<compile_context>
chip_gen: v6e
topology: v6e:2x2x1
jax: 0.10.0
libtpu: 0.0.40
codegen_flags: <defaults>
</compile_context>

<pallas_src>
import functools

import jax
import jax.numpy as jnp
from jax import lax
from jax.experimental import pallas as pl
from jax.experimental.pallas import tpu as pltpu


_N_OUT_PAD = 128   # fc2 output lanes padded to a full lane tile (unmasked stores)


# ----------------------------------------------------------------------------
# Pallas kernel 1: fused conv (kernel = 2*stride, VALID) + bias + ReLU on
# stride-grouped input.  One grid step = one sample.
#   g_ref : (1, GH, GW, GD)   GD = s*s*Cin   (block-grouped input)
#   w_ref : (4*GD, Cout)      patch rows ordered (dh, dw, ph, pw, cin)
#   b_ref : (1, Cout)         float32
#   o_ref : (1, OH, OW, Cout) OH = GH-1, OW = GW-1
# ----------------------------------------------------------------------------
def _conv2x2_relu_kernel(g_ref, w_ref, b_ref, o_ref, *, oh_total, ow_total):
    for oh in range(oh_total):
        row0 = g_ref[0, oh, :, :]        # (GW, GD)
        row1 = g_ref[0, oh + 1, :, :]    # (GW, GD)
        # Patch for output (oh, ow) = 2x2 neighbourhood of stride blocks.
        patches = jnp.concatenate(
            [row0[0:ow_total, :], row0[1:ow_total + 1, :],
             row1[0:ow_total, :], row1[1:ow_total + 1, :]],
            axis=-1)                                             # (OW, 4*GD)
        acc = jnp.dot(patches, w_ref[...], preferred_element_type=jnp.float32)
        acc = jnp.maximum(acc + b_ref[...], 0.0)
        o_ref[0, oh, :, :] = acc.astype(o_ref.dtype)


def conv2x2_relu(g, w, b):
    """g: (B, GH, GW, GD), w: (4*GD, Cout), b: (1, Cout) -> (B, GH-1, GW-1, Cout)."""
    B, GH, GW, GD = g.shape
    K, Cout = w.shape
    assert K == 4 * GD
    OH, OW = GH - 1, GW - 1
    kernel = functools.partial(_conv2x2_relu_kernel, oh_total=OH, ow_total=OW)
    flops = 2 * B * OH * OW * K * Cout
    bytes_accessed = (g.size * g.dtype.itemsize + w.size * w.dtype.itemsize
                      + b.size * b.dtype.itemsize
                      + B * OH * OW * Cout * g.dtype.itemsize)
    return pl.pallas_call(
        kernel,
        out_shape=jax.ShapeDtypeStruct((B, OH, OW, Cout), g.dtype),
        grid=(B,),
        in_specs=[
            pl.BlockSpec((1, GH, GW, GD), lambda i: (i, 0, 0, 0)),
            pl.BlockSpec((K, Cout), lambda i: (0, 0)),      # weights: resident
            pl.BlockSpec((1, Cout), lambda i: (0, 0)),
        ],
        out_specs=pl.BlockSpec((1, OH, OW, Cout), lambda i: (i, 0, 0, 0)),
        compiler_params=pltpu.CompilerParams(
            dimension_semantics=("parallel",)),
        cost_estimate=pl.CostEstimate(flops=flops, transcendentals=0,
                                      bytes_accessed=bytes_accessed),
    )(g, w, b)


# ----------------------------------------------------------------------------
# Pallas kernel 2: fused 3-layer MLP  (fc0+ReLU -> fc1+ReLU -> fc2),
# M-tiled over batch rows, weights resident in VMEM, f32 accumulation.
# ----------------------------------------------------------------------------
def _mlp3_kernel(x_ref, w0_ref, b0_ref, w1_ref, b1_ref, w2_ref, b2_ref, o_ref):
    h = jnp.dot(x_ref[...], w0_ref[...], preferred_element_type=jnp.float32)
    h = jnp.maximum(h + b0_ref[...], 0.0)
    h = jnp.dot(h.astype(w1_ref.dtype), w1_ref[...],
                preferred_element_type=jnp.float32)
    h = jnp.maximum(h + b1_ref[...], 0.0)
    q = jnp.dot(h.astype(w2_ref.dtype), w2_ref[...],
                preferred_element_type=jnp.float32)
    o_ref[...] = (q + b2_ref[...]).astype(o_ref.dtype)


def mlp3_fused(x, w0, b0, w1, b1, w2, b2, *, block_m=256):
    M, K = x.shape
    N0, N1, N2 = w0.shape[1], w1.shape[1], w2.shape[1]
    tm = min(block_m, M)            # full-extent block when M < block_m
    grid = (pl.cdiv(M, tm),)
    flops = 2 * M * (K * N0 + N0 * N1 + N1 * N2)
    bytes_accessed = (sum(a.size * a.dtype.itemsize
                          for a in (x, w0, b0, w1, b1, w2, b2)) + M * N2 * 4)
    return pl.pallas_call(
        _mlp3_kernel,
        out_shape=jax.ShapeDtypeStruct((M, N2), jnp.float32),
        grid=grid,
        in_specs=[
            pl.BlockSpec((tm, K), lambda i: (i, 0)),
            pl.BlockSpec((K, N0), lambda i: (0, 0)),        # weights: resident
            pl.BlockSpec((1, N0), lambda i: (0, 0)),
            pl.BlockSpec((N0, N1), lambda i: (0, 0)),
            pl.BlockSpec((1, N1), lambda i: (0, 0)),
            pl.BlockSpec((N1, N2), lambda i: (0, 0)),
            pl.BlockSpec((1, N2), lambda i: (0, 0)),
        ],
        out_specs=pl.BlockSpec((tm, N2), lambda i: (i, 0)),
        compiler_params=pltpu.CompilerParams(
            dimension_semantics=("parallel",),
            vmem_limit_bytes=40 * 1024 * 1024),
        cost_estimate=pl.CostEstimate(flops=flops, transcendentals=0,
                                      bytes_accessed=bytes_accessed),
    )(x, w0, b0, w1, b1, w2, b2)


# ----------------------------------------------------------------------------
# Thin XLA glue: stride-block regrouping (small reshape/transpose, no im2col).
# Inner block order is (ph, pw, c).
# ----------------------------------------------------------------------------
def _group_blocks_nchw(x, s):
    B, C, H, W = x.shape
    GH, GW = H // s, W // s
    g = x.reshape(B, C, GH, s, GW, s).transpose(0, 2, 4, 3, 5, 1)
    return g.reshape(B, GH, GW, s * s * C)


def _group_blocks_nhwc(h, s):
    B, H, W, C = h.shape
    GH, GW = H // s, W // s
    g = h.reshape(B, GH, s, GW, s, C).transpose(0, 1, 3, 2, 4, 5)
    return g.reshape(B, GH, GW, s * s * C)


# ----------------------------------------------------------------------------
# One-time parameter preparation (torch layout -> kernel layout).
# ----------------------------------------------------------------------------
def _prep_conv_weight(w, stride, dtype):
    """torch (Cout, Cin, 2s, 2s) -> (4*s*s*Cin, Cout), rows in (dh,dw,ph,pw,cin)."""
    Cout, Cin, KH, KW = w.shape
    s = stride
    assert KH == 2 * s and KW == 2 * s
    w6 = w.reshape(Cout, Cin, 2, s, 2, s)          # (co, ci, dh, ph, dw, pw)
    w6 = w6.transpose(2, 4, 3, 5, 1, 0)            # (dh, dw, ph, pw, ci, co)
    return w6.reshape(4 * s * s * Cin, Cout).astype(dtype)


def prepare_params(params, compute_dtype=jnp.float32):
    n_actions = params["fc2_w"].shape[0]
    assert n_actions <= _N_OUT_PAD
    # fc0 consumes the channel-last (h, w, c) flatten instead of torch's (c, h, w).
    w0 = params["fc0_w"].reshape(256, 32, 9, 9).transpose(0, 2, 3, 1)
    w0 = w0.reshape(256, 2592).T                                    # (2592, 256)
    w1 = params["fc1_w"].T                                          # (256, 128)
    w2 = jnp.zeros((128, _N_OUT_PAD), jnp.float32)
    w2 = w2.at[:, :n_actions].set(params["fc2_w"].T)                # (128, 128)
    b2 = jnp.zeros((1, _N_OUT_PAD), jnp.float32)
    b2 = b2.at[:, :n_actions].set(params["fc2_b"])
    return {
        "conv1_w": _prep_conv_weight(params["conv1_w"], 4, compute_dtype),
        "conv1_b": params["conv1_b"].reshape(1, -1).astype(jnp.float32),
        "conv2_w": _prep_conv_weight(params["conv2_w"], 2, compute_dtype),
        "conv2_b": params["conv2_b"].reshape(1, -1).astype(jnp.float32),
        "fc0_w": w0.astype(compute_dtype),
        "fc0_b": params["fc0_b"].reshape(1, -1).astype(jnp.float32),
        "fc1_w": w1.astype(compute_dtype),
        "fc1_b": params["fc1_b"].reshape(1, -1).astype(jnp.float32),
        "fc2_w": w2.astype(compute_dtype),
        "fc2_b": b2,
    }


# ----------------------------------------------------------------------------
# Synthetic torch-layout parameters (deterministic).
# ----------------------------------------------------------------------------
def init_params(key, n_input_channels, n_actions):
    ks = jax.random.split(key, 5)
    scale = 0.05
    return {
        "conv1_w": scale * jax.random.normal(ks[0], (16, n_input_channels, 8, 8), jnp.float32),
        "conv1_b": jnp.full((16,), 0.1, jnp.float32),
        "conv2_w": scale * jax.random.normal(ks[1], (32, 16, 4, 4), jnp.float32),
        "conv2_b": jnp.full((32,), 0.1, jnp.float32),
        "fc0_w": scale * jax.random.normal(ks[2], (256, 2592), jnp.float32),
        "fc0_b": jnp.full((256,), 0.1, jnp.float32),
        "fc1_w": scale * jax.random.normal(ks[3], (128, 256), jnp.float32),
        "fc1_b": jnp.zeros((128,), jnp.float32),
        "fc2_w": scale * jax.random.normal(ks[4], (n_actions, 128), jnp.float32),
        "fc2_b": jnp.zeros((n_actions,), jnp.float32),
    }


# ----------------------------------------------------------------------------
# QNetwork forward (Pallas-backed): conv1+ReLU -> conv2+ReLU -> fused MLP.
# ----------------------------------------------------------------------------
def qnetwork_forward(kp, x, *, n_actions):
    assert x.shape[2:] == (84, 84), "SmallAtariCNN expects 84x84 inputs (fc0 K=2592)"
    dtype = kp["conv1_w"].dtype
    x = x.astype(jnp.float32)                                   # x.float()
    g1 = _group_blocks_nchw(x, 4).astype(dtype)                 # (B, 21, 21, 64)
    h1 = conv2x2_relu(g1, kp["conv1_w"], kp["conv1_b"])         # (B, 20, 20, 16)
    g2 = _group_blocks_nhwc(h1, 2)                              # (B, 10, 10, 64)
    h2 = conv2x2_relu(g2, kp["conv2_w"], kp["conv2_b"])         # (B, 9, 9, 32)
    B = h2.shape[0]
    h_flat = h2.reshape(B, -1).astype(dtype)                    # (B, 2592), (h,w,c) order
    q_pad = mlp3_fused(h_flat, kp["fc0_w"], kp["fc0_b"],
                       kp["fc1_w"], kp["fc1_b"],
                       kp["fc2_w"], kp["fc2_b"])                # (B, 128)
    return q_pad[:, :n_actions]                                 # (B, n_actions)


# ----------------------------------------------------------------------------
# Pure-JAX reference (torch-layout params) for correctness check.
# ----------------------------------------------------------------------------
def qnetwork_reference(params, x):
    x = x.astype(jnp.float32)
    dn = lax.conv_dimension_numbers(x.shape, params["conv1_w"].shape, ("NCHW", "OIHW", "NCHW"))
    h = lax.conv_general_dilated(x, params["conv1_w"], (4, 4), "VALID", dimension_numbers=dn)
    h = jnp.maximum(h + params["conv1_b"][None, :, None, None], 0.0)
    dn = lax.conv_dimension_numbers(h.shape, params["conv2_w"].shape, ("NCHW", "OIHW", "NCHW"))
    h = lax.conv_general_dilated(h, params["conv2_w"], (2, 2), "VALID", dimension_numbers=dn)
    h = jnp.maximum(h + params["conv2_b"][None, :, None, None], 0.0)
    h = h.reshape(h.shape[0], -1)
    h = jnp.maximum(h @ params["fc0_w"].T + params["fc0_b"], 0.0)
    h = jnp.maximum(h @ params["fc1_w"].T + params["fc1_b"], 0.0)
    return h @ params["fc2_w"].T + params["fc2_b"]


if __name__ == "__main__":
    # Spatial size must be 84x84: SmallAtariCNN's Linear expects 2592 = 32*9*9.
    B, C_IN, N_ACTIONS = 2, 4, 6
    key = jax.random.PRNGKey(0)
    k_param, k_x = jax.random.split(key)
    params = init_params(k_param, C_IN, N_ACTIONS)
    x = jax.random.uniform(k_x, (B, C_IN, 84, 84), jnp.float32)

    # One-time weight relayout.  Use compute_dtype=jnp.bfloat16 on v6e/v7x for
    # ~2x DMA/MXU throughput (loosen the tolerance below if you do).
    kp = prepare_params(params, compute_dtype=jnp.float32)

    fwd = jax.jit(functools.partial(qnetwork_forward, n_actions=N_ACTIONS))
    q = jax.block_until_ready(fwd(kp, x))
    assert q.shape == (B, N_ACTIONS) and q.dtype == jnp.float32

    q_ref = jax.block_until_ready(qnetwork_reference(params, x))
    tol = 2e-4 if kp["fc0_w"].dtype == jnp.float32 else 3e-2
    assert jnp.allclose(q, q_ref, rtol=tol, atol=tol), "mismatch vs reference"

    print("KERNEL_OK")
</pallas_src>

<mosaic_0001>
module attributes {stable_mosaic.version = 11 : i64} {
  func.func @_conv2x2_relu_kernel(%arg0: i32, %arg1: memref<1x21x21x64xf32, #tpu.memory_space<vmem>>, %arg2: memref<256x16xf32, #tpu.memory_space<vmem>>, %arg3: memref<1x16xf32, #tpu.memory_space<vmem>>, %arg4: memref<1x20x20x16xf32, #tpu.memory_space<vmem>>) attributes {dimension_semantics = [#tpu.dimension_semantics<parallel>], iteration_bounds = array<i64: 2>, scalar_prefetch = 0 : i64, scratch_operands = 0 : i64, tpu.core_type = #tpu.core_type<tc>, window_params = [{transform_indices = @transform_0, window_bounds = array<i64: 1, 21, 21, 64>}, {pipeline_mode = #tpu.pipeline_mode<synchronous>, transform_indices = @transform_1, window_bounds = array<i64: 256, 16>}, {pipeline_mode = #tpu.pipeline_mode<synchronous>, transform_indices = @transform_2, window_bounds = array<i64: 1, 16>}, {transform_indices = @transform_3, window_bounds = array<i64: 1, 20, 20, 16>}]} {
    %c0 = arith.constant 0 : index
    %c0_0 = arith.constant 0 : index
    %c0_1 = arith.constant 0 : index
    %c0_2 = arith.constant 0 : index
    %0 = vector.load %arg1[%c0, %c0_0, %c0_1, %c0_2] : memref<1x21x21x64xf32, #tpu.memory_space<vmem>>, vector<1x1x21x64xf32>
    %1 = vector.shape_cast %0 : vector<1x1x21x64xf32> to vector<21x64xf32>
    %c0_3 = arith.constant 0 : index
    %c1 = arith.constant 1 : index
    %c0_4 = arith.constant 0 : index
    %c0_5 = arith.constant 0 : index
    %2 = vector.load %arg1[%c0_3, %c1, %c0_4, %c0_5] : memref<1x21x21x64xf32, #tpu.memory_space<vmem>>, vector<1x1x21x64xf32>
    %3 = vector.shape_cast %2 : vector<1x1x21x64xf32> to vector<21x64xf32>
    %4 = vector.extract_strided_slice %1 {offsets = [0, 0], sizes = [20, 64], strides = [1, 1]} : vector<21x64xf32> to vector<20x64xf32>
    %5 = vector.extract_strided_slice %1 {offsets = [1, 0], sizes = [20, 64], strides = [1, 1]} : vector<21x64xf32> to vector<20x64xf32>
    %6 = vector.extract_strided_slice %3 {offsets = [0, 0], sizes = [20, 64], strides = [1, 1]} : vector<21x64xf32> to vector<20x64xf32>
    %7 = vector.extract_strided_slice %3 {offsets = [1, 0], sizes = [20, 64], strides = [1, 1]} : vector<21x64xf32> to vector<20x64xf32>
    %8 = tpu.concatenate %4, %5, %6, %7 in 1 : vector<20x64xf32>, vector<20x64xf32>, vector<20x64xf32>, vector<20x64xf32> -> vector<20x256xf32>
    %c0_6 = arith.constant 0 : index
    %c0_7 = arith.constant 0 : index
    %9 = vector.load %arg2[%c0_6, %c0_7] : memref<256x16xf32, #tpu.memory_space<vmem>>, vector<256x16xf32>
    %cst = arith.constant dense<0.000000e+00> : vector<20x16xf32>
    %10 = tpu.matmul %8, %9, %cst {dimension_numbers = #tpu.dot_dimension_numbers<[1], [0], [0], [1], [0, 0, 1, 1], [], []>} : vector<20x256xf32>, vector<256x16xf32>, vector<20x16xf32> -> vector<20x16xf32>
    %c0_8 = arith.constant 0 : index
    %c0_9 = arith.constant 0 : index
    %11 = vector.load %arg3[%c0_8, %c0_9] : memref<1x16xf32, #tpu.memory_space<vmem>>, vector<1x16xf32>
    %12 = vector.broadcast %11 : vector<1x16xf32> to vector<20x16xf32>
    %13 = arith.addf %10, %12 : vector<20x16xf32>
    %cst_10 = arith.constant 0.000000e+00 : f32
    %14 = vector.broadcast %cst_10 : f32 to vector<20x16xf32>
    %15 = arith.maximumf %13, %14 : vector<20x16xf32>
    %c0_11 = arith.constant 0 : index
    %c0_12 = arith.constant 0 : index
    %c0_13 = arith.constant 0 : index
    %c0_14 = arith.constant 0 : index
    %16 = vector.load %arg4[%c0_11, %c0_12, %c0_13, %c0_14] : memref<1x20x20x16xf32, #tpu.memory_space<vmem>>, vector<1x1x20x16xf32>
    %17 = vector.shape_cast %16 : vector<1x1x20x16xf32> to vector<20x16xf32>
    %18 = vector.shape_cast %15 : vector<20x16xf32> to vector<1x1x20x16xf32>
    tpu.vector_store %arg4[%c0_11, %c0_12, %c0_13, %c0_14], %18 {strides = array<i32>} : memref<1x20x20x16xf32, #tpu.memory_space<vmem>>, vector<1x1x20x16xf32>,
    %c0_15 = arith.constant 0 : index
    %c1_16 = arith.constant 1 : index
    %c0_17 = arith.constant 0 : index
    %c0_18 = arith.constant 0 : index
    %19 = vector.load %arg1[%c0_15, %c1_16, %c0_17, %c0_18] : memref<1x21x21x64xf32, #tpu.memory_space<vmem>>, vector<1x1x21x64xf32>
    %20 = vector.shape_cast %19 : vector<1x1x21x64xf32> to vector<21x64xf32>
    %c0_19 = arith.constant 0 : index
    %c2 = arith.constant 2 : index
    %c0_20 = arith.constant 0 : index
    %c0_21 = arith.constant 0 : index
    %21 = vector.load %arg1[%c0_19, %c2, %c0_20, %c0_21] : memref<1x21x21x64xf32, #tpu.memory_space<vmem>>, vector<1x1x21x64xf32>
    %22 = vector.shape_cast %21 : vector<1x1x21x64xf32> to vector<21x64xf32>
    %23 = vector.extract_strided_slice %20 {offsets = [0, 0], sizes = [20, 64], strides = [1, 1]} : vector<21x64xf32> to vector<20x64xf32>
    %24 = vector.extract_strided_slice %20 {offsets = [1, 0], sizes = [20, 64], strides = [1, 1]} : vector<21x64xf32> to vector<20x64xf32>
    %25 = vector.extract_strided_slice %22 {offsets = [0, 0], sizes = [20, 64], strides = [1, 1]} : vector<21x64xf32> to vector<20x64xf32>
    %26 = vector.extract_strided_slice %22 {offsets = [1, 0], sizes = [20, 64], strides = [1, 1]} : vector<21x64xf32> to vector<20x64xf32>
    %27 = tpu.concatenate %23, %24, %25, %26 in 1 : vector<20x64xf32>, vector<20x64xf32>, vector<20x64xf32>, vector<20x64xf32> -> vector<20x256xf32>
    %c0_22 = arith.constant 0 : index
    %c0_23 = arith.constant 0 : index
    %28 = vector.load %arg2[%c0_22, %c0_23] : memref<256x16xf32, #tpu.memory_space<vmem>>, vector<256x16xf32>
    %cst_24 = arith.constant dense<0.000000e+00> : vector<20x16xf32>
    %29 = tpu.matmul %27, %28, %cst_24 {dimension_numbers = #tpu.dot_dimension_numbers<[1], [0], [0], [1], [0, 0, 1, 1], [], []>} : vector<20x256xf32>, vector<256x16xf32>, vector<20x16xf32> -> vector<20x16xf32>
    %c0_25 = arith.constant 0 : index
    %c0_26 = arith.constant 0 : index
    %30 = vector.load %arg3[%c0_25, %c0_26] : memref<1x16xf32, #tpu.memory_space<vmem>>, vector<1x16xf32>
    %31 = vector.broadcast %30 : vector<1x16xf32> to vector<20x16xf32>
    %32 = arith.addf %29, %31 : vector<20x16xf32>
    %cst_27 = arith.constant 0.000000e+00 : f32
    %33 = vector.broadcast %cst_27 : f32 to vector<20x16xf32>
    %34 = arith.maximumf %32, %33 : vector<20x16xf32>
    %c0_28 = arith.constant 0 : index
    %c1_29 = arith.constant 1 : index
    %c0_30 = arith.constant 0 : index
    %c0_31 = arith.constant 0 : index
    %35 = vector.load %arg4[%c0_28, %c1_29, %c0_30, %c0_31] : memref<1x20x20x16xf32, #tpu.memory_space<vmem>>, vector<1x1x20x16xf32>
    %36 = vector.shape_cast %35 : vector<1x1x20x16xf32> to vector<20x16xf32>
    %37 = vector.shape_cast %34 : vector<20x16xf32> to vector<1x1x20x16xf32>
    tpu.vector_store %arg4[%c0_28, %c1_29, %c0_30, %c0_31], %37 {strides = array<i32>} : memref<1x20x20x16xf32, #tpu.memory_space<vmem>>, vector<1x1x20x16xf32>,
    %c0_32 = arith.constant 0 : index
    %c2_33 = arith.constant 2 : index
    %c0_34 = arith.constant 0 : index
    %c0_35 = arith.constant 0 : index
    %38 = vector.load %arg1[%c0_32, %c2_33, %c0_34, %c0_35] : memref<1x21x21x64xf32, #tpu.memory_space<vmem>>, vector<1x1x21x64xf32>
    %39 = vector.shape_cast %38 : vector<1x1x21x64xf32> to vector<21x64xf32>
    %c0_36 = arith.constant 0 : index
    %c3 = arith.constant 3 : index
    %c0_37 = arith.constant 0 : index
    %c0_38 = arith.constant 0 : index
    %40 = vector.load %arg1[%c0_36, %c3, %c0_37, %c0_38] : memref<1x21x21x64xf32, #tpu.memory_space<vmem>>, vector<1x1x21x64xf32>
    %41 = vector.shape_cast %40 : vector<1x1x21x64xf32> to vector<21x64xf32>
    %42 = vector.extract_strided_slice %39 {offsets = [0, 0], sizes = [20, 64], strides = [1, 1]} : vector<21x64xf32> to vector<20x64xf32>
    %43 = vector.extract_strided_slice %39 {offsets = [1, 0], sizes = [20, 64], strides = [1, 1]} : vector<21x64xf32> to vector<20x64xf32>
    %44 = vector.extract_strided_slice %41 {offsets = [0, 0], sizes = [20, 64], strides = [1, 1]} : vector<21x64xf32> to vector<20x64xf32>
    %45 = vector.extract_strided_slice %41 {offsets = [1, 0], sizes = [20, 64], strides = [1, 1]} : vector<21x64xf32> to vector<20x64xf32>
    %46 = tpu.concatenate %42, %43, %44, %45 in 1 : vector<20x64xf32>, vector<20x64xf32>, vector<20x64xf32>, vector<20x64xf32> -> vector<20x256xf32>
    %c0_39 = arith.constant 0 : index
    %c0_40 = arith.constant 0 : index
    %47 = vector.load %arg2[%c0_39, %c0_40] : memref<256x16xf32, #tpu.memory_space<vmem>>, vector<256x16xf32>
    %cst_41 = arith.constant dense<0.000000e+00> : vector<20x16xf32>
    %48 = tpu.matmul %46, %47, %cst_41 {dimension_numbers = #tpu.dot_dimension_numbers<[1], [0], [0], [1], [0, 0, 1, 1], [], []>} : vector<20x256xf32>, vector<256x16xf32>, vector<20x16xf32> -> vector<20x16xf32>
    %c0_42 = arith.constant 0 : index
    %c0_43 = arith.constant 0 : index
    %49 = vector.load %arg3[%c0_42, %c0_43] : memref<1x16xf32, #tpu.memory_space<vmem>>, vector<1x16xf32>
    %50 = vector.broadcast %49 : vector<1x16xf32> to vector<20x16xf32>
    %51 = arith.addf %48, %50 : vector<20x16xf32>
    %cst_44 = arith.constant 0.000000e+00 : f32
    %52 = vector.broadcast %cst_44 : f32 to vector<20x16xf32>
    %53 = arith.maximumf %51, %52 : vector<20x16xf32>
    %c0_45 = arith.constant 0 : index
    %c2_46 = arith.constant 2 : index
    %c0_47 = arith.constant 0 : index
    %c0_48 = arith.constant 0 : index
    %54 = vector.load %arg4[%c0_45, %c2_46, %c0_47, %c0_48] : memref<1x20x20x16xf32, #tpu.memory_space<vmem>>, vector<1x1x20x16xf32>
    %55 = vector.shape_cast %54 : vector<1x1x20x16xf32> to vector<20x16xf32>
    %56 = vector.shape_cast %53 : vector<20x16xf32> to vector<1x1x20x16xf32>
    tpu.vector_store %arg4[%c0_45, %c2_46, %c0_47, %c0_48], %56 {strides = array<i32>} : memref<1x20x20x16xf32, #tpu.memory_space<vmem>>, vector<1x1x20x16xf32>,
    %c0_49 = arith.constant 0 : index
    %c3_50 = arith.constant 3 : index
    %c0_51 = arith.constant 0 : index
    %c0_52 = arith.constant 0 : index
    %57 = vector.load %arg1[%c0_49, %c3_50, %c0_51, %c0_52] : memref<1x21x21x64xf32, #tpu.memory_space<vmem>>, vector<1x1x21x64xf32>
    %58 = vector.shape_cast %57 : vector<1x1x21x64xf32> to vector<21x64xf32>
    %c0_53 = arith.constant 0 : index
    %c4 = arith.constant 4 : index
    %c0_54 = arith.constant 0 : index
    %c0_55 = arith.constant 0 : index
    %59 = vector.load %arg1[%c0_53, %c4, %c0_54, %c0_55] : memref<1x21x21x64xf32, #tpu.memory_space<vmem>>, vector<1x1x21x64xf32>
    %60 = vector.shape_cast %59 : vector<1x1x21x64xf32> to vector<21x64xf32>
    %61 = vector.extract_strided_slice %58 {offsets = [0, 0], sizes = [20, 64], strides = [1, 1]} : vector<21x64xf32> to vector<20x64xf32>
    %62 = vector.extract_strided_slice %58 {offsets = [1, 0], sizes = [20, 64], strides = [1, 1]} : vector<21x64xf32> to vector<20x64xf32>
    %63 = vector.extract_strided_slice %60 {offsets = [0, 0], sizes = [20, 64], strides = [1, 1]} : vector<21x64xf32> to vector<20x64xf32>
    %64 = vector.extract_strided_slice %60 {offsets = [1, 0], sizes = [20, 64], strides = [1, 1]} : vector<21x64xf32> to vector<20x64xf32>
    %65 = tpu.concatenate %61, %62, %63, %64 in 1 : vector<20x64xf32>, vector<20x64xf32>, vector<20x64xf32>, vector<20x64xf32> -> vector<20x256xf32>
    %c0_56 = arith.constant 0 : index
    %c0_57 = arith.constant 0 : index
    %66 = vector.load %arg2[%c0_56, %c0_57] : memref<256x16xf32, #tpu.memory_space<vmem>>, vector<256x16xf32>
    %cst_58 = arith.constant dense<0.000000e+00> : vector<20x16xf32>
    %67 = tpu.matmul %65, %66, %cst_58 {dimension_numbers = #tpu.dot_dimension_numbers<[1], [0], [0], [1], [0, 0, 1, 1], [], []>} : vector<20x256xf32>, vector<256x16xf32>, vector<20x16xf32> -> vector<20x16xf32>
    %c0_59 = arith.constant 0 : index
    %c0_60 = arith.constant 0 : index
    %68 = vector.load %arg3[%c0_59, %c0_60] : memref<1x16xf32, #tpu.memory_space<vmem>>, vector<1x16xf32>
    %69 = vector.broadcast %68 : vector<1x16xf32> to vector<20x16xf32>
    %70 = arith.addf %67, %69 : vector<20x16xf32>
    %cst_61 = arith.constant 0.000000e+00 : f32
    %71 = vector.broadcast %cst_61 : f32 to vector<20x16xf32>
    %72 = arith.maximumf %70, %71 : vector<20x16xf32>
    %c0_62 = arith.constant 0 : index
    %c3_63 = arith.constant 3 : index
    %c0_64 = arith.constant 0 : index
    %c0_65 = arith.constant 0 : index
    %73 = vector.load %arg4[%c0_62, %c3_63, %c0_64, %c0_65] : memref<1x20x20x16xf32, #tpu.memory_space<vmem>>, vector<1x1x20x16xf32>
    %74 = vector.shape_cast %73 : vector<1x1x20x16xf32> to vector<20x16xf32>
    %75 = vector.shape_cast %72 : vector<20x16xf32> to vector<1x1x20x16xf32>
    tpu.vector_store %arg4[%c0_62, %c3_63, %c0_64, %c0_65], %75 {strides = array<i32>} : memref<1x20x20x16xf32, #tpu.memory_space<vmem>>, vector<1x1x20x16xf32>,
    %c0_66 = arith.constant 0 : index
    %c4_67 = arith.constant 4 : index
    %c0_68 = arith.constant 0 : index
    %c0_69 = arith.constant 0 : index
    %76 = vector.load %arg1[%c0_66, %c4_67, %c0_68, %c0_69] : memref<1x21x21x64xf32, #tpu.memory_space<vmem>>, vector<1x1x21x64xf32>
    %77 = vector.shape_cast %76 : vector<1x1x21x64xf32> to vector<21x64xf32>
    %c0_70 = arith.constant 0 : index
    %c5 = arith.constant 5 : index
    %c0_71 = arith.constant 0 : index
    %c0_72 = arith.constant 0 : index
    %78 = vector.load %arg1[%c0_70, %c5, %c0_71, %c0_72] : memref<1x21x21x64xf32, #tpu.memory_space<vmem>>, vector<1x1x21x64xf32>
    %79 = vector.shape_cast %78 : vector<1x1x21x64xf32> to vector<21x64xf32>
    %80 = vector.extract_strided_slice %77 {offsets = [0, 0], sizes = [20, 64], strides = [1, 1]} : vector<21x64xf32> to vector<20x64xf32>
    %81 = vector.extract_strided_slice %77 {offsets = [1, 0], sizes = [20, 64], strides = [1, 1]} : vector<21x64xf32> to vector<20x64xf32>
    %82 = vector.extract_strided_slice %79 {offsets = [0, 0], sizes = [20, 64], strides = [1, 1]} : vector<21x64xf32> to vector<20x64xf32>
    %83 = vector.extract_strided_slice %79 {offsets = [1, 0], sizes = [20, 64], strides = [1, 1]} : vector<21x64xf32> to vector<20x64xf32>
    %84 = tpu.concatenate %80, %81, %82, %83 in 1 : vector<20x64xf32>, vector<20x64xf32>, vector<20x64xf32>, vector<20x64xf32> -> vector<20x256xf32>
    %c0_73 = arith.constant 0 : index
    %c0_74 = arith.constant 0 : index
    %85 = vector.load %arg2[%c0_73, %c0_74] : memref<256x16xf32, #tpu.memory_space<vmem>>, vector<256x16xf32>
    %cst_75 = arith.constant dense<0.000000e+00> : vector<20x16xf32>
    %86 = tpu.matmul %84, %85, %cst_75 {dimension_numbers = #tpu.dot_dimension_numbers<[1], [0], [0], [1], [0, 0, 1, 1], [], []>} : vector<20x256xf32>, vector<256x16xf32>, vector<20x16xf32> -> vector<20x16xf32>
    %c0_76 = arith.constant 0 : index
    %c0_77 = arith.constant 0 : index
    %87 = vector.load %arg3[%c0_76, %c0_77] : memref<1x16xf32, #tpu.memory_space<vmem>>, vector<1x16xf32>
    %88 = vector.broadcast %87 : vector<1x16xf32> to vector<20x16xf32>
    %89 = arith.addf %86, %88 : vector<20x16xf32>
    %cst_78 = arith.constant 0.000000e+00 : f32
    %90 = vector.broadcast %cst_78 : f32 to vector<20x16xf32>
    %91 = arith.maximumf %89, %90 : vector<20x16xf32>
    %c0_79 = arith.constant 0 : index
    %c4_80 = arith.constant 4 : index
    %c0_81 = arith.constant 0 : index
    %c0_82 = arith.constant 0 : index
    %92 = vector.load %arg4[%c0_79, %c4_80, %c0_81, %c0_82] : memref<1x20x20x16xf32, #tpu.memory_space<vmem>>, vector<1x1x20x16xf32>
    %93 = vector.shape_cast %92 : vector<1x1x20x16xf32> to vector<20x16xf32>
    %94 = vector.shape_cast %91 : vector<20x16xf32> to vector<1x1x20x16xf32>
    tpu.vector_store %arg4[%c0_79, %c4_80, %c0_81, %c0_82], %94 {strides = array<i32>} : memref<1x20x20x16xf32, #tpu.memory_space<vmem>>, vector<1x1x20x16xf32>,
    %c0_83 = arith.constant 0 : index
    %c5_84 = arith.constant 5 : index
    %c0_85 = arith.constant 0 : index
    %c0_86 = arith.constant 0 : index
    %95 = vector.load %arg1[%c0_83, %c5_84, %c0_85, %c0_86] : memref<1x21x21x64xf32, #tpu.memory_space<vmem>>, vector<1x1x21x64xf32>
    %96 = vector.shape_cast %95 : vector<1x1x21x64xf32> to vector<21x64xf32>
    %c0_87 = arith.constant 0 : index
    %c6 = arith.constant 6 : index
    %c0_88 = arith.constant 0 : index
    %c0_89 = arith.constant 0 : index
    %97 = vector.load %arg1[%c0_87, %c6, %c0_88, %c0_89] : memref<1x21x21x64xf32, #tpu.memory_space<vmem>>, vector<1x1x21x64xf32>
    %98 = vector.shape_cast %97 : vector<1x1x21x64xf32> to vector<21x64xf32>
    %99 = vector.extract_strided_slice %96 {offsets = [0, 0], sizes = [20, 64], strides = [1, 1]} : vector<21x64xf32> to vector<20x64xf32>
    %100 = vector.extract_strided_slice %96 {offsets = [1, 0], sizes = [20, 64], strides = [1, 1]} : vector<21x64xf32> to vector<20x64xf32>
    %101 = vector.extract_strided_slice %98 {offsets = [0, 0], sizes = [20, 64], strides = [1, 1]} : vector<21x64xf32> to vector<20x64xf32>
    %102 = vector.extract_strided_slice %98 {offsets = [1, 0], sizes = [20, 64], strides = [1, 1]} : vector<21x64xf32> to vector<20x64xf32>
    %103 = tpu.concatenate %99, %100, %101, %102 in 1 : vector<20x64xf32>, vector<20x64xf32>, vector<20x64xf32>, vector<20x64xf32> -> vector<20x256xf32>
    %c0_90 = arith.constant 0 : index
    %c0_91 = arith.constant 0 : index
    %104 = vector.load %arg2[%c0_90, %c0_91] : memref<256x16xf32, #tpu.memory_space<vmem>>, vector<256x16xf32>
    %cst_92 = arith.constant dense<0.000000e+00> : vector<20x16xf32>
    %105 = tpu.matmul %103, %104, %cst_92 {dimension_numbers = #tpu.dot_dimension_numbers<[1], [0], [0], [1], [0, 0, 1, 1], [], []>} : vector<20x256xf32>, vector<256x16xf32>, vector<20x16xf32> -> vector<20x16xf32>
    %c0_93 = arith.constant 0 : index
    %c0_94 = arith.constant 0 : index
    %106 = vector.load %arg3[%c0_93, %c0_94] : memref<1x16xf32, #tpu.memory_space<vmem>>, vector<1x16xf32>
    %107 = vector.broadcast %106 : vector<1x16xf32> to vector<20x16xf32>
    %108 = arith.addf %105, %107 : vector<20x16xf32>
    %cst_95 = arith.constant 0.000000e+00 : f32
    %109 = vector.broadcast %cst_95 : f32 to vector<20x16xf32>
    %110 = arith.maximumf %108, %109 : vector<20x16xf32>
    %c0_96 = arith.constant 0 : index
    %c5_97 = arith.constant 5 : index
    %c0_98 = arith.constant 0 : index
    %c0_99 = arith.constant 0 : index
    %111 = vector.load %arg4[%c0_96, %c5_97, %c0_98, %c0_99] : memref<1x20x20x16xf32, #tpu.memory_space<vmem>>, vector<1x1x20x16xf32>
    %112 = vector.shape_cast %111 : vector<1x1x20x16xf32> to vector<20x16xf32>
    %113 = vector.shape_cast %110 : vector<20x16xf32> to vector<1x1x20x16xf32>
    tpu.vector_store %arg4[%c0_96, %c5_97, %c0_98, %c0_99], %113 {strides = array<i32>} : memref<1x20x20x16xf32, #tpu.memory_space<vmem>>, vector<1x1x20x16xf32>,
    %c0_100 = arith.constant 0 : index
    %c6_101 = arith.constant 6 : index
    %c0_102 = arith.constant 0 : index
    %c0_103 = arith.constant 0 : index
    %114 = vector.load %arg1[%c0_100, %c6_101, %c0_102, %c0_103] : memref<1x21x21x64xf32, #tpu.memory_space<vmem>>, vector<1x1x21x64xf32>
    %115 = vector.shape_cast %114 : vector<1x1x21x64xf32> to vector<21x64xf32>
    %c0_104 = arith.constant 0 : index
    %c7 = arith.constant 7 : index
    %c0_105 = arith.constant 0 : index
    %c0_106 = arith.constant 0 : index
    %116 = vector.load %arg1[%c0_104, %c7, %c0_105, %c0_106] : memref<1x21x21x64xf32, #tpu.memory_space<vmem>>, vector<1x1x21x64xf32>
    %117 = vector.shape_cast %116 : vector<1x1x21x64xf32> to vector<21x64xf32>
    %118 = vector.extract_strided_slice %115 {offsets = [0, 0], sizes = [20, 64], strides = [1, 1]} : vector<21x64xf32> to vector<20x64xf32>
    %119 = vector.extract_strided_slice %115 {offsets = [1, 0], sizes = [20, 64], strides = [1, 1]} : vector<21x64xf32> to vector<20x64xf32>
    %120 = vector.extract_strided_slice %117 {offsets = [0, 0], sizes = [20, 64], strides = [1, 1]} : vector<21x64xf32> to vector<20x64xf32>
    %121 = vector.extract_strided_slice %117 {offsets = [1, 0], sizes = [20, 64], strides = [1, 1]} : vector<21x64xf32> to vector<20x64xf32>
    %122 = tpu.concatenate %118, %119, %120, %121 in 1 : vector<20x64xf32>, vector<20x64xf32>, vector<20x64xf32>, vector<20x64xf32> -> vector<20x256xf32>
    %c0_107 = arith.constant 0 : index
    %c0_108 = arith.constant 0 : index
    %123 = vector.load %arg2[%c0_107, %c0_108] : memref<256x16xf32, #tpu.memory_space<vmem>>, vector<256x16xf32>
    %cst_109 = arith.constant dense<0.000000e+00> : vector<20x16xf32>
    %124 = tpu.matmul %122, %123, %cst_109 {dimension_numbers = #tpu.dot_dimension_numbers<[1], [0], [0], [1], [0, 0, 1, 1], [], []>} : vector<20x256xf32>, vector<256x16xf32>, vector<20x16xf32> -> vector<20x16xf32>
    %c0_110 = arith.constant 0 : index
    %c0_111 = arith.constant 0 : index
    %125 = vector.load %arg3[%c0_110, %c0_111] : memref<1x16xf32, #tpu.memory_space<vmem>>, vector<1x16xf32>
    %126 = vector.broadcast %125 : vector<1x16xf32> to vector<20x16xf32>
    %127 = arith.addf %124, %126 : vector<20x16xf32>
    %cst_112 = arith.constant 0.000000e+00 : f32
    %128 = vector.broadcast %cst_112 : f32 to vector<20x16xf32>
    %129 = arith.maximumf %127, %128 : vector<20x16xf32>
    %c0_113 = arith.constant 0 : index
    %c6_114 = arith.constant 6 : index
    %c0_115 = arith.constant 0 : index
    %c0_116 = arith.constant 0 : index
    %130 = vector.load %arg4[%c0_113, %c6_114, %c0_115, %c0_116] : memref<1x20x20x16xf32, #tpu.memory_space<vmem>>, vector<1x1x20x16xf32>
    %131 = vector.shape_cast %130 : vector<1x1x20x16xf32> to vector<20x16xf32>
    %132 = vector.shape_cast %129 : vector<20x16xf32> to vector<1x1x20x16xf32>
    tpu.vector_store %arg4[%c0_113, %c6_114, %c0_115, %c0_116], %132 {strides = array<i32>} : memref<1x20x20x16xf32, #tpu.memory_space<vmem>>, vector<1x1x20x16xf32>,
    %c0_117 = arith.constant 0 : index
    %c7_118 = arith.constant 7 : index
    %c0_119 = arith.constant 0 : index
    %c0_120 = arith.constant 0 : index
    %133 = vector.load %arg1[%c0_117, %c7_118, %c0_119, %c0_120] : memref<1x21x21x64xf32, #tpu.memory_space<vmem>>, vector<1x1x21x64xf32>
    %134 = vector.shape_cast %133 : vector<1x1x21x64xf32> to vector<21x64xf32>
    %c0_121 = arith.constant 0 : index
    %c8 = arith.constant 8 : index
    %c0_122 = arith.constant 0 : index
    %c0_123 = arith.constant 0 : index
    %135 = vector.load %arg1[%c0_121, %c8, %c0_122, %c0_123] : memref<1x21x21x64xf32, #tpu.memory_space<vmem>>, vector<1x1x21x64xf32>
    %136 = vector.shape_cast %135 : vector<1x1x21x64xf32> to vector<21x64xf32>
    %137 = vector.extract_strided_slice %134 {offsets = [0, 0], sizes = [20, 64], strides = [1, 1]} : vector<21x64xf32> to vector<20x64xf32>
    %138 = vector.extract_strided_slice %134 {offsets = [1, 0], sizes = [20, 64], strides = [1, 1]} : vector<21x64xf32> to vector<20x64xf32>
    %139 = vector.extract_strided_slice %136 {offsets = [0, 0], sizes = [20, 64], strides = [1, 1]} : vector<21x64xf32> to vector<20x64xf32>
    %140 = vector.extract_strided_slice %136 {offsets = [1, 0], sizes = [20, 64], strides = [1, 1]} : vector<21x64xf32> to vector<20x64xf32>
    %141 = tpu.concatenate %137, %138, %139, %140 in 1 : vector<20x64xf32>, vector<20x64xf32>, vector<20x64xf32>, vector<20x64xf32> -> vector<20x256xf32>
    %c0_124 = arith.constant 0 : index
    %c0_125 = arith.constant 0 : index
    %142 = vector.load %arg2[%c0_124, %c0_125] : memref<256x16xf32, #tpu.memory_space<vmem>>, vector<256x16xf32>
    %cst_126 = arith.constant dense<0.000000e+00> : vector<20x16xf32>
    %143 = tpu.matmul %141, %142, %cst_126 {dimension_numbers = #tpu.dot_dimension_numbers<[1], [0], [0], [1], [0, 0, 1, 1], [], []>} : vector<20x256xf32>, vector<256x16xf32>, vector<20x16xf32> -> vector<20x16xf32>
    %c0_127 = arith.constant 0 : index
    %c0_128 = arith.constant 0 : index
    %144 = vector.load %arg3[%c0_127, %c0_128] : memref<1x16xf32, #tpu.memory_space<vmem>>, vector<1x16xf32>
    %145 = vector.broadcast %144 : vector<1x16xf32> to vector<20x16xf32>
    %146 = arith.addf %143, %145 : vector<20x16xf32>
    %cst_129 = arith.constant 0.000000e+00 : f32
    %147 = vector.broadcast %cst_129 : f32 to vector<20x16xf32>
    %148 = arith.maximumf %146, %147 : vector<20x16xf32>
    %c0_130 = arith.constant 0 : index
    %c7_131 = arith.constant 7 : index
    %c0_132 = arith.constant 0 : index
    %c0_133 = arith.constant 0 : index
    %149 = vector.load %arg4[%c0_130, %c7_131, %c0_132, %c0_133] : memref<1x20x20x16xf32, #tpu.memory_space<vmem>>, vector<1x1x20x16xf32>
    %150 = vector.shape_cast %149 : vector<1x1x20x16xf32> to vector<20x16xf32>
    %151 = vector.shape_cast %148 : vector<20x16xf32> to vector<1x1x20x16xf32>
    tpu.vector_store %arg4[%c0_130, %c7_131, %c0_132, %c0_133], %151 {strides = array<i32>} : memref<1x20x20x16xf32, #tpu.memory_space<vmem>>, vector<1x1x20x16xf32>,
    %c0_134 = arith.constant 0 : index
    %c8_135 = arith.constant 8 : index
    %c0_136 = arith.constant 0 : index
    %c0_137 = arith.constant 0 : index
    %152 = vector.load %arg1[%c0_134, %c8_135, %c0_136, %c0_137] : memref<1x21x21x64xf32, #tpu.memory_space<vmem>>, vector<1x1x21x64xf32>
    %153 = vector.shape_cast %152 : vector<1x1x21x64xf32> to vector<21x64xf32>
    %c0_138 = arith.constant 0 : index
    %c9 = arith.constant 9 : index
    %c0_139 = arith.constant 0 : index
    %c0_140 = arith.constant 0 : index
    %154 = vector.load %arg1[%c0_138, %c9, %c0_139, %c0_140] : memref<1x21x21x64xf32, #tpu.memory_space<vmem>>, vector<1x1x21x64xf32>
    %155 = vector.shape_cast %154 : vector<1x1x21x64xf32> to vector<21x64xf32>
    %156 = vector.extract_strided_slice %153 {offsets = [0, 0], sizes = [20, 64], strides = [1, 1]} : vector<21x64xf32> to vector<20x64xf32>
    %157 = vector.extract_strided_slice %153 {offsets = [1, 0], sizes = [20, 64], strides = [1, 1]} : vector<21x64xf32> to vector<20x64xf32>
    %158 = vector.extract_strided_slice %155 {offsets = [0, 0], sizes = [20, 64], strides = [1, 1]} : vector<21x64xf32> to vector<20x64xf32>
    %159 = vector.extract_strided_slice %155 {offsets = [1, 0], sizes = [20, 64], strides = [1, 1]} : vector<21x64xf32> to vector<20x64xf32>
    %160 = tpu.concatenate %156, %157, %158, %159 in 1 : vector<20x64xf32>, vector<20x64xf32>, vector<20x64xf32>, vector<20x64xf32> -> vector<20x256xf32>
    %c0_141 = arith.constant 0 : index
    %c0_142 = arith.constant 0 : index
    %161 = vector.load %arg2[%c0_141, %c0_142] : memref<256x16xf32, #tpu.memory_space<vmem>>, vector<256x16xf32>
    %cst_143 = arith.constant dense<0.000000e+00> : vector<20x16xf32>
    %162 = tpu.matmul %160, %161, %cst_143 {dimension_numbers = #tpu.dot_dimension_numbers<[1], [0], [0], [1], [0, 0, 1, 1], [], []>} : vector<20x256xf32>, vector<256x16xf32>, vector<20x16xf32> -> vector<20x16xf32>
    %c0_144 = arith.constant 0 : index
    %c0_145 = arith.constant 0 : index
    %163 = vector.load %arg3[%c0_144, %c0_145] : memref<1x16xf32, #tpu.memory_space<vmem>>, vector<1x16xf32>
    %164 = vector.broadcast %163 : vector<1x16xf32> to vector<20x16xf32>
    %165 = arith.addf %162, %164 : vector<20x16xf32>
    %cst_146 = arith.constant 0.000000e+00 : f32
    %166 = vector.broadcast %cst_146 : f32 to vector<20x16xf32>
    %167 = arith.maximumf %165, %166 : vector<20x16xf32>
    %c0_147 = arith.constant 0 : index
    %c8_148 = arith.constant 8 : index
    %c0_149 = arith.constant 0 : index
    %c0_150 = arith.constant 0 : index
    %168 = vector.load %arg4[%c0_147, %c8_148, %c0_149, %c0_150] : memref<1x20x20x16xf32, #tpu.memory_space<vmem>>, vector<1x1x20x16xf32>
    %169 = vector.shape_cast %168 : vector<1x1x20x16xf32> to vector<20x16xf32>
    %170 = vector.shape_cast %167 : vector<20x16xf32> to vector<1x1x20x16xf32>
    tpu.vector_store %arg4[%c0_147, %c8_148, %c0_149, %c0_150], %170 {strides = array<i32>} : memref<1x20x20x16xf32, #tpu.memory_space<vmem>>, vector<1x1x20x16xf32>,
    %c0_151 = arith.constant 0 : index
    %c9_152 = arith.constant 9 : index
    %c0_153 = arith.constant 0 : index
    %c0_154 = arith.constant 0 : index
    %171 = vector.load %arg1[%c0_151, %c9_152, %c0_153, %c0_154] : memref<1x21x21x64xf32, #tpu.memory_space<vmem>>, vector<1x1x21x64xf32>
    %172 = vector.shape_cast %171 : vector<1x1x21x64xf32> to vector<21x64xf32>
    %c0_155 = arith.constant 0 : index
    %c10 = arith.constant 10 : index
    %c0_156 = arith.constant 0 : index
    %c0_157 = arith.constant 0 : index
    %173 = vector.load %arg1[%c0_155, %c10, %c0_156, %c0_157] : memref<1x21x21x64xf32, #tpu.memory_space<vmem>>, vector<1x1x21x64xf32>
    %174 = vector.shape_cast %173 : vector<1x1x21x64xf32> to vector<21x64xf32>
    %175 = vector.extract_strided_slice %172 {offsets = [0, 0], sizes = [20, 64], strides = [1, 1]} : vector<21x64xf32> to vector<20x64xf32>
    %176 = vector.extract_strided_slice %172 {offsets = [1, 0], sizes = [20, 64], strides = [1, 1]} : vector<21x64xf32> to vector<20x64xf32>
    %177 = vector.extract_strided_slice %174 {offsets = [0, 0], sizes = [20, 64], strides = [1, 1]} : vector<21x64xf32> to vector<20x64xf32>
    %178 = vector.extract_strided_slice %174 {offsets = [1, 0], sizes = [20, 64], strides = [1, 1]} : vector<21x64xf32> to vector<20x64xf32>
    %179 = tpu.concatenate %175, %176, %177, %178 in 1 : vector<20x64xf32>, vector<20x64xf32>, vector<20x64xf32>, vector<20x64xf32> -> vector<20x256xf32>
    %c0_158 = arith.constant 0 : index
    %c0_159 = arith.constant 0 : index
    %180 = vector.load %arg2[%c0_158, %c0_159] : memref<256x16xf32, #tpu.memory_space<vmem>>, vector<256x16xf32>
    %cst_160 = arith.constant dense<0.000000e+00> : vector<20x16xf32>
    %181 = tpu.matmul %179, %180, %cst_160 {dimension_numbers = #tpu.dot_dimension_numbers<[1], [0], [0], [1], [0, 0, 1, 1], [], []>} : vector<20x256xf32>, vector<256x16xf32>, vector<20x16xf32> -> vector<20x16xf32>
    %c0_161 = arith.constant 0 : index
    %c0_162 = arith.constant 0 : index
    %182 = vector.load %arg3[%c0_161, %c0_162] : memref<1x16xf32, #tpu.memory_space<vmem>>, vector<1x16xf32>
    %183 = vector.broadcast %182 : vector<1x16xf32> to vector<20x16xf32>
    %184 = arith.addf %181, %183 : vector<20x16xf32>
    %cst_163 = arith.constant 0.000000e+00 : f32
    %185 = vector.broadcast %cst_163 : f32 to vector<20x16xf32>
    %186 = arith.maximumf %184, %185 : vector<20x16xf32>
    %c0_164 = arith.constant 0 : index
    %c9_165 = arith.constant 9 : index
    %c0_166 = arith.constant 0 : index
    %c0_167 = arith.constant 0 : index
    %187 = vector.load %arg4[%c0_164, %c9_165, %c0_166, %c0_167] : memref<1x20x20x16xf32, #tpu.memory_space<vmem>>, vector<1x1x20x16xf32>
    %188 = vector.shape_cast %187 : vector<1x1x20x16xf32> to vector<20x16xf32>
    %189 = vector.shape_cast %186 : vector<20x16xf32> to vector<1x1x20x16xf32>
    tpu.vector_store %arg4[%c0_164, %c9_165, %c0_166, %c0_167], %189 {strides = array<i32>} : memref<1x20x20x16xf32, #tpu.memory_space<vmem>>, vector<1x1x20x16xf32>,
    %c0_168 = arith.constant 0 : index
    %c10_169 = arith.constant 10 : index
    %c0_170 = arith.constant 0 : index
    %c0_171 = arith.constant 0 : index
    %190 = vector.load %arg1[%c0_168, %c10_169, %c0_170, %c0_171] : memref<1x21x21x64xf32, #tpu.memory_space<vmem>>, vector<1x1x21x64xf32>
    %191 = vector.shape_cast %190 : vector<1x1x21x64xf32> to vector<21x64xf32>
    %c0_172 = arith.constant 0 : index
    %c11 = arith.constant 11 : index
    %c0_173 = arith.constant 0 : index
    %c0_174 = arith.constant 0 : index
    %192 = vector.load %arg1[%c0_172, %c11, %c0_173, %c0_174] : memref<1x21x21x64xf32, #tpu.memory_space<vmem>>, vector<1x1x21x64xf32>
    %193 = vector.shape_cast %192 : vector<1x1x21x64xf32> to vector<21x64xf32>
    %194 = vector.extract_strided_slice %191 {offsets = [0, 0], sizes = [20, 64], strides = [1, 1]} : vector<21x64xf32> to vector<20x64xf32>
    %195 = vector.extract_strided_slice %191 {offsets = [1, 0], sizes = [20, 64], strides = [1, 1]} : vector<21x64xf32> to vector<20x64xf32>
    %196 = vector.extract_strided_slice %193 {offsets = [0, 0], sizes = [20, 64], strides = [1, 1]} : vector<21x64xf32> to vector<20x64xf32>
    %197 = vector.extract_strided_slice %193 {offsets = [1, 0], sizes = [20, 64], strides = [1, 1]} : vector<21x64xf32> to vector<20x64xf32>
    %198 = tpu.concatenate %194, %195, %196, %197 in 1 : vector<20x64xf32>, vector<20x64xf32>, vector<20x64xf32>, vector<20x64xf32> -> vector<20x256xf32>
    %c0_175 = arith.constant 0 : index
    %c0_176 = arith.constant 0 : index
    %199 = vector.load %arg2[%c0_175, %c0_176] : memref<256x16xf32, #tpu.memory_space<vmem>>, vector<256x16xf32>
    %cst_177 = arith.constant dense<0.000000e+00> : vector<20x16xf32>
    %200 = tpu.matmul %198, %199, %cst_177 {dimension_numbers = #tpu.dot_dimension_numbers<[1], [0], [0], [1], [0, 0, 1, 1], [], []>} : vector<20x256xf32>, vector<256x16xf32>, vector<20x16xf32> -> vector<20x16xf32>
    %c0_178 = arith.constant 0 : index
    %c0_179 = arith.constant 0 : index
    %201 = vector.load %arg3[%c0_178, %c0_179] : memref<1x16xf32, #tpu.memory_space<vmem>>, vector<1x16xf32>
    %202 = vector.broadcast %201 : vector<1x16xf32> to vector<20x16xf32>
    %203 = arith.addf %200, %202 : vector<20x16xf32>
    %cst_180 = arith.constant 0.000000e+00 : f32
    %204 = vector.broadcast %cst_180 : f32 to vector<20x16xf32>
    %205 = arith.maximumf %203, %204 : vector<20x16xf32>
    %c0_181 = arith.constant 0 : index
    %c10_182 = arith.constant 10 : index
    %c0_183 = arith.constant 0 : index
    %c0_184 = arith.constant 0 : index
    %206 = vector.load %arg4[%c0_181, %c10_182, %c0_183, %c0_184] : memref<1x20x20x16xf32, #tpu.memory_space<vmem>>, vector<1x1x20x16xf32>
    %207 = vector.shape_cast %206 : vector<1x1x20x16xf32> to vector<20x16xf32>
    %208 = vector.shape_cast %205 : vector<20x16xf32> to vector<1x1x20x16xf32>
    tpu.vector_store %arg4[%c0_181, %c10_182, %c0_183, %c0_184], %208 {strides = array<i32>} : memref<1x20x20x16xf32, #tpu.memory_space<vmem>>, vector<1x1x20x16xf32>,
    %c0_185 = arith.constant 0 : index
    %c11_186 = arith.constant 11 : index
    %c0_187 = arith.constant 0 : index
    %c0_188 = arith.constant 0 : index
    %209 = vector.load %arg1[%c0_185, %c11_186, %c0_187, %c0_188] : memref<1x21x21x64xf32, #tpu.memory_space<vmem>>, vector<1x1x21x64xf32>
    %210 = vector.shape_cast %209 : vector<1x1x21x64xf32> to vector<21x64xf32>
    %c0_189 = arith.constant 0 : index
    %c12 = arith.constant 12 : index
    %c0_190 = arith.constant 0 : index
    %c0_191 = arith.constant 0 : index
    %211 = vector.load %arg1[%c0_189, %c12, %c0_190, %c0_191] : memref<1x21x21x64xf32, #tpu.memory_space<vmem>>, vector<1x1x21x64xf32>
    %212 = vector.shape_cast %211 : vector<1x1x21x64xf32> to vector<21x64xf32>
    %213 = vector.extract_strided_slice %210 {offsets = [0, 0], sizes = [20, 64], strides = [1, 1]} : vector<21x64xf32> to vector<20x64xf32>
    %214 = vector.extract_strided_slice %210 {offsets = [1, 0], sizes = [20, 64], strides = [1, 1]} : vector<21x64xf32> to vector<20x64xf32>
    %215 = vector.extract_strided_slice %212 {offsets = [0, 0], sizes = [20, 64], strides = [1, 1]} : vector<21x64xf32> to vector<20x64xf32>
    %216 = vector.extract_strided_slice %212 {offsets = [1, 0], sizes = [20, 64], strides = [1, 1]} : vector<21x64xf32> to vector<20x64xf32>
    %217 = tpu.concatenate %213, %214, %215, %216 in 1 : vector<20x64xf32>, vector<20x64xf32>, vector<20x64xf32>, vector<20x64xf32> -> vector<20x256xf32>
    %c0_192 = arith.constant 0 : index
    %c0_193 = arith.constant 0 : index
    %218 = vector.load %arg2[%c0_192, %c0_193] : memref<256x16xf32, #tpu.memory_space<vmem>>, vector<256x16xf32>
    %cst_194 = arith.constant dense<0.000000e+00> : vector<20x16xf32>
    %219 = tpu.matmul %217, %218, %cst_194 {dimension_numbers = #tpu.dot_dimension_numbers<[1], [0], [0], [1], [0, 0, 1, 1], [], []>} : vector<20x256xf32>, vector<256x16xf32>, vector<20x16xf32> -> vector<20x16xf32>
    %c0_195 = arith.constant 0 : index
    %c0_196 = arith.constant 0 : index
    %220 = vector.load %arg3[%c0_195, %c0_196] : memref<1x16xf32, #tpu.memory_space<vmem>>, vector<1x16xf32>
    %221 = vector.broadcast %220 : vector<1x16xf32> to vector<20x16xf32>
    %222 = arith.addf %219, %221 : vector<20x16xf32>
    %cst_197 = arith.constant 0.000000e+00 : f32
    %223 = vector.broadcast %cst_197 : f32 to vector<20x16xf32>
    %224 = arith.maximumf %222, %223 : vector<20x16xf32>
    %c0_198 = arith.constant 0 : index
    %c11_199 = arith.constant 11 : index
    %c0_200 = arith.constant 0 : index
    %c0_201 = arith.constant 0 : index
    %225 = vector.load %arg4[%c0_198, %c11_199, %c0_200, %c0_201] : memref<1x20x20x16xf32, #tpu.memory_space<vmem>>, vector<1x1x20x16xf32>
    %226 = vector.shape_cast %225 : vector<1x1x20x16xf32> to vector<20x16xf32>
    %227 = vector.shape_cast %224 : vector<20x16xf32> to vector<1x1x20x16xf32>
    tpu.vector_store %arg4[%c0_198, %c11_199, %c0_200, %c0_201], %227 {strides = array<i32>} : memref<1x20x20x16xf32, #tpu.memory_space<vmem>>, vector<1x1x20x16xf32>,
    %c0_202 = arith.constant 0 : index
    %c12_203 = arith.constant 12 : index
    %c0_204 = arith.constant 0 : index
    %c0_205 = arith.constant 0 : index
    %228 = vector.load %arg1[%c0_202, %c12_203, %c0_204, %c0_205] : memref<1x21x21x64xf32, #tpu.memory_space<vmem>>, vector<1x1x21x64xf32>
    %229 = vector.shape_cast %228 : vector<1x1x21x64xf32> to vector<21x64xf32>
    %c0_206 = arith.constant 0 : index
    %c13 = arith.constant 13 : index
    %c0_207 = arith.constant 0 : index
    %c0_208 = arith.constant 0 : index
    %230 = vector.load %arg1[%c0_206, %c13, %c0_207, %c0_208] : memref<1x21x21x64xf32, #tpu.memory_space<vmem>>, vector<1x1x21x64xf32>
    %231 = vector.shape_cast %230 : vector<1x1x21x64xf32> to vector<21x64xf32>
    %232 = vector.extract_strided_slice %229 {offsets = [0, 0], sizes = [20, 64], strides = [1, 1]} : vector<21x64xf32> to vector<20x64xf32>
    %233 = vector.extract_strided_slice %229 {offsets = [1, 0], sizes = [20, 64], strides = [1, 1]} : vector<21x64xf32> to vector<20x64xf32>
    %234 = vector.extract_strided_slice %231 {offsets = [0, 0], sizes = [20, 64], strides = [1, 1]} : vector<21x64xf32> to vector<20x64xf32>
    %235 = vector.extract_strided_slice %231 {offsets = [1, 0], sizes = [20, 64], strides = [1, 1]} : vector<21x64xf32> to vector<20x64xf32>
    %236 = tpu.concatenate %232, %233, %234, %235 in 1 : vector<20x64xf32>, vector<20x64xf32>, vector<20x64xf32>, vector<20x64xf32> -> vector<20x256xf32>
    %c0_209 = arith.constant 0 : index
    %c0_210 = arith.constant 0 : index
    %237 = vector.load %arg2[%c0_209, %c0_210] : memref<256x16xf32, #tpu.memory_space<vmem>>, vector<256x16xf32>
    %cst_211 = arith.constant dense<0.000000e+00> : vector<20x16xf32>
    %238 = tpu.matmul %236, %237, %cst_211 {dimension_numbers = #tpu.dot_dimension_numbers<[1], [0], [0], [1], [0, 0, 1, 1], [], []>} : vector<20x256xf32>, vector<256x16xf32>, vector<20x16xf32> -> vector<20x16xf32>
    %c0_212 = arith.constant 0 : index
    %c0_213 = arith.constant 0 : index
    %239 = vector.load %arg3[%c0_212, %c0_213] : memref<1x16xf32, #tpu.memory_space<vmem>>, vector<1x16xf32>
    %240 = vector.broadcast %239 : vector<1x16xf32> to vector<20x16xf32>
    %241 = arith.addf %238, %240 : vector<20x16xf32>
    %cst_214 = arith.constant 0.000000e+00 : f32
    %242 = vector.broadcast %cst_214 : f32 to vector<20x16xf32>
    %243 = arith.maximumf %241, %242 : vector<20x16xf32>
    %c0_215 = arith.constant 0 : index
    %c12_216 = arith.constant 12 : index
    %c0_217 = arith.constant 0 : index
    %c0_218 = arith.constant 0 : index
    %244 = vector.load %arg4[%c0_215, %c12_216, %c0_217, %c0_218] : memref<1x20x20x16xf32, #tpu.memory_space<vmem>>, vector<1x1x20x16xf32>
    %245 = vector.shape_cast %244 : vector<1x1x20x16xf32> to vector<20x16xf32>
    %246 = vector.shape_cast %243 : vector<20x16xf32> to vector<1x1x20x16xf32>
    tpu.vector_store %arg4[%c0_215, %c12_216, %c0_217, %c0_218], %246 {strides = array<i32>} : memref<1x20x20x16xf32, #tpu.memory_space<vmem>>, vector<1x1x20x16xf32>,
    %c0_219 = arith.constant 0 : index
    %c13_220 = arith.constant 13 : index
    %c0_221 = arith.constant 0 : index
    %c0_222 = arith.constant 0 : index
    %247 = vector.load %arg1[%c0_219, %c13_220, %c0_221, %c0_222] : memref<1x21x21x64xf32, #tpu.memory_space<vmem>>, vector<1x1x21x64xf32>
    %248 = vector.shape_cast %247 : vector<1x1x21x64xf32> to vector<21x64xf32>
    %c0_223 = arith.constant 0 : index
    %c14 = arith.constant 14 : index
    %c0_224 = arith.constant 0 : index
    %c0_225 = arith.constant 0 : index
    %249 = vector.load %arg1[%c0_223, %c14, %c0_224, %c0_225] : memref<1x21x21x64xf32, #tpu.memory_space<vmem>>, vector<1x1x21x64xf32>
    %250 = vector.shape_cast %249 : vector<1x1x21x64xf32> to vector<21x64xf32>
    %251 = vector.extract_strided_slice %248 {offsets = [0, 0], sizes = [20, 64], strides = [1, 1]} : vector<21x64xf32> to vector<20x64xf32>
    %252 = vector.extract_strided_slice %248 {offsets = [1, 0], sizes = [20, 64], strides = [1, 1]} : vector<21x64xf32> to vector<20x64xf32>
    %253 = vector.extract_strided_slice %250 {offsets = [0, 0], sizes = [20, 64], strides = [1, 1]} : vector<21x64xf32> to vector<20x64xf32>
    %254 = vector.extract_strided_slice %250 {offsets = [1, 0], sizes = [20, 64], strides = [1, 1]} : vector<21x64xf32> to vector<20x64xf32>
    %255 = tpu.concatenate %251, %252, %253, %254 in 1 : vector<20x64xf32>, vector<20x64xf32>, vector<20x64xf32>, vector<20x64xf32> -> vector<20x256xf32>
    %c0_226 = arith.constant 0 : index
    %c0_227 = arith.constant 0 : index
    %256 = vector.load %arg2[%c0_226, %c0_227] : memref<256x16xf32, #tpu.memory_space<vmem>>, vector<256x16xf32>
    %cst_228 = arith.constant dense<0.000000e+00> : vector<20x16xf32>
    %257 = tpu.matmul %255, %256, %cst_228 {dimension_numbers = #tpu.dot_dimension_numbers<[1], [0], [0], [1], [0, 0, 1, 1], [], []>} : vector<20x256xf32>, vector<256x16xf32>, vector<20x16xf32> -> vector<20x16xf32>
    %c0_229 = arith.constant 0 : index
    %c0_230 = arith.constant 0 : index
    %258 = vector.load %arg3[%c0_229, %c0_230] : memref<1x16xf32, #tpu.memory_space<vmem>>, vector<1x16xf32>
    %259 = vector.broadcast %258 : vector<1x16xf32> to vector<20x16xf32>
    %260 = arith.addf %257, %259 : vector<20x16xf32>
    %cst_231 = arith.constant 0.000000e+00 : f32
    %261 = vector.broadcast %cst_231 : f32 to vector<20x16xf32>
    %262 = arith.maximumf %260, %261 : vector<20x16xf32>
    %c0_232 = arith.constant 0 : index
    %c13_233 = arith.constant 13 : index
    %c0_234 = arith.constant 0 : index
    %c0_235 = arith.constant 0 : index
    %263 = vector.load %arg4[%c0_232, %c13_233, %c0_234, %c0_235] : memref<1x20x20x16xf32, #tpu.memory_space<vmem>>, vector<1x1x20x16xf32>
    %264 = vector.shape_cast %263 : vector<1x1x20x16xf32> to vector<20x16xf32>
    %265 = vector.shape_cast %262 : vector<20x16xf32> to vector<1x1x20x16xf32>
    tpu.vector_store %arg4[%c0_232, %c13_233, %c0_234, %c0_235], %265 {strides = array<i32>} : memref<1x20x20x16xf32, #tpu.memory_space<vmem>>, vector<1x1x20x16xf32>,
    %c0_236 = arith.constant 0 : index
    %c14_237 = arith.constant 14 : index
    %c0_238 = arith.constant 0 : index
    %c0_239 = arith.constant 0 : index
    %266 = vector.load %arg1[%c0_236, %c14_237, %c0_238, %c0_239] : memref<1x21x21x64xf32, #tpu.memory_space<vmem>>, vector<1x1x21x64xf32>
    %267 = vector.shape_cast %266 : vector<1x1x21x64xf32> to vector<21x64xf32>
    %c0_240 = arith.constant 0 : index
    %c15 = arith.constant 15 : index
    %c0_241 = arith.constant 0 : index
    %c0_242 = arith.constant 0 : index
    %268 = vector.load %arg1[%c0_240, %c15, %c0_241, %c0_242] : memref<1x21x21x64xf32, #tpu.memory_space<vmem>>, vector<1x1x21x64xf32>
    %269 = vector.shape_cast %268 : vector<1x1x21x64xf32> to vector<21x64xf32>
    %270 = vector.extract_strided_slice %267 {offsets = [0, 0], sizes = [20, 64], strides = [1, 1]} : vector<21x64xf32> to vector<20x64xf32>
    %271 = vector.extract_strided_slice %267 {offsets = [1, 0], sizes = [20, 64], strides = [1, 1]} : vector<21x64xf32> to vector<20x64xf32>
    %272 = vector.extract_strided_slice %269 {offsets = [0, 0], sizes = [20, 64], strides = [1, 1]} : vector<21x64xf32> to vector<20x64xf32>
    %273 = vector.extract_strided_slice %269 {offsets = [1, 0], sizes = [20, 64], strides = [1, 1]} : vector<21x64xf32> to vector<20x64xf32>
    %274 = tpu.concatenate %270, %271, %272, %273 in 1 : vector<20x64xf32>, vector<20x64xf32>, vector<20x64xf32>, vector<20x64xf32> -> vector<20x256xf32>
    %c0_243 = arith.constant 0 : index
    %c0_244 = arith.constant 0 : index
    %275 = vector.load %arg2[%c0_243, %c0_244] : memref<256x16xf32, #tpu.memory_space<vmem>>, vector<256x16xf32>
    %cst_245 = arith.constant dense<0.000000e+00> : vector<20x16xf32>
    %276 = tpu.matmul %274, %275, %cst_245 {dimension_numbers = #tpu.dot_dimension_numbers<[1], [0], [0], [1], [0, 0, 1, 1], [], []>} : vector<20x256xf32>, vector<256x16xf32>, vector<20x16xf32> -> vector<20x16xf32>
    %c0_246 = arith.constant 0 : index
    %c0_247 = arith.constant 0 : index
    %277 = vector.load %arg3[%c0_246, %c0_247] : memref<1x16xf32, #tpu.memory_space<vmem>>, vector<1x16xf32>
    %278 = vector.broadcast %277 : vector<1x16xf32> to vector<20x16xf32>
    %279 = arith.addf %276, %278 : vector<20x16xf32>
    %cst_248 = arith.constant 0.000000e+00 : f32
    %280 = vector.broadcast %cst_248 : f32 to vector<20x16xf32>
    %281 = arith.maximumf %279, %280 : vector<20x16xf32>
    %c0_249 = arith.constant 0 : index
    %c14_250 = arith.constant 14 : index
    %c0_251 = arith.constant 0 : index
    %c0_252 = arith.constant 0 : index
    %282 = vector.load %arg4[%c0_249, %c14_250, %c0_251, %c0_252] : memref<1x20x20x16xf32, #tpu.memory_space<vmem>>, vector<1x1x20x16xf32>
    %283 = vector.shape_cast %282 : vector<1x1x20x16xf32> to vector<20x16xf32>
    %284 = vector.shape_cast %281 : vector<20x16xf32> to vector<1x1x20x16xf32>
    tpu.vector_store %arg4[%c0_249, %c14_250, %c0_251, %c0_252], %284 {strides = array<i32>} : memref<1x20x20x16xf32, #tpu.memory_space<vmem>>, vector<1x1x20x16xf32>,
    %c0_253 = arith.constant 0 : index
    %c15_254 = arith.constant 15 : index
    %c0_255 = arith.constant 0 : index
    %c0_256 = arith.constant 0 : index
    %285 = vector.load %arg1[%c0_253, %c15_254, %c0_255, %c0_256] : memref<1x21x21x64xf32, #tpu.memory_space<vmem>>, vector<1x1x21x64xf32>
    %286 = vector.shape_cast %285 : vector<1x1x21x64xf32> to vector<21x64xf32>
    %c0_257 = arith.constant 0 : index
    %c16 = arith.constant 16 : index
    %c0_258 = arith.constant 0 : index
    %c0_259 = arith.constant 0 : index
    %287 = vector.load %arg1[%c0_257, %c16, %c0_258, %c0_259] : memref<1x21x21x64xf32, #tpu.memory_space<vmem>>, vector<1x1x21x64xf32>
    %288 = vector.shape_cast %287 : vector<1x1x21x64xf32> to vector<21x64xf32>
    %289 = vector.extract_strided_slice %286 {offsets = [0, 0], sizes = [20, 64], strides = [1, 1]} : vector<21x64xf32> to vector<20x64xf32>
    %290 = vector.extract_strided_slice %286 {offsets = [1, 0], sizes = [20, 64], strides = [1, 1]} : vector<21x64xf32> to vector<20x64xf32>
    %291 = vector.extract_strided_slice %288 {offsets = [0, 0], sizes = [20, 64], strides = [1, 1]} : vector<21x64xf32> to vector<20x64xf32>
    %292 = vector.extract_strided_slice %288 {offsets = [1, 0], sizes = [20, 64], strides = [1, 1]} : vector<21x64xf32> to vector<20x64xf32>
    %293 = tpu.concatenate %289, %290, %291, %292 in 1 : vector<20x64xf32>, vector<20x64xf32>, vector<20x64xf32>, vector<20x64xf32> -> vector<20x256xf32>
    %c0_260 = arith.constant 0 : index
    %c0_261 = arith.constant 0 : index
    %294 = vector.load %arg2[%c0_260, %c0_261] : memref<256x16xf32, #tpu.memory_space<vmem>>, vector<256x16xf32>
    %cst_262 = arith.constant dense<0.000000e+00> : vector<20x16xf32>
    %295 = tpu.matmul %293, %294, %cst_262 {dimension_numbers = #tpu.dot_dimension_numbers<[1], [0], [0], [1], [0, 0, 1, 1], [], []>} : vector<20x256xf32>, vector<256x16xf32>, vector<20x16xf32> -> vector<20x16xf32>
    %c0_263 = arith.constant 0 : index
    %c0_264 = arith.constant 0 : index
    %296 = vector.load %arg3[%c0_263, %c0_264] : memref<1x16xf32, #tpu.memory_space<vmem>>, vector<1x16xf32>
    %297 = vector.broadcast %296 : vector<1x16xf32> to vector<20x16xf32>
    %298 = arith.addf %295, %297 : vector<20x16xf32>
    %cst_265 = arith.constant 0.000000e+00 : f32
    %299 = vector.broadcast %cst_265 : f32 to vector<20x16xf32>
    %300 = arith.maximumf %298, %299 : vector<20x16xf32>
    %c0_266 = arith.constant 0 : index
    %c15_267 = arith.constant 15 : index
    %c0_268 = arith.constant 0 : index
    %c0_269 = arith.constant 0 : index
    %301 = vector.load %arg4[%c0_266, %c15_267, %c0_268, %c0_269] : memref<1x20x20x16xf32, #tpu.memory_space<vmem>>, vector<1x1x20x16xf32>
    %302 = vector.shape_cast %301 : vector<1x1x20x16xf32> to vector<20x16xf32>
    %303 = vector.shape_cast %300 : vector<20x16xf32> to vector<1x1x20x16xf32>
    tpu.vector_store %arg4[%c0_266, %c15_267, %c0_268, %c0_269], %303 {strides = array<i32>} : memref<1x20x20x16xf32, #tpu.memory_space<vmem>>, vector<1x1x20x16xf32>,
    %c0_270 = arith.constant 0 : index
    %c16_271 = arith.constant 16 : index
    %c0_272 = arith.constant 0 : index
    %c0_273 = arith.constant 0 : index
    %304 = vector.load %arg1[%c0_270, %c16_271, %c0_272, %c0_273] : memref<1x21x21x64xf32, #tpu.memory_space<vmem>>, vector<1x1x21x64xf32>
    %305 = vector.shape_cast %304 : vector<1x1x21x64xf32> to vector<21x64xf32>
    %c0_274 = arith.constant 0 : index
    %c17 = arith.constant 17 : index
    %c0_275 = arith.constant 0 : index
    %c0_276 = arith.constant 0 : index
    %306 = vector.load %arg1[%c0_274, %c17, %c0_275, %c0_276] : memref<1x21x21x64xf32, #tpu.memory_space<vmem>>, vector<1x1x21x64xf32>
    %307 = vector.shape_cast %306 : vector<1x1x21x64xf32> to vector<21x64xf32>
    %308 = vector.extract_strided_slice %305 {offsets = [0, 0], sizes = [20, 64], strides = [1, 1]} : vector<21x64xf32> to vector<20x64xf32>
    %309 = vector.extract_strided_slice %305 {offsets = [1, 0], sizes = [20, 64], strides = [1, 1]} : vector<21x64xf32> to vector<20x64xf32>
    %310 = vector.extract_strided_slice %307 {offsets = [0, 0], sizes = [20, 64], strides = [1, 1]} : vector<21x64xf32> to vector<20x64xf32>
    %311 = vector.extract_strided_slice %307 {offsets = [1, 0], sizes = [20, 64], strides = [1, 1]} : vector<21x64xf32> to vector<20x64xf32>
    %312 = tpu.concatenate %308, %309, %310, %311 in 1 : vector<20x64xf32>, vector<20x64xf32>, vector<20x64xf32>, vector<20x64xf32> -> vector<20x256xf32>
    %c0_277 = arith.constant 0 : index
    %c0_278 = arith.constant 0 : index
    %313 = vector.load %arg2[%c0_277, %c0_278] : memref<256x16xf32, #tpu.memory_space<vmem>>, vector<256x16xf32>
    %cst_279 = arith.constant dense<0.000000e+00> : vector<20x16xf32>
    %314 = tpu.matmul %312, %313, %cst_279 {dimension_numbers = #tpu.dot_dimension_numbers<[1], [0], [0], [1], [0, 0, 1, 1], [], []>} : vector<20x256xf32>, vector<256x16xf32>, vector<20x16xf32> -> vector<20x16xf32>
    %c0_280 = arith.constant 0 : index
    %c0_281 = arith.constant 0 : index
    %315 = vector.load %arg3[%c0_280, %c0_281] : memref<1x16xf32, #tpu.memory_space<vmem>>, vector<1x16xf32>
    %316 = vector.broadcast %315 : vector<1x16xf32> to vector<20x16xf32>
    %317 = arith.addf %314, %316 : vector<20x16xf32>
    %cst_282 = arith.constant 0.000000e+00 : f32
    %318 = vector.broadcast %cst_282 : f32 to vector<20x16xf32>
    %319 = arith.maximumf %317, %318 : vector<20x16xf32>
    %c0_283 = arith.constant 0 : index
    %c16_284 = arith.constant 16 : index
    %c0_285 = arith.constant 0 : index
    %c0_286 = arith.constant 0 : index
    %320 = vector.load %arg4[%c0_283, %c16_284, %c0_285, %c0_286] : memref<1x20x20x16xf32, #tpu.memory_space<vmem>>, vector<1x1x20x16xf32>
    %321 = vector.shape_cast %320 : vector<1x1x20x16xf32> to vector<20x16xf32>
    %322 = vector.shape_cast %319 : vector<20x16xf32> to vector<1x1x20x16xf32>
    tpu.vector_store %arg4[%c0_283, %c16_284, %c0_285, %c0_286], %322 {strides = array<i32>} : memref<1x20x20x16xf32, #tpu.memory_space<vmem>>, vector<1x1x20x16xf32>,
    %c0_287 = arith.constant 0 : index
    %c17_288 = arith.constant 17 : index
    %c0_289 = arith.constant 0 : index
    %c0_290 = arith.constant 0 : index
    %323 = vector.load %arg1[%c0_287, %c17_288, %c0_289, %c0_290] : memref<1x21x21x64xf32, #tpu.memory_space<vmem>>, vector<1x1x21x64xf32>
    %324 = vector.shape_cast %323 : vector<1x1x21x64xf32> to vector<21x64xf32>
    %c0_291 = arith.constant 0 : index
    %c18 = arith.constant 18 : index
    %c0_292 = arith.constant 0 : index
    %c0_293 = arith.constant 0 : index
    %325 = vector.load %arg1[%c0_291, %c18, %c0_292, %c0_293] : memref<1x21x21x64xf32, #tpu.memory_space<vmem>>, vector<1x1x21x64xf32>
    %326 = vector.shape_cast %325 : vector<1x1x21x64xf32> to vector<21x64xf32>
    %327 = vector.extract_strided_slice %324 {offsets = [0, 0], sizes = [20, 64], strides = [1, 1]} : vector<21x64xf32> to vector<20x64xf32>
    %328 = vector.extract_strided_slice %324 {offsets = [1, 0], sizes = [20, 64], strides = [1, 1]} : vector<21x64xf32> to vector<20x64xf32>
    %329 = vector.extract_strided_slice %326 {offsets = [0, 0], sizes = [20, 64], strides = [1, 1]} : vector<21x64xf32> to vector<20x64xf32>
    %330 = vector.extract_strided_slice %326 {offsets = [1, 0], sizes = [20, 64], strides = [1, 1]} : vector<21x64xf32> to vector<20x64xf32>
    %331 = tpu.concatenate %327, %328, %329, %330 in 1 : vector<20x64xf32>, vector<20x64xf32>, vector<20x64xf32>, vector<20x64xf32> -> vector<20x256xf32>
    %c0_294 = arith.constant 0 : index
    %c0_295 = arith.constant 0 : index
    %332 = vector.load %arg2[%c0_294, %c0_295] : memref<256x16xf32, #tpu.memory_space<vmem>>, vector<256x16xf32>
    %cst_296 = arith.constant dense<0.000000e+00> : vector<20x16xf32>
    %333 = tpu.matmul %331, %332, %cst_296 {dimension_numbers = #tpu.dot_dimension_numbers<[1], [0], [0], [1], [0, 0, 1, 1], [], []>} : vector<20x256xf32>, vector<256x16xf32>, vector<20x16xf32> -> vector<20x16xf32>
    %c0_297 = arith.constant 0 : index
    %c0_298 = arith.constant 0 : index
    %334 = vector.load %arg3[%c0_297, %c0_298] : memref<1x16xf32, #tpu.memory_space<vmem>>, vector<1x16xf32>
    %335 = vector.broadcast %334 : vector<1x16xf32> to vector<20x16xf32>
    %336 = arith.addf %333, %335 : vector<20x16xf32>
    %cst_299 = arith.constant 0.000000e+00 : f32
    %337 = vector.broadcast %cst_299 : f32 to vector<20x16xf32>
    %338 = arith.maximumf %336, %337 : vector<20x16xf32>
    %c0_300 = arith.constant 0 : index
    %c17_301 = arith.constant 17 : index
    %c0_302 = arith.constant 0 : index
    %c0_303 = arith.constant 0 : index
    %339 = vector.load %arg4[%c0_300, %c17_301, %c0_302, %c0_303] : memref<1x20x20x16xf32, #tpu.memory_space<vmem>>, vector<1x1x20x16xf32>
    %340 = vector.shape_cast %339 : vector<1x1x20x16xf32> to vector<20x16xf32>
    %341 = vector.shape_cast %338 : vector<20x16xf32> to vector<1x1x20x16xf32>
    tpu.vector_store %arg4[%c0_300, %c17_301, %c0_302, %c0_303], %341 {strides = array<i32>} : memref<1x20x20x16xf32, #tpu.memory_space<vmem>>, vector<1x1x20x16xf32>,
    %c0_304 = arith.constant 0 : index
    %c18_305 = arith.constant 18 : index
    %c0_306 = arith.constant 0 : index
    %c0_307 = arith.constant 0 : index
    %342 = vector.load %arg1[%c0_304, %c18_305, %c0_306, %c0_307] : memref<1x21x21x64xf32, #tpu.memory_space<vmem>>, vector<1x1x21x64xf32>
    %343 = vector.shape_cast %342 : vector<1x1x21x64xf32> to vector<21x64xf32>
    %c0_308 = arith.constant 0 : index
    %c19 = arith.constant 19 : index
    %c0_309 = arith.constant 0 : index
    %c0_310 = arith.constant 0 : index
    %344 = vector.load %arg1[%c0_308, %c19, %c0_309, %c0_310] : memref<1x21x21x64xf32, #tpu.memory_space<vmem>>, vector<1x1x21x64xf32>
    %345 = vector.shape_cast %344 : vector<1x1x21x64xf32> to vector<21x64xf32>
    %346 = vector.extract_strided_slice %343 {offsets = [0, 0], sizes = [20, 64], strides = [1, 1]} : vector<21x64xf32> to vector<20x64xf32>
    %347 = vector.extract_strided_slice %343 {offsets = [1, 0], sizes = [20, 64], strides = [1, 1]} : vector<21x64xf32> to vector<20x64xf32>
    %348 = vector.extract_strided_slice %345 {offsets = [0, 0], sizes = [20, 64], strides = [1, 1]} : vector<21x64xf32> to vector<20x64xf32>
    %349 = vector.extract_strided_slice %345 {offsets = [1, 0], sizes = [20, 64], strides = [1, 1]} : vector<21x64xf32> to vector<20x64xf32>
    %350 = tpu.concatenate %346, %347, %348, %349 in 1 : vector<20x64xf32>, vector<20x64xf32>, vector<20x64xf32>, vector<20x64xf32> -> vector<20x256xf32>
    %c0_311 = arith.constant 0 : index
    %c0_312 = arith.constant 0 : index
    %351 = vector.load %arg2[%c0_311, %c0_312] : memref<256x16xf32, #tpu.memory_space<vmem>>, vector<256x16xf32>
    %cst_313 = arith.constant dense<0.000000e+00> : vector<20x16xf32>
    %352 = tpu.matmul %350, %351, %cst_313 {dimension_numbers = #tpu.dot_dimension_numbers<[1], [0], [0], [1], [0, 0, 1, 1], [], []>} : vector<20x256xf32>, vector<256x16xf32>, vector<20x16xf32> -> vector<20x16xf32>
    %c0_314 = arith.constant 0 : index
    %c0_315 = arith.constant 0 : index
    %353 = vector.load %arg3[%c0_314, %c0_315] : memref<1x16xf32, #tpu.memory_space<vmem>>, vector<1x16xf32>
    %354 = vector.broadcast %353 : vector<1x16xf32> to vector<20x16xf32>
    %355 = arith.addf %352, %354 : vector<20x16xf32>
    %cst_316 = arith.constant 0.000000e+00 : f32
    %356 = vector.broadcast %cst_316 : f32 to vector<20x16xf32>
    %357 = arith.maximumf %355, %356 : vector<20x16xf32>
    %c0_317 = arith.constant 0 : index
    %c18_318 = arith.constant 18 : index
    %c0_319 = arith.constant 0 : index
    %c0_320 = arith.constant 0 : index
    %358 = vector.load %arg4[%c0_317, %c18_318, %c0_319, %c0_320] : memref<1x20x20x16xf32, #tpu.memory_space<vmem>>, vector<1x1x20x16xf32>
    %359 = vector.shape_cast %358 : vector<1x1x20x16xf32> to vector<20x16xf32>
    %360 = vector.shape_cast %357 : vector<20x16xf32> to vector<1x1x20x16xf32>
    tpu.vector_store %arg4[%c0_317, %c18_318, %c0_319, %c0_320], %360 {strides = array<i32>} : memref<1x20x20x16xf32, #tpu.memory_space<vmem>>, vector<1x1x20x16xf32>,
    %c0_321 = arith.constant 0 : index
    %c19_322 = arith.constant 19 : index
    %c0_323 = arith.constant 0 : index
    %c0_324 = arith.constant 0 : index
    %361 = vector.load %arg1[%c0_321, %c19_322, %c0_323, %c0_324] : memref<1x21x21x64xf32, #tpu.memory_space<vmem>>, vector<1x1x21x64xf32>
    %362 = vector.shape_cast %361 : vector<1x1x21x64xf32> to vector<21x64xf32>
    %c0_325 = arith.constant 0 : index
    %c20 = arith.constant 20 : index
    %c0_326 = arith.constant 0 : index
    %c0_327 = arith.constant 0 : index
    %363 = vector.load %arg1[%c0_325, %c20, %c0_326, %c0_327] : memref<1x21x21x64xf32, #tpu.memory_space<vmem>>, vector<1x1x21x64xf32>
    %364 = vector.shape_cast %363 : vector<1x1x21x64xf32> to vector<21x64xf32>
    %365 = vector.extract_strided_slice %362 {offsets = [0, 0], sizes = [20, 64], strides = [1, 1]} : vector<21x64xf32> to vector<20x64xf32>
    %366 = vector.extract_strided_slice %362 {offsets = [1, 0], sizes = [20, 64], strides = [1, 1]} : vector<21x64xf32> to vector<20x64xf32>
    %367 = vector.extract_strided_slice %364 {offsets = [0, 0], sizes = [20, 64], strides = [1, 1]} : vector<21x64xf32> to vector<20x64xf32>
    %368 = vector.extract_strided_slice %364 {offsets = [1, 0], sizes = [20, 64], strides = [1, 1]} : vector<21x64xf32> to vector<20x64xf32>
    %369 = tpu.concatenate %365, %366, %367, %368 in 1 : vector<20x64xf32>, vector<20x64xf32>, vector<20x64xf32>, vector<20x64xf32> -> vector<20x256xf32>
    %c0_328 = arith.constant 0 : index
    %c0_329 = arith.constant 0 : index
    %370 = vector.load %arg2[%c0_328, %c0_329] : memref<256x16xf32, #tpu.memory_space<vmem>>, vector<256x16xf32>
    %cst_330 = arith.constant dense<0.000000e+00> : vector<20x16xf32>
    %371 = tpu.matmul %369, %370, %cst_330 {dimension_numbers = #tpu.dot_dimension_numbers<[1], [0], [0], [1], [0, 0, 1, 1], [], []>} : vector<20x256xf32>, vector<256x16xf32>, vector<20x16xf32> -> vector<20x16xf32>
    %c0_331 = arith.constant 0 : index
    %c0_332 = arith.constant 0 : index
    %372 = vector.load %arg3[%c0_331, %c0_332] : memref<1x16xf32, #tpu.memory_space<vmem>>, vector<1x16xf32>
    %373 = vector.broadcast %372 : vector<1x16xf32> to vector<20x16xf32>
    %374 = arith.addf %371, %373 : vector<20x16xf32>
    %cst_333 = arith.constant 0.000000e+00 : f32
    %375 = vector.broadcast %cst_333 : f32 to vector<20x16xf32>
    %376 = arith.maximumf %374, %375 : vector<20x16xf32>
    %c0_334 = arith.constant 0 : index
    %c19_335 = arith.constant 19 : index
    %c0_336 = arith.constant 0 : index
    %c0_337 = arith.constant 0 : index
    %377 = vector.load %arg4[%c0_334, %c19_335, %c0_336, %c0_337] : memref<1x20x20x16xf32, #tpu.memory_space<vmem>>, vector<1x1x20x16xf32>
    %378 = vector.shape_cast %377 : vector<1x1x20x16xf32> to vector<20x16xf32>
    %379 = vector.shape_cast %376 : vector<20x16xf32> to vector<1x1x20x16xf32>
    tpu.vector_store %arg4[%c0_334, %c19_335, %c0_336, %c0_337], %379 {strides = array<i32>} : memref<1x20x20x16xf32, #tpu.memory_space<vmem>>, vector<1x1x20x16xf32>,
    return
  }
  func.func @transform_0(%arg0: i32) -> (i32, i32, i32, i32) {
    %c0_i32 = arith.constant 0 : i32
    %c0_i32_0 = arith.constant 0 : i32
    %c0_i32_1 = arith.constant 0 : i32
    %c0_i32_2 = arith.constant 0 : i32
    return %arg0, %c0_i32, %c0_i32_0, %c0_i32_1 : i32, i32, i32, i32
  }
  func.func @transform_1(%arg0: i32) -> (i32, i32) {
    %c0_i32 = arith.constant 0 : i32
    %c0_i32_0 = arith.constant 0 : i32
    %c0_i32_1 = arith.constant 0 : i32
    return %c0_i32, %c0_i32_0 : i32, i32
  }
  func.func @transform_2(%arg0: i32) -> (i32, i32) {
    %c0_i32 = arith.constant 0 : i32
    %c0_i32_0 = arith.constant 0 : i32
    %c0_i32_1 = arith.constant 0 : i32
    return %c0_i32, %c0_i32_0 : i32, i32
  }
  func.func @transform_3(%arg0: i32) -> (i32, i32, i32, i32) {
    %c0_i32 = arith.constant 0 : i32
    %c0_i32_0 = arith.constant 0 : i32
    %c0_i32_1 = arith.constant 0 : i32
    %c0_i32_2 = arith.constant 0 : i32
    return %arg0, %c0_i32, %c0_i32_0, %c0_i32_1 : i32, i32, i32, i32
  }
}

module attributes {stable_mosaic.version = 11 : i64} {
  func.func @_conv2x2_relu_kernel(%arg0: i32, %arg1: memref<1x10x10x64xf32, #tpu.memory_space<vmem>>, %arg2: memref<256x32xf32, #tpu.memory_space<vmem>>, %arg3: memref<1x32xf32, #tpu.memory_space<vmem>>, %arg4: memref<1x9x9x32xf32, #tpu.memory_space<vmem>>) attributes {dimension_semantics = [#tpu.dimension_semantics<parallel>], iteration_bounds = array<i64: 2>, scalar_prefetch = 0 : i64, scratch_operands = 0 : i64, tpu.core_type = #tpu.core_type<tc>, window_params = [{transform_indices = @transform_0, window_bounds = array<i64: 1, 10, 10, 64>}, {pipeline_mode = #tpu.pipeline_mode<synchronous>, transform_indices = @transform_1, window_bounds = array<i64: 256, 32>}, {pipeline_mode = #tpu.pipeline_mode<synchronous>, transform_indices = @transform_2, window_bounds = array<i64: 1, 32>}, {transform_indices = @transform_3, window_bounds = array<i64: 1, 9, 9, 32>}]} {
    %c0 = arith.constant 0 : index
    %c0_0 = arith.constant 0 : index
    %c0_1 = arith.constant 0 : index
    %c0_2 = arith.constant 0 : index
    %0 = vector.load %arg1[%c0, %c0_0, %c0_1, %c0_2] : memref<1x10x10x64xf32, #tpu.memory_space<vmem>>, vector<1x1x10x64xf32>
    %1 = vector.shape_cast %0 : vector<1x1x10x64xf32> to vector<10x64xf32>
    %c0_3 = arith.constant 0 : index
    %c1 = arith.constant 1 : index
    %c0_4 = arith.constant 0 : index
    %c0_5 = arith.constant 0 : index
    %2 = vector.load %arg1[%c0_3, %c1, %c0_4, %c0_5] : memref<1x10x10x64xf32, #tpu.memory_space<vmem>>, vector<1x1x10x64xf32>
    %3 = vector.shape_cast %2 : vector<1x1x10x64xf32> to vector<10x64xf32>
    %4 = vector.extract_strided_slice %1 {offsets = [0, 0], sizes = [9, 64], strides = [1, 1]} : vector<10x64xf32> to vector<9x64xf32>
    %5 = vector.extract_strided_slice %1 {offsets = [1, 0], sizes = [9, 64], strides = [1, 1]} : vector<10x64xf32> to vector<9x64xf32>
    %6 = vector.extract_strided_slice %3 {offsets = [0, 0], sizes = [9, 64], strides = [1, 1]} : vector<10x64xf32> to vector<9x64xf32>
    %7 = vector.extract_strided_slice %3 {offsets = [1, 0], sizes = [9, 64], strides = [1, 1]} : vector<10x64xf32> to vector<9x64xf32>
    %8 = tpu.concatenate %4, %5, %6, %7 in 1 : vector<9x64xf32>, vector<9x64xf32>, vector<9x64xf32>, vector<9x64xf32> -> vector<9x256xf32>
    %c0_6 = arith.constant 0 : index
    %c0_7 = arith.constant 0 : index
    %9 = vector.load %arg2[%c0_6, %c0_7] : memref<256x32xf32, #tpu.memory_space<vmem>>, vector<256x32xf32>
    %cst = arith.constant dense<0.000000e+00> : vector<9x32xf32>
    %10 = tpu.matmul %8, %9, %cst {dimension_numbers = #tpu.dot_dimension_numbers<[1], [0], [0], [1], [0, 0, 1, 1], [], []>} : vector<9x256xf32>, vector<256x32xf32>, vector<9x32xf32> -> vector<9x32xf32>
    %c0_8 = arith.constant 0 : index
    %c0_9 = arith.constant 0 : index
    %11 = vector.load %arg3[%c0_8, %c0_9] : memref<1x32xf32, #tpu.memory_space<vmem>>, vector<1x32xf32>
    %12 = vector.broadcast %11 : vector<1x32xf32> to vector<9x32xf32>
    %13 = arith.addf %10, %12 : vector<9x32xf32>
    %cst_10 = arith.constant 0.000000e+00 : f32
    %14 = vector.broadcast %cst_10 : f32 to vector<9x32xf32>
    %15 = arith.maximumf %13, %14 : vector<9x32xf32>
    %c0_11 = arith.constant 0 : index
    %c0_12 = arith.constant 0 : index
    %c0_13 = arith.constant 0 : index
    %c0_14 = arith.constant 0 : index
    %16 = vector.load %arg4[%c0_11, %c0_12, %c0_13, %c0_14] : memref<1x9x9x32xf32, #tpu.memory_space<vmem>>, vector<1x1x9x32xf32>
    %17 = vector.shape_cast %16 : vector<1x1x9x32xf32> to vector<9x32xf32>
    %18 = vector.shape_cast %15 : vector<9x32xf32> to vector<1x1x9x32xf32>
    tpu.vector_store %arg4[%c0_11, %c0_12, %c0_13, %c0_14], %18 {strides = array<i32>} : memref<1x9x9x32xf32, #tpu.memory_space<vmem>>, vector<1x1x9x32xf32>,
    %c0_15 = arith.constant 0 : index
    %c1_16 = arith.constant 1 : index
    %c0_17 = arith.constant 0 : index
    %c0_18 = arith.constant 0 : index
    %19 = vector.load %arg1[%c0_15, %c1_16, %c0_17, %c0_18] : memref<1x10x10x64xf32, #tpu.memory_space<vmem>>, vector<1x1x10x64xf32>
    %20 = vector.shape_cast %19 : vector<1x1x10x64xf32> to vector<10x64xf32>
    %c0_19 = arith.constant 0 : index
    %c2 = arith.constant 2 : index
    %c0_20 = arith.constant 0 : index
    %c0_21 = arith.constant 0 : index
    %21 = vector.load %arg1[%c0_19, %c2, %c0_20, %c0_21] : memref<1x10x10x64xf32, #tpu.memory_space<vmem>>, vector<1x1x10x64xf32>
    %22 = vector.shape_cast %21 : vector<1x1x10x64xf32> to vector<10x64xf32>
    %23 = vector.extract_strided_slice %20 {offsets = [0, 0], sizes = [9, 64], strides = [1, 1]} : vector<10x64xf32> to vector<9x64xf32>
    %24 = vector.extract_strided_slice %20 {offsets = [1, 0], sizes = [9, 64], strides = [1, 1]} : vector<10x64xf32> to vector<9x64xf32>
    %25 = vector.extract_strided_slice %22 {offsets = [0, 0], sizes = [9, 64], strides = [1, 1]} : vector<10x64xf32> to vector<9x64xf32>
    %26 = vector.extract_strided_slice %22 {offsets = [1, 0], sizes = [9, 64], strides = [1, 1]} : vector<10x64xf32> to vector<9x64xf32>
    %27 = tpu.concatenate %23, %24, %25, %26 in 1 : vector<9x64xf32>, vector<9x64xf32>, vector<9x64xf32>, vector<9x64xf32> -> vector<9x256xf32>
    %c0_22 = arith.constant 0 : index
    %c0_23 = arith.constant 0 : index
    %28 = vector.load %arg2[%c0_22, %c0_23] : memref<256x32xf32, #tpu.memory_space<vmem>>, vector<256x32xf32>
    %cst_24 = arith.constant dense<0.000000e+00> : vector<9x32xf32>
    %29 = tpu.matmul %27, %28, %cst_24 {dimension_numbers = #tpu.dot_dimension_numbers<[1], [0], [0], [1], [0, 0, 1, 1], [], []>} : vector<9x256xf32>, vector<256x32xf32>, vector<9x32xf32> -> vector<9x32xf32>
    %c0_25 = arith.constant 0 : index
    %c0_26 = arith.constant 0 : index
    %30 = vector.load %arg3[%c0_25, %c0_26] : memref<1x32xf32, #tpu.memory_space<vmem>>, vector<1x32xf32>
    %31 = vector.broadcast %30 : vector<1x32xf32> to vector<9x32xf32>
    %32 = arith.addf %29, %31 : vector<9x32xf32>
    %cst_27 = arith.constant 0.000000e+00 : f32
    %33 = vector.broadcast %cst_27 : f32 to vector<9x32xf32>
    %34 = arith.maximumf %32, %33 : vector<9x32xf32>
    %c0_28 = arith.constant 0 : index
    %c1_29 = arith.constant 1 : index
    %c0_30 = arith.constant 0 : index
    %c0_31 = arith.constant 0 : index
    %35 = vector.load %arg4[%c0_28, %c1_29, %c0_30, %c0_31] : memref<1x9x9x32xf32, #tpu.memory_space<vmem>>, vector<1x1x9x32xf32>
    %36 = vector.shape_cast %35 : vector<1x1x9x32xf32> to vector<9x32xf32>
    %37 = vector.shape_cast %34 : vector<9x32xf32> to vector<1x1x9x32xf32>
    tpu.vector_store %arg4[%c0_28, %c1_29, %c0_30, %c0_31], %37 {strides = array<i32>} : memref<1x9x9x32xf32, #tpu.memory_space<vmem>>, vector<1x1x9x32xf32>,
    %c0_32 = arith.constant 0 : index
    %c2_33 = arith.constant 2 : index
    %c0_34 = arith.constant 0 : index
    %c0_35 = arith.constant 0 : index
    %38 = vector.load %arg1[%c0_32, %c2_33, %c0_34, %c0_35] : memref<1x10x10x64xf32, #tpu.memory_space<vmem>>, vector<1x1x10x64xf32>
    %39 = vector.shape_cast %38 : vector<1x1x10x64xf32> to vector<10x64xf32>
    %c0_36 = arith.constant 0 : index
    %c3 = arith.constant 3 : index
    %c0_37 = arith.constant 0 : index
    %c0_38 = arith.constant 0 : index
    %40 = vector.load %arg1[%c0_36, %c3, %c0_37, %c0_38] : memref<1x10x10x64xf32, #tpu.memory_space<vmem>>, vector<1x1x10x64xf32>
    %41 = vector.shape_cast %40 : vector<1x1x10x64xf32> to vector<10x64xf32>
    %42 = vector.extract_strided_slice %39 {offsets = [0, 0], sizes = [9, 64], strides = [1, 1]} : vector<10x64xf32> to vector<9x64xf32>
    %43 = vector.extract_strided_slice %39 {offsets = [1, 0], sizes = [9, 64], strides = [1, 1]} : vector<10x64xf32> to vector<9x64xf32>
    %44 = vector.extract_strided_slice %41 {offsets = [0, 0], sizes = [9, 64], strides = [1, 1]} : vector<10x64xf32> to vector<9x64xf32>
    %45 = vector.extract_strided_slice %41 {offsets = [1, 0], sizes = [9, 64], strides = [1, 1]} : vector<10x64xf32> to vector<9x64xf32>
    %46 = tpu.concatenate %42, %43, %44, %45 in 1 : vector<9x64xf32>, vector<9x64xf32>, vector<9x64xf32>, vector<9x64xf32> -> vector<9x256xf32>
    %c0_39 = arith.constant 0 : index
    %c0_40 = arith.constant 0 : index
    %47 = vector.load %arg2[%c0_39, %c0_40] : memref<256x32xf32, #tpu.memory_space<vmem>>, vector<256x32xf32>
    %cst_41 = arith.constant dense<0.000000e+00> : vector<9x32xf32>
    %48 = tpu.matmul %46, %47, %cst_41 {dimension_numbers = #tpu.dot_dimension_numbers<[1], [0], [0], [1], [0, 0, 1, 1], [], []>} : vector<9x256xf32>, vector<256x32xf32>, vector<9x32xf32> -> vector<9x32xf32>
    %c0_42 = arith.constant 0 : index
    %c0_43 = arith.constant 0 : index
    %49 = vector.load %arg3[%c0_42, %c0_43] : memref<1x32xf32, #tpu.memory_space<vmem>>, vector<1x32xf32>
    %50 = vector.broadcast %49 : vector<1x32xf32> to vector<9x32xf32>
    %51 = arith.addf %48, %50 : vector<9x32xf32>
    %cst_44 = arith.constant 0.000000e+00 : f32
    %52 = vector.broadcast %cst_44 : f32 to vector<9x32xf32>
    %53 = arith.maximumf %51, %52 : vector<9x32xf32>
    %c0_45 = arith.constant 0 : index
    %c2_46 = arith.constant 2 : index
    %c0_47 = arith.constant 0 : index
    %c0_48 = arith.constant 0 : index
    %54 = vector.load %arg4[%c0_45, %c2_46, %c0_47, %c0_48] : memref<1x9x9x32xf32, #tpu.memory_space<vmem>>, vector<1x1x9x32xf32>
    %55 = vector.shape_cast %54 : vector<1x1x9x32xf32> to vector<9x32xf32>
    %56 = vector.shape_cast %53 : vector<9x32xf32> to vector<1x1x9x32xf32>
    tpu.vector_store %arg4[%c0_45, %c2_46, %c0_47, %c0_48], %56 {strides = array<i32>} : memref<1x9x9x32xf32, #tpu.memory_space<vmem>>, vector<1x1x9x32xf32>,
    %c0_49 = arith.constant 0 : index
    %c3_50 = arith.constant 3 : index
    %c0_51 = arith.constant 0 : index
    %c0_52 = arith.constant 0 : index
    %57 = vector.load %arg1[%c0_49, %c3_50, %c0_51, %c0_52] : memref<1x10x10x64xf32, #tpu.memory_space<vmem>>, vector<1x1x10x64xf32>
    %58 = vector.shape_cast %57 : vector<1x1x10x64xf32> to vector<10x64xf32>
    %c0_53 = arith.constant 0 : index
    %c4 = arith.constant 4 : index
    %c0_54 = arith.constant 0 : index
    %c0_55 = arith.constant 0 : index
    %59 = vector.load %arg1[%c0_53, %c4, %c0_54, %c0_55] : memref<1x10x10x64xf32, #tpu.memory_space<vmem>>, vector<1x1x10x64xf32>
    %60 = vector.shape_cast %59 : vector<1x1x10x64xf32> to vector<10x64xf32>
    %61 = vector.extract_strided_slice %58 {offsets = [0, 0], sizes = [9, 64], strides = [1, 1]} : vector<10x64xf32> to vector<9x64xf32>
    %62 = vector.extract_strided_slice %58 {offsets = [1, 0], sizes = [9, 64], strides = [1, 1]} : vector<10x64xf32> to vector<9x64xf32>
    %63 = vector.extract_strided_slice %60 {offsets = [0, 0], sizes = [9, 64], strides = [1, 1]} : vector<10x64xf32> to vector<9x64xf32>
    %64 = vector.extract_strided_slice %60 {offsets = [1, 0], sizes = [9, 64], strides = [1, 1]} : vector<10x64xf32> to vector<9x64xf32>
    %65 = tpu.concatenate %61, %62, %63, %64 in 1 : vector<9x64xf32>, vector<9x64xf32>, vector<9x64xf32>, vector<9x64xf32> -> vector<9x256xf32>
    %c0_56 = arith.constant 0 : index
    %c0_57 = arith.constant 0 : index
    %66 = vector.load %arg2[%c0_56, %c0_57] : memref<256x32xf32, #tpu.memory_space<vmem>>, vector<256x32xf32>
    %cst_58 = arith.constant dense<0.000000e+00> : vector<9x32xf32>
    %67 = tpu.matmul %65, %66, %cst_58 {dimension_numbers = #tpu.dot_dimension_numbers<[1], [0], [0], [1], [0, 0, 1, 1], [], []>} : vector<9x256xf32>, vector<256x32xf32>, vector<9x32xf32> -> vector<9x32xf32>
    %c0_59 = arith.constant 0 : index
    %c0_60 = arith.constant 0 : index
    %68 = vector.load %arg3[%c0_59, %c0_60] : memref<1x32xf32, #tpu.memory_space<vmem>>, vector<1x32xf32>
    %69 = vector.broadcast %68 : vector<1x32xf32> to vector<9x32xf32>
    %70 = arith.addf %67, %69 : vector<9x32xf32>
    %cst_61 = arith.constant 0.000000e+00 : f32
    %71 = vector.broadcast %cst_61 : f32 to vector<9x32xf32>
    %72 = arith.maximumf %70, %71 : vector<9x32xf32>
    %c0_62 = arith.constant 0 : index
    %c3_63 = arith.constant 3 : index
    %c0_64 = arith.constant 0 : index
    %c0_65 = arith.constant 0 : index
    %73 = vector.load %arg4[%c0_62, %c3_63, %c0_64, %c0_65] : memref<1x9x9x32xf32, #tpu.memory_space<vmem>>, vector<1x1x9x32xf32>
    %74 = vector.shape_cast %73 : vector<1x1x9x32xf32> to vector<9x32xf32>
    %75 = vector.shape_cast %72 : vector<9x32xf32> to vector<1x1x9x32xf32>
    tpu.vector_store %arg4[%c0_62, %c3_63, %c0_64, %c0_65], %75 {strides = array<i32>} : memref<1x9x9x32xf32, #tpu.memory_space<vmem>>, vector<1x1x9x32xf32>,
    %c0_66 = arith.constant 0 : index
    %c4_67 = arith.constant 4 : index
    %c0_68 = arith.constant 0 : index
    %c0_69 = arith.constant 0 : index
    %76 = vector.load %arg1[%c0_66, %c4_67, %c0_68, %c0_69] : memref<1x10x10x64xf32, #tpu.memory_space<vmem>>, vector<1x1x10x64xf32>
    %77 = vector.shape_cast %76 : vector<1x1x10x64xf32> to vector<10x64xf32>
    %c0_70 = arith.constant 0 : index
    %c5 = arith.constant 5 : index
    %c0_71 = arith.constant 0 : index
    %c0_72 = arith.constant 0 : index
    %78 = vector.load %arg1[%c0_70, %c5, %c0_71, %c0_72] : memref<1x10x10x64xf32, #tpu.memory_space<vmem>>, vector<1x1x10x64xf32>
    %79 = vector.shape_cast %78 : vector<1x1x10x64xf32> to vector<10x64xf32>
    %80 = vector.extract_strided_slice %77 {offsets = [0, 0], sizes = [9, 64], strides = [1, 1]} : vector<10x64xf32> to vector<9x64xf32>
    %81 = vector.extract_strided_slice %77 {offsets = [1, 0], sizes = [9, 64], strides = [1, 1]} : vector<10x64xf32> to vector<9x64xf32>
    %82 = vector.extract_strided_slice %79 {offsets = [0, 0], sizes = [9, 64], strides = [1, 1]} : vector<10x64xf32> to vector<9x64xf32>
    %83 = vector.extract_strided_slice %79 {offsets = [1, 0], sizes = [9, 64], strides = [1, 1]} : vector<10x64xf32> to vector<9x64xf32>
    %84 = tpu.concatenate %80, %81, %82, %83 in 1 : vector<9x64xf32>, vector<9x64xf32>, vector<9x64xf32>, vector<9x64xf32> -> vector<9x256xf32>
    %c0_73 = arith.constant 0 : index
    %c0_74 = arith.constant 0 : index
    %85 = vector.load %arg2[%c0_73, %c0_74] : memref<256x32xf32, #tpu.memory_space<vmem>>, vector<256x32xf32>
    %cst_75 = arith.constant dense<0.000000e+00> : vector<9x32xf32>
    %86 = tpu.matmul %84, %85, %cst_75 {dimension_numbers = #tpu.dot_dimension_numbers<[1], [0], [0], [1], [0, 0, 1, 1], [], []>} : vector<9x256xf32>, vector<256x32xf32>, vector<9x32xf32> -> vector<9x32xf32>
    %c0_76 = arith.constant 0 : index
    %c0_77 = arith.constant 0 : index
    %87 = vector.load %arg3[%c0_76, %c0_77] : memref<1x32xf32, #tpu.memory_space<vmem>>, vector<1x32xf32>
    %88 = vector.broadcast %87 : vector<1x32xf32> to vector<9x32xf32>
    %89 = arith.addf %86, %88 : vector<9x32xf32>
    %cst_78 = arith.constant 0.000000e+00 : f32
    %90 = vector.broadcast %cst_78 : f32 to vector<9x32xf32>
    %91 = arith.maximumf %89, %90 : vector<9x32xf32>
    %c0_79 = arith.constant 0 : index
    %c4_80 = arith.constant 4 : index
    %c0_81 = arith.constant 0 : index
    %c0_82 = arith.constant 0 : index
    %92 = vector.load %arg4[%c0_79, %c4_80, %c0_81, %c0_82] : memref<1x9x9x32xf32, #tpu.memory_space<vmem>>, vector<1x1x9x32xf32>
    %93 = vector.shape_cast %92 : vector<1x1x9x32xf32> to vector<9x32xf32>
    %94 = vector.shape_cast %91 : vector<9x32xf32> to vector<1x1x9x32xf32>
    tpu.vector_store %arg4[%c0_79, %c4_80, %c0_81, %c0_82], %94 {strides = array<i32>} : memref<1x9x9x32xf32, #tpu.memory_space<vmem>>, vector<1x1x9x32xf32>,
    %c0_83 = arith.constant 0 : index
    %c5_84 = arith.constant 5 : index
    %c0_85 = arith.constant 0 : index
    %c0_86 = arith.constant 0 : index
    %95 = vector.load %arg1[%c0_83, %c5_84, %c0_85, %c0_86] : memref<1x10x10x64xf32, #tpu.memory_space<vmem>>, vector<1x1x10x64xf32>
    %96 = vector.shape_cast %95 : vector<1x1x10x64xf32> to vector<10x64xf32>
    %c0_87 = arith.constant 0 : index
    %c6 = arith.constant 6 : index
    %c0_88 = arith.constant 0 : index
    %c0_89 = arith.constant 0 : index
    %97 = vector.load %arg1[%c0_87, %c6, %c0_88, %c0_89] : memref<1x10x10x64xf32, #tpu.memory_space<vmem>>, vector<1x1x10x64xf32>
    %98 = vector.shape_cast %97 : vector<1x1x10x64xf32> to vector<10x64xf32>
    %99 = vector.extract_strided_slice %96 {offsets = [0, 0], sizes = [9, 64], strides = [1, 1]} : vector<10x64xf32> to vector<9x64xf32>
    %100 = vector.extract_strided_slice %96 {offsets = [1, 0], sizes = [9, 64], strides = [1, 1]} : vector<10x64xf32> to vector<9x64xf32>
    %101 = vector.extract_strided_slice %98 {offsets = [0, 0], sizes = [9, 64], strides = [1, 1]} : vector<10x64xf32> to vector<9x64xf32>
    %102 = vector.extract_strided_slice %98 {offsets = [1, 0], sizes = [9, 64], strides = [1, 1]} : vector<10x64xf32> to vector<9x64xf32>
    %103 = tpu.concatenate %99, %100, %101, %102 in 1 : vector<9x64xf32>, vector<9x64xf32>, vector<9x64xf32>, vector<9x64xf32> -> vector<9x256xf32>
    %c0_90 = arith.constant 0 : index
    %c0_91 = arith.constant 0 : index
    %104 = vector.load %arg2[%c0_90, %c0_91] : memref<256x32xf32, #tpu.memory_space<vmem>>, vector<256x32xf32>
    %cst_92 = arith.constant dense<0.000000e+00> : vector<9x32xf32>
    %105 = tpu.matmul %103, %104, %cst_92 {dimension_numbers = #tpu.dot_dimension_numbers<[1], [0], [0], [1], [0, 0, 1, 1], [], []>} : vector<9x256xf32>, vector<256x32xf32>, vector<9x32xf32> -> vector<9x32xf32>
    %c0_93 = arith.constant 0 : index
    %c0_94 = arith.constant 0 : index
    %106 = vector.load %arg3[%c0_93, %c0_94] : memref<1x32xf32, #tpu.memory_space<vmem>>, vector<1x32xf32>
    %107 = vector.broadcast %106 : vector<1x32xf32> to vector<9x32xf32>
    %108 = arith.addf %105, %107 : vector<9x32xf32>
    %cst_95 = arith.constant 0.000000e+00 : f32
    %109 = vector.broadcast %cst_95 : f32 to vector<9x32xf32>
    %110 = arith.maximumf %108, %109 : vector<9x32xf32>
    %c0_96 = arith.constant 0 : index
    %c5_97 = arith.constant 5 : index
    %c0_98 = arith.constant 0 : index
    %c0_99 = arith.constant 0 : index
    %111 = vector.load %arg4[%c0_96, %c5_97, %c0_98, %c0_99] : memref<1x9x9x32xf32, #tpu.memory_space<vmem>>, vector<1x1x9x32xf32>
    %112 = vector.shape_cast %111 : vector<1x1x9x32xf32> to vector<9x32xf32>
    %113 = vector.shape_cast %110 : vector<9x32xf32> to vector<1x1x9x32xf32>
    tpu.vector_store %arg4[%c0_96, %c5_97, %c0_98, %c0_99], %113 {strides = array<i32>} : memref<1x9x9x32xf32, #tpu.memory_space<vmem>>, vector<1x1x9x32xf32>,
    %c0_100 = arith.constant 0 : index
    %c6_101 = arith.constant 6 : index
    %c0_102 = arith.constant 0 : index
    %c0_103 = arith.constant 0 : index
    %114 = vector.load %arg1[%c0_100, %c6_101, %c0_102, %c0_103] : memref<1x10x10x64xf32, #tpu.memory_space<vmem>>, vector<1x1x10x64xf32>
    %115 = vector.shape_cast %114 : vector<1x1x10x64xf32> to vector<10x64xf32>
    %c0_104 = arith.constant 0 : index
    %c7 = arith.constant 7 : index
    %c0_105 = arith.constant 0 : index
    %c0_106 = arith.constant 0 : index
    %116 = vector.load %arg1[%c0_104, %c7, %c0_105, %c0_106] : memref<1x10x10x64xf32, #tpu.memory_space<vmem>>, vector<1x1x10x64xf32>
    %117 = vector.shape_cast %116 : vector<1x1x10x64xf32> to vector<10x64xf32>
    %118 = vector.extract_strided_slice %115 {offsets = [0, 0], sizes = [9, 64], strides = [1, 1]} : vector<10x64xf32> to vector<9x64xf32>
    %119 = vector.extract_strided_slice %115 {offsets = [1, 0], sizes = [9, 64], strides = [1, 1]} : vector<10x64xf32> to vector<9x64xf32>
    %120 = vector.extract_strided_slice %117 {offsets = [0, 0], sizes = [9, 64], strides = [1, 1]} : vector<10x64xf32> to vector<9x64xf32>
    %121 = vector.extract_strided_slice %117 {offsets = [1, 0], sizes = [9, 64], strides = [1, 1]} : vector<10x64xf32> to vector<9x64xf32>
    %122 = tpu.concatenate %118, %119, %120, %121 in 1 : vector<9x64xf32>, vector<9x64xf32>, vector<9x64xf32>, vector<9x64xf32> -> vector<9x256xf32>
    %c0_107 = arith.constant 0 : index
    %c0_108 = arith.constant 0 : index
    %123 = vector.load %arg2[%c0_107, %c0_108] : memref<256x32xf32, #tpu.memory_space<vmem>>, vector<256x32xf32>
    %cst_109 = arith.constant dense<0.000000e+00> : vector<9x32xf32>
    %124 = tpu.matmul %122, %123, %cst_109 {dimension_numbers = #tpu.dot_dimension_numbers<[1], [0], [0], [1], [0, 0, 1, 1], [], []>} : vector<9x256xf32>, vector<256x32xf32>, vector<9x32xf32> -> vector<9x32xf32>
    %c0_110 = arith.constant 0 : index
    %c0_111 = arith.constant 0 : index
    %125 = vector.load %arg3[%c0_110, %c0_111] : memref<1x32xf32, #tpu.memory_space<vmem>>, vector<1x32xf32>
    %126 = vector.broadcast %125 : vector<1x32xf32> to vector<9x32xf32>
    %127 = arith.addf %124, %126 : vector<9x32xf32>
    %cst_112 = arith.constant 0.000000e+00 : f32
    %128 = vector.broadcast %cst_112 : f32 to vector<9x32xf32>
    %129 = arith.maximumf %127, %128 : vector<9x32xf32>
    %c0_113 = arith.constant 0 : index
    %c6_114 = arith.constant 6 : index
    %c0_115 = arith.constant 0 : index
    %c0_116 = arith.constant 0 : index
    %130 = vector.load %arg4[%c0_113, %c6_114, %c0_115, %c0_116] : memref<1x9x9x32xf32, #tpu.memory_space<vmem>>, vector<1x1x9x32xf32>
    %131 = vector.shape_cast %130 : vector<1x1x9x32xf32> to vector<9x32xf32>
    %132 = vector.shape_cast %129 : vector<9x32xf32> to vector<1x1x9x32xf32>
    tpu.vector_store %arg4[%c0_113, %c6_114, %c0_115, %c0_116], %132 {strides = array<i32>} : memref<1x9x9x32xf32, #tpu.memory_space<vmem>>, vector<1x1x9x32xf32>,
    %c0_117 = arith.constant 0 : index
    %c7_118 = arith.constant 7 : index
    %c0_119 = arith.constant 0 : index
    %c0_120 = arith.constant 0 : index
    %133 = vector.load %arg1[%c0_117, %c7_118, %c0_119, %c0_120] : memref<1x10x10x64xf32, #tpu.memory_space<vmem>>, vector<1x1x10x64xf32>
    %134 = vector.shape_cast %133 : vector<1x1x10x64xf32> to vector<10x64xf32>
    %c0_121 = arith.constant 0 : index
    %c8 = arith.constant 8 : index
    %c0_122 = arith.constant 0 : index
    %c0_123 = arith.constant 0 : index
    %135 = vector.load %arg1[%c0_121, %c8, %c0_122, %c0_123] : memref<1x10x10x64xf32, #tpu.memory_space<vmem>>, vector<1x1x10x64xf32>
    %136 = vector.shape_cast %135 : vector<1x1x10x64xf32> to vector<10x64xf32>
    %137 = vector.extract_strided_slice %134 {offsets = [0, 0], sizes = [9, 64], strides = [1, 1]} : vector<10x64xf32> to vector<9x64xf32>
    %138 = vector.extract_strided_slice %134 {offsets = [1, 0], sizes = [9, 64], strides = [1, 1]} : vector<10x64xf32> to vector<9x64xf32>
    %139 = vector.extract_strided_slice %136 {offsets = [0, 0], sizes = [9, 64], strides = [1, 1]} : vector<10x64xf32> to vector<9x64xf32>
    %140 = vector.extract_strided_slice %136 {offsets = [1, 0], sizes = [9, 64], strides = [1, 1]} : vector<10x64xf32> to vector<9x64xf32>
    %141 = tpu.concatenate %137, %138, %139, %140 in 1 : vector<9x64xf32>, vector<9x64xf32>, vector<9x64xf32>, vector<9x64xf32> -> vector<9x256xf32>
    %c0_124 = arith.constant 0 : index
    %c0_125 = arith.constant 0 : index
    %142 = vector.load %arg2[%c0_124, %c0_125] : memref<256x32xf32, #tpu.memory_space<vmem>>, vector<256x32xf32>
    %cst_126 = arith.constant dense<0.000000e+00> : vector<9x32xf32>
    %143 = tpu.matmul %141, %142, %cst_126 {dimension_numbers = #tpu.dot_dimension_numbers<[1], [0], [0], [1], [0, 0, 1, 1], [], []>} : vector<9x256xf32>, vector<256x32xf32>, vector<9x32xf32> -> vector<9x32xf32>
    %c0_127 = arith.constant 0 : index
    %c0_128 = arith.constant 0 : index
    %144 = vector.load %arg3[%c0_127, %c0_128] : memref<1x32xf32, #tpu.memory_space<vmem>>, vector<1x32xf32>
    %145 = vector.broadcast %144 : vector<1x32xf32> to vector<9x32xf32>
    %146 = arith.addf %143, %145 : vector<9x32xf32>
    %cst_129 = arith.constant 0.000000e+00 : f32
    %147 = vector.broadcast %cst_129 : f32 to vector<9x32xf32>
    %148 = arith.maximumf %146, %147 : vector<9x32xf32>
    %c0_130 = arith.constant 0 : index
    %c7_131 = arith.constant 7 : index
    %c0_132 = arith.constant 0 : index
    %c0_133 = arith.constant 0 : index
    %149 = vector.load %arg4[%c0_130, %c7_131, %c0_132, %c0_133] : memref<1x9x9x32xf32, #tpu.memory_space<vmem>>, vector<1x1x9x32xf32>
    %150 = vector.shape_cast %149 : vector<1x1x9x32xf32> to vector<9x32xf32>
    %151 = vector.shape_cast %148 : vector<9x32xf32> to vector<1x1x9x32xf32>
    tpu.vector_store %arg4[%c0_130, %c7_131, %c0_132, %c0_133], %151 {strides = array<i32>} : memref<1x9x9x32xf32, #tpu.memory_space<vmem>>, vector<1x1x9x32xf32>,
    %c0_134 = arith.constant 0 : index
    %c8_135 = arith.constant 8 : index
    %c0_136 = arith.constant 0 : index
    %c0_137 = arith.constant 0 : index
    %152 = vector.load %arg1[%c0_134, %c8_135, %c0_136, %c0_137] : memref<1x10x10x64xf32, #tpu.memory_space<vmem>>, vector<1x1x10x64xf32>
    %153 = vector.shape_cast %152 : vector<1x1x10x64xf32> to vector<10x64xf32>
    %c0_138 = arith.constant 0 : index
    %c9 = arith.constant 9 : index
    %c0_139 = arith.constant 0 : index
    %c0_140 = arith.constant 0 : index
    %154 = vector.load %arg1[%c0_138, %c9, %c0_139, %c0_140] : memref<1x10x10x64xf32, #tpu.memory_space<vmem>>, vector<1x1x10x64xf32>
    %155 = vector.shape_cast %154 : vector<1x1x10x64xf32> to vector<10x64xf32>
    %156 = vector.extract_strided_slice %153 {offsets = [0, 0], sizes = [9, 64], strides = [1, 1]} : vector<10x64xf32> to vector<9x64xf32>
    %157 = vector.extract_strided_slice %153 {offsets = [1, 0], sizes = [9, 64], strides = [1, 1]} : vector<10x64xf32> to vector<9x64xf32>
    %158 = vector.extract_strided_slice %155 {offsets = [0, 0], sizes = [9, 64], strides = [1, 1]} : vector<10x64xf32> to vector<9x64xf32>
    %159 = vector.extract_strided_slice %155 {offsets = [1, 0], sizes = [9, 64], strides = [1, 1]} : vector<10x64xf32> to vector<9x64xf32>
    %160 = tpu.concatenate %156, %157, %158, %159 in 1 : vector<9x64xf32>, vector<9x64xf32>, vector<9x64xf32>, vector<9x64xf32> -> vector<9x256xf32>
    %c0_141 = arith.constant 0 : index
    %c0_142 = arith.constant 0 : index
    %161 = vector.load %arg2[%c0_141, %c0_142] : memref<256x32xf32, #tpu.memory_space<vmem>>, vector<256x32xf32>
    %cst_143 = arith.constant dense<0.000000e+00> : vector<9x32xf32>
    %162 = tpu.matmul %160, %161, %cst_143 {dimension_numbers = #tpu.dot_dimension_numbers<[1], [0], [0], [1], [0, 0, 1, 1], [], []>} : vector<9x256xf32>, vector<256x32xf32>, vector<9x32xf32> -> vector<9x32xf32>
    %c0_144 = arith.constant 0 : index
    %c0_145 = arith.constant 0 : index
    %163 = vector.load %arg3[%c0_144, %c0_145] : memref<1x32xf32, #tpu.memory_space<vmem>>, vector<1x32xf32>
    %164 = vector.broadcast %163 : vector<1x32xf32> to vector<9x32xf32>
    %165 = arith.addf %162, %164 : vector<9x32xf32>
    %cst_146 = arith.constant 0.000000e+00 : f32
    %166 = vector.broadcast %cst_146 : f32 to vector<9x32xf32>
    %167 = arith.maximumf %165, %166 : vector<9x32xf32>
    %c0_147 = arith.constant 0 : index
    %c8_148 = arith.constant 8 : index
    %c0_149 = arith.constant 0 : index
    %c0_150 = arith.constant 0 : index
    %168 = vector.load %arg4[%c0_147, %c8_148, %c0_149, %c0_150] : memref<1x9x9x32xf32, #tpu.memory_space<vmem>>, vector<1x1x9x32xf32>
    %169 = vector.shape_cast %168 : vector<1x1x9x32xf32> to vector<9x32xf32>
    %170 = vector.shape_cast %167 : vector<9x32xf32> to vector<1x1x9x32xf32>
    tpu.vector_store %arg4[%c0_147, %c8_148, %c0_149, %c0_150], %170 {strides = array<i32>} : memref<1x9x9x32xf32, #tpu.memory_space<vmem>>, vector<1x1x9x32xf32>,
    return
  }
  func.func @transform_0(%arg0: i32) -> (i32, i32, i32, i32) {
    %c0_i32 = arith.constant 0 : i32
    %c0_i32_0 = arith.constant 0 : i32
    %c0_i32_1 = arith.constant 0 : i32
    %c0_i32_2 = arith.constant 0 : i32
    return %arg0, %c0_i32, %c0_i32_0, %c0_i32_1 : i32, i32, i32, i32
  }
  func.func @transform_1(%arg0: i32) -> (i32, i32) {
    %c0_i32 = arith.constant 0 : i32
    %c0_i32_0 = arith.constant 0 : i32
    %c0_i32_1 = arith.constant 0 : i32
    return %c0_i32, %c0_i32_0 : i32, i32
  }
  func.func @transform_2(%arg0: i32) -> (i32, i32) {
    %c0_i32 = arith.constant 0 : i32
    %c0_i32_0 = arith.constant 0 : i32
    %c0_i32_1 = arith.constant 0 : i32
    return %c0_i32, %c0_i32_0 : i32, i32
  }
  func.func @transform_3(%arg0: i32) -> (i32, i32, i32, i32) {
    %c0_i32 = arith.constant 0 : i32
    %c0_i32_0 = arith.constant 0 : i32
    %c0_i32_1 = arith.constant 0 : i32
    %c0_i32_2 = arith.constant 0 : i32
    return %arg0, %c0_i32, %c0_i32_0, %c0_i32_1 : i32, i32, i32, i32
  }
}

module attributes {stable_mosaic.version = 11 : i64} {
  func.func @_mlp3_kernel(%arg0: i32, %arg1: memref<2x2592xf32, #tpu.memory_space<vmem>>, %arg2: memref<2592x256xf32, #tpu.memory_space<vmem>>, %arg3: memref<1x256xf32, #tpu.memory_space<vmem>>, %arg4: memref<256x128xf32, #tpu.memory_space<vmem>>, %arg5: memref<1x128xf32, #tpu.memory_space<vmem>>, %arg6: memref<128x128xf32, #tpu.memory_space<vmem>>, %arg7: memref<1x128xf32, #tpu.memory_space<vmem>>, %arg8: memref<2x128xf32, #tpu.memory_space<vmem>>) attributes {dimension_semantics = [#tpu.dimension_semantics<parallel>], iteration_bounds = array<i64: 1>, scalar_prefetch = 0 : i64, scratch_operands = 0 : i64, tpu.core_type = #tpu.core_type<tc>, window_params = [{transform_indices = @transform_0, window_bounds = array<i64: 2, 2592>}, {pipeline_mode = #tpu.pipeline_mode<synchronous>, transform_indices = @transform_1, window_bounds = array<i64: 2592, 256>}, {pipeline_mode = #tpu.pipeline_mode<synchronous>, transform_indices = @transform_2, window_bounds = array<i64: 1, 256>}, {pipeline_mode = #tpu.pipeline_mode<synchronous>, transform_indices = @transform_3, window_bounds = array<i64: 256, 128>}, {pipeline_mode = #tpu.pipeline_mode<synchronous>, transform_indices = @transform_4, window_bounds = array<i64: 1, 128>}, {pipeline_mode = #tpu.pipeline_mode<synchronous>, transform_indices = @transform_5, window_bounds = array<i64: 128, 128>}, {pipeline_mode = #tpu.pipeline_mode<synchronous>, transform_indices = @transform_6, window_bounds = array<i64: 1, 128>}, {transform_indices = @transform_7, window_bounds = array<i64: 2, 128>}]} {
    %c0 = arith.constant 0 : index
    %c0_0 = arith.constant 0 : index
    %0 = vector.load %arg1[%c0, %c0_0] : memref<2x2592xf32, #tpu.memory_space<vmem>>, vector<2x2592xf32>
    %c0_1 = arith.constant 0 : index
    %c0_2 = arith.constant 0 : index
    %1 = vector.load %arg2[%c0_1, %c0_2] : memref<2592x256xf32, #tpu.memory_space<vmem>>, vector<2592x256xf32>
    %cst = arith.constant dense<0.000000e+00> : vector<2x256xf32>
    %2 = tpu.matmul %0, %1, %cst {dimension_numbers = #tpu.dot_dimension_numbers<[1], [0], [0], [1], [0, 0, 1, 1], [], []>} : vector<2x2592xf32>, vector<2592x256xf32>, vector<2x256xf32> -> vector<2x256xf32>
    %c0_3 = arith.constant 0 : index
    %c0_4 = arith.constant 0 : index
    %3 = vector.load %arg3[%c0_3, %c0_4] : memref<1x256xf32, #tpu.memory_space<vmem>>, vector<1x256xf32>
    %4 = vector.broadcast %3 : vector<1x256xf32> to vector<2x256xf32>
    %5 = arith.addf %2, %4 : vector<2x256xf32>
    %cst_5 = arith.constant 0.000000e+00 : f32
    %6 = vector.broadcast %cst_5 : f32 to vector<2x256xf32>
    %7 = arith.maximumf %5, %6 : vector<2x256xf32>
    %c0_6 = arith.constant 0 : index
    %c0_7 = arith.constant 0 : index
    %8 = vector.load %arg4[%c0_6, %c0_7] : memref<256x128xf32, #tpu.memory_space<vmem>>, vector<256x128xf32>
    %cst_8 = arith.constant dense<0.000000e+00> : vector<2x128xf32>
    %9 = tpu.matmul %7, %8, %cst_8 {dimension_numbers = #tpu.dot_dimension_numbers<[1], [0], [0], [1], [0, 0, 1, 1], [], []>} : vector<2x256xf32>, vector<256x128xf32>, vector<2x128xf32> -> vector<2x128xf32>
    %c0_9 = arith.constant 0 : index
    %c0_10 = arith.constant 0 : index
    %10 = vector.load %arg5[%c0_9, %c0_10] : memref<1x128xf32, #tpu.memory_space<vmem>>, vector<1x128xf32>
    %11 = vector.broadcast %10 : vector<1x128xf32> to vector<2x128xf32>
    %12 = arith.addf %9, %11 : vector<2x128xf32>
    %cst_11 = arith.constant 0.000000e+00 : f32
    %13 = vector.broadcast %cst_11 : f32 to vector<2x128xf32>
    %14 = arith.maximumf %12, %13 : vector<2x128xf32>
    %c0_12 = arith.constant 0 : index
    %c0_13 = arith.constant 0 : index
    %15 = vector.load %arg6[%c0_12, %c0_13] : memref<128x128xf32, #tpu.memory_space<vmem>>, vector<128x128xf32>
    %cst_14 = arith.constant dense<0.000000e+00> : vector<2x128xf32>
    %16 = tpu.matmul %14, %15, %cst_14 {dimension_numbers = #tpu.dot_dimension_numbers<[1], [0], [0], [1], [0, 0, 1, 1], [], []>} : vector<2x128xf32>, vector<128x128xf32>, vector<2x128xf32> -> vector<2x128xf32>
    %c0_15 = arith.constant 0 : index
    %c0_16 = arith.constant 0 : index
    %17 = vector.load %arg7[%c0_15, %c0_16] : memref<1x128xf32, #tpu.memory_space<vmem>>, vector<1x128xf32>
    %18 = vector.broadcast %17 : vector<1x128xf32> to vector<2x128xf32>
    %19 = arith.addf %16, %18 : vector<2x128xf32>
    %c0_17 = arith.constant 0 : index
    %c0_18 = arith.constant 0 : index
    %20 = vector.load %arg8[%c0_17, %c0_18] : memref<2x128xf32, #tpu.memory_space<vmem>>, vector<2x128xf32>
    tpu.vector_store %arg8[%c0_17, %c0_18], %19 {strides = array<i32>} : memref<2x128xf32, #tpu.memory_space<vmem>>, vector<2x128xf32>,
    return
  }
  func.func @transform_0(%arg0: i32) -> (i32, i32) {
    %c0_i32 = arith.constant 0 : i32
    %c0_i32_0 = arith.constant 0 : i32
    return %arg0, %c0_i32 : i32, i32
  }
  func.func @transform_1(%arg0: i32) -> (i32, i32) {
    %c0_i32 = arith.constant 0 : i32
    %c0_i32_0 = arith.constant 0 : i32
    %c0_i32_1 = arith.constant 0 : i32
    return %c0_i32, %c0_i32_0 : i32, i32
  }
  func.func @transform_2(%arg0: i32) -> (i32, i32) {
    %c0_i32 = arith.constant 0 : i32
    %c0_i32_0 = arith.constant 0 : i32
    %c0_i32_1 = arith.constant 0 : i32
    return %c0_i32, %c0_i32_0 : i32, i32
  }
  func.func @transform_3(%arg0: i32) -> (i32, i32) {
    %c0_i32 = arith.constant 0 : i32
    %c0_i32_0 = arith.constant 0 : i32
    %c0_i32_1 = arith.constant 0 : i32
    return %c0_i32, %c0_i32_0 : i32, i32
  }
  func.func @transform_4(%arg0: i32) -> (i32, i32) {
    %c0_i32 = arith.constant 0 : i32
    %c0_i32_0 = arith.constant 0 : i32
    %c0_i32_1 = arith.constant 0 : i32
    return %c0_i32, %c0_i32_0 : i32, i32
  }
  func.func @transform_5(%arg0: i32) -> (i32, i32) {
    %c0_i32 = arith.constant 0 : i32
    %c0_i32_0 = arith.constant 0 : i32
    %c0_i32_1 = arith.constant 0 : i32
    return %c0_i32, %c0_i32_0 : i32, i32
  }
  func.func @transform_6(%arg0: i32) -> (i32, i32) {
    %c0_i32 = arith.constant 0 : i32
    %c0_i32_0 = arith.constant 0 : i32
    %c0_i32_1 = arith.constant 0 : i32
    return %c0_i32, %c0_i32_0 : i32, i32
  }
  func.func @transform_7(%arg0: i32) -> (i32, i32) {
    %c0_i32 = arith.constant 0 : i32
    %c0_i32_0 = arith.constant 0 : i32
    return %arg0, %c0_i32 : i32, i32
  }
}

</mosaic_0001>

<bundles_post_ra>
// kernel: qnetwork_forward.3
= control target key start
LH: loop header
LB: loop body
LE: loop exit
PB: predicated region body
PF: predicated region fallthrough
CT: control target
= control target key end

     0   :  { %s5116_s12 = smov 0   ;;  %s7159_s0 = inlined_call_operand.vmem [shape: f32[2,21,21,64], index: 0, kind: input, shape index: {}]   ;;  %s7160_s1 = inlined_call_operand.vmem [shape: f32[256,16], index: 1, kind: input, shape index: {}]   ;;  %s7161_s2 = inlined_call_operand.vmem [shape: f32[1,16], index: 2, kind: input, shape index: {}]   ;;  %s7162_s3 = inlined_call_operand.vmem [shape: f32[2,20,20,16], index: 3, kind: output, shape index: {}]  }
   0x1 LB: > { %s3689_s13 = sadd.s32 4294967295, %s5093_s12   ;;  %p3693_p0 = scmp.ge.s32.totalorder %s5093_s12, 1  ;;  %s5093_s12 = sphi %s5116_s12, %s13_s12  }
   0x2   : > { %p137_p1 = scmp.lt.s32.totalorder %s5093_s12, 3 }
   0x4   : > { %p138_p2 = pnand %p3693_p0, %p137_p1 }
   0x6   : > { %141 = sbr.rel (%p138_p2) target bundleno = 706 (0x2c2), region = 32 }
   0xb   : > { %p161_p3 = scmp.lt.s32.totalorder %s3689_s13, 1  ;;  %v5127_v0 = vld [vmem:[%s7160_s1 + $0xf8] sm:$0xff]  ;;  %v5137_v2 = vld [vmem:[%s7160_s1 + $0xf0] sm:$0xff]  ;;  %v5153_v4 = vld [vmem:[%s7160_s1 + $0xe8] sm:$0xff]  ;;  %vm181_vm0 = vcmask 1046528   ;;  %s5095_s23 = smov 64  }
   0xc   : > { %7189 = vst [vmem:[#allocation2_spill] sm:$0xff] %v5127_v0  ;;  %v5132_v1 = vld [vmem:[%s7160_s1 + $0x78] sm:$0xff]  ;;  %3892 = vmatprep.subr.mxu0 %v5127_v0  ;;  %3933 = vmatprep.subr.mxu1 %v5127_v0  ;;  %v5144_v3 = vld [vmem:[%s7160_s1 + $0x70] sm:$0xff]  ;;  %v5160_v5 = vld [vmem:[%s7160_s1 + $0x68] sm:$0xff]  ;;  %vm213_vm1 = vcmask 523264   ;;  %vm342_vm2 = vcmask 130048  }
   0xd   : > { %s7222_s13 = smov (!%p161_p3, %s3689_s13), 1  ;;  %3893 = vmatpush3.msra.mxu0 %v5132_v1  ;;  %3934 = vmatpush3.msra.mxu1 %v5132_v1  ;;  %v5168_v6 = vld [vmem:[%s7160_s1 + $0xe0] sm:$0xff]  ;;  %v5187_v8 = vld [vmem:[%s7160_s1 + $0xd8] sm:$0xff]  ;;  %v5197_v10 = vld [vmem:[%s7160_s1 + $0xd0] sm:$0xff]  ;;  %vm345_vm3 = vcmask 125952  }
   0xe   : > { %3894 = vmatprep.subr.mxu0 %v5137_v2  ;;  %3935 = vmatprep.subr.mxu1 %v5137_v2  ;;  %s4712_s26 = smul.u32 504, %s7222_s13  ;;  %v5175_v7 = vld [vmem:[%s7160_s1 + $0x60] sm:$0xff]  ;;  %v5192_v9 = vld [vmem:[%s7160_s1 + $0x58] sm:$0xff]  ;;  %v5213_v14 = vld [vmem:[%s7160_s1 + $0x50] sm:$0xff] }
   0xf   : > { %3895 = vmatpush3.msra.mxu0 %v5144_v3  ;;  %3936 = vmatpush3.msra.mxu1 %v5144_v3  ;;  %v5242_v25 = vld [vmem:[%s7160_s1 + $0xc8] sm:$0xff]  ;;  %v5277_v37 = vld [vmem:[%s7160_s1 + $0xc0] sm:$0xff]  ;;  %v5325_v57 = vld [vmem:[%s7160_s1 + $0xb8] sm:$0xff]  ;;  %s4713_s14 = smul.u32 480, %s7222_s13 }
  0x10   : > { %3896 = vmatprep.subr.mxu0 %v5153_v4  ;;  %3937 = vmatprep.subr.mxu1 %v5153_v4  ;;  %s5180_s6 = scalar_lea.vmem %s7159_s0, %s4712_s26  ;;  %v5257_v30 = vld [vmem:[%s7160_s1 + $0x48] sm:$0xff]  ;;  %v5304_v49 = vld [vmem:[%s7160_s1 + $0x40] sm:$0xff]  ;;  %v5339_v61 = vld [vmem:[%s7160_s1 + $0x38] sm:$0xff] }
  0x11   : > { %3897 = vmatpush3.msra.mxu0 %v5160_v5  ;;  %3938 = vmatpush3.msra.mxu1 %v5160_v5  ;;  %v5200_v11 = vld [vmem:[%s5180_s6 + $0x18] sm:$0xff]  ;;  %v5203_v12 = vld [vmem:[%s5180_s6 + $0x20] sm:$0xff]  ;;  %v5206_v13 = vld [vmem:[%s5180_s6 + $0x30] sm:$0xff]  ;;  %s6414_s25 = scalar_lea.vmem %s7162_s3, %s4713_s14 }
  0x12   : > { %3898 = vmatprep.subr.mxu0 %v5168_v6  ;;  %3939 = vmatprep.subr.mxu1 %v5168_v6  ;;  %v199_v15 = vrot.slane %v5200_v11, 1  ;;  %v200_v16 = vrot.slane %v5203_v12, 1  ;;  %v5218_v17 = vld [vmem:[%s5180_s6 + $0x38] sm:$0xff]  ;;  %v374_v18 = vrot.slane %v5206_v13, 1  ;;  %v5222_v19 = vld [vmem:[%s5180_s6] sm:$0xff]  ;;  %v5225_v20 = vld [vmem:[%s5180_s6 + $0x8] sm:$0xff] }
  0x13   : > { %3899 = vmatpush3.msra.mxu0 %v5175_v7  ;;  %3940 = vmatpush3.msra.mxu1 %v5175_v7  ;;  %v5230_v21 = vrot.slane %v5218_v17, 1  ;;  %v182_v22 = vrot.slane %v5222_v19, 1  ;;  %v183_v23 = vrot.slane %v5225_v20, 1  ;;  %v5235_v24 = vld [vmem:[%s5180_s6 + $0x28] sm:$0x1f]  ;;  %v5283_v41 = vld [vmem:[%s5180_s6 + $0x50] sm:$0xff] }
  0x14   : > { %3900 = vmatprep.subr.mxu0 %v5187_v8  ;;  %3941 = vmatprep.subr.mxu1 %v5187_v8  ;;  %v201_v26 = vsel %vm181_vm0, %v199_v15, %v200_v16  ;;  %v202_v27 = vrot.slane %v5235_v24, 1  ;;  %v5247_v28 = vld [vmem:[%s5180_s6 + $0x40] sm:$0x1f]  ;;  %v5250_v29 = vld [vmem:[%s5180_s6 + $0x10] sm:$0x1f]  ;;  %v5270_v36 = vld [vmem:[%s5180_s6 + $0x48] sm:$0xff] }
  0x15   : > { %3901 = vmatpush3.msra.mxu0 %v5192_v9  ;;  %3942 = vmatpush3.msra.mxu1 %v5192_v9  ;;  %v5261_v31 = vsel %vm181_vm0, %v374_v18, %v5230_v21  ;;  %v184_v32 = vsel %vm181_vm0, %v182_v22, %v183_v23  ;;  %v377_v33 = vrot.slane %v5247_v28, 1  ;;  %v185_v34 = vrot.slane %v5250_v29, 1  ;;  %v5267_v35 = vld [vmem:[%s5180_s6 + $0x28] sm:$0x1f]  ;;  %7190 = vst [vmem:[#allocation3_spill] sm:$0xff] %v5270_v36  ;;  %v5286_v42 = vld [vmem:[%s5180_s6 + $0x60] sm:$0xff] }
  0x16   : > { %3902 = vmatprep.subr.mxu0 %v5197_v10  ;;  %3943 = vmatprep.subr.mxu1 %v5197_v10  ;;  %v4723_v38 = vpack.i.bf16 %v5261_v31, %v201_v26  ;;  %v203_v39 = vsel %vm181_vm0, %v200_v16, %v202_v27  ;;  %v360_v40 = vrot.slane %v5267_v35, 1  ;;  %7191 = vst [vmem:[#allocation4_spill] sm:$0xff] %v5283_v41  ;;  %7192 = vst [vmem:[#allocation5_spill] sm:$0xff] %v5286_v42  ;;  %v5289_v43 = vld [vmem:[%s5180_s6 + $0x68] sm:$0xff]  ;;  %v5316_v55 = vld [vmem:[%s5180_s6 + $0x58] sm:$0x1f] }
  0x17   : > { %7193 = vst [vmem:[#allocation6_spill] sm:$0xff] %v5289_v43  ;;  %3903 = vmatpush3.msra.mxu0 %v5213_v14  ;;  %3944 = vmatpush3.msra.mxu1 %v5213_v14  ;;  %v378_v44 = vsel %vm181_vm0, %v5230_v21, %v377_v33  ;;  %v186_v45 = vsel %vm181_vm0, %v183_v23, %v185_v34  ;;  %v547_v50 = vrot.slane %v5270_v36, 1  ;;  %v548_v51 = vrot.slane %v5283_v41, 1  ;;  %v5319_v56 = vld [vmem:[%s5180_s6 + $0x70] sm:$0x1f] }
  0x18   : > { %3904 = vmatprep.subr.mxu0 %v5242_v25  ;;  %3945 = vmatprep.subr.mxu1 %v5242_v25  ;;  %v4728_v46 = vpack.i.bf16 %v201_v26, %v184_v32  ;;  %v4738_v47 = vpack.i.bf16 %v378_v44, %v203_v39  ;;  %v361_v48 = vsel %vm181_vm0, %v200_v16, %v360_v40  ;;  %v720_v52 = vrot.slane %v5286_v42, 1  ;;  %v5331_v59 = vld [vmem:[%s5180_s6 + $0x40] sm:$0x1f]  ;;  %v5334_v60 = vld [vmem:[%s5180_s6 + $0x58] sm:$0x1f]  ;;  %v5352_v18 = vld [vmem:[%s7160_s1 + $0xb0] sm:$0xff] }
  0x19   : > { %4724 = vrot.lane.b32.xlu0 %v4723_v38, %s5095_s23  ;;  %3905 = vmatpush3.msra.mxu0 %v5257_v30  ;;  %v5310_v53 = vrot.slane %v5289_v43, 1  ;;  %v4743_v54 = vpack.i.bf16 %v361_v48, %v186_v45  ;;  %7194 = vst [vmem:[#allocation7_spill] sm:$0xff] %v5316_v55  ;;  %7195 = vst [vmem:[#allocation8_spill] sm:$0xff] %v5319_v56  ;;  %v4733_v58 = vpack.i.bf16 %v377_v33, %v202_v27  ;;  %v5366_v32 = vld [vmem:[%s7160_s1 + $0x30] sm:$0xff]  ;;  %v5372_v38 = vld [vmem:[%s5180_s6 + $0x78] sm:$0xff] }
  0x1a   : > { %3946 = vmatpush3.msra.mxu1 %v5257_v30  ;;  %3906 = vmatprep.subr.mxu0 %v5277_v37  ;;  %7196 = vst [vmem:[#allocation9_spill] sm:$0xff] %v5331_v59  ;;  %7197 = vst [vmem:[#allocation10_spill] sm:$0xff] %v5334_v60  ;;  %v549_v62 = vsel %vm181_vm0, %v547_v50, %v548_v51  ;;  %v550_v15 = vrot.slane %v5316_v55, 1  ;;  %v723_v16 = vrot.slane %v5319_v56, 1  ;;  %v533_v23 = vrot.slane %v5331_v59, 1  ;;  %v3734_v39 = vld [vmem:[%s5180_s6 + $0x80] sm:$0xff] }
  0x1b   : > { %4739 = vrot.lane.b32.xlu1 %v4738_v47, %s5095_s23  ;;  %3947 = vmatprep.subr.mxu1 %v5277_v37  ;;  %v5344_v63 = vsel %vm181_vm0, %v720_v52, %v5310_v53  ;;  %v4748_v22 = vpack.i.bf16 %v360_v40, %v185_v34  ;;  %v706_v26 = vrot.slane %v5334_v60, 1  ;;  %7198 = vst [vmem:[#allocation11_spill] sm:$0xff] %v5372_v38  ;;  %v5379_v40 = vld [vmem:[%s7160_s1 + $0xa8] sm:$0xff]  ;;  %v5384_v45 = vld [vmem:[%s5180_s6 + $0x90] sm:$0xff]  ;;  %v5402_v52 = vld [vmem:[%s7160_s1 + $0xa0] sm:$0xff] }
  0x1c   : > { %3907 = vmatpush3.msra.mxu0 %v5304_v49  ;;  %3948 = vmatpush3.msra.mxu1 %v5304_v49  ;;  %v4753_v27 = vpack.i.bf16 %v5344_v63, %v549_v62  ;;  %v551_v33 = vsel %vm181_vm0, %v548_v51, %v550_v15  ;;  %v724_v34 = vsel %vm181_vm0, %v5310_v53, %v723_v16  ;;  %v5390_v47 = vld [vmem:[%s7160_s1 + $0x28] sm:$0xff]  ;;  %v3763_v59 = vld [vmem:[%s5180_s6 + $0xc0] sm:$0xff] }
  0x1d   : > { %4729 = vrot.lane.b32.xlu0 %v4728_v46, %s5095_s23  ;;  %3908 = vmatprep.subr.mxu0 %v5325_v57  ;;  %v4758_v44 = vpack.i.bf16 %v549_v62, %v5261_v31  ;;  %7199 = vst [vmem:[#allocation12_spill] sm:$0xff] %v5384_v45  ;;  %v3744_v46 = vld [vmem:[%s5180_s6 + $0x98] sm:$0xff]  ;;  %v534_v48 = vsel %vm181_vm0, %v5230_v21, %v533_v23  ;;  %v893_v21 = vrot.slane %v5372_v38, 1  ;;  %v5413_v62 = vld [vmem:[%s7160_s1 + $0x20] sm:$0xff]  ;;  %v3754_v38 = vld [vmem:[%s5180_s6 + $0xb0] sm:$0xff] }
  0x1e   : > { %3949 = vmatprep.subr.mxu1 %v5325_v57  ;;  %3909 = vmatpush3.msra.mxu0 %v5339_v61  ;;  %v707_v50 = vsel %vm181_vm0, %v548_v51, %v706_v26  ;;  %v4763_v31 = vpack.i.bf16 %v724_v34, %v551_v33  ;;  %v1066_v51 = vrot.slane %v5384_v45, 1  ;;  %v5420_v33 = vld [vmem:[%s5180_s6 + $0xa0] sm:$0x1f]  ;;  %v5426_v34 = vld [vmem:[%s7160_s1 + $0x98] sm:$0xff]  ;;  %v3764_v56 = vld [vmem:[%s5180_s6 + $0xc8] sm:$0xff] }
  0x1f   : > { %4744 = vrot.lane.b32.xlu1 %v4743_v54, %s5095_s23  ;;  %3950 = vmatpush3.msra.mxu1 %v5339_v61  ;;  %v894_v54 = vrot.slane %v3734_v39, 1  ;;  %v4773_v39 = vpack.i.bf16 %v723_v16, %v550_v15  ;;  %v1069_v15 = vrot.slane %v5420_v33, 1  ;;  %v5455_v16 = vld [vmem:[%s7160_s1 + $0x90] sm:$0xff]  ;;  %v5496_v55 = vld [vmem:[%s7160_s1 + $0x80] sm:$0xff]  ;;  %v5510_v42 = vrot.slane %v3764_v56, 1 }
  0x20   : > { %3910 = vmatprep.subr.mxu0 %v5352_v18  ;;  %3951 = vmatprep.subr.mxu1 %v5352_v18  ;;  %7203 = vst [vmem:[#allocation16_spill] sm:$0xff] %v5496_v55  ;;  %v3752_v56 = vld [vmem:[%s5180_s6 + $0xa0] sm:$0x1f] }
  0x21   : > { %4734 = vrot.lane.b32.xlu0 %v4733_v58, %s5095_s23  ;;  %3911 = vmatpush3.msra.mxu0 %v5366_v32  ;;  %v5406_v58 = vrot.slane %v3744_v46, 1  ;;  %v5435_v46 = vld [vmem:[%s5180_s6 + $0x88] sm:$0x1f]  ;;  %v3785_v36 = vld [vmem:[%s5180_s6 + $0x100] sm:$0x1f] }
  0x22   : > { %3952 = vmatpush3.msra.mxu1 %v5366_v32  ;;  %3912 = vmatprep.subr.mxu0 %v5379_v40  ;;  %v1052_v33 = vrot.slane %v5435_v46, 1  ;;  %v3753_v46 = vld [vmem:[%s5180_s6 + $0xa8] sm:$0xff] }
  0x23   : > { %4749 = vrot.lane.b32.xlu1 %v4748_v22, %s5095_s23  ;;  %3953 = vmatprep.subr.mxu1 %v5379_v40  ;;  %v4768_v22 = vpack.i.bf16 %v707_v50, %v534_v48  ;;  %v5441_v48 = vld [vmem:[%s7160_s1 + $0x18] sm:$0xff]  ;;  %v895_v50 = vsel %vm181_vm0, %v893_v21, %v894_v54  ;;  %v5446_v45 = vsel %vm181_vm0, %v1066_v51, %v5406_v58  ;;  %v5462_v51 = vld [vmem:[%s7160_s1 + $0x10] sm:$0xff] }
  0x24   : > { %3913 = vmatpush3.msra.mxu0 %v5390_v47  ;;  %3954 = vmatpush3.msra.mxu1 %v5390_v47  ;;  %v4778_v21 = vpack.i.bf16 %v706_v26, %v533_v23  ;;  %7200 = vst [vmem:[#allocation13_spill] sm:$0xff] %v5462_v51  ;;  %v4783_v23 = vpack.i.bf16 %v5446_v45, %v895_v50  ;;  %v5474_v26 = vld [vmem:[%s7160_s1 + $0x88] sm:$0xff] }
  0x25   : > { %4754 = vrot.lane.b32.xlu0 %v4753_v27, %s5095_s23  ;;  %v5417_v27 = vld [vmem:[%s5180_s6 + $0x88] sm:$0x1f]  ;;  %3914 = vmatprep.subr.mxu0 %v5402_v52  ;;  %7201 = vst [vmem:[#allocation14_spill] sm:$0xff] %v5474_v26  ;;  %v4788_v60 = vpack.i.bf16 %v895_v50, %v5344_v63  ;;  %v1053_v41 = vsel %vm181_vm0, %v894_v54, %v1052_v33  ;;  %v5508_v50 = vld [vmem:[%s7160_s1] sm:$0xff] }
  0x26   : > { %3955 = vmatprep.subr.mxu1 %v5402_v52  ;;  %3915 = vmatpush3.msra.mxu0 %v5413_v62  ;;  %7204 = vst [vmem:[#allocation17_spill] sm:$0xff] %v5508_v50 }
  0x27   : > { %4759 = vrot.lane.b32.xlu1 %v4758_v44, %s5095_s23  ;;  %v5432_v44 = vld [vmem:[%s5180_s6 + $0x70] sm:$0x1f]  ;;  %3956 = vmatpush3.msra.mxu1 %v5413_v62 }
  0x28   : > { %3916 = vmatprep.subr.mxu0 %v5426_v34  ;;  %3957 = vmatprep.subr.mxu1 %v5426_v34 }
  0x29   : > { %4764 = vrot.lane.b32.xlu0 %v4763_v31, %s5095_s23  ;;  %v896_v31 = vrot.slane %v5417_v27, 1  ;;  %v879_v27 = vrot.slane %v5432_v44, 1  ;;  %3917 = vmatpush3.msra.mxu0 %v5441_v48  ;;  %v1070_v44 = vsel %vm181_vm0, %v5406_v58, %v1069_v15 }
  0x2a   : > { %3958 = vmatpush3.msra.mxu1 %v5441_v48  ;;  %3918 = vmatprep.subr.mxu0 %v5455_v16 }
  0x2b   : > { %4769 = vrot.lane.b32.xlu1 %v4768_v22, %s5095_s23  ;;  %v897_v22 = vsel %vm181_vm0, %v894_v54, %v896_v31  ;;  %3959 = vmatprep.subr.mxu1 %v5455_v16  ;;  %v880_v43 = vsel %vm181_vm0, %v5310_v53, %v879_v27  ;;  %v1240_v53 = vrot.slane %v3754_v38, 1  ;;  %v1412_v54 = vrot.slane %v3763_v59, 1  ;;  %v3762_v38 = vld [vmem:[%s5180_s6 + $0xb8] sm:$0x1f] }
  0x2c   : > { %3919 = vmatpush3.msra.mxu0 %v5462_v51  ;;  %3960 = vmatpush3.msra.mxu1 %v5462_v51  ;;  %v4793_v63 = vpack.i.bf16 %v1070_v44, %v897_v22  ;;  %v3755_v22 = vld [vmem:[%s5180_s6 + $0xb8] sm:$0x1f]  ;;  %v3765_v44 = vld [vmem:[%s5180_s6 + $0xd0] sm:$0x1f]  ;;  %v4803_v59 = vpack.i.bf16 %v1069_v15, %v896_v31  ;;  %v4808_v31 = vpack.i.bf16 %v1052_v33, %v879_v27  ;;  %v1225_v15 = vrot.slane %v3752_v56, 1 }
  0x2d   : > { %4774 = vrot.lane.b32.xlu0 %v4773_v39, %s5095_s23  ;;  %v5486_v39 = vld [vmem:[%s7160_s1 + $0x8] sm:$0xff]  ;;  %3920 = vmatprep.subr.mxu0 %v5474_v26  ;;  %v3784_v27 = vld [vmem:[%s5180_s6 + $0xf8] sm:$0xff]  ;;  %v3772_v51 = vld [vmem:[%s5180_s6 + $0xd0] sm:$0x1f] }
  0x2e   : > { %7202 = vst [vmem:[#allocation15_spill] sm:$0xff] %v5486_v39  ;;  %3961 = vmatprep.subr.mxu1 %v5474_v26  ;;  %3921 = vmatpush3.msra.mxu0 %v5486_v39  ;;  %v1226_v33 = vsel %vm181_vm0, %v5406_v58, %v1225_v15  ;;  %v3782_v58 = vld [vmem:[%s5180_s6 + $0xe8] sm:$0x1f] }
  0x2f   : > { %4779 = vrot.lane.b32.xlu1 %v4778_v21, %s5095_s23  ;;  %v1239_v21 = vrot.slane %v3753_v46, 1  ;;  %3962 = vmatpush3.msra.mxu1 %v5486_v39 }
  0x30   : > { %3922 = vmatprep.subr.mxu0 %v5496_v55  ;;  %3963 = vmatprep.subr.mxu1 %v5496_v55 }
  0x31   : > { %4784 = vrot.lane.b32.xlu0 %v4783_v23, %s5095_s23  ;;  %v4798_v23 = vpack.i.bf16 %v1053_v41, %v880_v43  ;;  %3923 = vmatpush3.msra.mxu0 %v5508_v50  ;;  %v1241_v46 = vsel %vm181_vm0, %v1239_v21, %v1240_v53  ;;  %v1414_v41 = vsel %vm181_vm0, %v1412_v54, %v5510_v42  ;;  %v1242_v43 = vrot.slane %v3755_v22, 1  ;;  %v3773_v54 = vld [vmem:[%s5180_s6 + $0xd8] sm:$0xff] }
  0x32   : > { %3964 = vmatpush3.msra.mxu1 %v5508_v50  ;;  %3974 = vmatprep.subr.mxu0 %v5127_v0  ;;  %v4813_v50 = vpack.i.bf16 %v1414_v41, %v1241_v46  ;;  %v4818_v22 = vpack.i.bf16 %v1241_v46, %v5446_v45  ;;  %v3775_v46 = vld [vmem:[%s5180_s6 + $0xe8] sm:$0x1f] }
  0x33   : > { %4789 = vrot.lane.b32.xlu1 %v4788_v60, %s5095_s23  ;;  %4015 = vmatprep.subr.mxu1 %v5127_v0  ;;  %v1415_v60 = vrot.slane %v3765_v44, 1  ;;  %v1243_v21 = vsel %vm181_vm0, %v1240_v53, %v1242_v43  ;;  %v3774_v44 = vld [vmem:[%s5180_s6 + $0xe0] sm:$0xff] }
  0x34   : > { %v1586_v0 = vrot.slane %v3774_v44, 1  ;;  %v1744_v44 = vrot.slane %v3782_v58, 1 }
  0x35   : > { %4794 = vrot.lane.b32.xlu0 %v4793_v63, %s5095_s23  ;;  %v1398_v63 = vrot.slane %v3762_v38, 1  ;;  %v1416_v55 = vsel %vm181_vm0, %v5510_v42, %v1415_v60  ;;  %v1585_v38 = vrot.slane %v3773_v54, 1  ;;  %v4833_v26 = vpack.i.bf16 %v1415_v60, %v1242_v43 }
  0x36   : > { %v4823_v56 = vpack.i.bf16 %v1416_v55, %v1243_v21  ;;  %v1761_v21 = vrot.slane %v3785_v36, 1 }
  0x37   : > { %4799 = vrot.lane.b32.xlu1 %v4798_v23, %s5095_s23  ;;  %v3783_v23 = vld [vmem:[%s5180_s6 + $0xf0] sm:$0xff]  ;;  %v4838_v54 = vpack.i.bf16 %v1398_v63, %v1225_v15 }
  0x38   : > { %v1758_v39 = vrot.slane %v3783_v23, 1 }
  0x39   : > { %4804 = vrot.lane.b32.xlu0 %v4803_v59, %s5095_s23  ;;  %v1399_v59 = vsel %vm181_vm0, %v1240_v53, %v1398_v63  ;;  %v1587_v53 = vsel %vm181_vm0, %v1585_v38, %v1586_v0 }
  0x3a   : > { %v4828_v45 = vpack.i.bf16 %v1399_v59, %v1226_v33  ;;  %v4848_v33 = vpack.i.bf16 %v1587_v53, %v1414_v41  ;;  %v3803_v59 = vld [vmem:[%s5180_s6 + $0x120] sm:$0xff] }
  0x3b   : > { %4809 = vrot.lane.b32.xlu1 %v4808_v31, %s5095_s23  ;;  %v1759_v31 = vrot.slane %v3784_v27, 1  ;;  %v3793_v27 = vld [vmem:[%s5180_s6 + $0x108] sm:$0xff]  ;;  %v2104_v38 = vrot.slane %v3803_v59, 1 }
  0x3c   : > { %v1931_v15 = vrot.slane %v3793_v27, 1  ;;  %v3802_v27 = vld [vmem:[%s5180_s6 + $0x118] sm:$0x1f] }
  0x3d   : > { %4814 = vrot.lane.b32.xlu0 %v4813_v50, %s5095_s23  ;;  %v1760_v55 = vsel %vm181_vm0, %v1758_v39, %v1759_v31  ;;  %v1588_v50 = vrot.slane %v3775_v46, 1  ;;  %v1762_v60 = vsel %vm181_vm0, %v1759_v31, %v1761_v21  ;;  %v3794_v39 = vld [vmem:[%s5180_s6 + $0x110] sm:$0xff] }
  0x3e   : > { %v4843_v23 = vpack.i.bf16 %v1760_v55, %v1587_v53  ;;  %v1932_v63 = vrot.slane %v3794_v39, 1 }
  0x3f   : > { %4819 = vrot.lane.b32.xlu1 %v4818_v22, %s5095_s23  ;;  %v1571_v22 = vrot.slane %v3772_v51, 1  ;;  %v1589_v43 = vsel %vm181_vm0, %v1586_v0, %v1588_v50  ;;  %v1745_v51 = vsel %vm181_vm0, %v1586_v0, %v1744_v44  ;;  %v4863_v46 = vpack.i.bf16 %v1761_v21, %v1588_v50  ;;  %v3805_v50 = vld [vmem:[%s5180_s6 + $0x130] sm:$0x1f] }
  0x41   : > { %4824 = vrot.lane.b32.xlu0 %v4823_v56, %s5095_s23  ;;  %v3804_v56 = vld [vmem:[%s5180_s6 + $0x128] sm:$0xff]  ;;  %v1572_v36 = vsel %vm181_vm0, %v5510_v42, %v1571_v22  ;;  %v1933_v42 = vsel %vm181_vm0, %v1931_v15, %v1932_v63  ;;  %v4868_v58 = vpack.i.bf16 %v1744_v44, %v1571_v22  ;;  %v3813_v15 = vld [vmem:[%s5180_s6 + $0x138] sm:$0xff] }
  0x42   : > { %v4858_v41 = vpack.i.bf16 %v1745_v51, %v1572_v36 }
  0x43   : > { %4829 = vrot.lane.b32.xlu1 %v4828_v45, %s5095_s23  ;;  %v2105_v45 = vrot.slane %v3804_v56, 1 }
  0x45   : > { %4834 = vrot.lane.b32.xlu0 %v4833_v26, %s5095_s23  ;;  %v4853_v26 = vpack.i.bf16 %v1762_v60, %v1589_v43  ;;  %v2106_v0 = vsel %vm181_vm0, %v2104_v38, %v2105_v45  ;;  %v2107_v43 = vrot.slane %v3805_v50, 1  ;;  %v3792_v60 = vld [vmem:[%s5180_s6 + $0x100] sm:$0x1f] }
  0x46   : > { %v4873_v53 = vpack.i.bf16 %v2106_v0, %v1933_v42  ;;  %v3814_v38 = vld [vmem:[%s5180_s6 + $0x140] sm:$0xff] }
  0x47   : > { %4839 = vrot.lane.b32.xlu1 %v4838_v54, %s5095_s23  ;;  %v4878_v54 = vpack.i.bf16 %v1933_v42, %v1760_v55  ;;  %v2108_v44 = vsel %vm181_vm0, %v2105_v45, %v2107_v43  ;;  %v2090_v55 = vrot.slane %v3802_v27, 1  ;;  %v3823_v42 = vld [vmem:[%s5180_s6 + $0x150] sm:$0xff] }
  0x49   : > { %4844 = vrot.lane.b32.xlu0 %v4843_v23, %s5095_s23  ;;  %v3795_v23 = vld [vmem:[%s5180_s6 + $0x118] sm:$0x1f]  ;;  %v2091_v56 = vsel %vm181_vm0, %v1932_v63, %v2090_v55 }
  0x4a   : > { %v1934_v21 = vrot.slane %v3795_v23, 1 }
  0x4b   : > { %4849 = vrot.lane.b32.xlu1 %v4848_v33, %s5095_s23  ;;  %v1917_v33 = vrot.slane %v3792_v60, 1 }
  0x4c   : > { %v1935_v22 = vsel %vm181_vm0, %v1932_v63, %v1934_v21  ;;  %v4893_v51 = vpack.i.bf16 %v2107_v43, %v1934_v21  ;;  %v2450_v63 = vrot.slane %v3823_v42, 1  ;;  %v3815_v21 = vld [vmem:[%s5180_s6 + $0x148] sm:$0x1f]  ;;  %v3825_v43 = vld [vmem:[%s5180_s6 + $0x160] sm:$0x1f] }
  0x4d   : > { %4854 = vrot.lane.b32.xlu0 %v4853_v26, %s5095_s23  ;;  %v4883_v39 = vpack.i.bf16 %v2108_v44, %v1935_v22  ;;  %v1918_v59 = vsel %vm181_vm0, %v1759_v31, %v1917_v33  ;;  %v4898_v26 = vpack.i.bf16 %v2090_v55, %v1917_v33  ;;  %v3824_v31 = vld [vmem:[%s5180_s6 + $0x158] sm:$0xff]  ;;  %v2280_v60 = vrot.slane %v3815_v21, 1  ;;  %v3812_v22 = vld [vmem:[%s5180_s6 + $0x130] sm:$0x1f]  ;;  %v3822_v44 = vld [vmem:[%s5180_s6 + $0x148] sm:$0x1f] }
  0x4e   : > { %v4888_v36 = vpack.i.bf16 %v2091_v56, %v1918_v59  ;;  %v2453_v27 = vrot.slane %v3825_v43, 1  ;;  %v3843_v42 = vld [vmem:[%s5180_s6 + $0x180] sm:$0xff] }
  0x4f   : > { %4859 = vrot.lane.b32.xlu1 %v4858_v41, %s5095_s23  ;;  %v2277_v41 = vrot.slane %v3813_v15, 1 }
  0x51   : > { %4864 = vrot.lane.b32.xlu0 %v4863_v46, %s5095_s23  ;;  %v2278_v46 = vrot.slane %v3814_v38, 1  ;;  %v3833_v38 = vld [vmem:[%s5180_s6 + $0x168] sm:$0xff] }
  0x53   : > { %4869 = vrot.lane.b32.xlu1 %v4868_v58, %s5095_s23  ;;  %v5589_v58 = vrot.slane %v3824_v31, 1  ;;  %v2281_v33 = vsel %vm181_vm0, %v2278_v46, %v2280_v60  ;;  %v2623_v31 = vrot.slane %v3833_v38, 1 }
  0x55   : > { %4874 = vrot.lane.b32.xlu0 %v4873_v53, %s5095_s23  ;;  %v2279_v53 = vsel %vm181_vm0, %v2277_v41, %v2278_v46  ;;  %v2454_v55 = vsel %vm181_vm0, %v5589_v58, %v2453_v27  ;;  %v3834_v41 = vld [vmem:[%s5180_s6 + $0x170] sm:$0xff] }
  0x56   : > { %v4908_v50 = vpack.i.bf16 %v2279_v53, %v2106_v0  ;;  %v2436_v0 = vrot.slane %v3822_v44, 1  ;;  %v4913_v59 = vpack.i.bf16 %v2454_v55, %v2281_v33 }
  0x57   : > { %4879 = vrot.lane.b32.xlu1 %v4878_v54, %s5095_s23  ;;  %v2452_v54 = vsel %vm181_vm0, %v2450_v63, %v5589_v58  ;;  %v5611_v63 = vrot.slane %v3834_v41, 1 }
  0x58   : > { %v4903_v23 = vpack.i.bf16 %v2452_v54, %v2279_v53  ;;  %v3844_v53 = vld [vmem:[%s5180_s6 + $0x188] sm:$0xff] }
  0x59   : > { %4884 = vrot.lane.b32.xlu0 %v4883_v39, %s5095_s23  ;;  %v2263_v39 = vrot.slane %v3812_v22, 1 }
  0x5b   : > { %4889 = vrot.lane.b32.xlu1 %v4888_v36, %s5095_s23  ;;  %v2264_v56 = vsel %vm181_vm0, %v2105_v45, %v2263_v39  ;;  %v2437_v36 = vsel %vm181_vm0, %v2278_v46, %v2436_v0  ;;  %v4928_v15 = vpack.i.bf16 %v2436_v0, %v2263_v39  ;;  %v5615_v45 = vrot.slane %v3844_v53, 1 }
  0x5d   : > { %4894 = vrot.lane.b32.xlu0 %v4893_v51, %s5095_s23  ;;  %v4918_v51 = vpack.i.bf16 %v2437_v36, %v2264_v56 }
  0x5f   : > { %4899 = vrot.lane.b32.xlu1 %v4898_v26, %s5095_s23  ;;  %v4923_v26 = vpack.i.bf16 %v2453_v27, %v2280_v60 }
  0x61   : > { %4904 = vrot.lane.b32.xlu0 %v4903_v23, %s5095_s23  ;;  %v2796_v23 = vrot.slane %v3843_v42, 1 }
  0x63   : > { %4909 = vrot.lane.b32.xlu1 %v4908_v50, %s5095_s23  ;;  %v2625_v50 = vsel %vm181_vm0, %v2623_v31, %v5611_v63  ;;  %v5621_v60 = vsel %vm181_vm0, %v2796_v23, %v5615_v45 }
  0x64   : > { %v4933_v27 = vpack.i.bf16 %v5621_v60, %v2625_v50  ;;  %v4938_v22 = vpack.i.bf16 %v2625_v50, %v2452_v54 }
  0x65   : > { %4914 = vrot.lane.b32.xlu0 %v4913_v59, %s5095_s23 }
  0x67   : > { %4919 = vrot.lane.b32.xlu1 %v4918_v51, %s5095_s23 }
  0x69   : > { %4924 = vrot.lane.b32.xlu0 %v4923_v26, %s5095_s23 }
  0x6b   : > { %4929 = vrot.lane.b32.xlu1 %v4928_v15, %s5095_s23 }
  0x6d   : > { %4934 = vrot.lane.b32.xlu0 %v4933_v27, %s5095_s23 }
  0x6f   : > { %4939 = vrot.lane.b32.xlu1 %v4938_v22, %s5095_s23 }
  0x8b   : > { %v4725_v46 = vpop.permute.xlu0 %4724 }
  0x8c   : > { %v4727_v21 = vunpack.i.h.bf16 %v4725_v46  ;;  %v4726_v43 = vunpack.i.l.bf16 %v4725_v46 }
  0x8e   : > { %v217_v44 = vsel %vm213_vm1, %v5200_v11, %v4726_v43  ;;  %v391_v33 = vsel %vm213_vm1, %v5206_v13, %v4727_v21 }
  0x8f   : > { %323 = vmatprep.mubr.f32.mxu0 %v217_v44  ;;  %497 = vmatprep.mubr.f32.mxu1 %v391_v33  ;;  %v4730_v55 = vpop.permute.xlu0 %4729 }
  0x90   : > { %v4732_v39 = vunpack.i.h.bf16 %v4730_v55  ;;  %v4731_v0 = vunpack.i.l.bf16 %v4730_v55 }
  0x92   : > { %v214_v59 = vsel %vm213_vm1, %v5222_v19, %v4731_v0  ;;  %v388_v54 = vsel %vm213_vm1, %v5200_v11, %v4732_v39  ;;  %v4740_v11 = vpop.permute.xlu1 %4739  ;;  %v7205_v39 = vld [vmem:[#allocation13_spill] sm:$0xff] }
  0x93   : > { %324 = vmatmul.mubr.f32.vlgmr.msra.gmra.mxu0 %v214_v59  ;;  %498 = vmatmul.mubr.f32.vlgmr.msra.gmra.mxu1 %v388_v54  ;;  %v4742_v19 = vunpack.i.h.bf16 %v4740_v11  ;;  %v4741_v56 = vunpack.i.l.bf16 %v4740_v11  ;;  %v4735_v41 = vpop.permute.xlu0 %4734  ;;  %v7208_v59 = vld [vmem:[#allocation15_spill] sm:$0xff]  ;;  %v7209_v54 = vld [vmem:[#allocation5_spill] sm:$0xff] }
  0x94   : > { %3975 = vmatpush3.msra.mxu0 %v5132_v1  ;;  %4016 = vmatpush3.msra.mxu1 %v5132_v1  ;;  %v4737_v31 = vunpack.i.h.bf16 %v4735_v41  ;;  %v4736_v53 = vunpack.i.l.bf16 %v4735_v41 }
  0x95   : > { %3976 = vmatprep.subr.mxu0 %v5137_v2  ;;  %4017 = vmatprep.subr.mxu1 %v5137_v2  ;;  %v218_v15 = vsel %vm213_vm1, %v5203_v12, %v4741_v56  ;;  %v392_v38 = vsel %vm213_vm1, %v5218_v17, %v4742_v19  ;;  %v7210_v19 = vld [vmem:[#allocation16_spill] sm:$0xff] }
  0x96   : > { %3977 = vmatpush3.msra.mxu0 %v5144_v3  ;;  %4018 = vmatpush3.msra.mxu1 %v5144_v3  ;;  %v4745_v36 = vpop.permute.xlu1 %4744 }
  0x97   : > { %3978 = vmatprep.subr.mxu0 %v5153_v4  ;;  %4019 = vmatprep.subr.mxu1 %v5153_v4  ;;  %v4747_v51 = vunpack.i.h.bf16 %v4745_v36  ;;  %v4746_v26 = vunpack.i.l.bf16 %v4745_v36  ;;  %v4755_v43 = vpop.permute.xlu0 %4754 }
  0x98   : > { %3979 = vmatpush3.msra.mxu0 %v5160_v5  ;;  %4020 = vmatpush3.msra.mxu1 %v5160_v5 }
  0x99   : > { %3980 = vmatprep.subr.mxu0 %v5168_v6  ;;  %4021 = vmatprep.subr.mxu1 %v5168_v6  ;;  %v215_v23 = vsel %vm213_vm1, %v5225_v20, %v4746_v26  ;;  %v389_v46 = vsel %vm213_vm1, %v5203_v12, %v4747_v51  ;;  %v219_v20 = vsel %vm213_vm1, %v5235_v24, %v4736_v53  ;;  %v4756_v24 = vunpack.i.l.bf16 %v4755_v43  ;;  %v7211_v51 = vld [vmem:[#allocation17_spill] sm:$0xff]  ;;  %v7212_v26 = vld [vmem:[#allocation2_spill] sm:$0xff] }
  0x9a   : > { %3981 = vmatpush3.msra.mxu0 %v5175_v7  ;;  %4022 = vmatpush3.msra.mxu1 %v5175_v7  ;;  %v4750_v42 = vpop.permute.xlu1 %4749  ;;  %v393_v12 = vsel %vm213_vm1, %v5247_v28, %v4737_v31  ;;  %v4757_v28 = vunpack.i.h.bf16 %v4755_v43  ;;  %v5821_v43 = vld [vmem:[%s7160_s1 + $0xf0] sm:$0xff] }
  0x9b   : > { %3982 = vmatprep.subr.mxu0 %v5187_v8  ;;  %4023 = vmatprep.subr.mxu1 %v5187_v8  ;;  %v4752_v50 = vunpack.i.h.bf16 %v4750_v42  ;;  %v4751_v21 = vunpack.i.l.bf16 %v4750_v42 }
  0x9c   : > { %3983 = vmatpush3.msra.mxu0 %v5192_v9  ;;  %4024 = vmatpush3.msra.mxu1 %v5192_v9  ;;  %v737_v11 = vsel %vm213_vm1, %v7209_v54, %v4757_v28  ;;  %v5856_v28 = vld [vmem:[%s7160_s1 + $0x60] sm:$0xff] }
  0x9d   : > { %3984 = vmatprep.subr.mxu0 %v5197_v10  ;;  %4025 = vmatprep.subr.mxu1 %v5197_v10  ;;  %v216_v27 = vsel %vm213_vm1, %v5250_v29, %v4751_v21  ;;  %v390_v22 = vsel %vm213_vm1, %v5267_v35, %v4752_v50  ;;  %v7206_v29 = vld [vmem:[#allocation14_spill] sm:$0xff]  ;;  %v7207_v35 = vld [vmem:[#allocation3_spill] sm:$0xff] }
  0x9e   : > { %3985 = vmatpush3.msra.mxu0 %v5213_v14  ;;  %4026 = vmatpush3.msra.mxu1 %v5213_v14  ;;  %v4760_v44 = vpop.permute.xlu1 %4759  ;;  %v564_v0 = vsel %vm213_vm1, %v7207_v35, %v4756_v24  ;;  %v5849_v24 = vld [vmem:[%s7160_s1 + $0xe0] sm:$0xff] }
  0x9f   : > { %3986 = vmatprep.subr.mxu0 %v5242_v25  ;;  %4027 = vmatprep.subr.mxu1 %v5242_v25  ;;  %v4762_v33 = vunpack.i.h.bf16 %v4760_v44  ;;  %v4761_v55 = vunpack.i.l.bf16 %v4760_v44  ;;  %v5842_v44 = vld [vmem:[%s7160_s1 + $0x68] sm:$0xff] }
  0xa0   : > { %3987 = vmatpush3.msra.mxu0 %v5257_v30  ;;  %4028 = vmatpush3.msra.mxu1 %v5257_v30 }
  0xa1   : > { %3988 = vmatprep.subr.mxu0 %v5277_v37  ;;  %4029 = vmatprep.subr.mxu1 %v5277_v37  ;;  %v561_v56 = vsel %vm213_vm1, %v5206_v13, %v4761_v55  ;;  %v734_v36 = vsel %vm213_vm1, %v7207_v35, %v4762_v33  ;;  %v5863_v33 = vld [vmem:[%s7160_s1 + $0xd8] sm:$0xff]  ;;  %v5891_v35 = vld [vmem:[%s7160_s1 + $0xc8] sm:$0xff] }
  0xa2   : > { %3989 = vmatpush3.msra.mxu0 %v5304_v49  ;;  %4030 = vmatpush3.msra.mxu1 %v5304_v49  ;;  %v5870_v55 = vld [vmem:[%s7160_s1 + $0x58] sm:$0xff] }
  0xa3   : > { %3990 = vmatprep.subr.mxu0 %v5325_v57  ;;  %4031 = vmatprep.subr.mxu1 %v5325_v57 }
  0xa4   : > { %3991 = vmatpush3.msra.mxu0 %v5339_v61  ;;  %4032 = vmatpush3.msra.mxu1 %v5339_v61 }
  0xa5   : > { %3992 = vmatprep.subr.mxu0 %v5352_v18  ;;  %4033 = vmatprep.subr.mxu1 %v5352_v18 }
  0xa6   : > { %3993 = vmatpush3.msra.mxu0 %v5366_v32  ;;  %4034 = vmatpush3.msra.mxu1 %v5366_v32 }
  0xa7   : > { %3994 = vmatprep.subr.mxu0 %v5379_v40  ;;  %4035 = vmatprep.subr.mxu1 %v5379_v40 }
  0xa8   : > { %328 = vmatprep.mubr.f32.mxu0 %v218_v15  ;;  %502 = vmatprep.mubr.f32.mxu1 %v392_v38  ;;  %v7218_v38 = vld [vmem:[#allocation10_spill] sm:$0xff] }
  0xa9   : > { %3995 = vmatpush3.msra.mxu0 %v5390_v47  ;;  %4036 = vmatpush3.msra.mxu1 %v5390_v47 }
  0xaa   : > { %3996 = vmatprep.subr.mxu0 %v5402_v52  ;;  %4037 = vmatprep.subr.mxu1 %v5402_v52 }
  0xab   : > { %329 = vmatmul.mubr.f32.gmra.mxu0 %v215_v23  ;;  %503 = vmatmul.mubr.f32.gmra.mxu1 %v389_v46 }
  0xac   : > { %3997 = vmatpush3.msra.mxu0 %v5413_v62  ;;  %4038 = vmatpush3.msra.mxu1 %v5413_v62 }
  0xad   : > { %3998 = vmatprep.subr.mxu0 %v5426_v34  ;;  %4039 = vmatprep.subr.mxu1 %v5426_v34 }
  0xae   : > { %3999 = vmatpush3.msra.mxu0 %v5441_v48  ;;  %4040 = vmatpush3.msra.mxu1 %v5441_v48 }
  0xaf   : > { %333 = vmatprep.mubr.f32.mxu0 %v219_v20  ;;  %507 = vmatprep.mubr.f32.mxu1 %v393_v12  ;;  %v5810_v20 = vld [vmem:[%s7160_s1 + $0xf8] sm:$0xff] }
  0xb0   : > { %4000 = vmatprep.subr.mxu0 %v5455_v16  ;;  %4041 = vmatprep.subr.mxu1 %v5455_v16  ;;  %v5816_v12 = vld [vmem:[%s7160_s1 + $0x78] sm:$0xff] }
  0xb1   : > { %334 = vmatmul.mubr.f32.gmra.mxu0 %v216_v27  ;;  %508 = vmatmul.mubr.f32.gmra.mxu1 %v390_v22  ;;  %v5828_v27 = vld [vmem:[%s7160_s1 + $0x70] sm:$0xff]  ;;  %v5835_v22 = vld [vmem:[%s7160_s1 + $0xe8] sm:$0xff] }
  0xb2   : > { %4001 = vmatpush3.msra.mxu0 %v7205_v39  ;;  %4042 = vmatpush3.msra.mxu1 %v7205_v39 }
  0xb3   : > { %4002 = vmatprep.subr.mxu0 %v7206_v29  ;;  %4043 = vmatprep.subr.mxu1 %v7206_v29 }
  0xb4   : > { %4003 = vmatpush3.msra.mxu0 %v7208_v59  ;;  %4044 = vmatpush3.msra.mxu1 %v7208_v59 }
  0xb5   : > { %4004 = vmatprep.subr.mxu0 %v7210_v19  ;;  %4045 = vmatprep.subr.mxu1 %v7210_v19 }
  0xb6   : > { %4005 = vmatpush3.msra.mxu0 %v7211_v51  ;;  %670 = vmatprep.mubr.f32.mxu0 %v564_v0  ;;  %v5898_v0 = vld [vmem:[%s7160_s1 + $0x48] sm:$0xff] }
  0xb7   : > { %4046 = vmatpush3.msra.mxu1 %v7211_v51  ;;  %843 = vmatprep.mubr.f32.mxu1 %v737_v11 }
  0xb8   : > { %671 = vmatmul.mubr.f32.vlgmr.msra.gmra.mxu0 %v561_v56  ;;  %844 = vmatmul.mubr.f32.vlgmr.msra.gmra.mxu1 %v734_v36  ;;  %v5926_v56 = vld [vmem:[%s7160_s1 + $0x38] sm:$0xff] }
  0xb9   : > { %4056 = vmatprep.subr.mxu0 %v7212_v26  ;;  %4097 = vmatprep.subr.mxu1 %v7212_v26 }
  0xba   : > { %4057 = vmatpush3.msra.mxu0 %v5132_v1  ;;  %4098 = vmatpush3.msra.mxu1 %v5132_v1  ;;  %v4765_v1 = vpop.permute.xlu0 %4764 }
  0xbb   : > { %4058 = vmatprep.subr.mxu0 %v5137_v2  ;;  %4099 = vmatprep.subr.mxu1 %v5137_v2  ;;  %v4770_v2 = vpop.permute.xlu1 %4769 }
  0xbc   : > { %4059 = vmatpush3.msra.mxu0 %v5144_v3  ;;  %4100 = vmatpush3.msra.mxu1 %v5144_v3  ;;  %v4767_v3 = vunpack.i.h.bf16 %v4765_v1 }
  0xbd   : > { %4060 = vmatprep.subr.mxu0 %v5153_v4  ;;  %4101 = vmatprep.subr.mxu1 %v5153_v4  ;;  %v4766_v4 = vunpack.i.l.bf16 %v4765_v1  ;;  %v5933_v1 = vld [vmem:[%s7160_s1 + $0xb0] sm:$0xff] }
  0xbe   : > { %4061 = vmatpush3.msra.mxu0 %v5160_v5  ;;  %4102 = vmatpush3.msra.mxu1 %v5160_v5  ;;  %v4772_v5 = vunpack.i.h.bf16 %v4770_v2 }
  0xbf   : > { %4062 = vmatprep.subr.mxu0 %v5168_v6  ;;  %4103 = vmatprep.subr.mxu1 %v5168_v6  ;;  %v4771_v6 = vunpack.i.l.bf16 %v4770_v2  ;;  %v5940_v2 = vld [vmem:[%s7160_s1 + $0x30] sm:$0xff] }
  0xc0   : > { %4063 = vmatpush3.msra.mxu0 %v5175_v7  ;;  %4104 = vmatpush3.msra.mxu1 %v5175_v7  ;;  %v4775_v7 = vpop.permute.xlu0 %4774 }
  0xc1   : > { %4064 = vmatprep.subr.mxu0 %v5187_v8  ;;  %4105 = vmatprep.subr.mxu1 %v5187_v8  ;;  %v7213_v8 = vld [vmem:[#allocation4_spill] sm:$0xff] }
  0xc2   : > { %4065 = vmatpush3.msra.mxu0 %v5192_v9  ;;  %4106 = vmatpush3.msra.mxu1 %v5192_v9  ;;  %v565_v9 = vsel %vm213_vm1, %v7213_v8, %v4766_v4 }
  0xc3   : > { %4066 = vmatprep.subr.mxu0 %v5197_v10  ;;  %4107 = vmatprep.subr.mxu1 %v5197_v10  ;;  %v7214_v10 = vld [vmem:[#allocation6_spill] sm:$0xff] }
  0xc4   : > { %4067 = vmatpush3.msra.mxu0 %v5213_v14  ;;  %4108 = vmatpush3.msra.mxu1 %v5213_v14  ;;  %v738_v13 = vsel %vm213_vm1, %v7214_v10, %v4767_v3  ;;  %v4780_v14 = vpop.permute.xlu1 %4779  ;;  %v5961_v10 = vld [vmem:[%s5180_s6 + $0x98] sm:$0xff] }
  0xc5   : > { %4068 = vmatprep.subr.mxu0 %v5242_v25  ;;  %4109 = vmatprep.subr.mxu1 %v5242_v25  ;;  %v4777_v25 = vunpack.i.h.bf16 %v4775_v7 }
  0xc6   : > { %4069 = vmatpush3.msra.mxu0 %v5257_v30  ;;  %4110 = vmatpush3.msra.mxu1 %v5257_v30  ;;  %v4776_v30 = vunpack.i.l.bf16 %v4775_v7 }
  0xc7   : > { %4070 = vmatprep.subr.mxu0 %v5277_v37  ;;  %4111 = vmatprep.subr.mxu1 %v5277_v37  ;;  %v562_v37 = vsel %vm213_vm1, %v5218_v17, %v4771_v6  ;;  %v5954_v6 = vld [vmem:[%s7160_s1 + $0x28] sm:$0xff] }
  0xc8   : > { %4071 = vmatpush3.msra.mxu0 %v5304_v49  ;;  %4112 = vmatpush3.msra.mxu1 %v5304_v49  ;;  %v735_v49 = vsel %vm213_vm1, %v7213_v8, %v4772_v5  ;;  %v4790_v41 = vpop.permute.xlu1 %4789  ;;  %v5947_v5 = vld [vmem:[%s7160_s1 + $0xa8] sm:$0xff]  ;;  %v5023_v8 = vld [vmem:[%s5180_s6 + $0x80] sm:$0xff] }
  0xc9   : > { %4072 = vmatprep.subr.mxu0 %v5325_v57  ;;  %4113 = vmatprep.subr.mxu1 %v5325_v57  ;;  %v4782_v57 = vunpack.i.h.bf16 %v4780_v14  ;;  %v4791_v53 = vunpack.i.l.bf16 %v4790_v41 }
  0xca   : > { %4073 = vmatpush3.msra.mxu0 %v5339_v61  ;;  %4114 = vmatpush3.msra.mxu1 %v5339_v61  ;;  %v4781_v61 = vunpack.i.l.bf16 %v4780_v14  ;;  %v5970_v14 = vld [vmem:[%s7160_s1 + $0xa0] sm:$0xff] }
  0xcb   : > { %4074 = vmatprep.subr.mxu0 %v5352_v18  ;;  %4115 = vmatprep.subr.mxu1 %v5352_v18  ;;  %v7215_v18 = vld [vmem:[#allocation7_spill] sm:$0xff]  ;;  %v907_v50 = vsel %vm213_vm1, %v7209_v54, %v4791_v53  ;;  %v5912_v54 = vld [vmem:[%s7160_s1 + $0x40] sm:$0xff] }
  0xcc   : > { %4075 = vmatpush3.msra.mxu0 %v5366_v32  ;;  %4116 = vmatpush3.msra.mxu1 %v5366_v32  ;;  %v566_v17 = vsel %vm213_vm1, %v7215_v18, %v4776_v30  ;;  %v7216_v32 = vld [vmem:[#allocation8_spill] sm:$0xff]  ;;  %v4800_v36 = vpop.permute.xlu1 %4799  ;;  %v5980_v18 = vld [vmem:[%s7160_s1 + $0x20] sm:$0xff]  ;;  %v5029_v53 = vld [vmem:[%s5180_s6 + $0x88] sm:$0x1f] }
  0xcd   : > { %4076 = vmatprep.subr.mxu0 %v5379_v40  ;;  %4117 = vmatprep.subr.mxu1 %v5379_v40  ;;  %v739_v40 = vsel %vm213_vm1, %v7216_v32, %v4777_v25  ;;  %v4802_v3 = vunpack.i.h.bf16 %v4800_v36  ;;  %v4801_v4 = vunpack.i.l.bf16 %v4800_v36 }
  0xce   : > { %4077 = vmatpush3.msra.mxu0 %v5390_v47  ;;  %4118 = vmatpush3.msra.mxu1 %v5390_v47  ;;  %v4785_v47 = vpop.permute.xlu0 %4784 }
  0xcf   : > { %675 = vmatprep.mubr.f32.mxu0 %v565_v9  ;;  %848 = vmatprep.mubr.f32.mxu1 %v738_v13  ;;  %v4786_v42 = vunpack.i.l.bf16 %v4785_v47  ;;  %v4787_v31 = vunpack.i.h.bf16 %v4785_v47  ;;  %v5992_v47 = vld [vmem:[%s7160_s1 + $0x18] sm:$0xff] }
  0xd0   : > { %4078 = vmatprep.subr.mxu0 %v5402_v52  ;;  %4119 = vmatprep.subr.mxu1 %v5402_v52  ;;  %v7217_v52 = vld [vmem:[#allocation9_spill] sm:$0xff]  ;;  %v4810_v25 = vpop.permute.xlu1 %4809 }
  0xd1   : > { %676 = vmatmul.mubr.f32.gmra.mxu0 %v562_v37  ;;  %849 = vmatmul.mubr.f32.gmra.mxu1 %v735_v49  ;;  %v563_v15 = vsel %vm213_vm1, %v7217_v52, %v4781_v61  ;;  %v5025_v49 = vld [vmem:[%s5180_s6 + $0x68] sm:$0xff]  ;;  %v1081_v61 = vsel %vm213_vm1, %v5023_v8, %v4802_v3  ;;  %v4811_v32 = vunpack.i.l.bf16 %v4810_v25  ;;  %v6042_v3 = vld [vmem:[%s7160_s1] sm:$0xff] }
  0xd2   : > { %4079 = vmatpush3.msra.mxu0 %v5413_v62  ;;  %4120 = vmatpush3.msra.mxu1 %v5413_v62  ;;  %v736_v62 = vsel %vm213_vm1, %v7218_v38, %v4782_v57  ;;  %v4795_v11 = vpop.permute.xlu0 %4794  ;;  %v908_v57 = vsel %vm213_vm1, %v5025_v49, %v4801_v4  ;;  %v5026_v52 = vld [vmem:[%s5180_s6 + $0x88] sm:$0x1f]  ;;  %v5027_v38 = vld [vmem:[%s5180_s6 + $0xa0] sm:$0x1f] }
  0xd3   : > { %4080 = vmatprep.subr.mxu0 %v5426_v34  ;;  %4121 = vmatprep.subr.mxu1 %v5426_v34  ;;  %v4792_v34 = vunpack.i.h.bf16 %v4790_v41  ;;  %v4796_v26 = vunpack.i.l.bf16 %v4795_v11  ;;  %v5030_v4 = vld [vmem:[%s5180_s6 + $0xa8] sm:$0xff] }
  0xd4   : > { %4081 = vmatpush3.msra.mxu0 %v5441_v48  ;;  %4122 = vmatpush3.msra.mxu1 %v5441_v48  ;;  %v7219_v48 = vld [vmem:[#allocation11_spill] sm:$0xff] }
  0xd5   : > { %680 = vmatprep.mubr.f32.mxu0 %v566_v17  ;;  %853 = vmatprep.mubr.f32.mxu1 %v739_v40  ;;  %v910_v23 = vsel %vm213_vm1, %v7219_v48, %v4786_v42  ;;  %v1080_v21 = vsel %vm213_vm1, %v7219_v48, %v4792_v34  ;;  %v911_v9 = vsel %vm213_vm1, %v5023_v8, %v4796_v26  ;;  %v4812_v17 = vunpack.i.h.bf16 %v4810_v25  ;;  %v5987_v40 = vld [vmem:[%s7160_s1 + $0x98] sm:$0xff]  ;;  %v6005_v42 = vld [vmem:[%s7160_s1 + $0x90] sm:$0xff]  ;;  %v6035_v26 = vld [vmem:[%s7160_s1 + $0x80] sm:$0xff] }
  0xd6   : > { %4082 = vmatprep.subr.mxu0 %v5455_v16  ;;  %4123 = vmatprep.subr.mxu1 %v5455_v16  ;;  %v7220_v16 = vld [vmem:[#allocation12_spill] sm:$0xff]  ;;  %v4805_v7 = vpop.permute.xlu0 %4804  ;;  %v6049_v8 = vld [vmem:[%s5180_s6 + $0xc0] sm:$0xff] }
  0xd7   : > { %681 = vmatmul.mubr.f32.gmra.mxu0 %v563_v15  ;;  %854 = vmatmul.mubr.f32.gmra.mxu1 %v736_v62  ;;  %v1083_v46 = vsel %vm213_vm1, %v7220_v16, %v4787_v31  ;;  %v4807_v30 = vunpack.i.h.bf16 %v4805_v7  ;;  %v4806_v37 = vunpack.i.l.bf16 %v4805_v7  ;;  %v5028_v31 = vld [vmem:[%s5180_s6 + $0x70] sm:$0x1f]  ;;  %v1082_v48 = vsel %vm213_vm1, %v5029_v53, %v4812_v17 }
  0xd8   : > { %4083 = vmatpush3.msra.mxu0 %v7205_v39  ;;  %4124 = vmatpush3.msra.mxu1 %v7205_v39  ;;  %v5877_v39 = vld [vmem:[%s7160_s1 + $0xd0] sm:$0xff]  ;;  %v909_v34 = vsel %vm213_vm1, %v5028_v31, %v4811_v32 }
  0xd9   : > { %4084 = vmatprep.subr.mxu0 %v7206_v29  ;;  %4125 = vmatprep.subr.mxu1 %v7206_v29  ;;  %v5884_v29 = vld [vmem:[%s7160_s1 + $0x50] sm:$0xff]  ;;  %v912_v15 = vsel %vm213_vm1, %v5026_v52, %v4806_v37  ;;  %v1085_v62 = vsel %vm213_vm1, %v5027_v38, %v4807_v30 }
  0xda   : > { %4085 = vmatpush3.msra.mxu0 %v7208_v59  ;;  %4126 = vmatpush3.msra.mxu1 %v7208_v59  ;;  %v5905_v59 = vld [vmem:[%s7160_s1 + $0xc0] sm:$0xff]  ;;  %v4815_v41 = vpop.permute.xlu0 %4814 }
  0xdb   : > { %4086 = vmatprep.subr.mxu0 %v7210_v19  ;;  %4127 = vmatprep.subr.mxu1 %v7210_v19  ;;  %v5919_v19 = vld [vmem:[%s7160_s1 + $0xb8] sm:$0xff]  ;;  %v4816_v16 = vunpack.i.l.bf16 %v4815_v41 }
  0xdc   : > { %4087 = vmatpush3.msra.mxu0 %v7211_v51  ;;  %1016 = vmatprep.mubr.f32.mxu0 %v910_v23  ;;  %v4820_v23 = vpop.permute.xlu1 %4819 }
  0xdd   : > { %4128 = vmatpush3.msra.mxu1 %v7211_v51  ;;  %1189 = vmatprep.mubr.f32.mxu1 %v1083_v46  ;;  %v4797_v51 = vunpack.i.h.bf16 %v4795_v11  ;;  %v6016_v46 = vld [vmem:[%s7160_s1 + $0x10] sm:$0xff]  ;;  %v4822_v11 = vunpack.i.h.bf16 %v4820_v23  ;;  %v4821_v36 = vunpack.i.l.bf16 %v4820_v23  ;;  %v1256_v7 = vsel %vm213_vm1, %v5030_v4, %v4816_v16 }
  0xde   : > { %1017 = vmatmul.mubr.f32.vlgmr.msra.gmra.mxu0 %v907_v50  ;;  %1190 = vmatmul.mubr.f32.vlgmr.msra.gmra.mxu1 %v1080_v21  ;;  %v4817_v50 = vunpack.i.h.bf16 %v4815_v41  ;;  %v6023_v21 = vld [vmem:[%s7160_s1 + $0x88] sm:$0xff]  ;;  %v4825_v37 = vpop.permute.xlu0 %4824 }
  0xdf   : > { %4138 = vmatprep.subr.mxu0 %v5810_v20  ;;  %4179 = vmatprep.subr.mxu1 %v5810_v20  ;;  %v1084_v13 = vsel %vm213_vm1, %v5961_v10, %v4797_v51  ;;  %v6028_v51 = vld [vmem:[%s7160_s1 + $0x8] sm:$0xff]  ;;  %v1426_v30 = vsel %vm213_vm1, %v5030_v4, %v4822_v11  ;;  %v6117_v11 = vld [vmem:[%s5180_s6 + $0x178] sm:$0x1f] }
  0xe0   : > { %4139 = vmatpush3.msra.mxu0 %v5816_v12  ;;  %4180 = vmatpush3.msra.mxu1 %v5816_v12  ;;  %v4830_v49 = vpop.permute.xlu1 %4829 }
  0xe1   : > { %4140 = vmatprep.subr.mxu0 %v5821_v43  ;;  %4181 = vmatprep.subr.mxu1 %v5821_v43  ;;  %v4832_v17 = vunpack.i.h.bf16 %v4830_v49  ;;  %v4831_v32 = vunpack.i.l.bf16 %v4830_v49 }
  0xe2   : > { %4141 = vmatpush3.msra.mxu0 %v5828_v27  ;;  %4182 = vmatpush3.msra.mxu1 %v5828_v27  ;;  %v4835_v52 = vpop.permute.xlu0 %4834 }
  0xe3   : > { %4142 = vmatprep.subr.mxu0 %v5835_v22  ;;  %4183 = vmatprep.subr.mxu1 %v5835_v22  ;;  %v4836_v53 = vunpack.i.l.bf16 %v4835_v52 }
  0xe4   : > { %4143 = vmatpush3.msra.mxu0 %v5842_v44  ;;  %4184 = vmatpush3.msra.mxu1 %v5842_v44  ;;  %v4840_v31 = vpop.permute.xlu1 %4839 }
  0xe5   : > { %4144 = vmatprep.subr.mxu0 %v5849_v24  ;;  %4185 = vmatprep.subr.mxu1 %v5849_v24  ;;  %v4842_v16 = vunpack.i.h.bf16 %v4840_v31 }
  0xe6   : > { %4145 = vmatpush3.msra.mxu0 %v5856_v28  ;;  %4186 = vmatpush3.msra.mxu1 %v5856_v28 }
  0xe7   : > { %4146 = vmatprep.subr.mxu0 %v5863_v33  ;;  %4187 = vmatprep.subr.mxu1 %v5863_v33 }
  0xe8   : > { %4147 = vmatpush3.msra.mxu0 %v5870_v55  ;;  %4188 = vmatpush3.msra.mxu1 %v5870_v55 }
  0xe9   : > { %4148 = vmatprep.subr.mxu0 %v5877_v39  ;;  %4189 = vmatprep.subr.mxu1 %v5877_v39 }
  0xea   : > { %4149 = vmatpush3.msra.mxu0 %v5884_v29  ;;  %4190 = vmatpush3.msra.mxu1 %v5884_v29 }
  0xeb   : > { %4150 = vmatprep.subr.mxu0 %v5891_v35  ;;  %4191 = vmatprep.subr.mxu1 %v5891_v35 }
  0xec   : > { %4151 = vmatpush3.msra.mxu0 %v5898_v0  ;;  %4192 = vmatpush3.msra.mxu1 %v5898_v0 }
  0xed   : > { %4152 = vmatprep.subr.mxu0 %v5905_v59  ;;  %4193 = vmatprep.subr.mxu1 %v5905_v59 }
  0xee   : > { %4153 = vmatpush3.msra.mxu0 %v5912_v54  ;;  %4194 = vmatpush3.msra.mxu1 %v5912_v54 }
  0xef   : > { %4154 = vmatprep.subr.mxu0 %v5919_v19  ;;  %4195 = vmatprep.subr.mxu1 %v5919_v19 }
  0xf0   : > { %4155 = vmatpush3.msra.mxu0 %v5926_v56  ;;  %4196 = vmatpush3.msra.mxu1 %v5926_v56 }
  0xf1   : > { %4156 = vmatprep.subr.mxu0 %v5933_v1  ;;  %4197 = vmatprep.subr.mxu1 %v5933_v1 }
  0xf2   : > { %4157 = vmatpush3.msra.mxu0 %v5940_v2  ;;  %4198 = vmatpush3.msra.mxu1 %v5940_v2 }
  0xf3   : > { %4158 = vmatprep.subr.mxu0 %v5947_v5  ;;  %4199 = vmatprep.subr.mxu1 %v5947_v5 }
  0xf4   : > { %4159 = vmatpush3.msra.mxu0 %v5954_v6  ;;  %4200 = vmatpush3.msra.mxu1 %v5954_v6 }
  0xf5   : > { %1021 = vmatprep.mubr.f32.mxu0 %v911_v9  ;;  %1194 = vmatprep.mubr.f32.mxu1 %v1084_v13  ;;  %v1429_v9 = vsel %vm213_vm1, %v6049_v8, %v4817_v50  ;;  %v5032_v13 = vld [vmem:[%s5180_s6 + $0x90] sm:$0xff]  ;;  %v4841_v50 = vunpack.i.l.bf16 %v4840_v31 }
  0xf6   : > { %4160 = vmatprep.subr.mxu0 %v5970_v14  ;;  %4201 = vmatprep.subr.mxu1 %v5970_v14  ;;  %v1253_v25 = vsel %vm213_vm1, %v5032_v13, %v4821_v36  ;;  %v6120_v36 = vld [vmem:[%s5180_s6 + $0x190] sm:$0x1f]  ;;  %v4845_v13 = vpop.permute.xlu0 %4844 }
  0xf7   : > { %1022 = vmatmul.mubr.f32.gmra.mxu0 %v908_v57  ;;  %1195 = vmatmul.mubr.f32.gmra.mxu1 %v1081_v61  ;;  %v4827_v57 = vunpack.i.h.bf16 %v4825_v37  ;;  %v4826_v61 = vunpack.i.l.bf16 %v4825_v37  ;;  %v2626_v37 = vrot.slane %v6117_v11, 1  ;;  %v2799_v49 = vrot.slane %v6120_v36, 1 }
  0xf8   : > { %4161 = vmatpush3.msra.mxu0 %v5980_v18  ;;  %4202 = vmatpush3.msra.mxu1 %v5980_v18  ;;  %v4847_v31 = vunpack.i.h.bf16 %v4845_v13 }
  0xf9   : > { %4162 = vmatprep.subr.mxu0 %v5987_v40  ;;  %4203 = vmatprep.subr.mxu1 %v5987_v40 }
  0xfa   : > { %4163 = vmatpush3.msra.mxu0 %v5992_v47  ;;  %4204 = vmatpush3.msra.mxu1 %v5992_v47 }
  0xfb   : > { %1026 = vmatprep.mubr.f32.mxu0 %v912_v15  ;;  %1199 = vmatprep.mubr.f32.mxu1 %v1085_v62  ;;  %v5033_v15 = vld [vmem:[%s5180_s6 + $0xb0] sm:$0xff]  ;;  %v6103_v62 = vld [vmem:[%s5180_s6 + $0xc8] sm:$0xff] }
  0xfc   : > { %4164 = vmatprep.subr.mxu0 %v6005_v42  ;;  %4205 = vmatprep.subr.mxu1 %v6005_v42  ;;  %v1257_v38 = vsel %vm213_vm1, %v5033_v15, %v4826_v61  ;;  %v1430_v41 = vsel %vm213_vm1, %v6103_v62, %v4827_v57  ;;  %v1427_v23 = vsel %vm213_vm1, %v5033_v15, %v4832_v17  ;;  %v5037_v57 = vld [vmem:[%s5180_s6 + $0xa0] sm:$0x1f]  ;;  %v5038_v17 = vld [vmem:[%s5180_s6 + $0xb8] sm:$0x1f]  ;;  %v4846_v15 = vunpack.i.l.bf16 %v4845_v13 }
  0xfd   : > { %1027 = vmatmul.mubr.f32.gmra.mxu0 %v909_v34  ;;  %1200 = vmatmul.mubr.f32.gmra.mxu1 %v1082_v48  ;;  %v4837_v34 = vunpack.i.h.bf16 %v4835_v52  ;;  %v1254_v48 = vsel %vm213_vm1, %v5961_v10, %v4831_v32  ;;  %v5035_v10 = vld [vmem:[%s5180_s6 + $0xb8] sm:$0x1f]  ;;  %v1255_v61 = vsel %vm213_vm1, %v5037_v57, %v4841_v50  ;;  %v1428_v32 = vsel %vm213_vm1, %v5038_v17, %v4842_v16  ;;  %v4850_v52 = vpop.permute.xlu1 %4849 }
  0xfe   : > { %4165 = vmatpush3.msra.mxu0 %v6016_v46  ;;  %4206 = vmatpush3.msra.mxu1 %v6016_v46  ;;  %v1258_v4 = vsel %vm213_vm1, %v5035_v10, %v4836_v53  ;;  %v2627_v53 = vsel %vm181_vm0, %v5611_v63, %v2626_v37  ;;  %v5039_v16 = vld [vmem:[%s5180_s6 + $0xd8] sm:$0xff]  ;;  %v6165_v10 = vld [vmem:[%s5180_s6 + $0xf0] sm:$0xff] }
  0xff   : > { %4166 = vmatprep.subr.mxu0 %v6023_v21  ;;  %4207 = vmatprep.subr.mxu1 %v6023_v21  ;;  %v1602_v50 = vsel %vm213_vm1, %v5039_v16, %v4846_v15  ;;  %v3864_v57 = vld [vmem:[%s5180_s6 + $0x1b8] sm:$0xff] }
 0x100   : > { %4167 = vmatpush3.msra.mxu0 %v6028_v51  ;;  %4208 = vmatpush3.msra.mxu1 %v6028_v51 }
 0x101   : > { %4168 = vmatprep.subr.mxu0 %v6035_v26  ;;  %4209 = vmatprep.subr.mxu1 %v6035_v26 }
 0x102   : > { %4169 = vmatpush3.msra.mxu0 %v6042_v3  ;;  %1362 = vmatprep.mubr.f32.mxu0 %v1256_v7  ;;  %v5036_v7 = vld [vmem:[%s5180_s6 + $0xd0] sm:$0x1f] }
 0x103   : > { %4210 = vmatpush3.msra.mxu1 %v6042_v3  ;;  %1535 = vmatprep.mubr.f32.mxu1 %v1429_v9  ;;  %v1431_v9 = vsel %vm213_vm1, %v5036_v7, %v4837_v34  ;;  %v4851_v34 = vunpack.i.l.bf16 %v4850_v52 }
 0x104   : > { %1363 = vmatmul.mubr.f32.vlgmr.msra.gmra.mxu0 %v1253_v25  ;;  %1536 = vmatmul.mubr.f32.vlgmr.msra.gmra.mxu1 %v1426_v30  ;;  %v6129_v25 = vld [vmem:[%s5180_s6 + $0x160] sm:$0x1f]  ;;  %v6132_v30 = vld [vmem:[%s5180_s6 + $0x178] sm:$0x1f] }
 0x105   : > { %4220 = vmatprep.subr.mxu0 %v5810_v20  ;;  %4261 = vmatprep.subr.mxu1 %v5810_v20 }
 0x106   : > { %4221 = vmatpush3.msra.mxu0 %v5816_v12  ;;  %4262 = vmatpush3.msra.mxu1 %v5816_v12 }
 0x107   : > { %4222 = vmatprep.subr.mxu0 %v5821_v43  ;;  %4263 = vmatprep.subr.mxu1 %v5821_v43 }
 0x108   : > { %4223 = vmatpush3.msra.mxu0 %v5828_v27  ;;  %4264 = vmatpush3.msra.mxu1 %v5828_v27 }
 0x109   : > { %4224 = vmatprep.subr.mxu0 %v5835_v22  ;;  %4265 = vmatprep.subr.mxu1 %v5835_v22 }
 0x10a   : > { %4225 = vmatpush3.msra.mxu0 %v5842_v44  ;;  %4266 = vmatpush3.msra.mxu1 %v5842_v44 }
 0x10b   : > { %4226 = vmatprep.subr.mxu0 %v5849_v24  ;;  %4267 = vmatprep.subr.mxu1 %v5849_v24 }
 0x10c   : > { %4227 = vmatpush3.msra.mxu0 %v5856_v28  ;;  %4268 = vmatpush3.msra.mxu1 %v5856_v28 }
 0x10d   : > { %4228 = vmatprep.subr.mxu0 %v5863_v33  ;;  %4269 = vmatprep.subr.mxu1 %v5863_v33 }
 0x10e   : > { %4229 = vmatpush3.msra.mxu0 %v5870_v55  ;;  %4270 = vmatpush3.msra.mxu1 %v5870_v55 }
 0x10f   : > { %4230 = vmatprep.subr.mxu0 %v5877_v39  ;;  %4271 = vmatprep.subr.mxu1 %v5877_v39 }
 0x110   : > { %4231 = vmatpush3.msra.mxu0 %v5884_v29  ;;  %4272 = vmatpush3.msra.mxu1 %v5884_v29 }
 0x111   : > { %4232 = vmatprep.subr.mxu0 %v5891_v35  ;;  %4273 = vmatprep.subr.mxu1 %v5891_v35 }
 0x112   : > { %4233 = vmatpush3.msra.mxu0 %v5898_v0  ;;  %4274 = vmatpush3.msra.mxu1 %v5898_v0 }
 0x113   : > { %4234 = vmatprep.subr.mxu0 %v5905_v59  ;;  %4275 = vmatprep.subr.mxu1 %v5905_v59 }
 0x114   : > { %4235 = vmatpush3.msra.mxu0 %v5912_v54  ;;  %4276 = vmatpush3.msra.mxu1 %v5912_v54 }
 0x115   : > { %4236 = vmatprep.subr.mxu0 %v5919_v19  ;;  %4277 = vmatprep.subr.mxu1 %v5919_v19 }
 0x116   : > { %4237 = vmatpush3.msra.mxu0 %v5926_v56  ;;  %4278 = vmatpush3.msra.mxu1 %v5926_v56 }
 0x117   : > { %4238 = vmatprep.subr.mxu0 %v5933_v1  ;;  %4279 = vmatprep.subr.mxu1 %v5933_v1 }
 0x118   : > { %4239 = vmatpush3.msra.mxu0 %v5940_v2  ;;  %4280 = vmatpush3.msra.mxu1 %v5940_v2 }
 0x119   : > { %4240 = vmatprep.subr.mxu0 %v5947_v5  ;;  %4281 = vmatprep.subr.mxu1 %v5947_v5 }
 0x11a   : > { %4241 = vmatpush3.msra.mxu0 %v5954_v6  ;;  %4282 = vmatpush3.msra.mxu1 %v5954_v6 }
 0x11b   : > { %1367 = vmatprep.mubr.f32.mxu0 %v1257_v38  ;;  %1540 = vmatprep.mubr.f32.mxu1 %v1430_v41  ;;  %v2609_v38 = vrot.slane %v6129_v25, 1  ;;  %v2782_v41 = vrot.slane %v6132_v30, 1  ;;  %v3854_v25 = vld [vmem:[%s5180_s6 + $0x1a0] sm:$0xff]  ;;  %v3863_v30 = vld [vmem:[%s5180_s6 + $0x1b0] sm:$0xff] }
 0x11c   : > { %4242 = vmatprep.subr.mxu0 %v5970_v14  ;;  %4283 = vmatprep.subr.mxu1 %v5970_v14  ;;  %v3142_v17 = vrot.slane %v3863_v30, 1 }
 0x11d   : > { %1368 = vmatmul.mubr.f32.gmra.mxu0 %v1254_v48  ;;  %1541 = vmatmul.mubr.f32.gmra.mxu1 %v1427_v23  ;;  %v2800_v48 = vsel %vm181_vm0, %v5615_v45, %v2799_v49  ;;  %v4852_v23 = vunpack.i.h.bf16 %v4850_v52  ;;  %v2610_v11 = vsel %vm181_vm0, %v5589_v58, %v2609_v38  ;;  %v2783_v36 = vsel %vm181_vm0, %v5611_v63, %v2782_v41 }
 0x11e   : > { %4243 = vmatpush3.msra.mxu0 %v5980_v18  ;;  %4284 = vmatpush3.msra.mxu1 %v5980_v18  ;;  %v4943_v7 = vpack.i.bf16 %v2800_v48, %v2627_v53  ;;  %v1599_v58 = vsel %vm213_vm1, %v6049_v8, %v4851_v34  ;;  %v4948_v13 = vpack.i.bf16 %v2783_v36, %v2610_v11  ;;  %v5044_v34 = vld [vmem:[%s5180_s6 + $0x100] sm:$0x1f]  ;;  %v5046_v11 = vld [vmem:[%s5180_s6 + $0xe8] sm:$0x1f] }
 0x11f   : > { %4244 = vmatprep.subr.mxu0 %v5987_v40  ;;  %4285 = vmatprep.subr.mxu1 %v5987_v40  ;;  %v1772_v63 = vsel %vm213_vm1, %v5039_v16, %v4852_v23  ;;  %v4953_v52 = vpack.i.bf16 %v2799_v49, %v2626_v37  ;;  %v4958_v15 = vpack.i.bf16 %v2782_v41, %v2609_v38  ;;  %v6261_v37 = vld [vmem:[%s5180_s6 + $0x190] sm:$0x1f]  ;;  %v6264_v49 = vld [vmem:[%s5180_s6 + $0x1a8] sm:$0x1f] }
 0x120   : > { %4245 = vmatpush3.msra.mxu0 %v5992_v47  ;;  %4286 = vmatpush3.msra.mxu1 %v5992_v47  ;;  %v5043_v41 = vld [vmem:[%s5180_s6 + $0xe8] sm:$0x1f]  ;;  %v2955_v23 = vrot.slane %v6261_v37, 1  ;;  %v3128_v16 = vrot.slane %v6264_v49, 1 }
 0x121   : > { %1372 = vmatprep.mubr.f32.mxu0 %v1258_v4  ;;  %1545 = vmatprep.mubr.f32.mxu1 %v1431_v9  ;;  %v1775_v4 = vsel %vm213_vm1, %v6165_v10, %v4847_v31  ;;  %v3853_v9 = vld [vmem:[%s5180_s6 + $0x198] sm:$0xff] }
 0x122   : > { %4246 = vmatprep.subr.mxu0 %v6005_v42  ;;  %4287 = vmatprep.subr.mxu1 %v6005_v42  ;;  %v2969_v8 = vrot.slane %v3853_v9, 1  ;;  %v2956_v9 = vsel %vm181_vm0, %v5615_v45, %v2955_v23  ;;  %v5047_v45 = vld [vmem:[%s5180_s6 + $0x108] sm:$0xff] }
 0x123   : > { %1373 = vmatmul.mubr.f32.gmra.mxu0 %v1255_v61  ;;  %1546 = vmatmul.mubr.f32.gmra.mxu1 %v1428_v32  ;;  %v6182_v61 = vrot.slane %v3854_v25, 1  ;;  %v6184_v32 = vrot.slane %v3864_v57, 1 }
 0x124   : > { %4247 = vmatpush3.msra.mxu0 %v6016_v46  ;;  %4288 = vmatpush3.msra.mxu1 %v6016_v46 }
 0x125   : > { %4248 = vmatprep.subr.mxu0 %v6023_v21  ;;  %4289 = vmatprep.subr.mxu1 %v6023_v21  ;;  %v2971_v31 = vsel %vm181_vm0, %v2969_v8, %v6182_v61 }
 0x126   : > { %4249 = vmatpush3.msra.mxu0 %v6028_v51  ;;  %4290 = vmatpush3.msra.mxu1 %v6028_v51 }
 0x127   : > { %4250 = vmatprep.subr.mxu0 %v6035_v26  ;;  %4291 = vmatprep.subr.mxu1 %v6035_v26 }
 0x128   : > { %4251 = vmatpush3.msra.mxu0 %v6042_v3  ;;  %1708 = vmatprep.mubr.f32.mxu0 %v1602_v50 }
 0x129   : > { %4292 = vmatpush3.msra.mxu1 %v6042_v3  ;;  %1881 = vmatprep.mubr.f32.mxu1 %v1775_v4 }
 0x12a   : > { %4944 = vrot.lane.b32.xlu0 %v4943_v7, %s5095_s23  ;;  %1709 = vmatmul.mubr.f32.vlgmr.msra.gmra.mxu0 %v1599_v58 }
 0x12b   : > { %1882 = vmatmul.mubr.f32.vlgmr.msra.gmra.mxu1 %v1772_v63  ;;  %4302 = vmatprep.subr.mxu0 %v5810_v20  ;;  %v3129_v63 = vsel %vm181_vm0, %v6182_v61, %v3128_v16 }
 0x12c   : > { %4343 = vmatprep.subr.mxu1 %v5810_v20  ;;  %4949 = vrot.lane.b32.xlu1 %v4948_v13, %s5095_s23  ;;  %v6198_v20 = vsel %vm181_vm0, %v3142_v17, %v6184_v32  ;;  %v4978_v57 = vpack.i.bf16 %v3129_v63, %v2956_v9  ;;  %v6479_v9 = vld [vmem:[%s7160_s1 + $0x48] sm:$0xff] }
 0x12d   : > { %4303 = vmatpush3.msra.mxu0 %v5816_v12  ;;  %4344 = vmatpush3.msra.mxu1 %v5816_v12  ;;  %v4963_v12 = vpack.i.bf16 %v6198_v20, %v2971_v31 }
 0x12e   : > { %4304 = vmatprep.subr.mxu0 %v5821_v43  ;;  %4345 = vmatprep.subr.mxu1 %v5821_v43  ;;  %v4968_v43 = vpack.i.bf16 %v2971_v31, %v5621_v60  ;;  %v4855_v60 = vpop.permute.xlu0 %4854 }
 0x12f   : > { %4305 = vmatpush3.msra.mxu0 %v5828_v27  ;;  %4346 = vmatpush3.msra.mxu1 %v5828_v27  ;;  %v4860_v27 = vpop.permute.xlu1 %4859 }
 0x130   : > { %4954 = vrot.lane.b32.xlu0 %v4953_v52, %s5095_s23  ;;  %4306 = vmatprep.subr.mxu0 %v5835_v22  ;;  %v3883_v52 = vld [vmem:[%s5180_s6 + $0x1e0] sm:$0xff] }
 0x131   : > { %4347 = vmatprep.subr.mxu1 %v5835_v22  ;;  %4959 = vrot.lane.b32.xlu1 %v4958_v15, %s5095_s23  ;;  %v4857_v22 = vunpack.i.h.bf16 %v4855_v60  ;;  %v6326_v15 = vld [vmem:[%s5180_s6 + $0x1e8] sm:$0xff] }
 0x132   : > { %4307 = vmatpush3.msra.mxu0 %v5842_v44  ;;  %4348 = vmatpush3.msra.mxu1 %v5842_v44  ;;  %v4856_v44 = vunpack.i.l.bf16 %v4855_v60 }
 0x133   : > { %4308 = vmatprep.subr.mxu0 %v5849_v24  ;;  %4349 = vmatprep.subr.mxu1 %v5849_v24  ;;  %v4862_v24 = vunpack.i.h.bf16 %v4860_v27 }
 0x134   : > { %4309 = vmatpush3.msra.mxu0 %v5856_v28  ;;  %4350 = vmatpush3.msra.mxu1 %v5856_v28  ;;  %v4861_v28 = vunpack.i.l.bf16 %v4860_v27 }
 0x135   : > { %4310 = vmatprep.subr.mxu0 %v5863_v33  ;;  %4351 = vmatprep.subr.mxu1 %v5863_v33  ;;  %v4865_v33 = vpop.permute.xlu0 %4864 }
 0x136   : > { %4964 = vrot.lane.b32.xlu0 %v4963_v12, %s5095_s23  ;;  %4311 = vmatpush3.msra.mxu0 %v5870_v55 }
 0x137   : > { %4352 = vmatpush3.msra.mxu1 %v5870_v55  ;;  %4969 = vrot.lane.b32.xlu1 %v4968_v43, %s5095_s23  ;;  %v5041_v55 = vld [vmem:[%s5180_s6 + $0xe0] sm:$0xff] }
 0x138   : > { %4312 = vmatprep.subr.mxu0 %v5877_v39  ;;  %4353 = vmatprep.subr.mxu1 %v5877_v39  ;;  %v1603_v39 = vsel %vm213_vm1, %v5041_v55, %v4856_v44  ;;  %v3489_v44 = vrot.slane %v6326_v15, 1  ;;  %v6525_v15 = vld [vmem:[%s7160_s1 + $0x30] sm:$0xff] }
 0x139   : > { %4313 = vmatpush3.msra.mxu0 %v5884_v29  ;;  %4354 = vmatpush3.msra.mxu1 %v5884_v29  ;;  %v6241_v29 = vld [vmem:[%s5180_s6 + $0xf8] sm:$0xff]  ;;  %v4875_v48 = vpop.permute.xlu0 %4874 }
 0x13a   : > { %4314 = vmatprep.subr.mxu0 %v5891_v35  ;;  %4355 = vmatprep.subr.mxu1 %v5891_v35  ;;  %v1776_v35 = vsel %vm213_vm1, %v6241_v29, %v4857_v22  ;;  %v4877_v58 = vunpack.i.h.bf16 %v4875_v48  ;;  %v3488_v22 = vrot.slane %v3883_v52, 1 }
 0x13b   : > { %4315 = vmatpush3.msra.mxu0 %v5898_v0  ;;  %4356 = vmatpush3.msra.mxu1 %v5898_v0  ;;  %v4870_v0 = vpop.permute.xlu1 %4869 }
 0x13c   : > { %4316 = vmatprep.subr.mxu0 %v5905_v59  ;;  %4357 = vmatprep.subr.mxu1 %v5905_v59  ;;  %v4867_v59 = vunpack.i.h.bf16 %v4865_v33 }
 0x13d   : > { %4317 = vmatpush3.msra.mxu0 %v5912_v54  ;;  %4358 = vmatpush3.msra.mxu1 %v5912_v54  ;;  %v4866_v54 = vunpack.i.l.bf16 %v4865_v33  ;;  %v6367_v33 = vld [vmem:[%s7161_s2] ss:$0 sm:$0xff] }
 0x13e   : > { %4318 = vmatprep.subr.mxu0 %v5919_v19  ;;  %4359 = vmatprep.subr.mxu1 %v5919_v19  ;;  %v1600_v19 = vsel %vm213_vm1, %v6103_v62, %v4861_v28  ;;  %v1777_v53 = vsel %vm213_vm1, %v5044_v34, %v4867_v59  ;;  %v4988_v28 = vpack.i.bf16 %v3128_v16, %v2955_v23  ;;  %v6430_v16 = vld [vmem:[%s7160_s1 + $0xd8] sm:$0xff] }
 0x13f   : > { %4319 = vmatpush3.msra.mxu0 %v5926_v56  ;;  %4360 = vmatpush3.msra.mxu1 %v5926_v56  ;;  %v1773_v56 = vsel %vm213_vm1, %v5041_v55, %v4862_v24  ;;  %v4880_v4 = vpop.permute.xlu1 %4879  ;;  %v6357_v24 = vld [vmem:[%s7160_s1 + $0x70] sm:$0xff] }
 0x140   : > { %4320 = vmatprep.subr.mxu0 %v5933_v1  ;;  %4361 = vmatprep.subr.mxu1 %v5933_v1  ;;  %v6253_v1 = vld [vmem:[%s5180_s6 + $0x1a8] sm:$0x1f]  ;;  %v4881_v13 = vunpack.i.l.bf16 %v4880_v4 }
 0x141   : > { %4321 = vmatpush3.msra.mxu0 %v5940_v2  ;;  %4362 = vmatpush3.msra.mxu1 %v5940_v2  ;;  %v6256_v2 = vld [vmem:[%s5180_s6 + $0x1c0] sm:$0x1f]  ;;  %v2972_v62 = vrot.slane %v6253_v1, 1 }
 0x142   : > { %4322 = vmatprep.subr.mxu0 %v5947_v5  ;;  %4363 = vmatprep.subr.mxu1 %v5947_v5  ;;  %v4872_v5 = vunpack.i.h.bf16 %v4870_v0  ;;  %v3145_v38 = vrot.slane %v6256_v2, 1  ;;  %v6387_v1 = vld [vmem:[%s5180_s6 + $0x1c0] sm:$0x1f]  ;;  %v6390_v2 = vld [vmem:[%s5180_s6 + $0x1d8] sm:$0x1f] }
 0x143   : > { %4323 = vmatpush3.msra.mxu0 %v5954_v6  ;;  %4364 = vmatpush3.msra.mxu1 %v5954_v6  ;;  %v4871_v6 = vunpack.i.l.bf16 %v4870_v0  ;;  %v6375_v0 = vld [vmem:[%s5180_s6 + $0x1f0] sm:$0x1f]  ;;  %v3301_v34 = vrot.slane %v6387_v1, 1 }
 0x144   : > { %1713 = vmatprep.mubr.f32.mxu0 %v1603_v39  ;;  %1886 = vmatprep.mubr.f32.mxu1 %v1776_v35  ;;  %v1774_v36 = vsel %vm213_vm1, %v5046_v11, %v4872_v5  ;;  %v3146_v7 = vsel %vm181_vm0, %v6184_v32, %v3145_v38  ;;  %v4983_v27 = vpack.i.bf16 %v3145_v38, %v2972_v62  ;;  %v6372_v35 = vld [vmem:[%s5180_s6 + $0x1d8] sm:$0x1f]  ;;  %v6397_v5 = vld [vmem:[%s7160_s1 + $0x68] sm:$0xff] }
 0x145   : > { %4324 = vmatprep.subr.mxu0 %v5970_v14  ;;  %4365 = vmatprep.subr.mxu1 %v5970_v14  ;;  %v1604_v14 = vsel %vm213_vm1, %v5043_v41, %v4866_v54  ;;  %v3318_v38 = vrot.slane %v6372_v35, 1  ;;  %v3491_v41 = vrot.slane %v6375_v0, 1 }
 0x146   : > { %1714 = vmatmul.mubr.f32.gmra.mxu0 %v1600_v19  ;;  %1887 = vmatmul.mubr.f32.gmra.mxu1 %v1773_v56  ;;  %v6382_v19 = vld [vmem:[%s7160_s1 + $0xe8] sm:$0xff] }
 0x147   : > { %4325 = vmatpush3.msra.mxu0 %v5980_v18  ;;  %4366 = vmatpush3.msra.mxu1 %v5980_v18  ;;  %v5045_v18 = vld [vmem:[%s5180_s6 + $0xd0] sm:$0x1f] }
 0x148   : > { %4326 = vmatprep.subr.mxu0 %v5987_v40  ;;  %4367 = vmatprep.subr.mxu1 %v5987_v40  ;;  %v1601_v50 = vsel %vm213_vm1, %v5045_v18, %v4871_v6  ;;  %v2973_v40 = vsel %vm181_vm0, %v6182_v61, %v2972_v62  ;;  %v3874_v61 = vld [vmem:[%s5180_s6 + $0x1d0] sm:$0xff]  ;;  %v3490_v6 = vsel %vm181_vm0, %v3488_v22, %v3489_v44  ;;  %v6407_v62 = vld [vmem:[%s7160_s1 + $0xe0] sm:$0xff] }
 0x149   : > { %4327 = vmatpush3.msra.mxu0 %v5992_v47  ;;  %4368 = vmatpush3.msra.mxu1 %v5992_v47  ;;  %v4876_v47 = vunpack.i.l.bf16 %v4875_v48  ;;  %v4973_v25 = vpack.i.bf16 %v3146_v7, %v2973_v40  ;;  %v6340_v12 = vrot.slane %v3874_v61, 1  ;;  %v3302_v40 = vsel %vm181_vm0, %v6184_v32, %v3301_v34  ;;  %v6472_v32 = vld [vmem:[%s7160_s1 + $0xc8] sm:$0xff] }
 0x14a   : > { %1718 = vmatprep.mubr.f32.mxu0 %v1604_v14  ;;  %1891 = vmatprep.mubr.f32.mxu1 %v1777_v53  ;;  %v6421_v14 = vld [vmem:[%s7160_s1 + $0x60] sm:$0xff]  ;;  %v3474_v53 = vrot.slane %v6390_v2, 1 }
 0x14b   : > { %4328 = vmatprep.subr.mxu0 %v6005_v42  ;;  %4369 = vmatprep.subr.mxu1 %v6005_v42  ;;  %v4882_v42 = vunpack.i.h.bf16 %v4880_v4  ;;  %v1948_v30 = vsel %vm213_vm1, %v5047_v45, %v4876_v47  ;;  %v3492_v4 = vsel %vm181_vm0, %v3489_v44, %v3491_v41  ;;  %v6465_v47 = vld [vmem:[%s7160_s1 + $0x50] sm:$0xff] }
 0x14c   : > { %1719 = vmatmul.mubr.f32.gmra.mxu0 %v1601_v50  ;;  %1892 = vmatmul.mubr.f32.gmra.mxu1 %v1774_v36  ;;  %v6437_v50 = vld [vmem:[%s7160_s1 + $0x58] sm:$0xff]  ;;  %v3319_v36 = vsel %vm181_vm0, %v6340_v12, %v3318_v38  ;;  %v3475_v7 = vsel %vm181_vm0, %v6340_v12, %v3474_v53  ;;  %v5049_v44 = vld [vmem:[%s5180_s6 + $0x110] sm:$0xff] }
 0x14d   : > { %4329 = vmatpush3.msra.mxu0 %v6016_v46  ;;  %4370 = vmatpush3.msra.mxu1 %v6016_v46  ;;  %v6313_v46 = vld [vmem:[%s5180_s6 + $0x120] sm:$0xff]  ;;  %v2118_v17 = vsel %vm213_vm1, %v5047_v45, %v4882_v42  ;;  %v5008_v63 = vpack.i.bf16 %v3475_v7, %v3302_v40  ;;  %v6502_v45 = vld [vmem:[%s7160_s1 + $0xb8] sm:$0xff]  ;;  %v5052_v40 = vld [vmem:[%s5180_s6 + $0x130] sm:$0x1f] }
 0x14e   : > { %4330 = vmatprep.subr.mxu0 %v6023_v21  ;;  %4371 = vmatprep.subr.mxu1 %v6023_v21  ;;  %v2121_v8 = vsel %vm213_vm1, %v6313_v46, %v4877_v58  ;;  %v3873_v21 = vld [vmem:[%s5180_s6 + $0x1c8] sm:$0xff]  ;;  %v5003_v58 = vpack.i.bf16 %v3492_v4, %v3319_v36  ;;  %v6488_v42 = vld [vmem:[%s7160_s1 + $0xc0] sm:$0xff]  ;;  %v5051_v36 = vld [vmem:[%s5180_s6 + $0x118] sm:$0x1f] }
 0x14f   : > { %4331 = vmatpush3.msra.mxu0 %v6028_v51  ;;  %4372 = vmatpush3.msra.mxu1 %v6028_v51  ;;  %v1945_v51 = vsel %vm213_vm1, %v6165_v10, %v4881_v13  ;;  %v6338_v10 = vld [vmem:[%s7160_s1 + $0x78] sm:$0xff]  ;;  %v3315_v31 = vrot.slane %v3873_v21, 1  ;;  %v6495_v13 = vld [vmem:[%s7160_s1 + $0x40] sm:$0xff]  ;;  %v4890_v21 = vpop.permute.xlu1 %4889 }
 0x150   : > { %4332 = vmatprep.subr.mxu0 %v6035_v26  ;;  %4373 = vmatprep.subr.mxu1 %v6035_v26  ;;  %v6332_v26 = vld [vmem:[%s7160_s1 + $0xf8] sm:$0xff]  ;;  %v4891_v52 = vunpack.i.l.bf16 %v4890_v21 }
 0x151   : > { %4974 = vrot.lane.b32.xlu0 %v4973_v25, %s5095_s23  ;;  %4333 = vmatpush3.msra.mxu0 %v6042_v3  ;;  %v3317_v56 = vsel %vm181_vm0, %v3315_v31, %v6340_v12  ;;  %v4885_v25 = vpop.permute.xlu0 %4884  ;;  %v4892_v31 = vunpack.i.h.bf16 %v4890_v21  ;;  %v6532_v12 = vld [vmem:[%s7160_s1 + $0xa8] sm:$0xff]  ;;  %v5053_v21 = vld [vmem:[%s5180_s6 + $0x100] sm:$0x1f] }
 0x152   : > { %2054 = vmatprep.mubr.f32.mxu0 %v1948_v30  ;;  %4374 = vmatpush3.msra.mxu1 %v6042_v3  ;;  %v6345_v3 = vld [vmem:[%s7160_s1 + $0xf0] sm:$0xff]  ;;  %v4993_v18 = vpack.i.bf16 %v3490_v6, %v3317_v56  ;;  %v4998_v11 = vpack.i.bf16 %v3317_v56, %v6198_v20  ;;  %v5013_v30 = vpack.i.bf16 %v3491_v41, %v3318_v38  ;;  %v4887_v61 = vunpack.i.h.bf16 %v4885_v25  ;;  %v6565_v41 = vld [vmem:[%s7160_s1 + $0x20] sm:$0xff] }
 0x153   : > { %2227 = vmatprep.mubr.f32.mxu1 %v2121_v8  ;;  %4979 = vrot.lane.b32.xlu1 %v4978_v57, %s5095_s23  ;;  %v3924_v43 = vpop.f32.mrf.mxu0  ;;  %v3965_v60 = vpop.f32.mrf.mxu1  ;;  %v6454_v20 = vld [vmem:[%s7160_s1 + $0xd0] sm:$0xff]  ;;  %v6509_v57 = vld [vmem:[%s7160_s1 + $0x38] sm:$0xff]  ;;  %v5018_v8 = vpack.i.bf16 %v3474_v53, %v3301_v34  ;;  %v2119_v6 = vsel %vm213_vm1, %v5049_v44, %v4892_v31 }
 0x154   : > { %2055 = vmatmul.mubr.f32.vlgmr.msra.gmra.mxu0 %v1945_v51  ;;  %2228 = vmatmul.mubr.f32.vlgmr.msra.gmra.mxu1 %v2118_v17  ;;  %v4886_v51 = vunpack.i.l.bf16 %v4885_v25  ;;  %v6518_v17 = vld [vmem:[%s7160_s1 + $0xb0] sm:$0xff]  ;;  %v4900_v35 = vpop.permute.xlu1 %4899  ;;  %v6572_v34 = vld [vmem:[%s7160_s1 + $0x98] sm:$0xff] }
 0x155   : > { %4384 = vmatprep.subr.mxu0 %v6332_v26  ;;  %4425 = vmatprep.subr.mxu1 %v6332_v26  ;;  %v3925_v55 = vpop.f32.mrf.mxu0  ;;  %v3966_v39 = vpop.f32.mrf.mxu1  ;;  %v4901_v38 = vunpack.i.l.bf16 %v4900_v35  ;;  %v5054_v31 = vld [vmem:[%s5180_s6 + $0x118] sm:$0x1f] }
 0x156   : > { %4385 = vmatpush3.msra.mxu0 %v6338_v10  ;;  %4426 = vmatpush3.msra.mxu1 %v6338_v10  ;;  %v3926_v59 = vadd.f32 %v3925_v55, %v3924_v43  ;;  %v3967_v54 = vadd.f32 %v3966_v39, %v3965_v60  ;;  %v4895_v43 = vpop.permute.xlu0 %4894  ;;  %v6539_v60 = vld [vmem:[%s7160_s1 + $0x28] sm:$0xff] }
 0x157   : > { %4386 = vmatprep.subr.mxu0 %v6345_v3  ;;  %4427 = vmatprep.subr.mxu1 %v6345_v3  ;;  %v6546_v55 = vld [vmem:[%s5180_s6 + $0x128] sm:$0xff]  ;;  %v4897_v0 = vunpack.i.h.bf16 %v4895_v43  ;;  %v4896_v2 = vunpack.i.l.bf16 %v4895_v43 }
 0x158   : > { %4984 = vrot.lane.b32.xlu0 %v4983_v27, %s5095_s23  ;;  %4387 = vmatpush3.msra.mxu0 %v6357_v24  ;;  %v326_v37 = vadd.f32 %v3926_v59, %v6367_v33  ;;  %v500_v49 = vadd.f32 %v3967_v54, %v6367_v33  ;;  %v2122_v39 = vsel %vm213_vm1, %v6546_v55, %v4887_v61  ;;  %v6555_v59 = vld [vmem:[%s7160_s1 + $0xa0] sm:$0xff] }
 0x159   : > { %4428 = vmatpush3.msra.mxu1 %v6357_v24  ;;  %4989 = vrot.lane.b32.xlu1 %v4988_v28, %s5095_s23  ;;  %v1949_v28 = vsel %vm213_vm1, %v5049_v44, %v4886_v51  ;;  %v1946_v54 = vsel %vm213_vm1, %v6241_v29, %v4891_v52  ;;  %v4902_v29 = vunpack.i.h.bf16 %v4900_v35  ;;  %v1950_v4 = vsel %vm213_vm1, %v5051_v36, %v4896_v2  ;;  %v6621_v2 = vld [vmem:[%s7160_s1 + $0x8] sm:$0xff] }
 0x15a   : > { %4388 = vmatprep.subr.mxu0 %v6382_v19  ;;  %4429 = vmatprep.subr.mxu1 %v6382_v19  ;;  %v339_v48 = vmax.f32 %v326_v37, 0.0  ;;  %v513_v23 = vmax.f32 %v500_v49, 0.0  ;;  %v2123_v7 = vsel %vm213_vm1, %v5052_v40, %v4897_v0  ;;  %v1947_v61 = vsel %vm213_vm1, %v5053_v21, %v4901_v38  ;;  %v6614_v0 = vld [vmem:[%s7160_s1 + $0x88] sm:$0xff] }
 0x15b   : > { %4389 = vmatpush3.msra.mxu0 %v6397_v5  ;;  %4430 = vmatpush3.msra.mxu1 %v6397_v5  ;;  %v2120_v43 = vsel %vm213_vm1, %v5054_v31, %v4902_v29 }
 0x15c   : > { %4390 = vmatprep.subr.mxu0 %v6407_v62  ;;  %4431 = vmatprep.subr.mxu1 %v6407_v62  ;;  %343 = vst.msk [vmem:[%s6414_s25] sm:$0xff] %vm342_vm2, %v339_v48  ;;  %3707 = vst.msk [vmem:[%s6414_s25 + $0x18] sm:$0xff] %vm342_vm2, %v513_v23  ;;  %v6579_v23 = vld [vmem:[%s7160_s1 + $0x18] sm:$0xff] }
 0x15d   : > { %4391 = vmatpush3.msra.mxu0 %v6421_v14  ;;  %4432 = vmatpush3.msra.mxu1 %v6421_v14 }
 0x15e   : > { %4392 = vmatprep.subr.mxu0 %v6430_v16  ;;  %4433 = vmatprep.subr.mxu1 %v6430_v16 }
 0x15f   : > { %4994 = vrot.lane.b32.xlu0 %v4993_v18, %s5095_s23  ;;  %4393 = vmatpush3.msra.mxu0 %v6437_v50 }
 0x160   : > { %4434 = vmatpush3.msra.mxu1 %v6437_v50  ;;  %4999 = vrot.lane.b32.xlu1 %v4998_v11, %s5095_s23 }
 0x161   : > { %4394 = vmatprep.subr.mxu0 %v6454_v20  ;;  %4435 = vmatprep.subr.mxu1 %v6454_v20 }
 0x162   : > { %4395 = vmatpush3.msra.mxu0 %v6465_v47  ;;  %4436 = vmatpush3.msra.mxu1 %v6465_v47 }
 0x163   : > { %4396 = vmatprep.subr.mxu0 %v6472_v32  ;;  %4437 = vmatprep.subr.mxu1 %v6472_v32 }
 0x164   : > { %5004 = vrot.lane.b32.xlu0 %v5003_v58, %s5095_s23  ;;  %4397 = vmatpush3.msra.mxu0 %v6479_v9  ;;  %v4905_v58 = vpop.permute.xlu0 %4904 }
 0x165   : > { %4438 = vmatpush3.msra.mxu1 %v6479_v9  ;;  %5009 = vrot.lane.b32.xlu1 %v5008_v63, %s5095_s23  ;;  %v4910_v63 = vpop.permute.xlu1 %4909  ;;  %v4906_v44 = vunpack.i.l.bf16 %v4905_v58 }
 0x166   : > { %4398 = vmatprep.subr.mxu0 %v6488_v42  ;;  %4439 = vmatprep.subr.mxu1 %v6488_v42  ;;  %v4911_v35 = vunpack.i.l.bf16 %v4910_v63 }
 0x167   : > { %4399 = vmatpush3.msra.mxu0 %v6495_v13  ;;  %4440 = vmatpush3.msra.mxu1 %v6495_v13 }
 0x168   : > { %4400 = vmatprep.subr.mxu0 %v6502_v45  ;;  %4441 = vmatprep.subr.mxu1 %v6502_v45 }
 0x169   : > { %5014 = vrot.lane.b32.xlu0 %v5013_v30, %s5095_s23  ;;  %4401 = vmatpush3.msra.mxu0 %v6509_v57 }
 0x16a   : > { %4442 = vmatpush3.msra.mxu1 %v6509_v57  ;;  %5019 = vrot.lane.b32.xlu1 %v5018_v8, %s5095_s23  ;;  %v6592_v8 = vld [vmem:[%s7160_s1 + $0x90] sm:$0xff] }
 0x16b   : > { %4402 = vmatprep.subr.mxu0 %v6518_v17  ;;  %4443 = vmatprep.subr.mxu1 %v6518_v17  ;;  %v3927_v27 = vpop.f32.mrf.mxu0  ;;  %v3968_v22 = vpop.f32.mrf.mxu1 }
 0x16c   : > { %4403 = vmatpush3.msra.mxu0 %v6525_v15  ;;  %4444 = vmatpush3.msra.mxu1 %v6525_v15 }
 0x16d   : > { %4404 = vmatprep.subr.mxu0 %v6532_v12  ;;  %4445 = vmatprep.subr.mxu1 %v6532_v12  ;;  %v3928_v56 = vpop.f32.mrf.mxu0  ;;  %v3969_v1 = vpop.f32.mrf.mxu1 }
 0x16e   : > { %4405 = vmatpush3.msra.mxu0 %v6539_v60  ;;  %4446 = vmatpush3.msra.mxu1 %v6539_v60  ;;  %v3929_v37 = vadd.f32 %v3928_v56, %v3927_v27  ;;  %v3970_v49 = vadd.f32 %v3969_v1, %v3968_v22  ;;  %v4912_v1 = vunpack.i.h.bf16 %v4910_v63 }
 0x16f   : > { %2059 = vmatprep.mubr.f32.mxu0 %v1949_v28  ;;  %2232 = vmatprep.mubr.f32.mxu1 %v2122_v39  ;;  %v6607_v28 = vld [vmem:[%s7160_s1 + $0x10] sm:$0xff]  ;;  %v4907_v39 = vunpack.i.h.bf16 %v4905_v58 }
 0x170   : > { %4406 = vmatprep.subr.mxu0 %v6555_v59  ;;  %4447 = vmatprep.subr.mxu1 %v6555_v59  ;;  %v331_v53 = vadd.f32 %v3929_v37, %v6367_v33  ;;  %v505_v48 = vadd.f32 %v3970_v49, %v6367_v33 }
 0x171   : > { %2060 = vmatmul.mubr.f32.gmra.mxu0 %v1946_v54  ;;  %2233 = vmatmul.mubr.f32.gmra.mxu1 %v2119_v6  ;;  %v3930_v18 = vpop.f32.mrf.mxu0  ;;  %v3971_v11 = vpop.f32.mrf.mxu1  ;;  %v6628_v6 = vld [vmem:[%s7160_s1 + $0x80] sm:$0xff] }
 0x172   : > { %4407 = vmatpush3.msra.mxu0 %v6565_v41  ;;  %4448 = vmatpush3.msra.mxu1 %v6565_v41  ;;  %v340_v25 = vmax.f32 %v331_v53, 0.0  ;;  %v514_v30 = vmax.f32 %v505_v48, 0.0  ;;  %v6635_v53 = vld [vmem:[%s7160_s1] sm:$0xff]  ;;  %v5055_v48 = vld [vmem:[%s5180_s6 + $0x138] sm:$0xff] }
 0x173   : > { %4408 = vmatprep.subr.mxu0 %v6572_v34  ;;  %4449 = vmatprep.subr.mxu1 %v6572_v34  ;;  %v3931_v51 = vpop.f32.mrf.mxu0  ;;  %v3972_v52 = vpop.f32.mrf.mxu1  ;;  %v2464_v58 = vsel %vm213_vm1, %v5055_v48, %v4912_v1  ;;  %v6706_v1 = vld [vmem:[%s5180_s6 + $0x158] sm:$0xff] }
 0x174   : > { %4409 = vmatpush3.msra.mxu0 %v6579_v23  ;;  %4450 = vmatpush3.msra.mxu1 %v6579_v23  ;;  %344 = vst.msk [vmem:[%s6414_s25 + $0x8] sm:$0xff] %vm342_vm2, %v340_v25  ;;  %3708 = vst.msk [vmem:[%s6414_s25 + $0x20] sm:$0xff] %vm342_vm2, %v514_v30  ;;  %v3932_v27 = vadd.f32 %v3931_v51, %v3930_v18  ;;  %v3973_v22 = vadd.f32 %v3972_v52, %v3971_v11  ;;  %v6642_v11 = vld [vmem:[%s5180_s6 + $0x150] sm:$0xff]  ;;  %v4915_v51 = vpop.permute.xlu0 %4914  ;;  %v4920_v52 = vpop.permute.xlu1 %4919 }
 0x175   : > { %2064 = vmatprep.mubr.f32.mxu0 %v1950_v4  ;;  %2237 = vmatprep.mubr.f32.mxu1 %v2123_v7  ;;  %v2294_v18 = vsel %vm213_vm1, %v5055_v48, %v4906_v44  ;;  %v2467_v36 = vsel %vm213_vm1, %v6642_v11, %v4907_v39  ;;  %v2291_v4 = vsel %vm213_vm1, %v6313_v46, %v4911_v35  ;;  %v4917_v31 = vunpack.i.h.bf16 %v4915_v51 }
 0x176   : > { %4410 = vmatprep.subr.mxu0 %v6592_v8  ;;  %4451 = vmatprep.subr.mxu1 %v6592_v8  ;;  %v336_v54 = vadd.f32 %v3932_v27, %v6367_v33  ;;  %v510_v56 = vadd.f32 %v3973_v22, %v6367_v33  ;;  %v4921_v27 = vunpack.i.l.bf16 %v4920_v52  ;;  %v4922_v22 = vunpack.i.h.bf16 %v4920_v52 }
 0x177   : > { %2065 = vmatmul.mubr.f32.gmra.mxu0 %v1947_v61  ;;  %2238 = vmatmul.mubr.f32.gmra.mxu1 %v2120_v43  ;;  %v4916_v43 = vunpack.i.l.bf16 %v4915_v51  ;;  %v5060_v51 = vld [vmem:[%s5180_s6 + $0x160] sm:$0x1f] }
 0x178   : > { %4411 = vmatpush3.msra.mxu0 %v6607_v28  ;;  %4452 = vmatpush3.msra.mxu1 %v6607_v28  ;;  %v341_v37 = vmax.f32 %v336_v54, 0.0  ;;  %v515_v49 = vmax.f32 %v510_v56, 0.0  ;;  %v4006_v38 = vpop.f32.mrf.mxu0  ;;  %v4047_v29 = vpop.f32.mrf.mxu1  ;;  %v5057_v54 = vld [vmem:[%s5180_s6 + $0x140] sm:$0xff] }
 0x179   : > { %4412 = vmatprep.subr.mxu0 %v6614_v0  ;;  %4453 = vmatprep.subr.mxu1 %v6614_v0  ;;  %v4925_v44 = vpop.permute.xlu0 %4924  ;;  %v2295_v56 = vsel %vm213_vm1, %v5057_v54, %v4916_v43 }
 0x17a   : > { %4413 = vmatpush3.msra.mxu0 %v6621_v2  ;;  %4454 = vmatpush3.msra.mxu1 %v6621_v2  ;;  %346 = vst.msk [vmem:[%s6414_s25 + $0x10] sm:$0xf] %vm345_vm3, %v341_v37  ;;  %3709 = vst.msk [vmem:[%s6414_s25 + $0x28] sm:$0xf] %vm345_vm3, %v515_v49  ;;  %v4007_v40 = vpop.f32.mrf.mxu0  ;;  %v4048_v7 = vpop.f32.mrf.mxu1  ;;  %v2468_v37 = vsel %vm213_vm1, %v6706_v1, %v4917_v31 }
 0x17b   : > { %4414 = vmatprep.subr.mxu0 %v6628_v6  ;;  %4455 = vmatprep.subr.mxu1 %v6628_v6  ;;  %v4008_v63 = vadd.f32 %v4007_v40, %v4006_v38  ;;  %v4049_v25 = vadd.f32 %v4048_v7, %v4047_v29  ;;  %v4930_v49 = vpop.permute.xlu1 %4929  ;;  %v4927_v38 = vunpack.i.h.bf16 %v4925_v44  ;;  %v2292_v29 = vsel %vm213_vm1, %v6546_v55, %v4921_v27 }
 0x17c   : > { %4415 = vmatpush3.msra.mxu0 %v6635_v53  ;;  %2400 = vmatprep.mubr.f32.mxu0 %v2294_v18  ;;  %v4932_v55 = vunpack.i.h.bf16 %v4930_v49 }
 0x17d   : > { %4456 = vmatpush3.msra.mxu1 %v6635_v53  ;;  %2573 = vmatprep.mubr.f32.mxu1 %v2467_v36  ;;  %v673_v46 = vadd.f32 %v4008_v63, %v6367_v33  ;;  %v846_v30 = vadd.f32 %v4049_v25, %v6367_v33  ;;  %v4926_v36 = vunpack.i.l.bf16 %v4925_v44  ;;  %v2469_v52 = vsel %vm213_vm1, %v5060_v51, %v4927_v38  ;;  %v4935_v31 = vpop.permute.xlu0 %4934 }
 0x17e   : > { %2401 = vmatmul.mubr.f32.vlgmr.msra.gmra.mxu0 %v2291_v4  ;;  %2574 = vmatmul.mubr.f32.vlgmr.msra.gmra.mxu1 %v2464_v58  ;;  %v2465_v4 = vsel %vm213_vm1, %v5057_v54, %v4922_v22  ;;  %v4931_v58 = vunpack.i.l.bf16 %v4930_v49  ;;  %v5061_v22 = vld [vmem:[%s5180_s6 + $0x130] sm:$0x1f]  ;;  %v5062_v54 = vld [vmem:[%s5180_s6 + $0x148] sm:$0x1f] }
 0x17f   : > { %4466 = vmatprep.subr.mxu0 %v6332_v26  ;;  %4507 = vmatprep.subr.mxu1 %v6332_v26  ;;  %v686_v21 = vmax.f32 %v673_v46, 0.0  ;;  %v859_v61 = vmax.f32 %v846_v30, 0.0 }
 0x180   : > { %4467 = vmatpush3.msra.mxu0 %v6338_v10  ;;  %4508 = vmatpush3.msra.mxu1 %v6338_v10  ;;  %v2293_v44 = vsel %vm213_vm1, %v5061_v22, %v4931_v58 }
 0x181   : > { %4468 = vmatprep.subr.mxu0 %v6345_v3  ;;  %4509 = vmatprep.subr.mxu1 %v6345_v3  ;;  %3717 = vst.msk [vmem:[%s6414_s25 + $0x30] sm:$0xff] %vm342_vm2, %v686_v21  ;;  %3727 = vst.msk [vmem:[%s6414_s25 + $0x48] sm:$0xff] %vm342_vm2, %v859_v61  ;;  %v5059_v21 = vld [vmem:[%s5180_s6 + $0x148] sm:$0x1f] }
 0x182   : > { %4469 = vmatpush3.msra.mxu0 %v6357_v24  ;;  %4510 = vmatpush3.msra.mxu1 %v6357_v24  ;;  %v2296_v61 = vsel %vm213_vm1, %v5059_v21, %v4926_v36 }
 0x183   : > { %4470 = vmatprep.subr.mxu0 %v6382_v19  ;;  %4511 = vmatprep.subr.mxu1 %v6382_v19 }
 0x184   : > { %4471 = vmatpush3.msra.mxu0 %v6397_v5  ;;  %4512 = vmatpush3.msra.mxu1 %v6397_v5 }
 0x185   : > { %4472 = vmatprep.subr.mxu0 %v6407_v62  ;;  %4513 = vmatprep.subr.mxu1 %v6407_v62 }
 0x186   : > { %4473 = vmatpush3.msra.mxu0 %v6421_v14  ;;  %4514 = vmatpush3.msra.mxu1 %v6421_v14 }
 0x187   : > { %4474 = vmatprep.subr.mxu0 %v6430_v16  ;;  %4515 = vmatprep.subr.mxu1 %v6430_v16 }
 0x188   : > { %4475 = vmatpush3.msra.mxu0 %v6437_v50  ;;  %4516 = vmatpush3.msra.mxu1 %v6437_v50 }
 0x189   : > { %4476 = vmatprep.subr.mxu0 %v6454_v20  ;;  %4517 = vmatprep.subr.mxu1 %v6454_v20 }
 0x18a   : > { %4477 = vmatpush3.msra.mxu0 %v6465_v47  ;;  %4518 = vmatpush3.msra.mxu1 %v6465_v47 }
 0x18b   : > { %4478 = vmatprep.subr.mxu0 %v6472_v32  ;;  %4519 = vmatprep.subr.mxu1 %v6472_v32 }
 0x18c   : > { %4479 = vmatpush3.msra.mxu0 %v6479_v9  ;;  %4520 = vmatpush3.msra.mxu1 %v6479_v9 }
 0x18d   : > { %4480 = vmatprep.subr.mxu0 %v6488_v42  ;;  %4521 = vmatprep.subr.mxu1 %v6488_v42 }
 0x18e   : > { %4481 = vmatpush3.msra.mxu0 %v6495_v13  ;;  %4522 = vmatpush3.msra.mxu1 %v6495_v13 }
 0x18f   : > { %4482 = vmatprep.subr.mxu0 %v6502_v45  ;;  %4523 = vmatprep.subr.mxu1 %v6502_v45 }
 0x190   : > { %4483 = vmatpush3.msra.mxu0 %v6509_v57  ;;  %4524 = vmatpush3.msra.mxu1 %v6509_v57 }
 0x191   : > { %4484 = vmatprep.subr.mxu0 %v6518_v17  ;;  %4525 = vmatprep.subr.mxu1 %v6518_v17  ;;  %v4009_v39 = vpop.f32.mrf.mxu0  ;;  %v4050_v35 = vpop.f32.mrf.mxu1 }
 0x192   : > { %4485 = vmatpush3.msra.mxu0 %v6525_v15  ;;  %4526 = vmatpush3.msra.mxu1 %v6525_v15 }
 0x193   : > { %4486 = vmatprep.subr.mxu0 %v6532_v12  ;;  %4527 = vmatprep.subr.mxu1 %v6532_v12  ;;  %v4010_v48 = vpop.f32.mrf.mxu0  ;;  %v4051_v18 = vpop.f32.mrf.mxu1 }
 0x194   : > { %4487 = vmatpush3.msra.mxu0 %v6539_v60  ;;  %4528 = vmatpush3.msra.mxu1 %v6539_v60  ;;  %v4011_v40 = vadd.f32 %v4010_v48, %v4009_v39  ;;  %v4052_v7 = vadd.f32 %v4051_v18, %v4050_v35  ;;  %v4937_v48 = vunpack.i.h.bf16 %v4935_v31 }
 0x195   : > { %2405 = vmatprep.mubr.f32.mxu0 %v2295_v56  ;;  %2578 = vmatprep.mubr.f32.mxu1 %v2468_v37  ;;  %v2466_v56 = vsel %vm213_vm1, %v5062_v54, %v4932_v55  ;;  %v4940_v37 = vpop.permute.xlu1 %4939 }
 0x196   : > { %4488 = vmatprep.subr.mxu0 %v6555_v59  ;;  %4529 = vmatprep.subr.mxu1 %v6555_v59  ;;  %v678_v63 = vadd.f32 %v4011_v40, %v6367_v33  ;;  %v851_v25 = vadd.f32 %v4052_v7, %v6367_v33  ;;  %v4941_v40 = vunpack.i.l.bf16 %v4940_v37 }
 0x197   : > { %2406 = vmatmul.mubr.f32.gmra.mxu0 %v2292_v29  ;;  %2579 = vmatmul.mubr.f32.gmra.mxu1 %v2465_v4  ;;  %v4012_v46 = vpop.f32.mrf.mxu0  ;;  %v4053_v30 = vpop.f32.mrf.mxu1  ;;  %v4936_v29 = vunpack.i.l.bf16 %v4935_v31  ;;  %v4942_v4 = vunpack.i.h.bf16 %v4940_v37 }
 0x198   : > { %4489 = vmatpush3.msra.mxu0 %v6565_v41  ;;  %4530 = vmatpush3.msra.mxu1 %v6565_v41  ;;  %v687_v43 = vmax.f32 %v678_v63, 0.0  ;;  %v860_v27 = vmax.f32 %v851_v25, 0.0  ;;  %v5063_v63 = vld [vmem:[%s5180_s6 + $0x168] sm:$0xff]  ;;  %v2637_v51 = vsel %vm213_vm1, %v6642_v11, %v4941_v40 }
 0x199   : > { %4490 = vmatprep.subr.mxu0 %v6572_v34  ;;  %4531 = vmatprep.subr.mxu1 %v6572_v34  ;;  %v4013_v39 = vpop.f32.mrf.mxu0  ;;  %v4054_v35 = vpop.f32.mrf.mxu1  ;;  %v2640_v25 = vsel %vm213_vm1, %v5063_v63, %v4936_v29 }
 0x19a   : > { %4491 = vmatpush3.msra.mxu0 %v6579_v23  ;;  %4532 = vmatpush3.msra.mxu1 %v6579_v23  ;;  %3718 = vst.msk [vmem:[%s6414_s25 + $0x38] sm:$0xff] %vm342_vm2, %v687_v43  ;;  %3728 = vst.msk [vmem:[%s6414_s25 + $0x50] sm:$0xff] %vm342_vm2, %v860_v27  ;;  %v4014_v49 = vadd.f32 %v4013_v39, %v4012_v46  ;;  %v4055_v38 = vadd.f32 %v4054_v35, %v4053_v30  ;;  %v6752_v30 = vld [vmem:[%s5180_s6 + $0x180] sm:$0xff] }
 0x19b   : > { %2410 = vmatprep.mubr.f32.mxu0 %v2296_v61  ;;  %2583 = vmatprep.mubr.f32.mxu1 %v2469_v52  ;;  %v2813_v21 = vsel %vm213_vm1, %v6752_v30, %v4937_v48  ;;  %v2810_v52 = vsel %vm213_vm1, %v5063_v63, %v4942_v4  ;;  %v5068_v48 = vld [vmem:[%s5180_s6 + $0x190] sm:$0x1f]  ;;  %v5070_v63 = vld [vmem:[%s5180_s6 + $0x178] sm:$0x1f] }
 0x19c   : > { %4492 = vmatprep.subr.mxu0 %v6592_v8  ;;  %4533 = vmatprep.subr.mxu1 %v6592_v8  ;;  %v683_v18 = vadd.f32 %v4014_v49, %v6367_v33  ;;  %v856_v36 = vadd.f32 %v4055_v38, %v6367_v33  ;;  %v5067_v38 = vld [vmem:[%s5180_s6 + $0x178] sm:$0x1f] }
 0x19d   : > { %2411 = vmatmul.mubr.f32.gmra.mxu0 %v2293_v44  ;;  %2584 = vmatmul.mubr.f32.gmra.mxu1 %v2466_v56 }
 0x19e   : > { %4493 = vmatpush3.msra.mxu0 %v6607_v28  ;;  %4534 = vmatpush3.msra.mxu1 %v6607_v28  ;;  %v688_v7 = vmax.f32 %v683_v18, 0.0  ;;  %v861_v58 = vmax.f32 %v856_v36, 0.0  ;;  %v4088_v55 = vpop.f32.mrf.mxu0  ;;  %v4129_v46 = vpop.f32.mrf.mxu1 }
 0x19f   : > { %4494 = vmatprep.subr.mxu0 %v6614_v0  ;;  %4535 = vmatprep.subr.mxu1 %v6614_v0 }
 0x1a0   : > { %4495 = vmatpush3.msra.mxu0 %v6621_v2  ;;  %4536 = vmatpush3.msra.mxu1 %v6621_v2  ;;  %3719 = vst.msk [vmem:[%s6414_s25 + $0x40] sm:$0xf] %vm345_vm3, %v688_v7  ;;  %3729 = vst.msk [vmem:[%s6414_s25 + $0x58] sm:$0xf] %vm345_vm3, %v861_v58  ;;  %v4089_v61 = vpop.f32.mrf.mxu0  ;;  %v4130_v43 = vpop.f32.mrf.mxu1  ;;  %v5069_v7 = vld [vmem:[%s5180_s6 + $0x160] sm:$0x1f] }
 0x1a1   : > { %4496 = vmatprep.subr.mxu0 %v6628_v6  ;;  %4537 = vmatprep.subr.mxu1 %v6628_v6  ;;  %v4090_v31 = vadd.f32 %v4089_v61, %v4088_v55  ;;  %v4131_v27 = vadd.f32 %v4130_v43, %v4129_v46 }
 0x1a2   : > { %4497 = vmatpush3.msra.mxu0 %v6635_v53  ;;  %2746 = vmatprep.mubr.f32.mxu0 %v2640_v25 }
 0x1a3   : > { %4538 = vmatpush3.msra.mxu1 %v6635_v53  ;;  %2919 = vmatprep.mubr.f32.mxu1 %v2813_v21  ;;  %v1019_v22 = vadd.f32 %v4090_v31, %v6367_v33  ;;  %v1192_v44 = vadd.f32 %v4131_v27, %v6367_v33 }
 0x1a4   : > { %2747 = vmatmul.mubr.f32.vlgmr.msra.gmra.mxu0 %v2637_v51  ;;  %2920 = vmatmul.mubr.f32.vlgmr.msra.gmra.mxu1 %v2810_v52 }
 0x1a5   : > { %4548 = vmatprep.subr.mxu0 %v6332_v26  ;;  %4589 = vmatprep.subr.mxu1 %v6332_v26  ;;  %v1032_v11 = vmax.f32 %v1019_v22, 0.0  ;;  %v1205_v39 = vmax.f32 %v1192_v44, 0.0  ;;  %v4945_v26 = vpop.permute.xlu0 %4944  ;;  %v5071_v44 = vld [vmem:[%s5180_s6 + $0x198] sm:$0xff] }
 0x1a6   : > { %4549 = vmatpush3.msra.mxu0 %v6338_v10  ;;  %4590 = vmatpush3.msra.mxu1 %v6338_v10  ;;  %v4950_v10 = vpop.permute.xlu1 %4949 }
 0x1a7   : > { %4550 = vmatprep.subr.mxu0 %v6345_v3  ;;  %4591 = vmatprep.subr.mxu1 %v6345_v3  ;;  %3737 = vst.msk [vmem:[%s6414_s25 + $0x60] sm:$0xff] %vm342_vm2, %v1032_v11  ;;  %3747 = vst.msk [vmem:[%s6414_s25 + $0x78] sm:$0xff] %vm342_vm2, %v1205_v39  ;;  %v4947_v3 = vunpack.i.h.bf16 %v4945_v26  ;;  %v6862_v11 = vld [vmem:[%s5180_s6 + $0x1b0] sm:$0xff] }
 0x1a8   : > { %4551 = vmatpush3.msra.mxu0 %v6357_v24  ;;  %4592 = vmatpush3.msra.mxu1 %v6357_v24  ;;  %v4946_v24 = vunpack.i.l.bf16 %v4945_v26 }
 0x1a9   : > { %4552 = vmatprep.subr.mxu0 %v6382_v19  ;;  %4593 = vmatprep.subr.mxu1 %v6382_v19  ;;  %v4952_v19 = vunpack.i.h.bf16 %v4950_v10 }
 0x1aa   : > { %4553 = vmatpush3.msra.mxu0 %v6397_v5  ;;  %4594 = vmatpush3.msra.mxu1 %v6397_v5  ;;  %v4951_v5 = vunpack.i.l.bf16 %v4950_v10 }
 0x1ab   : > { %4554 = vmatprep.subr.mxu0 %v6407_v62  ;;  %4595 = vmatprep.subr.mxu1 %v6407_v62  ;;  %v4955_v62 = vpop.permute.xlu0 %4954 }
 0x1ac   : > { %4555 = vmatpush3.msra.mxu0 %v6421_v14  ;;  %4596 = vmatpush3.msra.mxu1 %v6421_v14 }
 0x1ad   : > { %4556 = vmatprep.subr.mxu0 %v6430_v16  ;;  %4597 = vmatprep.subr.mxu1 %v6430_v16 }
 0x1ae   : > { %4557 = vmatpush3.msra.mxu0 %v6437_v50  ;;  %4598 = vmatpush3.msra.mxu1 %v6437_v50  ;;  %v5065_v50 = vld [vmem:[%s5180_s6 + $0x170] sm:$0xff] }
 0x1af   : > { %4558 = vmatprep.subr.mxu0 %v6454_v20  ;;  %4599 = vmatprep.subr.mxu1 %v6454_v20  ;;  %v2641_v20 = vsel %vm213_vm1, %v5065_v50, %v4946_v24  ;;  %v4965_v18 = vpop.permute.xlu0 %4964 }
 0x1b0   : > { %4559 = vmatpush3.msra.mxu0 %v6465_v47  ;;  %4600 = vmatpush3.msra.mxu1 %v6465_v47  ;;  %v6816_v47 = vld [vmem:[%s5180_s6 + $0x188] sm:$0xff]  ;;  %v4967_v61 = vunpack.i.h.bf16 %v4965_v18 }
 0x1b1   : > { %4560 = vmatprep.subr.mxu0 %v6472_v32  ;;  %4601 = vmatprep.subr.mxu1 %v6472_v32  ;;  %v2814_v32 = vsel %vm213_vm1, %v6816_v47, %v4947_v3 }
 0x1b2   : > { %4561 = vmatpush3.msra.mxu0 %v6479_v9  ;;  %4602 = vmatpush3.msra.mxu1 %v6479_v9  ;;  %v4960_v9 = vpop.permute.xlu1 %4959 }
 0x1b3   : > { %4562 = vmatprep.subr.mxu0 %v6488_v42  ;;  %4603 = vmatprep.subr.mxu1 %v6488_v42  ;;  %v2638_v42 = vsel %vm213_vm1, %v6706_v1, %v4951_v5  ;;  %v4962_v1 = vunpack.i.h.bf16 %v4960_v9 }
 0x1b4   : > { %4563 = vmatpush3.msra.mxu0 %v6495_v13  ;;  %4604 = vmatpush3.msra.mxu1 %v6495_v13  ;;  %v2811_v13 = vsel %vm213_vm1, %v5065_v50, %v4952_v19  ;;  %v3350_v19 = vld [vmem:[%s7160_s1 + $0x78] sm:$0xff]  ;;  %v3364_v50 = vld [vmem:[%s7160_s1 + $0xe8] sm:$0xff] }
 0x1b5   : > { %4564 = vmatprep.subr.mxu0 %v6502_v45  ;;  %4605 = vmatprep.subr.mxu1 %v6502_v45  ;;  %v2812_v25 = vsel %vm213_vm1, %v5070_v63, %v4962_v1  ;;  %v3358_v1 = vld [vmem:[%s7160_s1 + $0xb8] sm:$0xff]  ;;  %v3340_v63 = vld [vmem:[%s7160_s1 + $0x28] sm:$0xff] }
 0x1b6   : > { %4565 = vmatpush3.msra.mxu0 %v6509_v57  ;;  %4606 = vmatpush3.msra.mxu1 %v6509_v57  ;;  %v4970_v36 = vpop.permute.xlu1 %4969 }
 0x1b7   : > { %4566 = vmatprep.subr.mxu0 %v6518_v17  ;;  %4607 = vmatprep.subr.mxu1 %v6518_v17  ;;  %v4091_v14 = vpop.f32.mrf.mxu0  ;;  %v4132_v16 = vpop.f32.mrf.mxu1  ;;  %v4957_v17 = vunpack.i.h.bf16 %v4955_v62  ;;  %v4971_v51 = vunpack.i.l.bf16 %v4970_v36  ;;  %v4972_v31 = vunpack.i.h.bf16 %v4970_v36  ;;  %v3356_v36 = vld [vmem:[%s7160_s1 + $0xa8] sm:$0xff] }
 0x1b8   : > { %4567 = vmatpush3.msra.mxu0 %v6525_v15  ;;  %4608 = vmatpush3.msra.mxu1 %v6525_v15  ;;  %v4956_v15 = vunpack.i.l.bf16 %v4955_v62  ;;  %v3365_v62 = vld [vmem:[%s7160_s1 + $0xf0] sm:$0xff] }
 0x1b9   : > { %4568 = vmatprep.subr.mxu0 %v6532_v12  ;;  %4609 = vmatprep.subr.mxu1 %v6532_v12  ;;  %v4092_v45 = vpop.f32.mrf.mxu0  ;;  %v4133_v57 = vpop.f32.mrf.mxu1  ;;  %v4961_v12 = vunpack.i.l.bf16 %v4960_v9  ;;  %v2983_v39 = vsel %vm213_vm1, %v6752_v30, %v4971_v51  ;;  %v3366_v30 = vld [vmem:[%s7160_s1 + $0xf8] sm:$0xff]  ;;  %v3347_v9 = vld [vmem:[%s7160_s1 + $0x60] sm:$0xff] }
 0x1ba   : > { %4569 = vmatpush3.msra.mxu0 %v6539_v60  ;;  %4610 = vmatpush3.msra.mxu1 %v6539_v60  ;;  %v4093_v35 = vadd.f32 %v4092_v45, %v4091_v14  ;;  %v4134_v54 = vadd.f32 %v4133_v57, %v4132_v16  ;;  %v2642_v29 = vsel %vm213_vm1, %v5067_v38, %v4956_v15  ;;  %v3361_v45 = vld [vmem:[%s7160_s1 + $0xd0] sm:$0xff] }
 0x1bb   : > { %2751 = vmatprep.mubr.f32.mxu0 %v2641_v20  ;;  %2924 = vmatprep.mubr.f32.mxu1 %v2814_v32  ;;  %v3348_v20 = vld [vmem:[%s7160_s1 + $0x68] sm:$0xff]  ;;  %v3363_v32 = vld [vmem:[%s7160_s1 + $0xe0] sm:$0xff]  ;;  %v3345_v57 = vld [vmem:[%s7160_s1 + $0x50] sm:$0xff] }
 0x1bc   : > { %4570 = vmatprep.subr.mxu0 %v6555_v59  ;;  %4611 = vmatprep.subr.mxu1 %v6555_v59  ;;  %v1024_v56 = vadd.f32 %v4093_v35, %v6367_v33  ;;  %v1197_v37 = vadd.f32 %v4134_v54, %v6367_v33  ;;  %v2815_v59 = vsel %vm213_vm1, %v5068_v48, %v4957_v17  ;;  %v3360_v17 = vld [vmem:[%s7160_s1 + $0xc8] sm:$0xff]  ;;  %v3359_v54 = vld [vmem:[%s7160_s1 + $0xc0] sm:$0xff]  ;;  %v3357_v38 = vld [vmem:[%s7160_s1 + $0xb0] sm:$0xff] }
 0x1bd   : > { %2752 = vmatmul.mubr.f32.gmra.mxu0 %v2638_v42  ;;  %2925 = vmatmul.mubr.f32.gmra.mxu1 %v2811_v13  ;;  %v4094_v60 = vpop.f32.mrf.mxu0  ;;  %v4135_v49 = vpop.f32.mrf.mxu1  ;;  %v3362_v42 = vld [vmem:[%s7160_s1 + $0xd8] sm:$0xff]  ;;  %v3344_v35 = vld [vmem:[%s7160_s1 + $0x48] sm:$0xff] }
 0x1be   : > { %4571 = vmatpush3.msra.mxu0 %v6565_v41  ;;  %4612 = vmatpush3.msra.mxu1 %v6565_v41  ;;  %v1033_v4 = vmax.f32 %v1024_v56, 0.0  ;;  %v1206_v40 = vmax.f32 %v1197_v37, 0.0  ;;  %v2639_v41 = vsel %vm213_vm1, %v5069_v7, %v4961_v12  ;;  %v3346_v13 = vld [vmem:[%s7160_s1 + $0x58] sm:$0xff]  ;;  %v3343_v12 = vld [vmem:[%s7160_s1 + $0x40] sm:$0xff] }
 0x1bf   : > { %4572 = vmatprep.subr.mxu0 %v6572_v34  ;;  %4613 = vmatprep.subr.mxu1 %v6572_v34  ;;  %v4095_v58 = vpop.f32.mrf.mxu0  ;;  %v4136_v55 = vpop.f32.mrf.mxu1  ;;  %v4966_v34 = vunpack.i.l.bf16 %v4965_v18  ;;  %v3341_v18 = vld [vmem:[%s7160_s1 + $0x30] sm:$0xff]  ;;  %v6954_v7 = vld [vmem:[%s5180_s6 + $0x1b8] sm:$0xff] }
 0x1c0   : > { %4573 = vmatpush3.msra.mxu0 %v6579_v23  ;;  %4614 = vmatpush3.msra.mxu1 %v6579_v23  ;;  %3738 = vst.msk [vmem:[%s6414_s25 + $0x68] sm:$0xff] %vm342_vm2, %v1033_v4  ;;  %3748 = vst.msk [vmem:[%s6414_s25 + $0x80] sm:$0xff] %vm342_vm2, %v1206_v40  ;;  %v4096_v46 = vadd.f32 %v4095_v58, %v4094_v60  ;;  %v4137_v21 = vadd.f32 %v4136_v55, %v4135_v49  ;;  %v3342_v49 = vld [vmem:[%s7160_s1 + $0x38] sm:$0xff]  ;;  %v5073_v4 = vld [vmem:[%s5180_s6 + $0x1a0] sm:$0xff] }
 0x1c1   : > { %2756 = vmatprep.mubr.f32.mxu0 %v2642_v29  ;;  %2929 = vmatprep.mubr.f32.mxu1 %v2815_v59 }
 0x1c2   : > { %4574 = vmatprep.subr.mxu0 %v6592_v8  ;;  %4615 = vmatprep.subr.mxu1 %v6592_v8  ;;  %v1029_v23 = vadd.f32 %v4096_v46, %v6367_v33  ;;  %v1202_v52 = vadd.f32 %v4137_v21, %v6367_v33  ;;  %v2986_v33 = vsel %vm213_vm1, %v5071_v44, %v4966_v34 }
 0x1c3   : > { %2757 = vmatmul.mubr.f32.gmra.mxu0 %v2639_v41  ;;  %2930 = vmatmul.mubr.f32.gmra.mxu1 %v2812_v25  ;;  %v4975_v15 = vpop.permute.xlu0 %4974 }
 0x1c4   : > { %4575 = vmatpush3.msra.mxu0 %v6607_v28  ;;  %4616 = vmatpush3.msra.mxu1 %v6607_v28  ;;  %v1034_v43 = vmax.f32 %v1029_v23, 0.0  ;;  %v1207_v27 = vmax.f32 %v1202_v52, 0.0  ;;  %v4170_v8 = vpop.f32.mrf.mxu0  ;;  %v4211_v22 = vpop.f32.mrf.mxu1  ;;  %v3159_v28 = vsel %vm213_vm1, %v6862_v11, %v4967_v61  ;;  %v4977_v37 = vunpack.i.h.bf16 %v4975_v15 }
 0x1c5   : > { %4576 = vmatprep.subr.mxu0 %v6614_v0  ;;  %4617 = vmatprep.subr.mxu1 %v6614_v0  ;;  %v6875_v0 = vld [vmem:[%s7161_s2] ss:$0 sm:$0xff]  ;;  %v4980_v56 = vpop.permute.xlu1 %4979  ;;  %v4976_v60 = vunpack.i.l.bf16 %v4975_v15 }
 0x1c6   : > { %4577 = vmatpush3.msra.mxu0 %v6621_v2  ;;  %4618 = vmatpush3.msra.mxu1 %v6621_v2  ;;  %3739 = vst.msk [vmem:[%s6414_s25 + $0x70] sm:$0xf] %vm345_vm3, %v1034_v43  ;;  %3749 = vst.msk [vmem:[%s6414_s25 + $0x88] sm:$0xf] %vm345_vm3, %v1207_v27  ;;  %v4171_v26 = vpop.f32.mrf.mxu0  ;;  %v4212_v10 = vpop.f32.mrf.mxu1  ;;  %v3156_v2 = vsel %vm213_vm1, %v5071_v44, %v4972_v31  ;;  %v4982_v48 = vunpack.i.h.bf16 %v4980_v56  ;;  %v4981_v59 = vunpack.i.l.bf16 %v4980_v56  ;;  %v3355_v31 = vld [vmem:[%s7160_s1 + $0xa0] sm:$0xff]  ;;  %v3354_v44 = vld [vmem:[%s7160_s1 + $0x98] sm:$0xff] }
 0x1c7   : > { %4578 = vmatprep.subr.mxu0 %v6628_v6  ;;  %4619 = vmatprep.subr.mxu1 %v6628_v6  ;;  %v4172_v3 = vadd.f32 %v4171_v26, %v4170_v8  ;;  %v4213_v24 = vadd.f32 %v4212_v10, %v4211_v22  ;;  %v2987_v40 = vsel %vm213_vm1, %v5073_v4, %v4976_v60  ;;  %v5075_v26 = vld [vmem:[%s5180_s6 + $0x1a8] sm:$0x1f] }
 0x1c8   : > { %4579 = vmatpush3.msra.mxu0 %v6635_v53  ;;  %3092 = vmatprep.mubr.f32.mxu0 %v2986_v33  ;;  %v3160_v41 = vsel %vm213_vm1, %v6954_v7, %v4977_v37  ;;  %v2984_v61 = vsel %vm213_vm1, %v6816_v47, %v4981_v59  ;;  %v3157_v51 = vsel %vm213_vm1, %v5073_v4, %v4982_v48  ;;  %v3339_v47 = vld [vmem:[%s7160_s1 + $0x20] sm:$0xff]  ;;  %v3336_v37 = vld [vmem:[%s7160_s1 + $0x8] sm:$0xff] }
 0x1c9   : > { %4620 = vmatpush3.msra.mxu1 %v6635_v53  ;;  %3265 = vmatprep.mubr.f32.mxu1 %v3159_v28  ;;  %v1365_v6 = vadd.f32 %v4172_v3, %v6875_v0  ;;  %v1538_v5 = vadd.f32 %v4213_v24, %v6875_v0  ;;  %v3349_v53 = vld [vmem:[%s7160_s1 + $0x70] sm:$0xff] }
 0x1ca   : > { %3093 = vmatmul.mubr.f32.vlgmr.msra.gmra.mxu0 %v2983_v39  ;;  %3266 = vmatmul.mubr.f32.vlgmr.msra.gmra.mxu1 %v3156_v2  ;;  %v4985_v29 = vpop.permute.xlu0 %4984  ;;  %v5076_v2 = vld [vmem:[%s5180_s6 + $0x1c0] sm:$0x1f] }
 0x1cb   : > { %4630 = vmatprep.subr.mxu0 %v3366_v30  ;;  %4671 = vmatprep.subr.mxu1 %v3366_v30  ;;  %v1378_v14 = vmax.f32 %v1365_v6, 0.0  ;;  %v1551_v16 = vmax.f32 %v1538_v5, 0.0  ;;  %v4990_v25 = vpop.permute.xlu1 %4989  ;;  %v4987_v21 = vunpack.i.h.bf16 %v4985_v29  ;;  %v4986_v34 = vunpack.i.l.bf16 %v4985_v29 }
 0x1cc   : > { %4631 = vmatpush3.msra.mxu0 %v3350_v19  ;;  %4672 = vmatpush3.msra.mxu1 %v3350_v19  ;;  %v4992_v8 = vunpack.i.h.bf16 %v4990_v25  ;;  %v4991_v22 = vunpack.i.l.bf16 %v4990_v25  ;;  %v3338_v19 = vld [vmem:[%s7160_s1 + $0x18] sm:$0xff] }
 0x1cd   : > { %4632 = vmatprep.subr.mxu0 %v3365_v62  ;;  %4673 = vmatprep.subr.mxu1 %v3365_v62  ;;  %3757 = vst.msk [vmem:[%s6414_s25 + $0x90] sm:$0xff] %vm342_vm2, %v1378_v14  ;;  %3767 = vst.msk [vmem:[%s6414_s25 + $0xa8] sm:$0xff] %vm342_vm2, %v1551_v16  ;;  %v2988_v10 = vsel %vm213_vm1, %v5075_v26, %v4986_v34  ;;  %v3161_v3 = vsel %vm213_vm1, %v5076_v2, %v4987_v21  ;;  %v5078_v16 = vld [vmem:[%s5180_s6 + $0x1a8] sm:$0x1f]  ;;  %v5083_v2 = vld [vmem:[%s5180_s6 + $0x1d8] sm:$0x1f] }
 0x1ce   : > { %4633 = vmatpush3.msra.mxu0 %v3349_v53  ;;  %4674 = vmatpush3.msra.mxu1 %v3349_v53  ;;  %v5077_v53 = vld [vmem:[%s5180_s6 + $0x190] sm:$0x1f] }
 0x1cf   : > { %4634 = vmatprep.subr.mxu0 %v3364_v50  ;;  %4675 = vmatprep.subr.mxu1 %v3364_v50  ;;  %v2985_v14 = vsel %vm213_vm1, %v5077_v53, %v4991_v22  ;;  %v3158_v50 = vsel %vm213_vm1, %v5078_v16, %v4992_v8 }
 0x1d0   : > { %4635 = vmatpush3.msra.mxu0 %v3348_v20  ;;  %4676 = vmatpush3.msra.mxu1 %v3348_v20 }
 0x1d1   : > { %4636 = vmatprep.subr.mxu0 %v3363_v32  ;;  %4677 = vmatprep.subr.mxu1 %v3363_v32  ;;  %v6961_v46 = vpop.permute.xlu0 %4994 }
 0x1d2   : > { %4637 = vmatpush3.msra.mxu0 %v3347_v9  ;;  %4678 = vmatpush3.msra.mxu1 %v3347_v9  ;;  %v6975_v33 = vpop.permute.xlu1 %4999  ;;  %v3353_v9 = vld [vmem:[%s7160_s1 + $0x90] sm:$0xff] }
 0x1d3   : > { %4638 = vmatprep.subr.mxu0 %v3362_v42  ;;  %4679 = vmatprep.subr.mxu1 %v3362_v42  ;;  %v5001_v15 = vunpack.i.l.bf16 %v6975_v33  ;;  %v5002_v56 = vunpack.i.h.bf16 %v6975_v33 }
 0x1d4   : > { %4639 = vmatpush3.msra.mxu0 %v3346_v13  ;;  %4680 = vmatpush3.msra.mxu1 %v3346_v13 }
 0x1d5   : > { %4640 = vmatprep.subr.mxu0 %v3361_v45  ;;  %4681 = vmatprep.subr.mxu1 %v3361_v45  ;;  %v4996_v45 = vunpack.i.l.bf16 %v6961_v46  ;;  %v3329_v25 = vsel %vm213_vm1, %v6862_v11, %v5001_v15 }
 0x1d6   : > { %4641 = vmatpush3.msra.mxu0 %v3345_v57  ;;  %4682 = vmatpush3.msra.mxu1 %v3345_v57  ;;  %v6986_v6 = vpop.permute.xlu0 %5004  ;;  %v3337_v57 = vld [vmem:[%s7160_s1 + $0x10] sm:$0xff] }
 0x1d7   : > { %4642 = vmatprep.subr.mxu0 %v3360_v17  ;;  %4683 = vmatprep.subr.mxu1 %v3360_v17  ;;  %v4997_v17 = vunpack.i.h.bf16 %v6961_v46  ;;  %v5006_v60 = vunpack.i.l.bf16 %v6986_v6 }
 0x1d8   : > { %4643 = vmatpush3.msra.mxu0 %v3344_v35  ;;  %4684 = vmatpush3.msra.mxu1 %v3344_v35  ;;  %v3352_v35 = vld [vmem:[%s7160_s1 + $0x88] sm:$0xff] }
 0x1d9   : > { %4644 = vmatprep.subr.mxu0 %v3359_v54  ;;  %4685 = vmatprep.subr.mxu1 %v3359_v54  ;;  %v5010_v54 = vpop.permute.xlu1 %5009 }
 0x1da   : > { %4645 = vmatpush3.msra.mxu0 %v3343_v12  ;;  %4686 = vmatpush3.msra.mxu1 %v3343_v12  ;;  %v5012_v21 = vunpack.i.h.bf16 %v5010_v54 }
 0x1db   : > { %4646 = vmatprep.subr.mxu0 %v3358_v1  ;;  %4687 = vmatprep.subr.mxu1 %v3358_v1 }
 0x1dc   : > { %4647 = vmatpush3.msra.mxu0 %v3342_v49  ;;  %4688 = vmatpush3.msra.mxu1 %v3342_v49  ;;  %v3351_v49 = vld [vmem:[%s7160_s1 + $0x80] sm:$0xff] }
 0x1dd   : > { %4648 = vmatprep.subr.mxu0 %v3357_v38  ;;  %4689 = vmatprep.subr.mxu1 %v3357_v38  ;;  %v4173_v58 = vpop.f32.mrf.mxu0  ;;  %v4214_v55 = vpop.f32.mrf.mxu1  ;;  %v5007_v38 = vunpack.i.h.bf16 %v6986_v6 }
 0x1de   : > { %4649 = vmatpush3.msra.mxu0 %v3341_v18  ;;  %4690 = vmatpush3.msra.mxu1 %v3341_v18  ;;  %v3335_v18 = vld [vmem:[%s7160_s1] sm:$0xff]  ;;  %v5020_v8 = vpop.permute.xlu1 %5019 }
 0x1df   : > { %4650 = vmatprep.subr.mxu0 %v3356_v36  ;;  %4691 = vmatprep.subr.mxu1 %v3356_v36  ;;  %v4174_v23 = vpop.f32.mrf.mxu0  ;;  %v4215_v52 = vpop.f32.mrf.mxu1  ;;  %v5079_v36 = vld [vmem:[%s5180_s6 + $0x1c8] sm:$0xff] }
 0x1e0   : > { %3097 = vmatprep.mubr.f32.mxu0 %v2987_v40  ;;  %3270 = vmatprep.mubr.f32.mxu1 %v3160_v41  ;;  %v4175_v43 = vadd.f32 %v4174_v23, %v4173_v58  ;;  %v4216_v27 = vadd.f32 %v4215_v52, %v4214_v55  ;;  %v3332_v4 = vsel %vm213_vm1, %v5079_v36, %v4996_v45  ;;  %v5015_v40 = vpop.permute.xlu0 %5014  ;;  %v5080_v58 = vld [vmem:[%s5180_s6 + $0x1e0] sm:$0xff] }
 0x1e1   : > { %4651 = vmatpush3.msra.mxu0 %v3340_v63  ;;  %4692 = vmatpush3.msra.mxu1 %v3340_v63  ;;  %v3505_v55 = vsel %vm213_vm1, %v5080_v58, %v4997_v17  ;;  %v5011_v63 = vunpack.i.l.bf16 %v5010_v54  ;;  %v3502_v34 = vsel %vm213_vm1, %v5079_v36, %v5002_v56  ;;  %v5016_v11 = vunpack.i.l.bf16 %v5015_v40 }
 0x1e2   : > { %3098 = vmatmul.mubr.f32.gmra.mxu0 %v2984_v61  ;;  %3271 = vmatmul.mubr.f32.gmra.mxu1 %v3157_v51  ;;  %v1370_v28 = vadd.f32 %v4175_v43, %v6875_v0  ;;  %v1543_v39 = vadd.f32 %v4216_v27, %v6875_v0  ;;  %v5081_v61 = vld [vmem:[%s5180_s6 + $0x1d0] sm:$0xff]  ;;  %v5082_v43 = vld [vmem:[%s5180_s6 + $0x1e8] sm:$0xff] }
 0x1e3   : > { %4652 = vmatprep.subr.mxu0 %v3355_v31  ;;  %4693 = vmatprep.subr.mxu1 %v3355_v31  ;;  %v4176_v24 = vpop.f32.mrf.mxu0  ;;  %v4217_v30 = vpop.f32.mrf.mxu1  ;;  %v3333_v51 = vsel %vm213_vm1, %v5081_v61, %v5006_v60  ;;  %v5017_v31 = vunpack.i.h.bf16 %v5015_v40  ;;  %v3506_v27 = vsel %vm213_vm1, %v5082_v43, %v5007_v38  ;;  %v3503_v26 = vsel %vm213_vm1, %v5081_v61, %v5012_v21 }
 0x1e4   : > { %4653 = vmatpush3.msra.mxu0 %v3339_v47  ;;  %4694 = vmatpush3.msra.mxu1 %v3339_v47  ;;  %v1379_v5 = vmax.f32 %v1370_v28, 0.0  ;;  %v1552_v62 = vmax.f32 %v1543_v39, 0.0  ;;  %v5022_v28 = vunpack.i.h.bf16 %v5020_v8  ;;  %v5021_v39 = vunpack.i.l.bf16 %v5020_v8 }
 0x1e5   : > { %4654 = vmatprep.subr.mxu0 %v3354_v44  ;;  %4695 = vmatprep.subr.mxu1 %v3354_v44  ;;  %v4177_v20 = vpop.f32.mrf.mxu0  ;;  %v4218_v32 = vpop.f32.mrf.mxu1  ;;  %v3330_v44 = vsel %vm213_vm1, %v6954_v7, %v5011_v63  ;;  %v5085_v7 = vld [vmem:[%s5180_s6 + $0x1c0] sm:$0x1f] }
 0x1e6   : > { %3102 = vmatprep.mubr.f32.mxu0 %v2988_v10  ;;  %3275 = vmatprep.mubr.f32.mxu1 %v3161_v3  ;;  %3758 = vst.msk [vmem:[%s6414_s25 + $0x98] sm:$0xff] %vm342_vm2, %v1379_v5  ;;  %3768 = vst.msk [vmem:[%s6414_s25 + $0xb0] sm:$0xff] %vm342_vm2, %v1552_v62  ;;  %v4178_v42 = vadd.f32 %v4177_v20, %v4176_v24  ;;  %v4219_v13 = vadd.f32 %v4218_v32, %v4217_v30  ;;  %v5084_v24 = vld [vmem:[%s5180_s6 + $0x1f0] sm:$0x1f]  ;;  %v5086_v5 = vld [vmem:[%s5180_s6 + $0x1d8] sm:$0x1f] }
 0x1e7   : > { %4655 = vmatpush3.msra.mxu0 %v3338_v19  ;;  %4696 = vmatpush3.msra.mxu1 %v3338_v19  ;;  %v3334_v3 = vsel %vm213_vm1, %v5083_v2, %v5016_v11  ;;  %v3507_v30 = vsel %vm213_vm1, %v5084_v24, %v5017_v31  ;;  %v3331_v6 = vsel %vm213_vm1, %v5085_v7, %v5021_v39 }
 0x1e8   : > { %3103 = vmatmul.mubr.f32.gmra.mxu0 %v2985_v14  ;;  %3276 = vmatmul.mubr.f32.gmra.mxu1 %v3158_v50  ;;  %v1375_v12 = vadd.f32 %v4178_v42, %v6875_v0  ;;  %v1548_v1 = vadd.f32 %v4219_v13, %v6875_v0  ;;  %v3504_v62 = vsel %vm213_vm1, %v5086_v5, %v5022_v28 }
 0x1e9   : > { %4656 = vmatprep.subr.mxu0 %v3353_v9  ;;  %4697 = vmatprep.subr.mxu1 %v3353_v9 }
 0x1ea   : > { %4657 = vmatpush3.msra.mxu0 %v3337_v57  ;;  %4698 = vmatpush3.msra.mxu1 %v3337_v57  ;;  %v1380_v29 = vmax.f32 %v1375_v12, 0.0  ;;  %v1553_v48 = vmax.f32 %v1548_v1, 0.0  ;;  %v4252_v59 = vpop.f32.mrf.mxu0 }
 0x1eb   : > { %4658 = vmatprep.subr.mxu0 %v3352_v35  ;;  %4699 = vmatprep.subr.mxu1 %v3352_v35  ;;  %v4293_v41 = vpop.f32.mrf.mxu1 }
 0x1ec   : > { %4659 = vmatpush3.msra.mxu0 %v3336_v37  ;;  %4700 = vmatpush3.msra.mxu1 %v3336_v37  ;;  %3759 = vst.msk [vmem:[%s6414_s25 + $0xa0] sm:$0xf] %vm345_vm3, %v1380_v29  ;;  %3769 = vst.msk [vmem:[%s6414_s25 + $0xb8] sm:$0xf] %vm345_vm3, %v1553_v48  ;;  %v4253_v46 = vpop.f32.mrf.mxu0 }
 0x1ed   : > { %4660 = vmatprep.subr.mxu0 %v3351_v49  ;;  %4701 = vmatprep.subr.mxu1 %v3351_v49  ;;  %v4254_v23 = vadd.f32 %v4253_v46, %v4252_v59  ;;  %v4294_v52 = vpop.f32.mrf.mxu1 }
 0x1ee   : > { %4661 = vmatpush3.msra.mxu0 %v3335_v18  ;;  %3438 = vmatprep.mubr.f32.mxu0 %v3332_v4  ;;  %v4295_v22 = vadd.f32 %v4294_v52, %v4293_v41 }
 0x1ef   : > { %4702 = vmatpush3.msra.mxu1 %v3335_v18  ;;  %3611 = vmatprep.mubr.f32.mxu1 %v3505_v55  ;;  %v1711_v47 = vadd.f32 %v4254_v23, %v6875_v0 }
 0x1f0   : > { %3439 = vmatmul.mubr.f32.vlgmr.msra.gmra.mxu0 %v3329_v25  ;;  %3612 = vmatmul.mubr.f32.vlgmr.msra.gmra.mxu1 %v3502_v34  ;;  %v1884_v33 = vadd.f32 %v4295_v22, %v6875_v0 }
 0x1f1   : > { %3443 = vmatprep.mubr.f32.mxu0 %v3333_v51  ;;  %3616 = vmatprep.mubr.f32.mxu1 %v3506_v27  ;;  %v1724_v10 = vmax.f32 %v1711_v47, 0.0 }
 0x1f2   : > { %v1897_v19 = vmax.f32 %v1884_v33, 0.0 }
 0x1f3   : > { %3777 = vst.msk [vmem:[%s6414_s25 + $0xc0] sm:$0xff] %vm342_vm2, %v1724_v10 }
 0x1f4   : > { %3444 = vmatmul.mubr.f32.gmra.mxu0 %v3330_v44  ;;  %3617 = vmatmul.mubr.f32.gmra.mxu1 %v3503_v26  ;;  %3787 = vst.msk [vmem:[%s6414_s25 + $0xd8] sm:$0xff] %vm342_vm2, %v1897_v19 }
 0x1f5   : > { %3448 = vmatprep.mubr.f32.mxu0 %v3334_v3  ;;  %3621 = vmatprep.mubr.f32.mxu1 %v3507_v30 }
 0x1f8   : > { %3449 = vmatmul.mubr.f32.gmra.mxu0 %v3331_v6  ;;  %3622 = vmatmul.mubr.f32.gmra.mxu1 %v3504_v62 }
 0x206   : > { %v4255_v53 = vpop.f32.mrf.mxu0  ;;  %v4296_v14 = vpop.f32.mrf.mxu1 }
 0x208   : > { %v4256_v16 = vpop.f32.mrf.mxu0  ;;  %v4297_v50 = vpop.f32.mrf.mxu1 }
 0x209   : > { %v4257_v20 = vadd.f32 %v4256_v16, %v4255_v53  ;;  %v4298_v32 = vadd.f32 %v4297_v50, %v4296_v14 }
 0x20b   : > { %v1716_v9 = vadd.f32 %v4257_v20, %v6875_v0  ;;  %v1889_v42 = vadd.f32 %v4298_v32, %v6875_v0 }
 0x20c   : > { %v4258_v13 = vpop.f32.mrf.mxu0  ;;  %v4299_v45 = vpop.f32.mrf.mxu1 }
 0x20d   : > { %v1725_v57 = vmax.f32 %v1716_v9, 0.0  ;;  %v1898_v17 = vmax.f32 %v1889_v42, 0.0 }
 0x20e   : > { %v4259_v15 = vpop.f32.mrf.mxu0  ;;  %v4300_v35 = vpop.f32.mrf.mxu1 }
 0x20f   : > { %3778 = vst.msk [vmem:[%s6414_s25 + $0xc8] sm:$0xff] %vm342_vm2, %v1725_v57  ;;  %3788 = vst.msk [vmem:[%s6414_s25 + $0xe0] sm:$0xff] %vm342_vm2, %v1898_v17  ;;  %v4260_v54 = vadd.f32 %v4259_v15, %v4258_v13  ;;  %v4301_v12 = vadd.f32 %v4300_v35, %v4299_v45 }
 0x211   : > { %v1721_v1 = vadd.f32 %v4260_v54, %v6875_v0  ;;  %v1894_v56 = vadd.f32 %v4301_v12, %v6875_v0 }
 0x213   : > { %v1726_v37 = vmax.f32 %v1721_v1, 0.0  ;;  %v1899_v60 = vmax.f32 %v1894_v56, 0.0 }
 0x214   : > { %v4334_v49 = vpop.f32.mrf.mxu0  ;;  %v4375_v38 = vpop.f32.mrf.mxu1 }
 0x215   : > { %3779 = vst.msk [vmem:[%s6414_s25 + $0xd0] sm:$0xf] %vm345_vm3, %v1726_v37  ;;  %3789 = vst.msk [vmem:[%s6414_s25 + $0xe8] sm:$0xf] %vm345_vm3, %v1899_v60 }
 0x216   : > { %v4335_v29 = vpop.f32.mrf.mxu0  ;;  %v4376_v48 = vpop.f32.mrf.mxu1 }
 0x217   : > { %v4336_v59 = vadd.f32 %v4335_v29, %v4334_v49  ;;  %v4377_v18 = vadd.f32 %v4376_v48, %v4375_v38 }
 0x219   : > { %v2057_v36 = vadd.f32 %v4336_v59, %v6875_v0  ;;  %v2230_v4 = vadd.f32 %v4377_v18, %v6875_v0 }
 0x21b   : > { %v2070_v40 = vmax.f32 %v2057_v36, 0.0  ;;  %v2243_v41 = vmax.f32 %v2230_v4, 0.0 }
 0x21d   : > { %3797 = vst.msk [vmem:[%s6414_s25 + $0xf0] sm:$0xff] %vm342_vm2, %v2070_v40  ;;  %3807 = vst.msk [vmem:[%s6414_s25 + $0x108] sm:$0xff] %vm342_vm2, %v2243_v41 }
 0x231   : > { %v4337_v58 = vpop.f32.mrf.mxu0  ;;  %v4378_v55 = vpop.f32.mrf.mxu1 }
 0x233   : > { %v4338_v63 = vpop.f32.mrf.mxu0  ;;  %v4379_v25 = vpop.f32.mrf.mxu1 }
 0x234   : > { %v4339_v46 = vadd.f32 %v4338_v63, %v4337_v58  ;;  %v4380_v21 = vadd.f32 %v4379_v25, %v4378_v55 }
 0x236   : > { %v2062_v34 = vadd.f32 %v4339_v46, %v6875_v0  ;;  %v2235_v61 = vadd.f32 %v4380_v21, %v6875_v0 }
 0x237   : > { %v4340_v51 = vpop.f32.mrf.mxu0  ;;  %v4381_v23 = vpop.f32.mrf.mxu1 }
 0x238   : > { %v2071_v52 = vmax.f32 %v2062_v34, 0.0  ;;  %v2244_v31 = vmax.f32 %v2235_v61, 0.0 }
 0x239   : > { %v4341_v11 = vpop.f32.mrf.mxu0  ;;  %v4382_v43 = vpop.f32.mrf.mxu1 }
 0x23a   : > { %3798 = vst.msk [vmem:[%s6414_s25 + $0xf8] sm:$0xff] %vm342_vm2, %v2071_v52  ;;  %3808 = vst.msk [vmem:[%s6414_s25 + $0x110] sm:$0xff] %vm342_vm2, %v2244_v31  ;;  %v4342_v27 = vadd.f32 %v4341_v11, %v4340_v51  ;;  %v4383_v8 = vadd.f32 %v4382_v43, %v4381_v23 }
 0x23c   : > { %v2067_v22 = vadd.f32 %v4342_v27, %v6875_v0  ;;  %v2240_v47 = vadd.f32 %v4383_v8, %v6875_v0 }
 0x23e   : > { %v2072_v44 = vmax.f32 %v2067_v22, 0.0  ;;  %v2245_v33 = vmax.f32 %v2240_v47, 0.0  ;;  %v4416_v28 = vpop.f32.mrf.mxu0  ;;  %v4457_v39 = vpop.f32.mrf.mxu1 }
 0x240   : > { %3799 = vst.msk [vmem:[%s6414_s25 + $0x100] sm:$0xf] %vm345_vm3, %v2072_v44  ;;  %3809 = vst.msk [vmem:[%s6414_s25 + $0x118] sm:$0xf] %vm345_vm3, %v2245_v33  ;;  %v4417_v26 = vpop.f32.mrf.mxu0  ;;  %v4458_v10 = vpop.f32.mrf.mxu1 }
 0x241   : > { %v4418_v2 = vadd.f32 %v4417_v26, %v4416_v28  ;;  %v4459_v3 = vadd.f32 %v4458_v10, %v4457_v39 }
 0x243   : > { %v2403_v24 = vadd.f32 %v4418_v2, %v6875_v0  ;;  %v2576_v30 = vadd.f32 %v4459_v3, %v6875_v0 }
 0x245   : > { %v2416_v19 = vmax.f32 %v2403_v24, 0.0  ;;  %v2589_v7 = vmax.f32 %v2576_v30, 0.0 }
 0x247   : > { %3817 = vst.msk [vmem:[%s6414_s25 + $0x120] sm:$0xff] %vm342_vm2, %v2416_v19  ;;  %3827 = vst.msk [vmem:[%s6414_s25 + $0x138] sm:$0xff] %vm342_vm2, %v2589_v7 }
 0x257   : > { %v4419_v6 = vpop.f32.mrf.mxu0  ;;  %v4460_v5 = vpop.f32.mrf.mxu1 }
 0x259   : > { %v4420_v62 = vpop.f32.mrf.mxu0  ;;  %v4461_v53 = vpop.f32.mrf.mxu1 }
 0x25a   : > { %v4421_v14 = vadd.f32 %v4420_v62, %v4419_v6  ;;  %v4462_v16 = vadd.f32 %v4461_v53, %v4460_v5 }
 0x25c   : > { %v2408_v50 = vadd.f32 %v4421_v14, %v6875_v0  ;;  %v2581_v20 = vadd.f32 %v4462_v16, %v6875_v0 }
 0x25d   : > { %v4422_v32 = vpop.f32.mrf.mxu0  ;;  %v4463_v9 = vpop.f32.mrf.mxu1 }
 0x25e   : > { %v2417_v42 = vmax.f32 %v2408_v50, 0.0  ;;  %v2590_v13 = vmax.f32 %v2581_v20, 0.0 }
 0x25f   : > { %v4423_v45 = vpop.f32.mrf.mxu0  ;;  %v4464_v57 = vpop.f32.mrf.mxu1 }
 0x260   : > { %3818 = vst.msk [vmem:[%s6414_s25 + $0x128] sm:$0xff] %vm342_vm2, %v2417_v42  ;;  %3828 = vst.msk [vmem:[%s6414_s25 + $0x140] sm:$0xff] %vm342_vm2, %v2590_v13  ;;  %v4424_v17 = vadd.f32 %v4423_v45, %v4422_v32  ;;  %v4465_v15 = vadd.f32 %v4464_v57, %v4463_v9 }
 0x262   : > { %v2413_v35 = vadd.f32 %v4424_v17, %v6875_v0  ;;  %v2586_v54 = vadd.f32 %v4465_v15, %v6875_v0 }
 0x264   : > { %v2418_v12 = vmax.f32 %v2413_v35, 0.0  ;;  %v2591_v1 = vmax.f32 %v2586_v54, 0.0  ;;  %v4498_v56 = vpop.f32.mrf.mxu0  ;;  %v4539_v37 = vpop.f32.mrf.mxu1 }
 0x266   : > { %3819 = vst.msk [vmem:[%s6414_s25 + $0x130] sm:$0xf] %vm345_vm3, %v2418_v12  ;;  %3829 = vst.msk [vmem:[%s6414_s25 + $0x148] sm:$0xf] %vm345_vm3, %v2591_v1  ;;  %v4499_v60 = vpop.f32.mrf.mxu0  ;;  %v4540_v49 = vpop.f32.mrf.mxu1 }
 0x267   : > { %v4500_v38 = vadd.f32 %v4499_v60, %v4498_v56  ;;  %v4541_v29 = vadd.f32 %v4540_v49, %v4539_v37 }
 0x269   : > { %v2749_v48 = vadd.f32 %v4500_v38, %v6875_v0  ;;  %v2922_v59 = vadd.f32 %v4541_v29, %v6875_v0 }
 0x26b   : > { %v2762_v18 = vmax.f32 %v2749_v48, 0.0  ;;  %v2935_v36 = vmax.f32 %v2922_v59, 0.0 }
 0x26d   : > { %3837 = vst.msk [vmem:[%s6414_s25 + $0x150] sm:$0xff] %vm342_vm2, %v2762_v18  ;;  %3847 = vst.msk [vmem:[%s6414_s25 + $0x168] sm:$0xff] %vm342_vm2, %v2935_v36 }
 0x27d   : > { %v4501_v4 = vpop.f32.mrf.mxu0  ;;  %v4542_v40 = vpop.f32.mrf.mxu1 }
 0x27f   : > { %v4502_v41 = vpop.f32.mrf.mxu0  ;;  %v4543_v58 = vpop.f32.mrf.mxu1 }
 0x280   : > { %v4503_v55 = vadd.f32 %v4502_v41, %v4501_v4  ;;  %v4544_v63 = vadd.f32 %v4543_v58, %v4542_v40 }
 0x282   : > { %v2754_v25 = vadd.f32 %v4503_v55, %v6875_v0  ;;  %v2927_v46 = vadd.f32 %v4544_v63, %v6875_v0 }
 0x283   : > { %v4504_v21 = vpop.f32.mrf.mxu0  ;;  %v4545_v34 = vpop.f32.mrf.mxu1 }
 0x284   : > { %v2763_v61 = vmax.f32 %v2754_v25, 0.0  ;;  %v2936_v51 = vmax.f32 %v2927_v46, 0.0 }
 0x285   : > { %v4505_v23 = vpop.f32.mrf.mxu0  ;;  %v4546_v52 = vpop.f32.mrf.mxu1 }
 0x286   : > { %3838 = vst.msk [vmem:[%s6414_s25 + $0x158] sm:$0xff] %vm342_vm2, %v2763_v61  ;;  %3848 = vst.msk [vmem:[%s6414_s25 + $0x170] sm:$0xff] %vm342_vm2, %v2936_v51  ;;  %v4506_v31 = vadd.f32 %v4505_v23, %v4504_v21  ;;  %v4547_v11 = vadd.f32 %v4546_v52, %v4545_v34 }
 0x288   : > { %v2759_v43 = vadd.f32 %v4506_v31, %v6875_v0  ;;  %v2932_v27 = vadd.f32 %v4547_v11, %v6875_v0 }
 0x28a   : > { %v2764_v8 = vmax.f32 %v2759_v43, 0.0  ;;  %v2937_v22 = vmax.f32 %v2932_v27, 0.0  ;;  %v4580_v47 = vpop.f32.mrf.mxu0  ;;  %v4621_v44 = vpop.f32.mrf.mxu1 }
 0x28c   : > { %3839 = vst.msk [vmem:[%s6414_s25 + $0x160] sm:$0xf] %vm345_vm3, %v2764_v8  ;;  %3849 = vst.msk [vmem:[%s6414_s25 + $0x178] sm:$0xf] %vm345_vm3, %v2937_v22  ;;  %v4581_v33 = vpop.f32.mrf.mxu0  ;;  %v4622_v28 = vpop.f32.mrf.mxu1 }
 0x28d   : > { %v4582_v39 = vadd.f32 %v4581_v33, %v4580_v47  ;;  %v4623_v26 = vadd.f32 %v4622_v28, %v4621_v44 }
 0x28f   : > { %v3095_v10 = vadd.f32 %v4582_v39, %v6875_v0  ;;  %v3268_v2 = vadd.f32 %v4623_v26, %v6875_v0 }
 0x291   : > { %v3108_v3 = vmax.f32 %v3095_v10, 0.0  ;;  %v3281_v24 = vmax.f32 %v3268_v2, 0.0 }
 0x293   : > { %3857 = vst.msk [vmem:[%s6414_s25 + $0x180] sm:$0xff] %vm342_vm2, %v3108_v3  ;;  %3867 = vst.msk [vmem:[%s6414_s25 + $0x198] sm:$0xff] %vm342_vm2, %v3281_v24 }
 0x2a2   : > { %v4583_v30 = vpop.f32.mrf.mxu0  ;;  %v4624_v19 = vpop.f32.mrf.mxu1 }
 0x2a4   : > { %v4584_v7 = vpop.f32.mrf.mxu0  ;;  %v4625_v6 = vpop.f32.mrf.mxu1 }
 0x2a5   : > { %v4585_v5 = vadd.f32 %v4584_v7, %v4583_v30  ;;  %v4626_v62 = vadd.f32 %v4625_v6, %v4624_v19 }
 0x2a7   : > { %v3100_v53 = vadd.f32 %v4585_v5, %v6875_v0  ;;  %v3273_v14 = vadd.f32 %v4626_v62, %v6875_v0 }
 0x2a8   : > { %v4586_v16 = vpop.f32.mrf.mxu0  ;;  %v4627_v50 = vpop.f32.mrf.mxu1 }
 0x2a9   : > { %v3109_v20 = vmax.f32 %v3100_v53, 0.0  ;;  %v3282_v32 = vmax.f32 %v3273_v14, 0.0 }
 0x2aa   : > { %v4587_v9 = vpop.f32.mrf.mxu0  ;;  %v4628_v42 = vpop.f32.mrf.mxu1 }
 0x2ab   : > { %3858 = vst.msk [vmem:[%s6414_s25 + $0x188] sm:$0xff] %vm342_vm2, %v3109_v20  ;;  %3868 = vst.msk [vmem:[%s6414_s25 + $0x1a0] sm:$0xff] %vm342_vm2, %v3282_v32  ;;  %v4588_v13 = vadd.f32 %v4587_v9, %v4586_v16  ;;  %v4629_v45 = vadd.f32 %v4628_v42, %v4627_v50 }
 0x2ad   : > { %v3105_v57 = vadd.f32 %v4588_v13, %v6875_v0  ;;  %v3278_v17 = vadd.f32 %v4629_v45, %v6875_v0 }
 0x2af   : > { %v3110_v15 = vmax.f32 %v3105_v57, 0.0  ;;  %v3283_v35 = vmax.f32 %v3278_v17, 0.0 }
 0x2b0   : > { %v4662_v54 = vpop.f32.mrf.mxu0  ;;  %v4703_v12 = vpop.f32.mrf.mxu1 }
 0x2b1   : > { %3859 = vst.msk [vmem:[%s6414_s25 + $0x190] sm:$0xf] %vm345_vm3, %v3110_v15  ;;  %3869 = vst.msk [vmem:[%s6414_s25 + $0x1a8] sm:$0xf] %vm345_vm3, %v3283_v35 }
 0x2b2   : > { %v4663_v1 = vpop.f32.mrf.mxu0  ;;  %v4704_v56 = vpop.f32.mrf.mxu1 }
 0x2b3   : > { %v4664_v37 = vadd.f32 %v4663_v1, %v4662_v54  ;;  %v4705_v60 = vadd.f32 %v4704_v56, %v4703_v12 }
 0x2b4   : > { %v4665_v49 = vpop.f32.mrf.mxu0  ;;  %v4706_v38 = vpop.f32.mrf.mxu1 }
 0x2b5   : > { %v3441_v29 = vadd.f32 %v4664_v37, %v6875_v0  ;;  %v3614_v48 = vadd.f32 %v4705_v60, %v6875_v0 }
 0x2b6   : > { %v4666_v59 = vpop.f32.mrf.mxu0  ;;  %v4707_v18 = vpop.f32.mrf.mxu1 }
 0x2b7   : > { %v3454_v36 = vmax.f32 %v3441_v29, 0.0  ;;  %v3627_v4 = vmax.f32 %v3614_v48, 0.0  ;;  %v4667_v40 = vadd.f32 %v4666_v59, %v4665_v49  ;;  %v4708_v41 = vadd.f32 %v4707_v18, %v4706_v38 }
 0x2b8   : > { %v4668_v58 = vpop.f32.mrf.mxu0  ;;  %v4709_v55 = vpop.f32.mrf.mxu1 }
 0x2b9   : > { %3877 = vst.msk [vmem:[%s6414_s25 + $0x1b0] sm:$0xff] %vm342_vm2, %v3454_v36  ;;  %3887 = vst.msk [vmem:[%s6414_s25 + $0x1c8] sm:$0xff] %vm342_vm2, %v3627_v4  ;;  %v3446_v63 = vadd.f32 %v4667_v40, %v6875_v0  ;;  %v3619_v25 = vadd.f32 %v4708_v41, %v6875_v0 }
 0x2ba   : > { %v4669_v46 = vpop.f32.mrf.mxu0  ;;  %v4710_v21 = vpop.f32.mrf.mxu1 }
 0x2bb   : > { %v3455_v34 = vmax.f32 %v3446_v63, 0.0  ;;  %v3628_v61 = vmax.f32 %v3619_v25, 0.0  ;;  %v4670_v51 = vadd.f32 %v4669_v46, %v4668_v58  ;;  %v4711_v23 = vadd.f32 %v4710_v21, %v4709_v55 }
 0x2bd   : > { %3878 = vst.msk [vmem:[%s6414_s25 + $0x1b8] sm:$0xff] %vm342_vm2, %v3455_v34  ;;  %3888 = vst.msk [vmem:[%s6414_s25 + $0x1d0] sm:$0xff] %vm342_vm2, %v3628_v61  ;;  %v3451_v52 = vadd.f32 %v4670_v51, %v6875_v0  ;;  %v3624_v31 = vadd.f32 %v4711_v23, %v6875_v0 }
 0x2bf   : > { %v3456_v11 = vmax.f32 %v3451_v52, 0.0  ;;  %v3629_v43 = vmax.f32 %v3624_v31, 0.0 }
 0x2c1   : > { %3879 = vst.msk [vmem:[%s6414_s25 + $0x1c0] sm:$0xf] %vm345_vm3, %v3456_v11  ;;  %3889 = vst.msk [vmem:[%s6414_s25 + $0x1d8] sm:$0xf] %vm345_vm3, %v3629_v43 }
 0x2c2 PF: > { %s13_s12 = sadd.s32 1, %s5093_s12  }
 0x2c3   : > { %p10_p4 = scmp.ge.s32.totalorder %s13_s12, 4  }
 0x2c5   :  { %12 = sbr.rel (!%p10_p4) target bundleno = 1 (0x1), region = 101 }

// kernel: qnetwork_forward.4
= control target key start
LH: loop header
LB: loop body
LE: loop exit
PB: predicated region body
PF: predicated region fallthrough
CT: control target
= control target key end

     0   :  { %s2151_s12 = smov 0   ;;  %s2967_s0 = inlined_call_operand.vmem [shape: f32[2,10,10,64], index: 0, kind: input, shape index: {}]   ;;  %s2968_s1 = inlined_call_operand.vmem [shape: f32[256,32], index: 1, kind: input, shape index: {}]   ;;  %s2969_s2 = inlined_call_operand.vmem [shape: f32[1,32], index: 2, kind: input, shape index: {}]   ;;  %s2970_s3 = inlined_call_operand.vmem [shape: f32[2,9,9,32], index: 3, kind: output, shape index: {}]  }
   0x1 LB: > { %s1579_s13 = sadd.s32 4294967295, %s2128_s12   ;;  %p1583_p0 = scmp.ge.s32.totalorder %s2128_s12, 1  ;;  %s2128_s12 = sphi %s2151_s12, %s13_s12  }
   0x2   : > { %p137_p1 = scmp.lt.s32.totalorder %s2128_s12, 3 }
   0x4   : > { %p138_p2 = pnand %p1583_p0, %p137_p1 }
   0x6   : > { %141 = sbr.rel (%p138_p2) target bundleno = 492 (0x1ec), region = 32 }
   0xb   : > { %p161_p3 = scmp.lt.s32.totalorder %s1579_s13, 1  ;;  %v2162_v0 = vld [vmem:[%s2968_s1 + $0xf8] sm:$0xff]  ;;  %v2172_v2 = vld [vmem:[%s2968_s1 + $0xf0] sm:$0xff]  ;;  %v2188_v4 = vld [vmem:[%s2968_s1 + $0xe8] sm:$0xff]  ;;  %vm178_vm0 = vcmask 1046528   ;;  %s2130_s21 = smov 64  }
   0xc   : > { %v2167_v1 = vld [vmem:[%s2968_s1 + $0x78] sm:$0xff]  ;;  %1647 = vmatprep.subr.mxu0 %v2162_v0  ;;  %1685 = vmatprep.subr.mxu1 %v2162_v0  ;;  %v2179_v3 = vld [vmem:[%s2968_s1 + $0x70] sm:$0xff]  ;;  %v2195_v5 = vld [vmem:[%s2968_s1 + $0x68] sm:$0xff]  ;;  %vm199_vm1 = vcmask 523264   ;;  %vm320_vm2 = vcmask 261120   ;;  %vm322_vm3 = vcmask 253952  }
   0xd   : > { %s3001_s13 = smov (!%p161_p3, %s1579_s13), 1  ;;  %1648 = vmatpush3.msra.mxu0 %v2167_v1  ;;  %1686 = vmatpush3.msra.mxu1 %v2167_v1  ;;  %v2203_v6 = vld [vmem:[%s2968_s1 + $0xe0] sm:$0xff]  ;;  %v2222_v8 = vld [vmem:[%s2968_s1 + $0xd8] sm:$0xff]  ;;  %v2232_v10 = vld [vmem:[%s2968_s1 + $0xd0] sm:$0xff] }
   0xe   : > { %1649 = vmatprep.subr.mxu0 %v2172_v2  ;;  %1687 = vmatprep.subr.mxu1 %v2172_v2  ;;  %s2021_s26 = smul.u32 160, %s3001_s13  ;;  %v2210_v7 = vld [vmem:[%s2968_s1 + $0x60] sm:$0xff]  ;;  %v2227_v9 = vld [vmem:[%s2968_s1 + $0x58] sm:$0xff]  ;;  %v2248_v14 = vld [vmem:[%s2968_s1 + $0x50] sm:$0xff] }
   0xf   : > { %1650 = vmatpush3.msra.mxu0 %v2179_v3  ;;  %1688 = vmatpush3.msra.mxu1 %v2179_v3  ;;  %v2274_v24 = vld [vmem:[%s2968_s1 + $0xc8] sm:$0xff]  ;;  %v2323_v48 = vld [vmem:[%s2968_s1 + $0xc0] sm:$0xff]  ;;  %v2360_v61 = vld [vmem:[%s2968_s1 + $0xb8] sm:$0xff]  ;;  %s2022_s24 = smul.u32 144, %s3001_s13 }
  0x10   : > { %1651 = vmatprep.subr.mxu0 %v2188_v4  ;;  %1689 = vmatprep.subr.mxu1 %v2188_v4  ;;  %s2215_s6 = scalar_lea.vmem %s2967_s0, %s2021_s26  ;;  %v2310_v41 = vld [vmem:[%s2968_s1 + $0x48] sm:$0xff]  ;;  %v2328_v49 = vld [vmem:[%s2968_s1 + $0x40] sm:$0xff] }
  0x11   : > { %1652 = vmatpush3.msra.mxu0 %v2195_v5  ;;  %1690 = vmatpush3.msra.mxu1 %v2195_v5  ;;  %v2235_v11 = vld [vmem:[%s2215_s6 + $0x10] sm:$0xff]  ;;  %v2238_v12 = vld [vmem:[%s2215_s6 + $0x18] sm:$0x3]  ;;  %v2241_v13 = vld [vmem:[%s2215_s6 + $0x20] sm:$0xff]  ;;  %s2910_s29 = scalar_lea.vmem %s2970_s3, %s2022_s24 }
  0x12   : > { %1653 = vmatprep.subr.mxu0 %v2203_v6  ;;  %1691 = vmatprep.subr.mxu1 %v2203_v6  ;;  %v190_v15 = vrot.slane %v2235_v11, 1  ;;  %v191_v16 = vrot.slane %v2238_v12, 1  ;;  %v2253_v17 = vld [vmem:[%s2215_s6 + $0x28] sm:$0x3]  ;;  %v342_v18 = vrot.slane %v2241_v13, 1  ;;  %v2257_v19 = vld [vmem:[%s2215_s6] sm:$0xff] }
  0x13   : > { %1654 = vmatpush3.msra.mxu0 %v2210_v7  ;;  %1692 = vmatpush3.msra.mxu1 %v2210_v7  ;;  %v343_v20 = vrot.slane %v2253_v17, 1  ;;  %v2263_v21 = vld [vmem:[%s2215_s6 + $0x8] sm:$0x3]  ;;  %v179_v22 = vrot.slane %v2257_v19, 1  ;;  %v2267_v23 = vld [vmem:[%s2215_s6 + $0x18] sm:$0x3] }
  0x14   : > { %1655 = vmatprep.subr.mxu0 %v2222_v8  ;;  %1693 = vmatprep.subr.mxu1 %v2222_v8  ;;  %v192_v25 = vsel %vm178_vm0, %v190_v15, %v191_v16  ;;  %v180_v26 = vrot.slane %v2263_v21, 1  ;;  %v332_v27 = vrot.slane %v2267_v23, 1  ;;  %v2280_v28 = vld [vmem:[%s2215_s6 + $0x30] sm:$0xff]  ;;  %v2283_v29 = vld [vmem:[%s2215_s6 + $0x38] sm:$0x3]  ;;  %v2286_v30 = vld [vmem:[%s2215_s6 + $0x40] sm:$0xff] }
  0x15   : > { %1656 = vmatpush3.msra.mxu0 %v2227_v9  ;;  %1694 = vmatpush3.msra.mxu1 %v2227_v9  ;;  %v344_v31 = vsel %vm178_vm0, %v342_v18, %v343_v20  ;;  %v2042_v32 = vpack.i.bf16 %v343_v20, %v191_v16  ;;  %v492_v33 = vrot.slane %v2280_v28, 1  ;;  %v493_v34 = vrot.slane %v2283_v29, 1  ;;  %v2294_v35 = vld [vmem:[%s2215_s6 + $0x48] sm:$0x3]  ;;  %v2304_v40 = vld [vmem:[%s2215_s6 + $0x38] sm:$0x3] }
  0x16   : > { %v2297_v36 = vld [vmem:[%s2215_s6 + $0x28] sm:$0x3]  ;;  %1657 = vmatprep.subr.mxu0 %v2232_v10  ;;  %1695 = vmatprep.subr.mxu1 %v2232_v10  ;;  %v2032_v37 = vpack.i.bf16 %v344_v31, %v192_v25  ;;  %v181_v38 = vsel %vm178_vm0, %v179_v22, %v180_v26  ;;  %v333_v39 = vsel %vm178_vm0, %v190_v15, %v332_v27  ;;  %v642_v43 = vrot.slane %v2286_v30, 1  ;;  %v2333_v52 = vld [vmem:[%s2215_s6 + $0x50] sm:$0xff]  ;;  %v2339_v54 = vld [vmem:[%s2215_s6 + $0x58] sm:$0x3] }
  0x17   : > { %1658 = vmatpush3.msra.mxu0 %v2248_v14  ;;  %2043 = vrot.lane.b32.xlu1 %v2042_v32, %s2130_s21  ;;  %v2047_v42 = vpack.i.bf16 %v332_v27, %v180_v26  ;;  %v643_v44 = vrot.slane %v2294_v35, 1  ;;  %v2037_v45 = vpack.i.bf16 %v333_v39, %v181_v38  ;;  %v482_v46 = vrot.slane %v2297_v36, 1  ;;  %v2336_v53 = vld [vmem:[%s2215_s6 + $0x48] sm:$0x3]  ;;  %2982 = vst [vmem:[#allocation2_spill] sm:$0xff] %v2339_v54  ;;  %v2349_v58 = vld [vmem:[%s2215_s6 + $0x60] sm:$0xff] }
  0x18   : > { %1696 = vmatpush3.msra.mxu1 %v2248_v14  ;;  %2033 = vrot.lane.b32.xlu0 %v2032_v37, %s2130_s21  ;;  %v632_v47 = vrot.slane %v2304_v40, 1  ;;  %v494_v50 = vsel %vm178_vm0, %v492_v33, %v493_v34  ;;  %v2346_v57 = vld [vmem:[%s2215_s6 + $0x58] sm:$0x3]  ;;  %v2352_v59 = vld [vmem:[%s2215_s6 + $0x68] sm:$0x3]  ;;  %v792_v63 = vrot.slane %v2333_v52, 1 }
  0x19   : > { %1659 = vmatprep.subr.mxu0 %v2274_v24  ;;  %v644_v51 = vsel %vm178_vm0, %v642_v43, %v643_v44  ;;  %1697 = vmatprep.subr.mxu1 %v2274_v24  ;;  %v483_v55 = vsel %vm178_vm0, %v342_v18, %v482_v46  ;;  %v782_v15 = vrot.slane %v2336_v53, 1  ;;  %v932_v16 = vrot.slane %v2339_v54, 1  ;;  %v2370_v18 = vld [vmem:[%s2968_s1 + $0x38] sm:$0xff]  ;;  %v2382_v26 = vld [vmem:[%s2968_s1 + $0xb0] sm:$0xff]  ;;  %v2401_v39 = vld [vmem:[%s2968_s1 + $0xa8] sm:$0xff] }
  0x1a   : > { %1660 = vmatpush3.msra.mxu0 %v2310_v41  ;;  %v633_v56 = vsel %vm178_vm0, %v492_v33, %v632_v47  ;;  %1698 = vmatpush3.msra.mxu1 %v2310_v41  ;;  %v2052_v62 = vpack.i.bf16 %v644_v51, %v494_v50  ;;  %v793_v20 = vrot.slane %v2346_v57, 1  ;;  %v942_v22 = vrot.slane %v2349_v58, 1  ;;  %v2389_v31 = vld [vmem:[%s2968_s1 + $0x30] sm:$0xff]  ;;  %v2427_v50 = vld [vmem:[%s2968_s1 + $0x28] sm:$0xff] }
  0x1b   : > { %2048 = vrot.lane.b32.xlu1 %v2047_v42, %s2130_s21  ;;  %v2057_v60 = vpack.i.bf16 %v633_v56, %v483_v55  ;;  %1661 = vmatprep.subr.mxu0 %v2323_v48  ;;  %v943_v25 = vrot.slane %v2352_v59, 1  ;;  %v2067_v27 = vpack.i.bf16 %v632_v47, %v482_v46  ;;  %v2062_v32 = vpack.i.bf16 %v643_v44, %v493_v34  ;;  %v2395_v38 = vld [vmem:[%s2215_s6 + $0x70] sm:$0xff]  ;;  %v2406_v46 = vld [vmem:[%s2215_s6 + $0x78] sm:$0x3]  ;;  %v2409_v34 = vld [vmem:[%s2215_s6 + $0x68] sm:$0x3] }
  0x1c   : > { %2038 = vrot.lane.b32.xlu0 %v2037_v45, %s2130_s21  ;;  %1699 = vmatprep.subr.mxu1 %v2323_v48  ;;  %v783_v33 = vsel %vm178_vm0, %v642_v43, %v782_v15  ;;  %v933_v37 = vsel %vm178_vm0, %v792_v63, %v932_v16  ;;  %2983 = vst [vmem:[#allocation3_spill] sm:$0xff] %v2395_v38  ;;  %2984 = vst [vmem:[#allocation4_spill] sm:$0xff] %v2406_v46  ;;  %v2412_v43 = vld [vmem:[%s2215_s6 + $0x78] sm:$0x3]  ;;  %v2417_v44 = vld [vmem:[%s2215_s6 + $0x80] sm:$0xff] }
  0x1d   : > { %1662 = vmatpush3.msra.mxu0 %v2328_v49  ;;  %1700 = vmatpush3.msra.mxu1 %v2328_v49  ;;  %v794_v42 = vsel %vm178_vm0, %v792_v63, %v793_v20  ;;  %v944_v45 = vsel %vm178_vm0, %v942_v22, %v943_v25  ;;  %2985 = vst [vmem:[#allocation5_spill] sm:$0xff] %v2409_v34  ;;  %2986 = vst [vmem:[#allocation6_spill] sm:$0xff] %v2412_v43  ;;  %v2420_v47 = vld [vmem:[%s2215_s6 + $0x88] sm:$0x3]  ;;  %v2434_v55 = vld [vmem:[%s2968_s1 + $0xa0] sm:$0xff]  ;;  %v1232_v63 = vrot.slane %v2412_v43, 1 }
  0x1e   : > { %1663 = vmatprep.subr.mxu0 %v2360_v61  ;;  %1701 = vmatprep.subr.mxu1 %v2360_v61  ;;  %2987 = vst [vmem:[#allocation7_spill] sm:$0xff] %v2417_v44  ;;  %2988 = vst [vmem:[#allocation8_spill] sm:$0xff] %v2420_v47  ;;  %v2077_v51 = vpack.i.bf16 %v933_v37, %v783_v33  ;;  %v2072_v56 = vpack.i.bf16 %v944_v45, %v794_v42  ;;  %v1093_v33 = vrot.slane %v2406_v46, 1  ;;  %v2456_v42 = vld [vmem:[%s2968_s1 + $0x98] sm:$0xff]  ;;  %v2506_v54 = vld [vmem:[%s2968_s1 + $0x8] sm:$0xff] }
  0x1f   : > { %2058 = vrot.lane.b32.xlu1 %v2057_v60, %s2130_s21  ;;  %1664 = vmatpush3.msra.mxu0 %v2370_v18  ;;  %v1092_v60 = vrot.slane %v2395_v38, 1  ;;  %v1242_v37 = vrot.slane %v2417_v44, 1  ;;  %v2087_v45 = vpack.i.bf16 %v932_v16, %v782_v15  ;;  %v2463_v43 = vld [vmem:[%s2968_s1 + $0x18] sm:$0xff]  ;;  %v2472_v15 = vld [vmem:[%s2968_s1 + $0x90] sm:$0xff]  ;;  %v2499_v44 = vld [vmem:[%s2968_s1 + $0x88] sm:$0xff] }
  0x20   : > { %2053 = vrot.lane.b32.xlu0 %v2052_v62, %s2130_s21  ;;  %1702 = vmatpush3.msra.mxu1 %v2370_v18  ;;  %v1082_v62 = vrot.slane %v2409_v34, 1  ;;  %v2082_v34 = vpack.i.bf16 %v943_v25, %v793_v20  ;;  %v2481_v20 = vld [vmem:[%s2968_s1 + $0x10] sm:$0xff]  ;;  %v2489_v25 = vld [vmem:[%s2215_s6 + $0x98] sm:$0x3] }
  0x21   : > { %1665 = vmatprep.subr.mxu0 %v2382_v26  ;;  %1703 = vmatprep.subr.mxu1 %v2382_v26  ;;  %v1233_v46 = vsel %vm178_vm0, %v1092_v60, %v1232_v63  ;;  %v1094_v16 = vsel %vm178_vm0, %v1092_v60, %v1093_v33  ;;  %2989 = vst [vmem:[#allocation9_spill] sm:$0xff] %v2489_v25 }
  0x22   : > { %1666 = vmatpush3.msra.mxu0 %v2389_v31  ;;  %1704 = vmatpush3.msra.mxu1 %v2389_v31 }
  0x23   : > { %2068 = vrot.lane.b32.xlu1 %v2067_v27, %s2130_s21  ;;  %1667 = vmatprep.subr.mxu0 %v2401_v39  ;;  %v2444_v27 = vld [vmem:[%s2968_s1 + $0x20] sm:$0xff] }
  0x24   : > { %2063 = vrot.lane.b32.xlu0 %v2062_v32, %s2130_s21  ;;  %1705 = vmatprep.subr.mxu1 %v2401_v39  ;;  %v1243_v32 = vrot.slane %v2420_v47, 1  ;;  %v1083_v47 = vsel %vm178_vm0, %v942_v22, %v1082_v62  ;;  %v2486_v22 = vld [vmem:[%s2215_s6 + $0x90] sm:$0xff] }
  0x25   : > { %1668 = vmatpush3.msra.mxu0 %v2427_v50  ;;  %1706 = vmatpush3.msra.mxu1 %v2427_v50  ;;  %v2097_v60 = vpack.i.bf16 %v1233_v46, %v1083_v47  ;;  %v1392_v46 = vrot.slane %v2486_v22, 1  ;;  %v1393_v47 = vrot.slane %v2489_v25, 1 }
  0x26   : > { %1669 = vmatprep.subr.mxu0 %v2434_v55  ;;  %1707 = vmatprep.subr.mxu1 %v2434_v55 }
  0x27   : > { %2078 = vrot.lane.b32.xlu1 %v2077_v51, %s2130_s21  ;;  %1670 = vmatpush3.msra.mxu0 %v2444_v27  ;;  %v1244_v51 = vsel %vm178_vm0, %v1242_v37, %v1243_v32  ;;  %v1394_v25 = vsel %vm178_vm0, %v1392_v46, %v1393_v47 }
  0x28   : > { %2073 = vrot.lane.b32.xlu0 %v2072_v56, %s2130_s21  ;;  %1708 = vmatpush3.msra.mxu1 %v2444_v27  ;;  %v2492_v56 = vld [vmem:[%s2215_s6 + $0x88] sm:$0x3]  ;;  %v2092_v38 = vpack.i.bf16 %v1244_v51, %v1094_v16  ;;  %v2525_v16 = vld [vmem:[%s2968_s1] sm:$0xff]  ;;  %v2102_v51 = vpack.i.bf16 %v1243_v32, %v1093_v33 }
  0x29   : > { %1671 = vmatprep.subr.mxu0 %v2456_v42  ;;  %1709 = vmatprep.subr.mxu1 %v2456_v42  ;;  %2990 = vst [vmem:[#allocation10_spill] sm:$0xff] %v2492_v56 }
  0x2a   : > { %1672 = vmatpush3.msra.mxu0 %v2463_v43  ;;  %1710 = vmatpush3.msra.mxu1 %v2463_v43 }
  0x2b   : > { %2088 = vrot.lane.b32.xlu1 %v2087_v45, %s2130_s21  ;;  %1673 = vmatprep.subr.mxu0 %v2472_v15  ;;  %v1382_v45 = vrot.slane %v2492_v56, 1  ;;  %v2107_v56 = vpack.i.bf16 %v1232_v63, %v1082_v62 }
  0x2c   : > { %2083 = vrot.lane.b32.xlu0 %v2082_v34, %s2130_s21  ;;  %1711 = vmatprep.subr.mxu1 %v2472_v15  ;;  %v2518_v34 = vld [vmem:[%s2968_s1 + $0x80] sm:$0xff] }
  0x2d   : > { %1674 = vmatpush3.msra.mxu0 %v2481_v20  ;;  %1712 = vmatpush3.msra.mxu1 %v2481_v20 }
  0x2e   : > { %1675 = vmatprep.subr.mxu0 %v2499_v44  ;;  %1713 = vmatprep.subr.mxu1 %v2499_v44 }
  0x2f   : > { %2098 = vrot.lane.b32.xlu1 %v2097_v60, %s2130_s21  ;;  %1676 = vmatpush3.msra.mxu0 %v2506_v54  ;;  %v1383_v60 = vsel %vm178_vm0, %v1242_v37, %v1382_v45 }
  0x30   : > { %2093 = vrot.lane.b32.xlu0 %v2092_v38, %s2130_s21  ;;  %1714 = vmatpush3.msra.mxu1 %v2506_v54  ;;  %v2112_v38 = vpack.i.bf16 %v1393_v47, %v1394_v25  ;;  %v2117_v62 = vpack.i.bf16 %v1382_v45, %v1383_v60 }
  0x31   : > { %1677 = vmatprep.subr.mxu0 %v2518_v34  ;;  %1715 = vmatprep.subr.mxu1 %v2518_v34 }
  0x32   : > { %1678 = vmatpush3.msra.mxu0 %v2525_v16  ;;  %1716 = vmatpush3.msra.mxu1 %v2525_v16 }
  0x33   : > { %1723 = vmatprep.subr.mxu0 %v2162_v0  ;;  %1761 = vmatprep.subr.mxu1 %v2162_v0 }
  0x34   : > { %2103 = vrot.lane.b32.xlu0 %v2102_v51, %s2130_s21  ;;  %2108 = vrot.lane.b32.xlu1 %v2107_v56, %s2130_s21 }
  0x38   : > { %2113 = vrot.lane.b32.xlu0 %v2112_v38, %s2130_s21  ;;  %2118 = vrot.lane.b32.xlu1 %v2117_v62, %s2130_s21 }
  0x8a   : > { %v2034_v63 = vpop.permute.xlu0 %2033 }
  0x8b   : > { %v2036_v33 = vunpack.i.h.bf16 %v2034_v63  ;;  %v2035_v37 = vunpack.i.l.bf16 %v2034_v63 }
  0x8d   : > { %v202_v32 = vsel %vm199_vm1, %v2235_v11, %v2035_v37  ;;  %v353_v46 = vsel %vm199_vm1, %v2241_v13, %v2036_v33 }
  0x8e   : > { %307 = vmatprep.mubr.f32.mxu0 %v202_v32  ;;  %458 = vmatprep.mubr.f32.mxu1 %v353_v46  ;;  %v2039_v51 = vpop.permute.xlu0 %2038 }
  0x8f   : > { %v2041_v56 = vunpack.i.h.bf16 %v2039_v51  ;;  %v2040_v25 = vunpack.i.l.bf16 %v2039_v51 }
  0x91   : > { %v200_v47 = vsel %vm199_vm1, %v2257_v19, %v2040_v25  ;;  %v351_v45 = vsel %vm199_vm1, %v2235_v11, %v2041_v56  ;;  %v2044_v11 = vpop.permute.xlu1 %2043 }
  0x92   : > { %308 = vmatmul.mubr.f32.vlgmr.msra.gmra.mxu0 %v200_v47  ;;  %459 = vmatmul.mubr.f32.vlgmr.msra.gmra.mxu1 %v351_v45  ;;  %v2046_v19 = vunpack.i.h.bf16 %v2044_v11  ;;  %v2045_v60 = vunpack.i.l.bf16 %v2044_v11  ;;  %v2054_v32 = vpop.permute.xlu0 %2053 }
  0x93   : > { %1724 = vmatpush3.msra.mxu0 %v2167_v1  ;;  %1762 = vmatpush3.msra.mxu1 %v2167_v1  ;;  %v2056_v56 = vunpack.i.h.bf16 %v2054_v32 }
  0x94   : > { %1725 = vmatprep.subr.mxu0 %v2172_v2  ;;  %1763 = vmatprep.subr.mxu1 %v2172_v2  ;;  %v203_v33 = vsel %vm199_vm1, %v2238_v12, %v2045_v60  ;;  %v354_v37 = vsel %vm199_vm1, %v2253_v17, %v2046_v19  ;;  %v2055_v17 = vunpack.i.l.bf16 %v2054_v32 }
  0x95   : > { %1726 = vmatpush3.msra.mxu0 %v2179_v3  ;;  %1764 = vmatpush3.msra.mxu1 %v2179_v3  ;;  %v2049_v38 = vpop.permute.xlu1 %2048 }
  0x96   : > { %1727 = vmatprep.subr.mxu0 %v2188_v4  ;;  %1765 = vmatprep.subr.mxu1 %v2188_v4  ;;  %v2051_v62 = vunpack.i.h.bf16 %v2049_v38  ;;  %v2050_v63 = vunpack.i.l.bf16 %v2049_v38 }
  0x97   : > { %1728 = vmatpush3.msra.mxu0 %v2195_v5  ;;  %1766 = vmatpush3.msra.mxu1 %v2195_v5 }
  0x98   : > { %1729 = vmatprep.subr.mxu0 %v2203_v6  ;;  %1767 = vmatprep.subr.mxu1 %v2203_v6  ;;  %v201_v46 = vsel %vm199_vm1, %v2263_v21, %v2050_v63  ;;  %v352_v12 = vsel %vm199_vm1, %v2267_v23, %v2051_v62  ;;  %v503_v21 = vsel %vm199_vm1, %v2280_v28, %v2055_v17 }
  0x99   : > { %1730 = vmatpush3.msra.mxu0 %v2210_v7  ;;  %1768 = vmatpush3.msra.mxu1 %v2210_v7  ;;  %v2059_v51 = vpop.permute.xlu1 %2058  ;;  %v653_v23 = vsel %vm199_vm1, %v2286_v30, %v2056_v56 }
  0x9a   : > { %1731 = vmatprep.subr.mxu0 %v2222_v8  ;;  %1769 = vmatprep.subr.mxu1 %v2222_v8  ;;  %v2061_v25 = vunpack.i.h.bf16 %v2059_v51  ;;  %v2060_v47 = vunpack.i.l.bf16 %v2059_v51 }
  0x9b   : > { %1732 = vmatpush3.msra.mxu0 %v2227_v9  ;;  %1770 = vmatpush3.msra.mxu1 %v2227_v9 }
  0x9c   : > { %1733 = vmatprep.subr.mxu0 %v2232_v10  ;;  %1771 = vmatprep.subr.mxu1 %v2232_v10  ;;  %v501_v45 = vsel %vm199_vm1, %v2241_v13, %v2060_v47  ;;  %v651_v11 = vsel %vm199_vm1, %v2280_v28, %v2061_v25  ;;  %v2064_v13 = vpop.permute.xlu0 %2063  ;;  %v1413_v47 = vld [vmem:[%s2968_s1 + $0x40] sm:$0xff] }
  0x9d   : > { %1734 = vmatpush3.msra.mxu0 %v2248_v14  ;;  %1772 = vmatpush3.msra.mxu1 %v2248_v14  ;;  %v2069_v28 = vpop.permute.xlu1 %2068  ;;  %v2066_v19 = vunpack.i.h.bf16 %v2064_v13  ;;  %v2065_v60 = vunpack.i.l.bf16 %v2064_v13  ;;  %v1411_v13 = vld [vmem:[%s2968_s1 + $0x30] sm:$0xff] }
  0x9e   : > { %1735 = vmatprep.subr.mxu0 %v2274_v24  ;;  %1773 = vmatprep.subr.mxu1 %v2274_v24  ;;  %v2071_v38 = vunpack.i.h.bf16 %v2069_v28  ;;  %v2070_v62 = vunpack.i.l.bf16 %v2069_v28  ;;  %v1426_v28 = vld [vmem:[%s2968_s1 + $0xa8] sm:$0xff] }
  0x9f   : > { %1736 = vmatpush3.msra.mxu0 %v2310_v41  ;;  %1774 = vmatpush3.msra.mxu1 %v2310_v41  ;;  %v504_v63 = vsel %vm199_vm1, %v2283_v29, %v2065_v60 }
  0xa0   : > { %1737 = vmatprep.subr.mxu0 %v2323_v48  ;;  %1775 = vmatprep.subr.mxu1 %v2323_v48  ;;  %v502_v32 = vsel %vm199_vm1, %v2297_v36, %v2070_v62  ;;  %v1410_v62 = vld [vmem:[%s2968_s1 + $0x28] sm:$0xff] }
  0xa1   : > { %1738 = vmatpush3.msra.mxu0 %v2328_v49  ;;  %1776 = vmatpush3.msra.mxu1 %v2328_v49 }
  0xa2   : > { %1739 = vmatprep.subr.mxu0 %v2360_v61  ;;  %1777 = vmatprep.subr.mxu1 %v2360_v61 }
  0xa3   : > { %1740 = vmatpush3.msra.mxu0 %v2370_v18  ;;  %1778 = vmatpush3.msra.mxu1 %v2370_v18 }
  0xa4   : > { %1741 = vmatprep.subr.mxu0 %v2382_v26  ;;  %1779 = vmatprep.subr.mxu1 %v2382_v26 }
  0xa5   : > { %1742 = vmatpush3.msra.mxu0 %v2389_v31  ;;  %1780 = vmatpush3.msra.mxu1 %v2389_v31 }
  0xa6   : > { %1743 = vmatprep.subr.mxu0 %v2401_v39  ;;  %1781 = vmatprep.subr.mxu1 %v2401_v39 }
  0xa7   : > { %1744 = vmatpush3.msra.mxu0 %v2427_v50  ;;  %1782 = vmatpush3.msra.mxu1 %v2427_v50 }
  0xa8   : > { %1745 = vmatprep.subr.mxu0 %v2434_v55  ;;  %1783 = vmatprep.subr.mxu1 %v2434_v55 }
  0xa9   : > { %1746 = vmatpush3.msra.mxu0 %v2444_v27  ;;  %1784 = vmatpush3.msra.mxu1 %v2444_v27 }
  0xaa   : > { %1747 = vmatprep.subr.mxu0 %v2456_v42  ;;  %1785 = vmatprep.subr.mxu1 %v2456_v42 }
  0xab   : > { %312 = vmatprep.mubr.f32.mxu0 %v203_v33  ;;  %463 = vmatprep.mubr.f32.mxu1 %v354_v37  ;;  %v654_v33 = vsel %vm199_vm1, %v2294_v35, %v2066_v19  ;;  %v2074_v37 = vpop.permute.xlu0 %2073 }
  0xac   : > { %1748 = vmatpush3.msra.mxu0 %v2463_v43  ;;  %1786 = vmatpush3.msra.mxu1 %v2463_v43  ;;  %v2075_v29 = vunpack.i.l.bf16 %v2074_v37  ;;  %v2076_v35 = vunpack.i.h.bf16 %v2074_v37 }
  0xad   : > { %1749 = vmatprep.subr.mxu0 %v2472_v15  ;;  %1787 = vmatprep.subr.mxu1 %v2472_v15 }
  0xae   : > { %313 = vmatmul.mubr.f32.gmra.mxu0 %v201_v46  ;;  %464 = vmatmul.mubr.f32.gmra.mxu1 %v352_v12  ;;  %v652_v46 = vsel %vm199_vm1, %v2304_v40, %v2071_v38  ;;  %v2079_v12 = vpop.permute.xlu1 %2078  ;;  %v803_v36 = vsel %vm199_vm1, %v2333_v52, %v2075_v29  ;;  %v953_v40 = vsel %vm199_vm1, %v2349_v58, %v2076_v35  ;;  %v2995_v35 = vld [vmem:[#allocation8_spill] sm:$0xff] }
  0xaf   : > { %1750 = vmatpush3.msra.mxu0 %v2481_v20  ;;  %1788 = vmatpush3.msra.mxu1 %v2481_v20  ;;  %v2081_v51 = vunpack.i.h.bf16 %v2079_v12  ;;  %v2080_v17 = vunpack.i.l.bf16 %v2079_v12  ;;  %v2994_v12 = vld [vmem:[#allocation4_spill] sm:$0xff] }
  0xb0   : > { %1751 = vmatprep.subr.mxu0 %v2499_v44  ;;  %1789 = vmatprep.subr.mxu1 %v2499_v44 }
  0xb1   : > { %1752 = vmatpush3.msra.mxu0 %v2506_v54  ;;  %1790 = vmatpush3.msra.mxu1 %v2506_v54  ;;  %v801_v56 = vsel %vm199_vm1, %v2286_v30, %v2080_v17  ;;  %v951_v25 = vsel %vm199_vm1, %v2333_v52, %v2081_v51  ;;  %v2992_v52 = vld [vmem:[#allocation3_spill] sm:$0xff]  ;;  %v1408_v17 = vld [vmem:[%s2968_s1 + $0x18] sm:$0xff] }
  0xb2   : > { %1753 = vmatprep.subr.mxu0 %v2518_v34  ;;  %1791 = vmatprep.subr.mxu1 %v2518_v34 }
  0xb3   : > { %1754 = vmatpush3.msra.mxu0 %v2525_v16  ;;  %608 = vmatprep.mubr.f32.mxu0 %v503_v21  ;;  %v1428_v21 = vld [vmem:[%s2968_s1 + $0xb8] sm:$0xff] }
  0xb4   : > { %1792 = vmatpush3.msra.mxu1 %v2525_v16  ;;  %758 = vmatprep.mubr.f32.mxu1 %v653_v23  ;;  %v1412_v23 = vld [vmem:[%s2968_s1 + $0x38] sm:$0xff] }
  0xb5   : > { %609 = vmatmul.mubr.f32.vlgmr.msra.gmra.mxu0 %v501_v45  ;;  %759 = vmatmul.mubr.f32.vlgmr.msra.gmra.mxu1 %v651_v11  ;;  %v1427_v45 = vld [vmem:[%s2968_s1 + $0xb0] sm:$0xff] }
  0xb6   : > { %1799 = vmatprep.subr.mxu0 %v2162_v0  ;;  %1837 = vmatprep.subr.mxu1 %v2162_v0 }
  0xb7   : > { %1800 = vmatpush3.msra.mxu0 %v2167_v1  ;;  %1838 = vmatpush3.msra.mxu1 %v2167_v1 }
  0xb8   : > { %1801 = vmatprep.subr.mxu0 %v2172_v2  ;;  %1839 = vmatprep.subr.mxu1 %v2172_v2 }
  0xb9   : > { %1802 = vmatpush3.msra.mxu0 %v2179_v3  ;;  %1840 = vmatpush3.msra.mxu1 %v2179_v3 }
  0xba   : > { %1803 = vmatprep.subr.mxu0 %v2188_v4  ;;  %1841 = vmatprep.subr.mxu1 %v2188_v4 }
  0xbb   : > { %1804 = vmatpush3.msra.mxu0 %v2195_v5  ;;  %1842 = vmatpush3.msra.mxu1 %v2195_v5 }
  0xbc   : > { %1805 = vmatprep.subr.mxu0 %v2203_v6  ;;  %1843 = vmatprep.subr.mxu1 %v2203_v6 }
  0xbd   : > { %1806 = vmatpush3.msra.mxu0 %v2210_v7  ;;  %1844 = vmatpush3.msra.mxu1 %v2210_v7 }
  0xbe   : > { %1807 = vmatprep.subr.mxu0 %v2222_v8  ;;  %1845 = vmatprep.subr.mxu1 %v2222_v8 }
  0xbf   : > { %1808 = vmatpush3.msra.mxu0 %v2227_v9  ;;  %1846 = vmatpush3.msra.mxu1 %v2227_v9 }
  0xc0   : > { %1809 = vmatprep.subr.mxu0 %v2232_v10  ;;  %1847 = vmatprep.subr.mxu1 %v2232_v10 }
  0xc1   : > { %1810 = vmatpush3.msra.mxu0 %v2248_v14  ;;  %1848 = vmatpush3.msra.mxu1 %v2248_v14 }
  0xc2   : > { %1811 = vmatprep.subr.mxu0 %v2274_v24  ;;  %1849 = vmatprep.subr.mxu1 %v2274_v24 }
  0xc3   : > { %1812 = vmatpush3.msra.mxu0 %v2310_v41  ;;  %1850 = vmatpush3.msra.mxu1 %v2310_v41 }
  0xc4   : > { %1813 = vmatprep.subr.mxu0 %v2323_v48  ;;  %1851 = vmatprep.subr.mxu1 %v2323_v48 }
  0xc5   : > { %1814 = vmatpush3.msra.mxu0 %v2328_v49  ;;  %1852 = vmatpush3.msra.mxu1 %v2328_v49 }
  0xc6   : > { %1815 = vmatprep.subr.mxu0 %v2360_v61  ;;  %1853 = vmatprep.subr.mxu1 %v2360_v61 }
  0xc7   : > { %1816 = vmatpush3.msra.mxu0 %v2370_v18  ;;  %1854 = vmatpush3.msra.mxu1 %v2370_v18 }
  0xc8   : > { %1817 = vmatprep.subr.mxu0 %v2382_v26  ;;  %1855 = vmatprep.subr.mxu1 %v2382_v26 }
  0xc9   : > { %1818 = vmatpush3.msra.mxu0 %v2389_v31  ;;  %1856 = vmatpush3.msra.mxu1 %v2389_v31 }
  0xca   : > { %1819 = vmatprep.subr.mxu0 %v2401_v39  ;;  %1857 = vmatprep.subr.mxu1 %v2401_v39 }
  0xcb   : > { %1820 = vmatpush3.msra.mxu0 %v2427_v50  ;;  %1858 = vmatpush3.msra.mxu1 %v2427_v50 }
  0xcc   : > { %1821 = vmatprep.subr.mxu0 %v2434_v55  ;;  %1859 = vmatprep.subr.mxu1 %v2434_v55 }
  0xcd   : > { %1822 = vmatpush3.msra.mxu0 %v2444_v27  ;;  %1860 = vmatpush3.msra.mxu1 %v2444_v27 }
  0xce   : > { %1823 = vmatprep.subr.mxu0 %v2456_v42  ;;  %1861 = vmatprep.subr.mxu1 %v2456_v42 }
  0xcf   : > { %1824 = vmatpush3.msra.mxu0 %v2463_v43  ;;  %1862 = vmatpush3.msra.mxu1 %v2463_v43 }
  0xd0   : > { %613 = vmatprep.mubr.f32.mxu0 %v504_v63  ;;  %763 = vmatprep.mubr.f32.mxu1 %v654_v33  ;;  %v1425_v63 = vld [vmem:[%s2968_s1 + $0xa0] sm:$0xff] }
  0xd1   : > { %1825 = vmatprep.subr.mxu0 %v2472_v15  ;;  %1863 = vmatprep.subr.mxu1 %v2472_v15 }
  0xd2   : > { %614 = vmatmul.mubr.f32.gmra.mxu0 %v502_v32  ;;  %764 = vmatmul.mubr.f32.gmra.mxu1 %v652_v46  ;;  %v1409_v32 = vld [vmem:[%s2968_s1 + $0x20] sm:$0xff]  ;;  %v1424_v46 = vld [vmem:[%s2968_s1 + $0x98] sm:$0xff] }
  0xd3   : > { %1826 = vmatpush3.msra.mxu0 %v2481_v20  ;;  %1864 = vmatpush3.msra.mxu1 %v2481_v20 }
  0xd4   : > { %1827 = vmatprep.subr.mxu0 %v2499_v44  ;;  %1865 = vmatprep.subr.mxu1 %v2499_v44 }
  0xd5   : > { %1828 = vmatpush3.msra.mxu0 %v2506_v54  ;;  %1866 = vmatpush3.msra.mxu1 %v2506_v54 }
  0xd6   : > { %1829 = vmatprep.subr.mxu0 %v2518_v34  ;;  %1867 = vmatprep.subr.mxu1 %v2518_v34 }
  0xd7   : > { %1830 = vmatpush3.msra.mxu0 %v2525_v16  ;;  %908 = vmatprep.mubr.f32.mxu0 %v803_v36  ;;  %v2996_v36 = vld [vmem:[#allocation5_spill] sm:$0xff] }
  0xd8   : > { %1868 = vmatpush3.msra.mxu1 %v2525_v16  ;;  %1058 = vmatprep.mubr.f32.mxu1 %v953_v40 }
  0xd9   : > { %909 = vmatmul.mubr.f32.vlgmr.msra.gmra.mxu0 %v801_v56  ;;  %1059 = vmatmul.mubr.f32.vlgmr.msra.gmra.mxu1 %v951_v25  ;;  %v2997_v56 = vld [vmem:[#allocation6_spill] sm:$0xff] }
  0xda   : > { %1875 = vmatprep.subr.mxu0 %v2162_v0  ;;  %1913 = vmatprep.subr.mxu1 %v2162_v0  ;;  %v2084_v0 = vpop.permute.xlu0 %2083 }
  0xdb   : > { %1876 = vmatpush3.msra.mxu0 %v2167_v1  ;;  %1914 = vmatpush3.msra.mxu1 %v2167_v1  ;;  %v2089_v1 = vpop.permute.xlu1 %2088 }
  0xdc   : > { %1877 = vmatprep.subr.mxu0 %v2172_v2  ;;  %1915 = vmatprep.subr.mxu1 %v2172_v2  ;;  %v2086_v2 = vunpack.i.h.bf16 %v2084_v0 }
  0xdd   : > { %1878 = vmatpush3.msra.mxu0 %v2179_v3  ;;  %1916 = vmatpush3.msra.mxu1 %v2179_v3  ;;  %v2085_v3 = vunpack.i.l.bf16 %v2084_v0 }
  0xde   : > { %1879 = vmatprep.subr.mxu0 %v2188_v4  ;;  %1917 = vmatprep.subr.mxu1 %v2188_v4  ;;  %v2091_v4 = vunpack.i.h.bf16 %v2089_v1 }
  0xdf   : > { %1880 = vmatpush3.msra.mxu0 %v2195_v5  ;;  %1918 = vmatpush3.msra.mxu1 %v2195_v5  ;;  %v2090_v5 = vunpack.i.l.bf16 %v2089_v1  ;;  %v1423_v1 = vld [vmem:[%s2968_s1 + $0x90] sm:$0xff] }
  0xe0   : > { %1881 = vmatprep.subr.mxu0 %v2203_v6  ;;  %1919 = vmatprep.subr.mxu1 %v2203_v6  ;;  %v804_v6 = vsel %vm199_vm1, %v2346_v57, %v2085_v3  ;;  %v2993_v57 = vld [vmem:[#allocation7_spill] sm:$0xff]  ;;  %v1407_v3 = vld [vmem:[%s2968_s1 + $0x10] sm:$0xff] }
  0xe1   : > { %1882 = vmatpush3.msra.mxu0 %v2210_v7  ;;  %1920 = vmatpush3.msra.mxu1 %v2210_v7  ;;  %v954_v7 = vsel %vm199_vm1, %v2352_v59, %v2086_v2 }
  0xe2   : > { %1883 = vmatprep.subr.mxu0 %v2222_v8  ;;  %1921 = vmatprep.subr.mxu1 %v2222_v8  ;;  %v2094_v8 = vpop.permute.xlu0 %2093 }
  0xe3   : > { %1884 = vmatpush3.msra.mxu0 %v2227_v9  ;;  %1922 = vmatpush3.msra.mxu1 %v2227_v9  ;;  %v802_v9 = vsel %vm199_vm1, %v2336_v53, %v2090_v5  ;;  %v2095_v30 = vunpack.i.l.bf16 %v2094_v8 }
  0xe4   : > { %1885 = vmatprep.subr.mxu0 %v2232_v10  ;;  %1923 = vmatprep.subr.mxu1 %v2232_v10  ;;  %v2991_v10 = vld [vmem:[#allocation2_spill] sm:$0xff] }
  0xe5   : > { %1886 = vmatpush3.msra.mxu0 %v2248_v14  ;;  %1924 = vmatpush3.msra.mxu1 %v2248_v14  ;;  %v952_v14 = vsel %vm199_vm1, %v2991_v10, %v2091_v4  ;;  %v1103_v53 = vsel %vm199_vm1, %v2992_v52, %v2095_v30  ;;  %v1421_v10 = vld [vmem:[%s2968_s1 + $0x80] sm:$0xff]  ;;  %v2998_v30 = vld [vmem:[#allocation9_spill] sm:$0xff] }
  0xe6   : > { %1887 = vmatprep.subr.mxu0 %v2274_v24  ;;  %1925 = vmatprep.subr.mxu1 %v2274_v24  ;;  %v2099_v24 = vpop.permute.xlu1 %2098  ;;  %v2104_v11 = vpop.permute.xlu0 %2103 }
  0xe7   : > { %1888 = vmatpush3.msra.mxu0 %v2310_v41  ;;  %1926 = vmatpush3.msra.mxu1 %v2310_v41  ;;  %v2096_v41 = vunpack.i.h.bf16 %v2094_v8  ;;  %v2106_v60 = vunpack.i.h.bf16 %v2104_v11  ;;  %v2105_v38 = vunpack.i.l.bf16 %v2104_v11 }
  0xe8   : > { %1889 = vmatprep.subr.mxu0 %v2323_v48  ;;  %1927 = vmatprep.subr.mxu1 %v2323_v48  ;;  %v2101_v48 = vunpack.i.h.bf16 %v2099_v24 }
  0xe9   : > { %1890 = vmatpush3.msra.mxu0 %v2328_v49  ;;  %1928 = vmatpush3.msra.mxu1 %v2328_v49  ;;  %v2100_v49 = vunpack.i.l.bf16 %v2099_v24  ;;  %v1253_v59 = vsel %vm199_vm1, %v2993_v57, %v2096_v41  ;;  %v1104_v29 = vsel %vm199_vm1, %v2994_v12, %v2105_v38  ;;  %v1254_v51 = vsel %vm199_vm1, %v2995_v35, %v2106_v60 }
  0xea   : > { %1891 = vmatprep.subr.mxu0 %v2360_v61  ;;  %1929 = vmatprep.subr.mxu1 %v2360_v61  ;;  %v2109_v19 = vpop.permute.xlu1 %2108  ;;  %v2114_v0 = vpop.permute.xlu0 %2113 }
  0xeb   : > { %1892 = vmatpush3.msra.mxu0 %v2370_v18  ;;  %1930 = vmatpush3.msra.mxu1 %v2370_v18  ;;  %v1101_v61 = vsel %vm199_vm1, %v2349_v58, %v2100_v49  ;;  %v1251_v18 = vsel %vm199_vm1, %v2992_v52, %v2101_v48  ;;  %v1435_v58 = vld [vmem:[%s2968_s1 + $0xf0] sm:$0xff]  ;;  %v2111_v33 = vunpack.i.h.bf16 %v2109_v19  ;;  %v2110_v37 = vunpack.i.l.bf16 %v2109_v19  ;;  %v2999_v48 = vld [vmem:[#allocation10_spill] sm:$0xff] }
  0xec   : > { %1893 = vmatprep.subr.mxu0 %v2382_v26  ;;  %1931 = vmatprep.subr.mxu1 %v2382_v26  ;;  %v1420_v26 = vld [vmem:[%s2968_s1 + $0x78] sm:$0xff]  ;;  %v2116_v4 = vunpack.i.h.bf16 %v2114_v0  ;;  %v2115_v5 = vunpack.i.l.bf16 %v2114_v0 }
  0xed   : > { %1894 = vmatpush3.msra.mxu0 %v2389_v31  ;;  %1932 = vmatpush3.msra.mxu1 %v2389_v31  ;;  %v1419_v31 = vld [vmem:[%s2968_s1 + $0x70] sm:$0xff]  ;;  %v1102_v40 = vsel %vm199_vm1, %v2996_v36, %v2110_v37  ;;  %v1252_v25 = vsel %vm199_vm1, %v2997_v56, %v2111_v33 }
  0xee   : > { %1895 = vmatprep.subr.mxu0 %v2401_v39  ;;  %1933 = vmatprep.subr.mxu1 %v2401_v39  ;;  %v1434_v39 = vld [vmem:[%s2968_s1 + $0xe8] sm:$0xff]  ;;  %v2119_v2 = vpop.permute.xlu1 %2118  ;;  %v1403_v24 = vsel %vm199_vm1, %v2486_v22, %v2115_v5  ;;  %v1404_v41 = vsel %vm199_vm1, %v2998_v30, %v2116_v4  ;;  %v2903_v22 = vld [vmem:[%s2969_s2] ss:$0 sm:$0xff] }
  0xef   : > { %1896 = vmatpush3.msra.mxu0 %v2427_v50  ;;  %1934 = vmatpush3.msra.mxu1 %v2427_v50  ;;  %v1417_v50 = vld [vmem:[%s2968_s1 + $0x60] sm:$0xff]  ;;  %v2120_v8 = vunpack.i.l.bf16 %v2119_v2 }
  0xf0   : > { %1897 = vmatprep.subr.mxu0 %v2434_v55  ;;  %1935 = vmatprep.subr.mxu1 %v2434_v55  ;;  %v1432_v55 = vld [vmem:[%s2968_s1 + $0xd8] sm:$0xff] }
  0xf1   : > { %1898 = vmatpush3.msra.mxu0 %v2444_v27  ;;  %1936 = vmatpush3.msra.mxu1 %v2444_v27  ;;  %v1416_v27 = vld [vmem:[%s2968_s1 + $0x58] sm:$0xff]  ;;  %v1401_v52 = vsel %vm199_vm1, %v2993_v57, %v2120_v8 }
  0xf2   : > { %1899 = vmatprep.subr.mxu0 %v2456_v42  ;;  %1937 = vmatprep.subr.mxu1 %v2456_v42  ;;  %v1431_v42 = vld [vmem:[%s2968_s1 + $0xd0] sm:$0xff] }
  0xf3   : > { %1900 = vmatpush3.msra.mxu0 %v2463_v43  ;;  %1938 = vmatpush3.msra.mxu1 %v2463_v43  ;;  %v1418_v43 = vld [vmem:[%s2968_s1 + $0x68] sm:$0xff] }
  0xf4   : > { %913 = vmatprep.mubr.f32.mxu0 %v804_v6  ;;  %1063 = vmatprep.mubr.f32.mxu1 %v954_v7  ;;  %v1422_v6 = vld [vmem:[%s2968_s1 + $0x88] sm:$0xff]  ;;  %v2121_v7 = vunpack.i.h.bf16 %v2119_v2 }
  0xf5   : > { %1901 = vmatprep.subr.mxu0 %v2472_v15  ;;  %1939 = vmatprep.subr.mxu1 %v2472_v15  ;;  %v1415_v15 = vld [vmem:[%s2968_s1 + $0x50] sm:$0xff] }
  0xf6   : > { %914 = vmatmul.mubr.f32.gmra.mxu0 %v802_v9  ;;  %1064 = vmatmul.mubr.f32.gmra.mxu1 %v952_v14  ;;  %v1406_v9 = vld [vmem:[%s2968_s1 + $0x8] sm:$0xff]  ;;  %v1405_v14 = vld [vmem:[%s2968_s1] sm:$0xff]  ;;  %v1402_v49 = vsel %vm199_vm1, %v2999_v48, %v2121_v7 }
  0xf7   : > { %1902 = vmatpush3.msra.mxu0 %v2481_v20  ;;  %1940 = vmatpush3.msra.mxu1 %v2481_v20  ;;  %v1430_v20 = vld [vmem:[%s2968_s1 + $0xc8] sm:$0xff] }
  0xf8   : > { %1903 = vmatprep.subr.mxu0 %v2499_v44  ;;  %1941 = vmatprep.subr.mxu1 %v2499_v44  ;;  %v1433_v44 = vld [vmem:[%s2968_s1 + $0xe0] sm:$0xff] }
  0xf9   : > { %1904 = vmatpush3.msra.mxu0 %v2506_v54  ;;  %1942 = vmatpush3.msra.mxu1 %v2506_v54  ;;  %v1436_v54 = vld [vmem:[%s2968_s1 + $0xf8] sm:$0xff] }
  0xfa   : > { %1905 = vmatprep.subr.mxu0 %v2518_v34  ;;  %1943 = vmatprep.subr.mxu1 %v2518_v34  ;;  %v1414_v34 = vld [vmem:[%s2968_s1 + $0x48] sm:$0xff] }
  0xfb   : > { %1906 = vmatpush3.msra.mxu0 %v2525_v16  ;;  %1208 = vmatprep.mubr.f32.mxu0 %v1103_v53 }
  0xfc   : > { %1944 = vmatpush3.msra.mxu1 %v2525_v16  ;;  %1358 = vmatprep.mubr.f32.mxu1 %v1253_v59  ;;  %v1429_v16 = vld [vmem:[%s2968_s1 + $0xc0] sm:$0xff] }
  0xfd   : > { %1209 = vmatmul.mubr.f32.vlgmr.msra.gmra.mxu0 %v1101_v61  ;;  %1359 = vmatmul.mubr.f32.vlgmr.msra.gmra.mxu1 %v1251_v18 }
  0xfe   : > { %1951 = vmatprep.subr.mxu0 %v1436_v54  ;;  %1989 = vmatprep.subr.mxu1 %v1436_v54 }
  0xff   : > { %1952 = vmatpush3.msra.mxu0 %v1420_v26  ;;  %2005 = vmatpush3.msra.mxu1 %v1420_v26 }
 0x100   : > { %1953 = vmatprep.subr.mxu0 %v1435_v58  ;;  %1990 = vmatprep.subr.mxu1 %v1435_v58 }
 0x101   : > { %1954 = vmatpush3.msra.mxu0 %v1419_v31  ;;  %2006 = vmatpush3.msra.mxu1 %v1419_v31 }
 0x102   : > { %1955 = vmatprep.subr.mxu0 %v1434_v39  ;;  %1991 = vmatprep.subr.mxu1 %v1434_v39 }
 0x103   : > { %1956 = vmatpush3.msra.mxu0 %v1418_v43  ;;  %2007 = vmatpush3.msra.mxu1 %v1418_v43 }
 0x104   : > { %1957 = vmatprep.subr.mxu0 %v1433_v44  ;;  %1992 = vmatprep.subr.mxu1 %v1433_v44 }
 0x105   : > { %1958 = vmatpush3.msra.mxu0 %v1417_v50  ;;  %2008 = vmatpush3.msra.mxu1 %v1417_v50 }
 0x106   : > { %1959 = vmatprep.subr.mxu0 %v1432_v55  ;;  %1993 = vmatprep.subr.mxu1 %v1432_v55 }
 0x107   : > { %1960 = vmatpush3.msra.mxu0 %v1416_v27  ;;  %2009 = vmatpush3.msra.mxu1 %v1416_v27 }
 0x108   : > { %1961 = vmatprep.subr.mxu0 %v1431_v42  ;;  %1994 = vmatprep.subr.mxu1 %v1431_v42 }
 0x109   : > { %1962 = vmatpush3.msra.mxu0 %v1415_v15  ;;  %2010 = vmatpush3.msra.mxu1 %v1415_v15 }
 0x10a   : > { %1963 = vmatprep.subr.mxu0 %v1430_v20  ;;  %1995 = vmatprep.subr.mxu1 %v1430_v20 }
 0x10b   : > { %1964 = vmatpush3.msra.mxu0 %v1414_v34  ;;  %2011 = vmatpush3.msra.mxu1 %v1414_v34 }
 0x10c   : > { %1965 = vmatprep.subr.mxu0 %v1429_v16  ;;  %1996 = vmatprep.subr.mxu1 %v1429_v16 }
 0x10d   : > { %1966 = vmatpush3.msra.mxu0 %v1413_v47  ;;  %2012 = vmatpush3.msra.mxu1 %v1413_v47 }
 0x10e   : > { %1967 = vmatprep.subr.mxu0 %v1428_v21  ;;  %1997 = vmatprep.subr.mxu1 %v1428_v21 }
 0x10f   : > { %1968 = vmatpush3.msra.mxu0 %v1412_v23  ;;  %2013 = vmatpush3.msra.mxu1 %v1412_v23 }
 0x110   : > { %1969 = vmatprep.subr.mxu0 %v1427_v45  ;;  %1998 = vmatprep.subr.mxu1 %v1427_v45 }
 0x111   : > { %1970 = vmatpush3.msra.mxu0 %v1411_v13  ;;  %2014 = vmatpush3.msra.mxu1 %v1411_v13 }
 0x112   : > { %1971 = vmatprep.subr.mxu0 %v1426_v28  ;;  %1999 = vmatprep.subr.mxu1 %v1426_v28 }
 0x113   : > { %1972 = vmatpush3.msra.mxu0 %v1410_v62  ;;  %2015 = vmatpush3.msra.mxu1 %v1410_v62 }
 0x114   : > { %1973 = vmatprep.subr.mxu0 %v1425_v63  ;;  %2000 = vmatprep.subr.mxu1 %v1425_v63 }
 0x115   : > { %1974 = vmatpush3.msra.mxu0 %v1409_v32  ;;  %2016 = vmatpush3.msra.mxu1 %v1409_v32 }
 0x116   : > { %1975 = vmatprep.subr.mxu0 %v1424_v46  ;;  %2001 = vmatprep.subr.mxu1 %v1424_v46 }
 0x117   : > { %1213 = vmatprep.mubr.f32.mxu0 %v1104_v29  ;;  %1363 = vmatprep.mubr.f32.mxu1 %v1254_v51 }
 0x118   : > { %1976 = vmatpush3.msra.mxu0 %v1408_v17  ;;  %2017 = vmatpush3.msra.mxu1 %v1408_v17 }
 0x119   : > { %1214 = vmatmul.mubr.f32.gmra.mxu0 %v1102_v40  ;;  %1364 = vmatmul.mubr.f32.gmra.mxu1 %v1252_v25 }
 0x11a   : > { %1977 = vmatprep.subr.mxu0 %v1423_v1  ;;  %2002 = vmatprep.subr.mxu1 %v1423_v1 }
 0x11b   : > { %1978 = vmatpush3.msra.mxu0 %v1407_v3  ;;  %2018 = vmatpush3.msra.mxu1 %v1407_v3 }
 0x11c   : > { %1979 = vmatprep.subr.mxu0 %v1422_v6  ;;  %2003 = vmatprep.subr.mxu1 %v1422_v6 }
 0x11d   : > { %1980 = vmatpush3.msra.mxu0 %v1406_v9  ;;  %2019 = vmatpush3.msra.mxu1 %v1406_v9 }
 0x11e   : > { %1981 = vmatprep.subr.mxu0 %v1421_v10  ;;  %2004 = vmatprep.subr.mxu1 %v1421_v10 }
 0x11f   : > { %1982 = vmatpush3.msra.mxu0 %v1405_v14  ;;  %2020 = vmatpush3.msra.mxu1 %v1405_v14 }
 0x120   : > { %1508 = vmatprep.mubr.f32.mxu0 %v1403_v24  ;;  %1513 = vmatprep.mubr.f32.mxu1 %v1404_v41 }
 0x121   : > { %1509 = vmatmul.mubr.f32.vlgmr.msra.gmra.mxu0 %v1401_v52  ;;  %1514 = vmatmul.mubr.f32.vlgmr.msra.gmra.mxu1 %v1402_v49 }
 0x152   : > { %v1679_v53 = vpop.f32.mrf.mxu0  ;;  %v1717_v59 = vpop.f32.mrf.mxu1 }
 0x154   : > { %v1680_v61 = vpop.f32.mrf.mxu0  ;;  %v1718_v18 = vpop.f32.mrf.mxu1 }
 0x155   : > { %v1681_v54 = vadd.f32 %v1680_v61, %v1679_v53  ;;  %v1719_v57 = vadd.f32 %v1718_v18, %v1717_v59 }
 0x157   : > { %v310_v26 = vadd.f32 %v1681_v54, %v2903_v22  ;;  %v461_v58 = vadd.f32 %v1719_v57, %v2903_v22 }
 0x159   : > { %v318_v31 = vmax.f32 %v310_v26, 0.0  ;;  %v469_v39 = vmax.f32 %v461_v58, 0.0 }
 0x15b   : > { %321 = vst.msk [vmem:[%s2910_s29] sm:$0xff] %vm320_vm2, %v318_v31  ;;  %1594 = vst.msk [vmem:[%s2910_s29 + $0x10] sm:$0xff] %vm320_vm2, %v469_v39 }
 0x16e   : > { %v1682_v43 = vpop.f32.mrf.mxu0  ;;  %v1720_v44 = vpop.f32.mrf.mxu1 }
 0x170   : > { %v1683_v50 = vpop.f32.mrf.mxu0  ;;  %v1721_v55 = vpop.f32.mrf.mxu1 }
 0x171   : > { %v1684_v27 = vadd.f32 %v1683_v50, %v1682_v43  ;;  %v1722_v42 = vadd.f32 %v1721_v55, %v1720_v44 }
 0x173   : > { %v315_v15 = vadd.f32 %v1684_v27, %v2903_v22  ;;  %v466_v20 = vadd.f32 %v1722_v42, %v2903_v22 }
 0x175   : > { %v319_v34 = vmax.f32 %v315_v15, 0.0  ;;  %v470_v16 = vmax.f32 %v466_v20, 0.0  ;;  %v1755_v47 = vpop.f32.mrf.mxu0  ;;  %v1793_v21 = vpop.f32.mrf.mxu1 }
 0x177   : > { %323 = vst.msk [vmem:[%s2910_s29 + $0x8] sm:$0x1] %vm322_vm3, %v319_v34  ;;  %1595 = vst.msk [vmem:[%s2910_s29 + $0x18] sm:$0x1] %vm322_vm3, %v470_v16  ;;  %v1756_v23 = vpop.f32.mrf.mxu0  ;;  %v1794_v45 = vpop.f32.mrf.mxu1 }
 0x178   : > { %v1757_v11 = vadd.f32 %v1756_v23, %v1755_v47  ;;  %v1795_v13 = vadd.f32 %v1794_v45, %v1793_v21 }
 0x17a   : > { %v611_v28 = vadd.f32 %v1757_v11, %v2903_v22  ;;  %v761_v19 = vadd.f32 %v1795_v13, %v2903_v22 }
 0x17c   : > { %v619_v60 = vmax.f32 %v611_v28, 0.0  ;;  %v769_v38 = vmax.f32 %v761_v19, 0.0 }
 0x17e   : > { %1601 = vst.msk [vmem:[%s2910_s29 + $0x20] sm:$0xff] %vm320_vm2, %v619_v60  ;;  %1608 = vst.msk [vmem:[%s2910_s29 + $0x30] sm:$0xff] %vm320_vm2, %v769_v38 }
 0x192   : > { %v1758_v62 = vpop.f32.mrf.mxu0  ;;  %v1796_v63 = vpop.f32.mrf.mxu1 }
 0x194   : > { %v1759_v33 = vpop.f32.mrf.mxu0  ;;  %v1797_v37 = vpop.f32.mrf.mxu1 }
 0x195   : > { %v1760_v32 = vadd.f32 %v1759_v33, %v1758_v62  ;;  %v1798_v46 = vadd.f32 %v1797_v37, %v1796_v63 }
 0x197   : > { %v616_v12 = vadd.f32 %v1760_v32, %v2903_v22  ;;  %v766_v29 = vadd.f32 %v1798_v46, %v2903_v22 }
 0x199   : > { %v620_v35 = vmax.f32 %v616_v12, 0.0  ;;  %v770_v51 = vmax.f32 %v766_v29, 0.0  ;;  %v1831_v17 = vpop.f32.mrf.mxu0  ;;  %v1869_v36 = vpop.f32.mrf.mxu1 }
 0x19b   : > { %1602 = vst.msk [vmem:[%s2910_s29 + $0x28] sm:$0x1] %vm322_vm3, %v620_v35  ;;  %1609 = vst.msk [vmem:[%s2910_s29 + $0x38] sm:$0x1] %vm322_vm3, %v770_v51  ;;  %v1832_v40 = vpop.f32.mrf.mxu0  ;;  %v1870_v56 = vpop.f32.mrf.mxu1 }
 0x19c   : > { %v1833_v25 = vadd.f32 %v1832_v40, %v1831_v17  ;;  %v1871_v0 = vadd.f32 %v1870_v56, %v1869_v36 }
 0x19e   : > { %v911_v1 = vadd.f32 %v1833_v25, %v2903_v22  ;;  %v1061_v2 = vadd.f32 %v1871_v0, %v2903_v22 }
 0x1a0   : > { %v919_v3 = vmax.f32 %v911_v1, 0.0  ;;  %v1069_v4 = vmax.f32 %v1061_v2, 0.0 }
 0x1a2   : > { %1615 = vst.msk [vmem:[%s2910_s29 + $0x40] sm:$0xff] %vm320_vm2, %v919_v3  ;;  %1622 = vst.msk [vmem:[%s2910_s29 + $0x50] sm:$0xff] %vm320_vm2, %v1069_v4 }
 0x1b6   : > { %v1834_v5 = vpop.f32.mrf.mxu0  ;;  %v1872_v6 = vpop.f32.mrf.mxu1 }
 0x1b8   : > { %v1835_v7 = vpop.f32.mrf.mxu0  ;;  %v1873_v8 = vpop.f32.mrf.mxu1 }
 0x1b9   : > { %v1836_v9 = vadd.f32 %v1835_v7, %v1834_v5  ;;  %v1874_v10 = vadd.f32 %v1873_v8, %v1872_v6 }
 0x1bb   : > { %v916_v14 = vadd.f32 %v1836_v9, %v2903_v22  ;;  %v1066_v24 = vadd.f32 %v1874_v10, %v2903_v22 }
 0x1bd   : > { %v920_v30 = vmax.f32 %v916_v14, 0.0  ;;  %v1070_v41 = vmax.f32 %v1066_v24, 0.0  ;;  %v1907_v48 = vpop.f32.mrf.mxu0  ;;  %v1945_v49 = vpop.f32.mrf.mxu1 }
 0x1bf   : > { %1616 = vst.msk [vmem:[%s2910_s29 + $0x48] sm:$0x1] %vm322_vm3, %v920_v30  ;;  %1623 = vst.msk [vmem:[%s2910_s29 + $0x58] sm:$0x1] %vm322_vm3, %v1070_v41  ;;  %v1908_v52 = vpop.f32.mrf.mxu0  ;;  %v1946_v53 = vpop.f32.mrf.mxu1 }
 0x1c0   : > { %v1909_v59 = vadd.f32 %v1908_v52, %v1907_v48  ;;  %v1947_v61 = vadd.f32 %v1946_v53, %v1945_v49 }
 0x1c2   : > { %v1211_v18 = vadd.f32 %v1909_v59, %v2903_v22  ;;  %v1361_v54 = vadd.f32 %v1947_v61, %v2903_v22 }
 0x1c4   : > { %v1219_v57 = vmax.f32 %v1211_v18, 0.0  ;;  %v1369_v26 = vmax.f32 %v1361_v54, 0.0 }
 0x1c6   : > { %1629 = vst.msk [vmem:[%s2910_s29 + $0x60] sm:$0xff] %vm320_vm2, %v1219_v57  ;;  %1636 = vst.msk [vmem:[%s2910_s29 + $0x70] sm:$0xff] %vm320_vm2, %v1369_v26 }
 0x1d9   : > { %v1910_v58 = vpop.f32.mrf.mxu0  ;;  %v1948_v31 = vpop.f32.mrf.mxu1 }
 0x1db   : > { %v1911_v39 = vpop.f32.mrf.mxu0  ;;  %v1949_v43 = vpop.f32.mrf.mxu1 }
 0x1dc   : > { %v1912_v44 = vadd.f32 %v1911_v39, %v1910_v58  ;;  %v1950_v50 = vadd.f32 %v1949_v43, %v1948_v31 }
 0x1de   : > { %v1216_v55 = vadd.f32 %v1912_v44, %v2903_v22  ;;  %v1366_v27 = vadd.f32 %v1950_v50, %v2903_v22 }
 0x1e0   : > { %v1220_v42 = vmax.f32 %v1216_v55, 0.0  ;;  %v1370_v15 = vmax.f32 %v1366_v27, 0.0 }
 0x1e1   : > { %v1983_v20 = vpop.f32.mrf.mxu0  ;;  %v1986_v34 = vpop.f32.mrf.mxu1 }
 0x1e2   : > { %1630 = vst.msk [vmem:[%s2910_s29 + $0x68] sm:$0x1] %vm322_vm3, %v1220_v42  ;;  %1637 = vst.msk [vmem:[%s2910_s29 + $0x78] sm:$0x1] %vm322_vm3, %v1370_v15 }
 0x1e3   : > { %v1984_v16 = vpop.f32.mrf.mxu0  ;;  %v1987_v47 = vpop.f32.mrf.mxu1 }
 0x1e4   : > { %v1985_v21 = vadd.f32 %v1984_v16, %v1983_v20  ;;  %v1988_v23 = vadd.f32 %v1987_v47, %v1986_v34 }
 0x1e6   : > { %v1511_v45 = vadd.f32 %v1985_v21, %v2903_v22  ;;  %v1516_v11 = vadd.f32 %v1988_v23, %v2903_v22 }
 0x1e8   : > { %v1519_v13 = vmax.f32 %v1511_v45, 0.0  ;;  %v1520_v28 = vmax.f32 %v1516_v11, 0.0 }
 0x1ea   : > { %1643 = vst.msk [vmem:[%s2910_s29 + $0x80] sm:$0xff] %vm320_vm2, %v1519_v13 }
 0x1eb   : > { %1644 = vst.msk [vmem:[%s2910_s29 + $0x88] sm:$0x1] %vm322_vm3, %v1520_v28 }
 0x1ec PF: > { %s13_s12 = sadd.s32 1, %s2128_s12  }
 0x1ed   : > { %p10_p4 = scmp.ge.s32.totalorder %s13_s12, 4  }
 0x1ef   :  { %12 = sbr.rel (!%p10_p4) target bundleno = 1 (0x1), region = 79 }

// kernel: qnetwork_forward.5
= control target key start
LH: loop header
LB: loop body
LE: loop exit
PB: predicated region body
PF: predicated region fallthrough
CT: control target
= control target key end

     0   :  { %s4134_s0 = inlined_call_operand.vmem [shape: f32[2,2592], index: 0, kind: input, shape index: {}]   ;;  %s4135_s1 = inlined_call_operand.vmem [shape: f32[2592,256], index: 1, kind: input, shape index: {}]   ;;  %s4136_s2 = inlined_call_operand.vmem [shape: f32[1,256], index: 2, kind: input, shape index: {}]   ;;  %s4137_s3 = inlined_call_operand.vmem [shape: f32[256,128], index: 3, kind: input, shape index: {}]   ;;  %s4138_s4 = inlined_call_operand.vmem [shape: f32[1,128], index: 4, kind: input, shape index: {}]   ;;  %s4139_s5 = inlined_call_operand.vmem [shape: f32[128,128], index: 5, kind: input, shape index: {}]   ;;  %s4140_s6 = inlined_call_operand.vmem [shape: f32[1,128], index: 6, kind: input, shape index: {}]   ;;  %s4141_s7 = inlined_call_operand.hbm [shape: f32[2,128], index: 7, kind: output, shape index: {}]  }
   0x1   :  { %v64_v0 = vld [vmem:[%s4135_s1 + $0xf8] sm:$0xff]  ;;  %v63_v1 = vld [vmem:[%s4135_s1 + $0xf0] sm:$0xff]  ;;  %v62_v2 = vld [vmem:[%s4135_s1 + $0xe8] sm:$0xff] }
   0x2   :  { %814 = vmatprep.subr.mxu0 %v64_v0  ;;  %v128_v3 = vld [vmem:[%s4135_s1 + $0x2f8] sm:$0xff]  ;;  %v61_v4 = vld [vmem:[%s4135_s1 + $0xe0] sm:$0xff]  ;;  %v127_v5 = vld [vmem:[%s4135_s1 + $0x2f0] sm:$0xff] }
   0x3   :  { %815 = vmatpush1.msra.mxu0 %v63_v1  ;;  %885 = vmatprep.subr.mxu1 %v128_v3  ;;  %v60_v6 = vld [vmem:[%s4135_s1 + $0xd8] sm:$0xff]  ;;  %v126_v7 = vld [vmem:[%s4135_s1 + $0x2e8] sm:$0xff]  ;;  %v59_v8 = vld [vmem:[%s4135_s1 + $0xd0] sm:$0xff] }
   0x4   :  { %816 = vmatprep.subr.mxu0 %v62_v2  ;;  %886 = vmatpush1.msra.mxu1 %v127_v5  ;;  %v125_v9 = vld [vmem:[%s4135_s1 + $0x2e0] sm:$0xff]  ;;  %v124_v10 = vld [vmem:[%s4135_s1 + $0x2d8] sm:$0xff]  ;;  %v58_v11 = vld [vmem:[%s4135_s1 + $0xc8] sm:$0xff] }
   0x5   :  { %817 = vmatpush1.msra.mxu0 %v61_v4  ;;  %887 = vmatprep.subr.mxu1 %v126_v7  ;;  %v123_v12 = vld [vmem:[%s4135_s1 + $0x2d0] sm:$0xff]  ;;  %v57_v13 = vld [vmem:[%s4135_s1 + $0xc0] sm:$0xff]  ;;  %v122_v14 = vld [vmem:[%s4135_s1 + $0x2c8] sm:$0xff] }
   0x6   :  { %818 = vmatprep.subr.mxu0 %v60_v6  ;;  %888 = vmatpush1.msra.mxu1 %v125_v9  ;;  %v56_v15 = vld [vmem:[%s4135_s1 + $0xb8] sm:$0xff]  ;;  %v121_v16 = vld [vmem:[%s4135_s1 + $0x2c0] sm:$0xff]  ;;  %v55_v17 = vld [vmem:[%s4135_s1 + $0xb0] sm:$0xff] }
   0x7   :  { %819 = vmatpush1.msra.mxu0 %v59_v8  ;;  %889 = vmatprep.subr.mxu1 %v124_v10  ;;  %v120_v18 = vld [vmem:[%s4135_s1 + $0x2b8] sm:$0xff]  ;;  %v54_v19 = vld [vmem:[%s4135_s1 + $0xa8] sm:$0xff]  ;;  %v119_v20 = vld [vmem:[%s4135_s1 + $0x2b0] sm:$0xff] }
   0x8   :  { %820 = vmatprep.subr.mxu0 %v58_v11  ;;  %890 = vmatpush1.msra.mxu1 %v123_v12  ;;  %v53_v21 = vld [vmem:[%s4135_s1 + $0xa0] sm:$0xff]  ;;  %v118_v22 = vld [vmem:[%s4135_s1 + $0x2a8] sm:$0xff]  ;;  %v52_v23 = vld [vmem:[%s4135_s1 + $0x98] sm:$0xff] }
   0x9   :  { %821 = vmatpush1.msra.mxu0 %v57_v13  ;;  %891 = vmatprep.subr.mxu1 %v122_v14  ;;  %v117_v24 = vld [vmem:[%s4135_s1 + $0x2a0] sm:$0xff]  ;;  %v51_v25 = vld [vmem:[%s4135_s1 + $0x90] sm:$0xff]  ;;  %v116_v26 = vld [vmem:[%s4135_s1 + $0x298] sm:$0xff] }
   0xa   :  { %822 = vmatprep.subr.mxu0 %v56_v15  ;;  %892 = vmatpush1.msra.mxu1 %v121_v16  ;;  %v50_v27 = vld [vmem:[%s4135_s1 + $0x88] sm:$0xff]  ;;  %v115_v28 = vld [vmem:[%s4135_s1 + $0x290] sm:$0xff]  ;;  %v49_v29 = vld [vmem:[%s4135_s1 + $0x80] sm:$0xff] }
   0xb   :  { %823 = vmatpush1.msra.mxu0 %v55_v17  ;;  %893 = vmatprep.subr.mxu1 %v120_v18  ;;  %v114_v30 = vld [vmem:[%s4135_s1 + $0x288] sm:$0xff]  ;;  %v48_v31 = vld [vmem:[%s4135_s1 + $0x78] sm:$0xff]  ;;  %v113_v32 = vld [vmem:[%s4135_s1 + $0x280] sm:$0xff] }
   0xc   :  { %824 = vmatprep.subr.mxu0 %v54_v19  ;;  %894 = vmatpush1.msra.mxu1 %v119_v20  ;;  %v47_v33 = vld [vmem:[%s4135_s1 + $0x70] sm:$0xff]  ;;  %v112_v34 = vld [vmem:[%s4135_s1 + $0x278] sm:$0xff]  ;;  %v46_v35 = vld [vmem:[%s4135_s1 + $0x68] sm:$0xff] }
   0xd   :  { %825 = vmatpush1.msra.mxu0 %v53_v21  ;;  %895 = vmatprep.subr.mxu1 %v118_v22  ;;  %v111_v36 = vld [vmem:[%s4135_s1 + $0x270] sm:$0xff]  ;;  %v45_v37 = vld [vmem:[%s4135_s1 + $0x60] sm:$0xff]  ;;  %v110_v38 = vld [vmem:[%s4135_s1 + $0x268] sm:$0xff] }
   0xe   :  { %826 = vmatprep.subr.mxu0 %v52_v23  ;;  %896 = vmatpush1.msra.mxu1 %v117_v24  ;;  %v44_v39 = vld [vmem:[%s4135_s1 + $0x58] sm:$0xff]  ;;  %v109_v40 = vld [vmem:[%s4135_s1 + $0x260] sm:$0xff]  ;;  %v43_v41 = vld [vmem:[%s4135_s1 + $0x50] sm:$0xff] }
   0xf   :  { %827 = vmatpush1.msra.mxu0 %v51_v25  ;;  %897 = vmatprep.subr.mxu1 %v116_v26  ;;  %v108_v42 = vld [vmem:[%s4135_s1 + $0x258] sm:$0xff]  ;;  %v42_v43 = vld [vmem:[%s4135_s1 + $0x48] sm:$0xff]  ;;  %v107_v44 = vld [vmem:[%s4135_s1 + $0x250] sm:$0xff] }
  0x10   :  { %828 = vmatprep.subr.mxu0 %v50_v27  ;;  %898 = vmatpush1.msra.mxu1 %v115_v28  ;;  %v41_v45 = vld [vmem:[%s4135_s1 + $0x40] sm:$0xff]  ;;  %v106_v46 = vld [vmem:[%s4135_s1 + $0x248] sm:$0xff]  ;;  %v40_v47 = vld [vmem:[%s4135_s1 + $0x38] sm:$0xff]  ;;  %v683_v27 = vlaneseq  ;;  %v1937_v28 = vmov 1983009808  }
  0x11   :  { %829 = vmatpush1.msra.mxu0 %v49_v29  ;;  %899 = vmatprep.subr.mxu1 %v114_v30  ;;  %v105_v48 = vld [vmem:[%s4135_s1 + $0x240] sm:$0xff]  ;;  %v39_v49 = vld [vmem:[%s4135_s1 + $0x30] sm:$0xff]  ;;  %v104_v50 = vld [vmem:[%s4135_s1 + $0x238] sm:$0xff]  ;;  %v701_v29 = vunpack.c.l.s4 %v1937_v28 }
  0x12   :  { %830 = vmatprep.subr.mxu0 %v48_v31  ;;  %900 = vmatpush1.msra.mxu1 %v113_v32  ;;  %v38_v51 = vld [vmem:[%s4135_s1 + $0x28] sm:$0xff]  ;;  %v103_v52 = vld [vmem:[%s4135_s1 + $0x230] sm:$0xff]  ;;  %v37_v53 = vld [vmem:[%s4135_s1 + $0x20] sm:$0xff] }
  0x13   :  { %831 = vmatpush1.msra.mxu0 %v47_v33  ;;  %901 = vmatprep.subr.mxu1 %v112_v34  ;;  %v102_v54 = vld [vmem:[%s4135_s1 + $0x228] sm:$0xff]  ;;  %v36_v55 = vld [vmem:[%s4135_s1 + $0x18] sm:$0xff]  ;;  %v101_v56 = vld [vmem:[%s4135_s1 + $0x220] sm:$0xff] }
  0x14   :  { %832 = vmatprep.subr.mxu0 %v46_v35  ;;  %902 = vmatpush1.msra.mxu1 %v111_v36  ;;  %v35_v57 = vld [vmem:[%s4135_s1 + $0x10] sm:$0xff]  ;;  %v100_v58 = vld [vmem:[%s4135_s1 + $0x218] sm:$0xff]  ;;  %v34_v59 = vld [vmem:[%s4135_s1 + $0x8] sm:$0xff] }
  0x15   :  { %833 = vmatpush1.msra.mxu0 %v45_v37  ;;  %903 = vmatprep.subr.mxu1 %v110_v38  ;;  %v99_v60 = vld [vmem:[%s4135_s1 + $0x210] sm:$0xff]  ;;  %v33_v61 = vld [vmem:[%s4135_s1] sm:$0xff]  ;;  %v98_v62 = vld [vmem:[%s4135_s1 + $0x208] sm:$0xff]  ;;  %v2278_v38 = vshrl.u32 %v683_v27, 7 }
  0x16   :  { %834 = vmatprep.subr.mxu0 %v44_v39  ;;  %904 = vmatpush1.msra.mxu1 %v109_v40  ;;  %v96_v63 = vld [vmem:[%s4135_s1 + $0x1f8] sm:$0xff]  ;;  %v97_v0 = vld [vmem:[%s4135_s1 + $0x200] sm:$0xff]  ;;  %v95_v1 = vld [vmem:[%s4135_s1 + $0x1f0] sm:$0xff]  ;;  %v702_v39 = vunpack.c.0.s8 %v701_v29 }
  0x17   :  { %835 = vmatpush1.msra.mxu0 %v43_v41  ;;  %905 = vmatprep.subr.mxu1 %v108_v42  ;;  %v160_v2 = vld [vmem:[%s4135_s1 + $0x3f8] sm:$0xff]  ;;  %v94_v3 = vld [vmem:[%s4135_s1 + $0x1e8] sm:$0xff]  ;;  %v159_v4 = vld [vmem:[%s4135_s1 + $0x3f0] sm:$0xff] }
  0x18   :  { %836 = vmatprep.subr.mxu0 %v42_v43  ;;  %906 = vmatpush1.msra.mxu1 %v107_v44  ;;  %v93_v5 = vld [vmem:[%s4135_s1 + $0x1e0] sm:$0xff]  ;;  %v158_v6 = vld [vmem:[%s4135_s1 + $0x3e8] sm:$0xff]  ;;  %v92_v7 = vld [vmem:[%s4135_s1 + $0x1d8] sm:$0xff] }
  0x19   :  { %837 = vmatpush1.msra.mxu0 %v41_v45  ;;  %907 = vmatprep.subr.mxu1 %v106_v46  ;;  %v157_v8 = vld [vmem:[%s4135_s1 + $0x3e0] sm:$0xff]  ;;  %v91_v9 = vld [vmem:[%s4135_s1 + $0x1d0] sm:$0xff]  ;;  %v156_v10 = vld [vmem:[%s4135_s1 + $0x3d8] sm:$0xff] }
  0x1a   :  { %838 = vmatprep.subr.mxu0 %v40_v47  ;;  %908 = vmatpush1.msra.mxu1 %v105_v48  ;;  %v90_v11 = vld [vmem:[%s4135_s1 + $0x1c8] sm:$0xff]  ;;  %v155_v12 = vld [vmem:[%s4135_s1 + $0x3d0] sm:$0xff]  ;;  %v89_v13 = vld [vmem:[%s4135_s1 + $0x1c0] sm:$0xff]  ;;  %v2305_v48 = vsub.s32 %v702_v39, %v2278_v38 }
  0x1b   :  { %839 = vmatpush1.msra.mxu0 %v39_v49  ;;  %909 = vmatprep.subr.mxu1 %v104_v50  ;;  %v154_v14 = vld [vmem:[%s4135_s1 + $0x3c8] sm:$0xff]  ;;  %v88_v15 = vld [vmem:[%s4135_s1 + $0x1b8] sm:$0xff]  ;;  %v153_v16 = vld [vmem:[%s4135_s1 + $0x3c0] sm:$0xff] }
  0x1c   :  { %840 = vmatprep.subr.mxu0 %v38_v51  ;;  %910 = vmatpush1.msra.mxu1 %v103_v52  ;;  %v87_v17 = vld [vmem:[%s4135_s1 + $0x1b0] sm:$0xff]  ;;  %v152_v18 = vld [vmem:[%s4135_s1 + $0x3b8] sm:$0xff]  ;;  %v86_v19 = vld [vmem:[%s4135_s1 + $0x1a8] sm:$0xff] }
  0x1d   :  { %841 = vmatpush1.msra.mxu0 %v37_v53  ;;  %911 = vmatprep.subr.mxu1 %v102_v54  ;;  %v151_v20 = vld [vmem:[%s4135_s1 + $0x3b0] sm:$0xff]  ;;  %v85_v21 = vld [vmem:[%s4135_s1 + $0x1a0] sm:$0xff]  ;;  %v150_v22 = vld [vmem:[%s4135_s1 + $0x3a8] sm:$0xff] }
  0x1e   :  { %842 = vmatprep.subr.mxu0 %v36_v55  ;;  %912 = vmatpush1.msra.mxu1 %v101_v56  ;;  %v84_v23 = vld [vmem:[%s4135_s1 + $0x198] sm:$0xff]  ;;  %v149_v24 = vld [vmem:[%s4135_s1 + $0x3a0] sm:$0xff]  ;;  %v83_v25 = vld [vmem:[%s4135_s1 + $0x190] sm:$0xff] }
  0x1f   :  { %843 = vmatpush1.msra.mxu0 %v35_v57  ;;  %913 = vmatprep.subr.mxu1 %v100_v58  ;;  %v148_v26 = vld [vmem:[%s4135_s1 + $0x398] sm:$0xff]  ;;  %v82_v30 = vld [vmem:[%s4135_s1 + $0x188] sm:$0xff]  ;;  %v147_v31 = vld [vmem:[%s4135_s1 + $0x390] sm:$0xff] }
  0x20   :  { %844 = vmatprep.subr.mxu0 %v34_v59  ;;  %914 = vmatpush1.msra.mxu1 %v99_v60  ;;  %v81_v32 = vld [vmem:[%s4135_s1 + $0x180] sm:$0xff]  ;;  %v146_v33 = vld [vmem:[%s4135_s1 + $0x388] sm:$0xff]  ;;  %v80_v34 = vld [vmem:[%s4135_s1 + $0x178] sm:$0xff] }
  0x21   :  { %845 = vmatpush1.msra.mxu0 %v33_v61  ;;  %915 = vmatprep.subr.mxu1 %v98_v62  ;;  %v145_v35 = vld [vmem:[%s4135_s1 + $0x380] sm:$0xff]  ;;  %v79_v36 = vld [vmem:[%s4135_s1 + $0x170] sm:$0xff]  ;;  %v144_v37 = vld [vmem:[%s4135_s1 + $0x378] sm:$0xff] }
  0x22   :  { %846 = vmatprep.subr.mxu0 %v96_v63  ;;  %916 = vmatpush1.msra.mxu1 %v97_v0  ;;  %v78_v40 = vld [vmem:[%s4135_s1 + $0x168] sm:$0xff]  ;;  %v143_v41 = vld [vmem:[%s4135_s1 + $0x370] sm:$0xff]  ;;  %v77_v42 = vld [vmem:[%s4135_s1 + $0x160] sm:$0xff] }
  0x23   :  { %847 = vmatpush2.msra.mxu0 %v95_v1  ;;  %917 = vmatprep.subr.mxu1 %v160_v2  ;;  %v142_v43 = vld [vmem:[%s4135_s1 + $0x368] sm:$0xff]  ;;  %v76_v44 = vld [vmem:[%s4135_s1 + $0x158] sm:$0xff]  ;;  %v141_v45 = vld [vmem:[%s4135_s1 + $0x360] sm:$0xff] }
  0x24   :  { %848 = vmatprep.subr.mxu0 %v94_v3  ;;  %918 = vmatpush2.msra.mxu1 %v159_v4  ;;  %v75_v46 = vld [vmem:[%s4135_s1 + $0x150] sm:$0xff]  ;;  %v140_v47 = vld [vmem:[%s4135_s1 + $0x358] sm:$0xff]  ;;  %v74_v49 = vld [vmem:[%s4135_s1 + $0x148] sm:$0xff] }
  0x25   :  { %849 = vmatpush2.msra.mxu0 %v93_v5  ;;  %919 = vmatprep.subr.mxu1 %v158_v6  ;;  %v139_v50 = vld [vmem:[%s4135_s1 + $0x350] sm:$0xff]  ;;  %v27_v51 = vld [vmem:[%s4134_s0] sm:$0xff]  ;;  %v138_v53 = vld [vmem:[%s4135_s1 + $0x348] sm:$0xff] }
  0x26   :  { %850 = vmatprep.subr.mxu0 %v92_v7  ;;  %920 = vmatpush2.msra.mxu1 %v157_v8  ;;  %v73_v52 = vld [vmem:[%s4135_s1 + $0x140] sm:$0xff]  ;;  %v72_v54 = vld [vmem:[%s4135_s1 + $0x138] sm:$0xff]  ;;  %v71_v56 = vld [vmem:[%s4135_s1 + $0x130] sm:$0xff]  ;;  %v706_v58 = vrot.slane %v27_v51, %v2305_v48  ;;  %v699_v59 = vcombine.high %v27_v51, %v27_v51 }
  0x27   :  { %851 = vmatpush2.msra.mxu0 %v91_v9  ;;  %921 = vmatprep.subr.mxu1 %v156_v10  ;;  %v137_v55 = vld [vmem:[%s4135_s1 + $0x340] sm:$0xff]  ;;  %v136_v57 = vld [vmem:[%s4135_s1 + $0x338] sm:$0xff]  ;;  %v70_v60 = vld [vmem:[%s4135_s1 + $0x128] sm:$0xff] }
  0x28   :  { %852 = vmatprep.subr.mxu0 %v90_v11  ;;  %922 = vmatpush2.msra.mxu1 %v155_v12  ;;  %v135_v61 = vld [vmem:[%s4135_s1 + $0x330] sm:$0xff]  ;;  %v69_v62 = vld [vmem:[%s4135_s1 + $0x120] sm:$0xff]  ;;  %v134_v63 = vld [vmem:[%s4135_s1 + $0x328] sm:$0xff]  ;;  %v714_v4 = vcombine.high %v706_v58, %v706_v58  ;;  %v713_v5 = vrot.slane %v699_v59, %v2305_v48 }
  0x29   :  { %853 = vmatpush2.msra.mxu0 %v89_v13  ;;  %923 = vmatprep.subr.mxu1 %v154_v14  ;;  %v68_v0 = vld [vmem:[%s4135_s1 + $0x118] sm:$0xff]  ;;  %v133_v1 = vld [vmem:[%s4135_s1 + $0x320] sm:$0xff]  ;;  %v67_v2 = vld [vmem:[%s4135_s1 + $0x110] sm:$0xff] }
  0x2a   :  { %854 = vmatprep.subr.mxu0 %v88_v15  ;;  %924 = vmatpush2.msra.mxu1 %v153_v16  ;;  %v132_v3 = vld [vmem:[%s4135_s1 + $0x318] sm:$0xff]  ;;  %v66_v6 = vld [vmem:[%s4135_s1 + $0x108] sm:$0xff]  ;;  %v65_v7 = vld [vmem:[%s4135_s1 + $0x100] sm:$0xff]  ;;  %v715_v12 = vcombine.high %v713_v5, %v713_v5 }
  0x2b   :  { %855 = vmatpush2.msra.mxu0 %v87_v17  ;;  %925 = vmatprep.subr.mxu1 %v152_v18  ;;  %v131_v8 = vld [vmem:[%s4135_s1 + $0x310] sm:$0xff]  ;;  %v130_v9 = vld [vmem:[%s4135_s1 + $0x308] sm:$0xff]  ;;  %v192_v10 = vld [vmem:[%s4135_s1 + $0x4f8] sm:$0xff] }
  0x2c   :  { %856 = vmatprep.subr.mxu0 %v86_v19  ;;  %926 = vmatpush2.msra.mxu1 %v151_v20  ;;  %v129_v11 = vld [vmem:[%s4135_s1 + $0x300] sm:$0xff]  ;;  %v191_v13 = vld [vmem:[%s4135_s1 + $0x4f0] sm:$0xff]  ;;  %v190_v14 = vld [vmem:[%s4135_s1 + $0x4e8] sm:$0xff] }
  0x2d   :  { %857 = vmatpush2.msra.mxu0 %v85_v21  ;;  %927 = vmatprep.subr.mxu1 %v150_v22  ;;  %v256_v15 = vld [vmem:[%s4135_s1 + $0x6f8] sm:$0xff]  ;;  %v189_v16 = vld [vmem:[%s4135_s1 + $0x4e0] sm:$0xff]  ;;  %v255_v17 = vld [vmem:[%s4135_s1 + $0x6f0] sm:$0xff] }
  0x2e   :  { %858 = vmatprep.subr.mxu0 %v84_v23  ;;  %928 = vmatpush2.msra.mxu1 %v149_v24  ;;  %v188_v18 = vld [vmem:[%s4135_s1 + $0x4d8] sm:$0xff]  ;;  %v254_v19 = vld [vmem:[%s4135_s1 + $0x6e8] sm:$0xff]  ;;  %v187_v20 = vld [vmem:[%s4135_s1 + $0x4d0] sm:$0xff] }
  0x2f   :  { %859 = vmatpush2.msra.mxu0 %v83_v25  ;;  %929 = vmatprep.subr.mxu1 %v148_v26  ;;  %v253_v21 = vld [vmem:[%s4135_s1 + $0x6e0] sm:$0xff]  ;;  %v186_v22 = vld [vmem:[%s4135_s1 + $0x4c8] sm:$0xff]  ;;  %v252_v23 = vld [vmem:[%s4135_s1 + $0x6d8] sm:$0xff] }
  0x30   :  { %860 = vmatprep.subr.mxu0 %v82_v30  ;;  %930 = vmatpush2.msra.mxu1 %v147_v31  ;;  %v185_v24 = vld [vmem:[%s4135_s1 + $0x4c0] sm:$0xff]  ;;  %v251_v25 = vld [vmem:[%s4135_s1 + $0x6d0] sm:$0xff]  ;;  %v184_v26 = vld [vmem:[%s4135_s1 + $0x4b8] sm:$0xff] }
  0x31   :  { %861 = vmatpush2.msra.mxu0 %v81_v32  ;;  %931 = vmatprep.subr.mxu1 %v146_v33  ;;  %v250_v27 = vld [vmem:[%s4135_s1 + $0x6c8] sm:$0xff]  ;;  %v183_v28 = vld [vmem:[%s4135_s1 + $0x4b0] sm:$0xff]  ;;  %v249_v29 = vld [vmem:[%s4135_s1 + $0x6c0] sm:$0xff] }
  0x32   :  { %862 = vmatprep.subr.mxu0 %v80_v34  ;;  %932 = vmatpush2.msra.mxu1 %v145_v35  ;;  %v182_v30 = vld [vmem:[%s4135_s1 + $0x4a8] sm:$0xff]  ;;  %v248_v31 = vld [vmem:[%s4135_s1 + $0x6b8] sm:$0xff]  ;;  %v181_v32 = vld [vmem:[%s4135_s1 + $0x4a0] sm:$0xff] }
  0x33   :  { %863 = vmatpush2.msra.mxu0 %v79_v36  ;;  %933 = vmatprep.subr.mxu1 %v144_v37  ;;  %v247_v33 = vld [vmem:[%s4135_s1 + $0x6b0] sm:$0xff]  ;;  %v180_v34 = vld [vmem:[%s4135_s1 + $0x498] sm:$0xff]  ;;  %v246_v35 = vld [vmem:[%s4135_s1 + $0x6a8] sm:$0xff] }
  0x34   :  { %864 = vmatprep.subr.mxu0 %v78_v40  ;;  %934 = vmatpush2.msra.mxu1 %v143_v41  ;;  %v179_v36 = vld [vmem:[%s4135_s1 + $0x490] sm:$0xff]  ;;  %v245_v37 = vld [vmem:[%s4135_s1 + $0x6a0] sm:$0xff]  ;;  %v178_v39 = vld [vmem:[%s4135_s1 + $0x488] sm:$0xff] }
  0x35   :  { %865 = vmatpush2.msra.mxu0 %v77_v42  ;;  %935 = vmatprep.subr.mxu1 %v142_v43  ;;  %v244_v40 = vld [vmem:[%s4135_s1 + $0x698] sm:$0xff]  ;;  %v177_v41 = vld [vmem:[%s4135_s1 + $0x480] sm:$0xff]  ;;  %v243_v42 = vld [vmem:[%s4135_s1 + $0x690] sm:$0xff] }
  0x36   :  { %866 = vmatprep.subr.mxu0 %v76_v44  ;;  %936 = vmatpush2.msra.mxu1 %v141_v45  ;;  %v176_v43 = vld [vmem:[%s4135_s1 + $0x478] sm:$0xff]  ;;  %v242_v44 = vld [vmem:[%s4135_s1 + $0x688] sm:$0xff]  ;;  %v175_v45 = vld [vmem:[%s4135_s1 + $0x470] sm:$0xff] }
  0x37   :  { %867 = vmatpush2.msra.mxu0 %v75_v46  ;;  %937 = vmatprep.subr.mxu1 %v140_v47  ;;  %v241_v46 = vld [vmem:[%s4135_s1 + $0x680] sm:$0xff]  ;;  %v174_v47 = vld [vmem:[%s4135_s1 + $0x468] sm:$0xff]  ;;  %v239_v51 = vld [vmem:[%s4135_s1 + $0x670] sm:$0xff] }
  0x38   :  { %868 = vmatprep.subr.mxu0 %v74_v49  ;;  %938 = vmatpush2.msra.mxu1 %v139_v50  ;;  %v240_v49 = vld [vmem:[%s4135_s1 + $0x678] sm:$0xff]  ;;  %v173_v50 = vld [vmem:[%s4135_s1 + $0x460] sm:$0xff]  ;;  %v235_v59 = vld [vmem:[%s4135_s1 + $0x650] sm:$0xff] }
  0x39   :  { %869 = vmatpush2.msra.mxu0 %v73_v52  ;;  %939 = vmatprep.subr.mxu1 %v138_v53  ;;  %v172_v52 = vld [vmem:[%s4135_s1 + $0x458] sm:$0xff]  ;;  %v238_v53 = vld [vmem:[%s4135_s1 + $0x668] sm:$0xff] }
  0x3a   :  { %870 = vmatprep.subr.mxu0 %v72_v54  ;;  %940 = vmatpush2.msra.mxu1 %v137_v55  ;;  %v171_v54 = vld [vmem:[%s4135_s1 + $0x450] sm:$0xff]  ;;  %v237_v55 = vld [vmem:[%s4135_s1 + $0x660] sm:$0xff] }
  0x3b   :  { %871 = vmatpush2.msra.mxu0 %v71_v56  ;;  %941 = vmatprep.subr.mxu1 %v136_v57  ;;  %v170_v56 = vld [vmem:[%s4135_s1 + $0x448] sm:$0xff]  ;;  %v236_v57 = vld [vmem:[%s4135_s1 + $0x658] sm:$0xff] }
  0x3c   :  { %872 = vmatprep.subr.mxu0 %v70_v60  ;;  %942 = vmatpush2.msra.mxu1 %v135_v61  ;;  %v168_v60 = vld [vmem:[%s4135_s1 + $0x438] sm:$0xff]  ;;  %v234_v61 = vld [vmem:[%s4135_s1 + $0x648] sm:$0xff] }
  0x3d   :  { %873 = vmatpush2.msra.mxu0 %v69_v62  ;;  %943 = vmatprep.subr.mxu1 %v134_v63  ;;  %v167_v62 = vld [vmem:[%s4135_s1 + $0x430] sm:$0xff]  ;;  %v233_v63 = vld [vmem:[%s4135_s1 + $0x640] sm:$0xff] }
  0x3e   :  { %874 = vmatprep.subr.mxu0 %v68_v0  ;;  %944 = vmatpush2.msra.mxu1 %v133_v1  ;;  %v166_v0 = vld [vmem:[%s4135_s1 + $0x428] sm:$0xff]  ;;  %v232_v1 = vld [vmem:[%s4135_s1 + $0x638] sm:$0xff] }
  0x3f   :  { %875 = vmatpush2.msra.mxu0 %v67_v2  ;;  %945 = vmatprep.subr.mxu1 %v132_v3  ;;  %v165_v2 = vld [vmem:[%s4135_s1 + $0x420] sm:$0xff]  ;;  %v231_v3 = vld [vmem:[%s4135_s1 + $0x630] sm:$0xff] }
  0x40   :  { %876 = vmatprep.subr.mxu0 %v66_v6  ;;  %878 = vmatprep.mubr.f32.mxu0 %v714_v4  ;;  %v164_v4 = vld [vmem:[%s4135_s1 + $0x418] sm:$0xff]  ;;  %v163_v6 = vld [vmem:[%s4135_s1 + $0x410] sm:$0xff] }
  0x41   :  { %877 = vmatpush2.msra.mxu0 %v65_v7  ;;  %946 = vmatpush2.msra.mxu1 %v131_v8  ;;  %v229_v7 = vld [vmem:[%s4135_s1 + $0x620] sm:$0xff]  ;;  %v162_v8 = vld [vmem:[%s4135_s1 + $0x408] sm:$0xff] }
  0x42   :  { %879 = vmatmul.mubr.f32.vlgmr.msra.gmra.mxu0 %v706_v58  ;;  %947 = vmatprep.subr.mxu1 %v130_v9  ;;  %v169_v58 = vld [vmem:[%s4135_s1 + $0x440] sm:$0xff]  ;;  %v228_v9 = vld [vmem:[%s4135_s1 + $0x618] sm:$0xff] }
  0x43   :  { %956 = vmatprep.subr.mxu0 %v192_v10  ;;  %948 = vmatpush2.msra.mxu1 %v129_v11  ;;  %v161_v10 = vld [vmem:[%s4135_s1 + $0x400] sm:$0xff]  ;;  %v227_v11 = vld [vmem:[%s4135_s1 + $0x610] sm:$0xff] }
  0x44   :  { %949 = vmatprep.mubr.f32.mxu1 %v715_v12  ;;  %957 = vmatpush1.msra.mxu0 %v191_v13  ;;  %v224_v12 = vld [vmem:[%s4135_s1 + $0x5f8] sm:$0xff]  ;;  %v226_v13 = vld [vmem:[%s4135_s1 + $0x608] sm:$0xff] }
  0x45   :  { %950 = vmatmul.mubr.f32.vlgmr.msra.gmra.mxu1 %v713_v5  ;;  %958 = vmatprep.subr.mxu0 %v190_v14  ;;  %v230_v5 = vld [vmem:[%s4135_s1 + $0x628] sm:$0xff]  ;;  %v223_v14 = vld [vmem:[%s4135_s1 + $0x5f0] sm:$0xff] }
  0x46   :  { %1027 = vmatprep.subr.mxu1 %v256_v15  ;;  %959 = vmatpush1.msra.mxu0 %v189_v16  ;;  %v225_v15 = vld [vmem:[%s4135_s1 + $0x600] sm:$0xff]  ;;  %v222_v16 = vld [vmem:[%s4135_s1 + $0x5e8] sm:$0xff] }
  0x47   :  { %1028 = vmatpush1.msra.mxu1 %v255_v17  ;;  %960 = vmatprep.subr.mxu0 %v188_v18  ;;  %v288_v17 = vld [vmem:[%s4135_s1 + $0x7f8] sm:$0xff]  ;;  %v221_v18 = vld [vmem:[%s4135_s1 + $0x5e0] sm:$0xff] }
  0x48   :  { %1029 = vmatprep.subr.mxu1 %v254_v19  ;;  %961 = vmatpush1.msra.mxu0 %v187_v20  ;;  %v287_v19 = vld [vmem:[%s4135_s1 + $0x7f0] sm:$0xff]  ;;  %v220_v20 = vld [vmem:[%s4135_s1 + $0x5d8] sm:$0xff] }
  0x49   :  { %1030 = vmatpush1.msra.mxu1 %v253_v21  ;;  %962 = vmatprep.subr.mxu0 %v186_v22  ;;  %v286_v21 = vld [vmem:[%s4135_s1 + $0x7e8] sm:$0xff]  ;;  %v219_v22 = vld [vmem:[%s4135_s1 + $0x5d0] sm:$0xff] }
  0x4a   :  { %1031 = vmatprep.subr.mxu1 %v252_v23  ;;  %963 = vmatpush1.msra.mxu0 %v185_v24  ;;  %v285_v23 = vld [vmem:[%s4135_s1 + $0x7e0] sm:$0xff]  ;;  %v218_v24 = vld [vmem:[%s4135_s1 + $0x5c8] sm:$0xff] }
  0x4b   :  { %1032 = vmatpush1.msra.mxu1 %v251_v25  ;;  %964 = vmatprep.subr.mxu0 %v184_v26  ;;  %v284_v25 = vld [vmem:[%s4135_s1 + $0x7d8] sm:$0xff]  ;;  %v217_v26 = vld [vmem:[%s4135_s1 + $0x5c0] sm:$0xff] }
  0x4c   :  { %1033 = vmatprep.subr.mxu1 %v250_v27  ;;  %965 = vmatpush1.msra.mxu0 %v183_v28  ;;  %v283_v27 = vld [vmem:[%s4135_s1 + $0x7d0] sm:$0xff]  ;;  %v216_v28 = vld [vmem:[%s4135_s1 + $0x5b8] sm:$0xff] }
  0x4d   :  { %1034 = vmatpush1.msra.mxu1 %v249_v29  ;;  %966 = vmatprep.subr.mxu0 %v182_v30  ;;  %v282_v29 = vld [vmem:[%s4135_s1 + $0x7c8] sm:$0xff]  ;;  %v215_v30 = vld [vmem:[%s4135_s1 + $0x5b0] sm:$0xff] }
  0x4e   :  { %1035 = vmatprep.subr.mxu1 %v248_v31  ;;  %967 = vmatpush1.msra.mxu0 %v181_v32  ;;  %v281_v31 = vld [vmem:[%s4135_s1 + $0x7c0] sm:$0xff]  ;;  %v214_v32 = vld [vmem:[%s4135_s1 + $0x5a8] sm:$0xff] }
  0x4f   :  { %1036 = vmatpush1.msra.mxu1 %v247_v33  ;;  %968 = vmatprep.subr.mxu0 %v180_v34  ;;  %v280_v33 = vld [vmem:[%s4135_s1 + $0x7b8] sm:$0xff]  ;;  %v213_v34 = vld [vmem:[%s4135_s1 + $0x5a0] sm:$0xff] }
  0x50   :  { %1037 = vmatprep.subr.mxu1 %v246_v35  ;;  %969 = vmatpush1.msra.mxu0 %v179_v36  ;;  %v279_v35 = vld [vmem:[%s4135_s1 + $0x7b0] sm:$0xff]  ;;  %v212_v36 = vld [vmem:[%s4135_s1 + $0x598] sm:$0xff] }
  0x51   :  { %1038 = vmatpush1.msra.mxu1 %v245_v37  ;;  %970 = vmatprep.subr.mxu0 %v178_v39  ;;  %v278_v37 = vld [vmem:[%s4135_s1 + $0x7a8] sm:$0xff]  ;;  %v211_v39 = vld [vmem:[%s4135_s1 + $0x590] sm:$0xff] }
  0x52   :  { %1039 = vmatprep.subr.mxu1 %v244_v40  ;;  %971 = vmatpush1.msra.mxu0 %v177_v41  ;;  %v277_v40 = vld [vmem:[%s4135_s1 + $0x7a0] sm:$0xff]  ;;  %v210_v41 = vld [vmem:[%s4135_s1 + $0x588] sm:$0xff] }
  0x53   :  { %1040 = vmatpush1.msra.mxu1 %v243_v42  ;;  %972 = vmatprep.subr.mxu0 %v176_v43  ;;  %v276_v42 = vld [vmem:[%s4135_s1 + $0x798] sm:$0xff]  ;;  %v209_v43 = vld [vmem:[%s4135_s1 + $0x580] sm:$0xff] }
  0x54   :  { %1041 = vmatprep.subr.mxu1 %v242_v44  ;;  %973 = vmatpush1.msra.mxu0 %v175_v45  ;;  %v275_v44 = vld [vmem:[%s4135_s1 + $0x790] sm:$0xff]  ;;  %v208_v45 = vld [vmem:[%s4135_s1 + $0x578] sm:$0xff] }
  0x55   :  { %1042 = vmatpush1.msra.mxu1 %v241_v46  ;;  %974 = vmatprep.subr.mxu0 %v174_v47  ;;  %v274_v46 = vld [vmem:[%s4135_s1 + $0x788] sm:$0xff]  ;;  %v207_v47 = vld [vmem:[%s4135_s1 + $0x570] sm:$0xff] }
  0x56   :  { %1043 = vmatprep.subr.mxu1 %v240_v49  ;;  %975 = vmatpush1.msra.mxu0 %v173_v50  ;;  %v273_v49 = vld [vmem:[%s4135_s1 + $0x780] sm:$0xff]  ;;  %v206_v50 = vld [vmem:[%s4135_s1 + $0x568] sm:$0xff] }
  0x57   :  { %1044 = vmatpush1.msra.mxu1 %v239_v51  ;;  %976 = vmatprep.subr.mxu0 %v172_v52  ;;  %v272_v51 = vld [vmem:[%s4135_s1 + $0x778] sm:$0xff]  ;;  %v205_v52 = vld [vmem:[%s4135_s1 + $0x560] sm:$0xff] }
  0x58   :  { %1045 = vmatprep.subr.mxu1 %v238_v53  ;;  %977 = vmatpush1.msra.mxu0 %v171_v54  ;;  %v271_v53 = vld [vmem:[%s4135_s1 + $0x770] sm:$0xff]  ;;  %v204_v54 = vld [vmem:[%s4135_s1 + $0x558] sm:$0xff] }
  0x59   :  { %1046 = vmatpush1.msra.mxu1 %v237_v55  ;;  %978 = vmatprep.subr.mxu0 %v170_v56  ;;  %v270_v55 = vld [vmem:[%s4135_s1 + $0x768] sm:$0xff]  ;;  %v203_v56 = vld [vmem:[%s4135_s1 + $0x550] sm:$0xff] }
  0x5a   :  { %1047 = vmatprep.subr.mxu1 %v236_v57  ;;  %979 = vmatpush1.msra.mxu0 %v169_v58  ;;  %v269_v57 = vld [vmem:[%s4135_s1 + $0x760] sm:$0xff]  ;;  %v202_v58 = vld [vmem:[%s4135_s1 + $0x548] sm:$0xff] }
  0x5b   :  { %1048 = vmatpush1.msra.mxu1 %v235_v59  ;;  %980 = vmatprep.subr.mxu0 %v168_v60  ;;  %v268_v59 = vld [vmem:[%s4135_s1 + $0x758] sm:$0xff]  ;;  %v201_v60 = vld [vmem:[%s4135_s1 + $0x540] sm:$0xff] }
  0x5c   :  { %1049 = vmatprep.subr.mxu1 %v234_v61  ;;  %981 = vmatpush1.msra.mxu0 %v167_v62  ;;  %v28_v61 = vld [vmem:[%s4134_s0 + $0x8] sm:$0xff]  ;;  %v267_v62 = vld [vmem:[%s4135_s1 + $0x750] sm:$0xff] }
  0x5d   :  { %1050 = vmatpush1.msra.mxu1 %v233_v63  ;;  %982 = vmatprep.subr.mxu0 %v166_v0  ;;  %v200_v63 = vld [vmem:[%s4135_s1 + $0x538] sm:$0xff]  ;;  %v266_v0 = vld [vmem:[%s4135_s1 + $0x748] sm:$0xff] }
  0x5e   :  { %1051 = vmatprep.subr.mxu1 %v232_v1  ;;  %983 = vmatpush1.msra.mxu0 %v165_v2  ;;  %v199_v1 = vld [vmem:[%s4135_s1 + $0x530] sm:$0xff]  ;;  %v265_v2 = vld [vmem:[%s4135_s1 + $0x740] sm:$0xff] }
  0x5f   :  { %1052 = vmatpush1.msra.mxu1 %v231_v3  ;;  %984 = vmatprep.subr.mxu0 %v164_v4  ;;  %v198_v3 = vld [vmem:[%s4135_s1 + $0x528] sm:$0xff]  ;;  %v716_v4 = vcombine.high %v28_v61, %v28_v61 }
  0x60   :  { %1053 = vmatprep.subr.mxu1 %v230_v5  ;;  %985 = vmatpush1.msra.mxu0 %v163_v6  ;;  %v264_v5 = vld [vmem:[%s4135_s1 + $0x738] sm:$0xff]  ;;  %v197_v6 = vld [vmem:[%s4135_s1 + $0x520] sm:$0xff] }
  0x61   :  { %1054 = vmatpush1.msra.mxu1 %v229_v7  ;;  %986 = vmatprep.subr.mxu0 %v162_v8  ;;  %v723_v7 = vrot.slane %v28_v61, %v2305_v48  ;;  %v263_v8 = vld [vmem:[%s4135_s1 + $0x730] sm:$0xff] }
  0x62   :  { %1055 = vmatprep.subr.mxu1 %v228_v9  ;;  %987 = vmatpush1.msra.mxu0 %v161_v10  ;;  %v196_v9 = vld [vmem:[%s4135_s1 + $0x518] sm:$0xff]  ;;  %v262_v10 = vld [vmem:[%s4135_s1 + $0x728] sm:$0xff]  ;;  %v367_v61 = vld [vmem:[%s4135_s1 + $0xa70] sm:$0xff] }
  0x63   :  { %1056 = vmatpush1.msra.mxu1 %v227_v11  ;;  %988 = vmatprep.subr.mxu0 %v224_v12  ;;  %v195_v11 = vld [vmem:[%s4135_s1 + $0x510] sm:$0xff]  ;;  %v261_v12 = vld [vmem:[%s4135_s1 + $0x720] sm:$0xff] }
  0x64   :  { %1057 = vmatprep.subr.mxu1 %v226_v13  ;;  %989 = vmatpush2.msra.mxu0 %v223_v14  ;;  %v194_v13 = vld [vmem:[%s4135_s1 + $0x508] sm:$0xff]  ;;  %v730_v14 = vrot.slane %v716_v4, %v2305_v48  ;;  %v297_v4 = vld [vmem:[%s4135_s1 + $0x840] sm:$0xff] }
  0x65   :  { %1058 = vmatpush1.msra.mxu1 %v225_v15  ;;  %990 = vmatprep.subr.mxu0 %v222_v16  ;;  %v260_v15 = vld [vmem:[%s4135_s1 + $0x718] sm:$0xff]  ;;  %v193_v16 = vld [vmem:[%s4135_s1 + $0x500] sm:$0xff] }
  0x66   :  { %1059 = vmatprep.subr.mxu1 %v288_v17  ;;  %991 = vmatpush2.msra.mxu0 %v221_v18  ;;  %v731_v17 = vcombine.high %v723_v7, %v723_v7  ;;  %v259_v18 = vld [vmem:[%s4135_s1 + $0x710] sm:$0xff] }
  0x67   :  { %1060 = vmatpush2.msra.mxu1 %v287_v19  ;;  %992 = vmatprep.subr.mxu0 %v220_v20  ;;  %v258_v19 = vld [vmem:[%s4135_s1 + $0x708] sm:$0xff]  ;;  %v320_v20 = vld [vmem:[%s4135_s1 + $0x8f8] sm:$0xff] }
  0x68   :  { %1061 = vmatprep.subr.mxu1 %v286_v21  ;;  %993 = vmatpush2.msra.mxu0 %v219_v22  ;;  %v257_v21 = vld [vmem:[%s4135_s1 + $0x700] sm:$0xff]  ;;  %v732_v22 = vcombine.high %v730_v14, %v730_v14 }
  0x69   :  { %1062 = vmatpush2.msra.mxu1 %v285_v23  ;;  %994 = vmatprep.subr.mxu0 %v218_v24  ;;  %v319_v23 = vld [vmem:[%s4135_s1 + $0x8f0] sm:$0xff]  ;;  %v318_v24 = vld [vmem:[%s4135_s1 + $0x8e8] sm:$0xff] }
  0x6a   :  { %1063 = vmatprep.subr.mxu1 %v284_v25  ;;  %995 = vmatpush2.msra.mxu0 %v217_v26  ;;  %v384_v25 = vld [vmem:[%s4135_s1 + $0xaf8] sm:$0xff]  ;;  %v317_v26 = vld [vmem:[%s4135_s1 + $0x8e0] sm:$0xff] }
  0x6b   :  { %1064 = vmatpush2.msra.mxu1 %v283_v27  ;;  %996 = vmatprep.subr.mxu0 %v216_v28  ;;  %v383_v27 = vld [vmem:[%s4135_s1 + $0xaf0] sm:$0xff]  ;;  %v316_v28 = vld [vmem:[%s4135_s1 + $0x8d8] sm:$0xff] }
  0x6c   :  { %1065 = vmatprep.subr.mxu1 %v282_v29  ;;  %997 = vmatpush2.msra.mxu0 %v215_v30  ;;  %v382_v29 = vld [vmem:[%s4135_s1 + $0xae8] sm:$0xff]  ;;  %v315_v30 = vld [vmem:[%s4135_s1 + $0x8d0] sm:$0xff] }
  0x6d   :  { %1066 = vmatpush2.msra.mxu1 %v281_v31  ;;  %998 = vmatprep.subr.mxu0 %v214_v32  ;;  %v381_v31 = vld [vmem:[%s4135_s1 + $0xae0] sm:$0xff]  ;;  %v314_v32 = vld [vmem:[%s4135_s1 + $0x8c8] sm:$0xff] }
  0x6e   :  { %1067 = vmatprep.subr.mxu1 %v280_v33  ;;  %999 = vmatpush2.msra.mxu0 %v213_v34  ;;  %v380_v33 = vld [vmem:[%s4135_s1 + $0xad8] sm:$0xff]  ;;  %v313_v34 = vld [vmem:[%s4135_s1 + $0x8c0] sm:$0xff] }
  0x6f   :  { %1068 = vmatpush2.msra.mxu1 %v279_v35  ;;  %1000 = vmatprep.subr.mxu0 %v212_v36  ;;  %v379_v35 = vld [vmem:[%s4135_s1 + $0xad0] sm:$0xff]  ;;  %v312_v36 = vld [vmem:[%s4135_s1 + $0x8b8] sm:$0xff] }
  0x70   :  { %1069 = vmatprep.subr.mxu1 %v278_v37  ;;  %1001 = vmatpush2.msra.mxu0 %v211_v39  ;;  %v378_v37 = vld [vmem:[%s4135_s1 + $0xac8] sm:$0xff]  ;;  %v311_v39 = vld [vmem:[%s4135_s1 + $0x8b0] sm:$0xff] }
  0x71   :  { %1070 = vmatpush2.msra.mxu1 %v277_v40  ;;  %1002 = vmatprep.subr.mxu0 %v210_v41  ;;  %v377_v40 = vld [vmem:[%s4135_s1 + $0xac0] sm:$0xff]  ;;  %v310_v41 = vld [vmem:[%s4135_s1 + $0x8a8] sm:$0xff] }
  0x72   :  { %1071 = vmatprep.subr.mxu1 %v276_v42  ;;  %1003 = vmatpush2.msra.mxu0 %v209_v43  ;;  %v376_v42 = vld [vmem:[%s4135_s1 + $0xab8] sm:$0xff]  ;;  %v309_v43 = vld [vmem:[%s4135_s1 + $0x8a0] sm:$0xff] }
  0x73   :  { %1072 = vmatpush2.msra.mxu1 %v275_v44  ;;  %1004 = vmatprep.subr.mxu0 %v208_v45  ;;  %v375_v44 = vld [vmem:[%s4135_s1 + $0xab0] sm:$0xff]  ;;  %v308_v45 = vld [vmem:[%s4135_s1 + $0x898] sm:$0xff] }
  0x74   :  { %1073 = vmatprep.subr.mxu1 %v274_v46  ;;  %1005 = vmatpush2.msra.mxu0 %v207_v47  ;;  %v374_v46 = vld [vmem:[%s4135_s1 + $0xaa8] sm:$0xff]  ;;  %v307_v47 = vld [vmem:[%s4135_s1 + $0x890] sm:$0xff] }
  0x75   :  { %1074 = vmatpush2.msra.mxu1 %v273_v49  ;;  %1006 = vmatprep.subr.mxu0 %v206_v50  ;;  %v373_v49 = vld [vmem:[%s4135_s1 + $0xaa0] sm:$0xff]  ;;  %v306_v50 = vld [vmem:[%s4135_s1 + $0x888] sm:$0xff] }
  0x76   :  { %1075 = vmatprep.subr.mxu1 %v272_v51  ;;  %1007 = vmatpush2.msra.mxu0 %v205_v52  ;;  %v372_v51 = vld [vmem:[%s4135_s1 + $0xa98] sm:$0xff]  ;;  %v305_v52 = vld [vmem:[%s4135_s1 + $0x880] sm:$0xff] }
  0x77   :  { %1076 = vmatpush2.msra.mxu1 %v271_v53  ;;  %1008 = vmatprep.subr.mxu0 %v204_v54  ;;  %v371_v53 = vld [vmem:[%s4135_s1 + $0xa90] sm:$0xff]  ;;  %v304_v54 = vld [vmem:[%s4135_s1 + $0x878] sm:$0xff] }
  0x78   :  { %1077 = vmatprep.subr.mxu1 %v270_v55  ;;  %1009 = vmatpush2.msra.mxu0 %v203_v56  ;;  %v370_v55 = vld [vmem:[%s4135_s1 + $0xa88] sm:$0xff]  ;;  %v303_v56 = vld [vmem:[%s4135_s1 + $0x870] sm:$0xff] }
  0x79   :  { %1078 = vmatpush2.msra.mxu1 %v269_v57  ;;  %1010 = vmatprep.subr.mxu0 %v202_v58  ;;  %v369_v57 = vld [vmem:[%s4135_s1 + $0xa80] sm:$0xff]  ;;  %v302_v58 = vld [vmem:[%s4135_s1 + $0x868] sm:$0xff] }
  0x7a   :  { %1079 = vmatprep.subr.mxu1 %v268_v59  ;;  %1011 = vmatpush2.msra.mxu0 %v201_v60  ;;  %v368_v59 = vld [vmem:[%s4135_s1 + $0xa78] sm:$0xff]  ;;  %v301_v60 = vld [vmem:[%s4135_s1 + $0x860] sm:$0xff] }
  0x7b   :  { %1080 = vmatpush2.msra.mxu1 %v267_v62  ;;  %1012 = vmatprep.subr.mxu0 %v200_v63  ;;  %v300_v62 = vld [vmem:[%s4135_s1 + $0x858] sm:$0xff]  ;;  %v366_v63 = vld [vmem:[%s4135_s1 + $0xa68] sm:$0xff] }
  0x7c   :  { %1081 = vmatprep.subr.mxu1 %v266_v0  ;;  %1013 = vmatpush2.msra.mxu0 %v199_v1  ;;  %v299_v0 = vld [vmem:[%s4135_s1 + $0x850] sm:$0xff]  ;;  %v365_v1 = vld [vmem:[%s4135_s1 + $0xa60] sm:$0xff] }
  0x7d   :  { %1082 = vmatpush2.msra.mxu1 %v265_v2  ;;  %1014 = vmatprep.subr.mxu0 %v198_v3  ;;  %v298_v2 = vld [vmem:[%s4135_s1 + $0x848] sm:$0xff]  ;;  %v364_v3 = vld [vmem:[%s4135_s1 + $0xa58] sm:$0xff] }
  0x7e   :  { %1083 = vmatprep.subr.mxu1 %v264_v5  ;;  %1015 = vmatpush2.msra.mxu0 %v197_v6  ;;  %v363_v5 = vld [vmem:[%s4135_s1 + $0xa50] sm:$0xff]  ;;  %v296_v6 = vld [vmem:[%s4135_s1 + $0x838] sm:$0xff] }
  0x7f   :  { %1084 = vmatpush2.msra.mxu1 %v263_v8  ;;  %1016 = vmatprep.subr.mxu0 %v196_v9  ;;  %v295_v8 = vld [vmem:[%s4135_s1 + $0x830] sm:$0xff]  ;;  %v361_v9 = vld [vmem:[%s4135_s1 + $0xa40] sm:$0xff] }
  0x80   :  { %1085 = vmatprep.subr.mxu1 %v262_v10  ;;  %1017 = vmatpush2.msra.mxu0 %v195_v11  ;;  %v294_v10 = vld [vmem:[%s4135_s1 + $0x828] sm:$0xff]  ;;  %v360_v11 = vld [vmem:[%s4135_s1 + $0xa38] sm:$0xff] }
  0x81   :  { %1086 = vmatpush2.msra.mxu1 %v261_v12  ;;  %1018 = vmatprep.subr.mxu0 %v194_v13  ;;  %v293_v12 = vld [vmem:[%s4135_s1 + $0x820] sm:$0xff]  ;;  %v359_v13 = vld [vmem:[%s4135_s1 + $0xa30] sm:$0xff] }
  0x82   :  { %1087 = vmatprep.subr.mxu1 %v260_v15  ;;  %1019 = vmatpush2.msra.mxu0 %v193_v16  ;;  %v358_v15 = vld [vmem:[%s4135_s1 + $0xa28] sm:$0xff]  ;;  %v291_v16 = vld [vmem:[%s4135_s1 + $0x810] sm:$0xff] }
  0x83   :  { %1020 = vmatprep.mubr.f32.mxu0 %v731_v17  ;;  %1088 = vmatpush2.msra.mxu1 %v259_v18  ;;  %v357_v17 = vld [vmem:[%s4135_s1 + $0xa20] sm:$0xff]  ;;  %v290_v18 = vld [vmem:[%s4135_s1 + $0x808] sm:$0xff] }
  0x84   :  { %1021 = vmatmul.mubr.f32.vlgmr.msra.gmra.mxu0 %v723_v7  ;;  %1089 = vmatprep.subr.mxu1 %v258_v19  ;;  %v362_v7 = vld [vmem:[%s4135_s1 + $0xa48] sm:$0xff]  ;;  %v356_v19 = vld [vmem:[%s4135_s1 + $0xa18] sm:$0xff] }
  0x85   :  { %1098 = vmatprep.subr.mxu0 %v320_v20  ;;  %1090 = vmatpush2.msra.mxu1 %v257_v21  ;;  %v289_v20 = vld [vmem:[%s4135_s1 + $0x800] sm:$0xff]  ;;  %v355_v21 = vld [vmem:[%s4135_s1 + $0xa10] sm:$0xff] }
  0x86   :  { %1091 = vmatprep.mubr.f32.mxu1 %v732_v22  ;;  %1099 = vmatpush1.msra.mxu0 %v319_v23  ;;  %v352_v22 = vld [vmem:[%s4135_s1 + $0x9f8] sm:$0xff]  ;;  %v354_v23 = vld [vmem:[%s4135_s1 + $0xa08] sm:$0xff] }
  0x87   :  { %1092 = vmatmul.mubr.f32.vlgmr.msra.gmra.mxu1 %v730_v14  ;;  %1100 = vmatprep.subr.mxu0 %v318_v24  ;;  %v292_v14 = vld [vmem:[%s4135_s1 + $0x818] sm:$0xff]  ;;  %v351_v24 = vld [vmem:[%s4135_s1 + $0x9f0] sm:$0xff] }
  0x88   :  { %1169 = vmatprep.subr.mxu1 %v384_v25  ;;  %1101 = vmatpush1.msra.mxu0 %v317_v26  ;;  %v353_v25 = vld [vmem:[%s4135_s1 + $0xa00] sm:$0xff]  ;;  %v350_v26 = vld [vmem:[%s4135_s1 + $0x9e8] sm:$0xff] }
  0x89   :  { %1170 = vmatpush1.msra.mxu1 %v383_v27  ;;  %1102 = vmatprep.subr.mxu0 %v316_v28  ;;  %v416_v27 = vld [vmem:[%s4135_s1 + $0xbf8] sm:$0xff]  ;;  %v349_v28 = vld [vmem:[%s4135_s1 + $0x9e0] sm:$0xff] }
  0x8a   :  { %1171 = vmatprep.subr.mxu1 %v382_v29  ;;  %1103 = vmatpush1.msra.mxu0 %v315_v30  ;;  %v415_v29 = vld [vmem:[%s4135_s1 + $0xbf0] sm:$0xff]  ;;  %v348_v30 = vld [vmem:[%s4135_s1 + $0x9d8] sm:$0xff] }
  0x8b   :  { %1172 = vmatpush1.msra.mxu1 %v381_v31  ;;  %1104 = vmatprep.subr.mxu0 %v314_v32  ;;  %v414_v31 = vld [vmem:[%s4135_s1 + $0xbe8] sm:$0xff]  ;;  %v347_v32 = vld [vmem:[%s4135_s1 + $0x9d0] sm:$0xff] }
  0x8c   :  { %1173 = vmatprep.subr.mxu1 %v380_v33  ;;  %1105 = vmatpush1.msra.mxu0 %v313_v34  ;;  %v413_v33 = vld [vmem:[%s4135_s1 + $0xbe0] sm:$0xff]  ;;  %v346_v34 = vld [vmem:[%s4135_s1 + $0x9c8] sm:$0xff] }
  0x8d   :  { %1174 = vmatpush1.msra.mxu1 %v379_v35  ;;  %1106 = vmatprep.subr.mxu0 %v312_v36  ;;  %v412_v35 = vld [vmem:[%s4135_s1 + $0xbd8] sm:$0xff]  ;;  %v345_v36 = vld [vmem:[%s4135_s1 + $0x9c0] sm:$0xff] }
  0x8e   :  { %1175 = vmatprep.subr.mxu1 %v378_v37  ;;  %1107 = vmatpush1.msra.mxu0 %v311_v39  ;;  %v411_v37 = vld [vmem:[%s4135_s1 + $0xbd0] sm:$0xff]  ;;  %v344_v39 = vld [vmem:[%s4135_s1 + $0x9b8] sm:$0xff] }
  0x8f   :  { %1176 = vmatpush1.msra.mxu1 %v377_v40  ;;  %1108 = vmatprep.subr.mxu0 %v310_v41  ;;  %v410_v40 = vld [vmem:[%s4135_s1 + $0xbc8] sm:$0xff]  ;;  %v343_v41 = vld [vmem:[%s4135_s1 + $0x9b0] sm:$0xff] }
  0x90   :  { %1177 = vmatprep.subr.mxu1 %v376_v42  ;;  %1109 = vmatpush1.msra.mxu0 %v309_v43  ;;  %v409_v42 = vld [vmem:[%s4135_s1 + $0xbc0] sm:$0xff]  ;;  %v342_v43 = vld [vmem:[%s4135_s1 + $0x9a8] sm:$0xff] }
  0x91   :  { %1178 = vmatpush1.msra.mxu1 %v375_v44  ;;  %1110 = vmatprep.subr.mxu0 %v308_v45  ;;  %v408_v44 = vld [vmem:[%s4135_s1 + $0xbb8] sm:$0xff]  ;;  %v341_v45 = vld [vmem:[%s4135_s1 + $0x9a0] sm:$0xff] }
  0x92   :  { %1179 = vmatprep.subr.mxu1 %v374_v46  ;;  %1111 = vmatpush1.msra.mxu0 %v307_v47  ;;  %v407_v46 = vld [vmem:[%s4135_s1 + $0xbb0] sm:$0xff]  ;;  %v340_v47 = vld [vmem:[%s4135_s1 + $0x998] sm:$0xff] }
  0x93   :  { %1180 = vmatpush1.msra.mxu1 %v373_v49  ;;  %1112 = vmatprep.subr.mxu0 %v306_v50  ;;  %v406_v49 = vld [vmem:[%s4135_s1 + $0xba8] sm:$0xff]  ;;  %v339_v50 = vld [vmem:[%s4135_s1 + $0x990] sm:$0xff] }
  0x94   :  { %1181 = vmatprep.subr.mxu1 %v372_v51  ;;  %1113 = vmatpush1.msra.mxu0 %v305_v52  ;;  %v405_v51 = vld [vmem:[%s4135_s1 + $0xba0] sm:$0xff]  ;;  %v338_v52 = vld [vmem:[%s4135_s1 + $0x988] sm:$0xff] }
  0x95   :  { %1182 = vmatpush1.msra.mxu1 %v371_v53  ;;  %1114 = vmatprep.subr.mxu0 %v304_v54  ;;  %v404_v53 = vld [vmem:[%s4135_s1 + $0xb98] sm:$0xff]  ;;  %v337_v54 = vld [vmem:[%s4135_s1 + $0x980] sm:$0xff] }
  0x96   :  { %1183 = vmatprep.subr.mxu1 %v370_v55  ;;  %1115 = vmatpush1.msra.mxu0 %v303_v56  ;;  %v403_v55 = vld [vmem:[%s4135_s1 + $0xb90] sm:$0xff]  ;;  %v336_v56 = vld [vmem:[%s4135_s1 + $0x978] sm:$0xff] }
  0x97   :  { %1184 = vmatpush1.msra.mxu1 %v369_v57  ;;  %1116 = vmatprep.subr.mxu0 %v302_v58  ;;  %v402_v57 = vld [vmem:[%s4135_s1 + $0xb88] sm:$0xff]  ;;  %v335_v58 = vld [vmem:[%s4135_s1 + $0x970] sm:$0xff] }
  0x98   :  { %1185 = vmatprep.subr.mxu1 %v368_v59  ;;  %1117 = vmatpush1.msra.mxu0 %v301_v60  ;;  %v401_v59 = vld [vmem:[%s4135_s1 + $0xb80] sm:$0xff]  ;;  %v334_v60 = vld [vmem:[%s4135_s1 + $0x968] sm:$0xff] }
  0x99   :  { %1186 = vmatpush1.msra.mxu1 %v367_v61  ;;  %1118 = vmatprep.subr.mxu0 %v300_v62  ;;  %v400_v61 = vld [vmem:[%s4135_s1 + $0xb78] sm:$0xff]  ;;  %v333_v62 = vld [vmem:[%s4135_s1 + $0x960] sm:$0xff] }
  0x9a   :  { %1187 = vmatprep.subr.mxu1 %v366_v63  ;;  %1119 = vmatpush1.msra.mxu0 %v299_v0  ;;  %v399_v63 = vld [vmem:[%s4135_s1 + $0xb70] sm:$0xff]  ;;  %v332_v0 = vld [vmem:[%s4135_s1 + $0x958] sm:$0xff] }
  0x9b   :  { %1188 = vmatpush1.msra.mxu1 %v365_v1  ;;  %1120 = vmatprep.subr.mxu0 %v298_v2  ;;  %v398_v1 = vld [vmem:[%s4135_s1 + $0xb68] sm:$0xff]  ;;  %v331_v2 = vld [vmem:[%s4135_s1 + $0x950] sm:$0xff] }
  0x9c   :  { %1189 = vmatprep.subr.mxu1 %v364_v3  ;;  %1121 = vmatpush1.msra.mxu0 %v297_v4  ;;  %v397_v3 = vld [vmem:[%s4135_s1 + $0xb60] sm:$0xff]  ;;  %v330_v4 = vld [vmem:[%s4135_s1 + $0x948] sm:$0xff] }
  0x9d   :  { %1190 = vmatpush1.msra.mxu1 %v363_v5  ;;  %1122 = vmatprep.subr.mxu0 %v296_v6  ;;  %v396_v5 = vld [vmem:[%s4135_s1 + $0xb58] sm:$0xff]  ;;  %v329_v6 = vld [vmem:[%s4135_s1 + $0x940] sm:$0xff] }
  0x9e   :  { %1191 = vmatprep.subr.mxu1 %v362_v7  ;;  %1123 = vmatpush1.msra.mxu0 %v295_v8  ;;  %v29_v7 = vld [vmem:[%s4134_s0 + $0x10] sm:$0xff] }
  0x9f   :  { %1192 = vmatpush1.msra.mxu1 %v361_v9  ;;  %1124 = vmatprep.subr.mxu0 %v294_v10  ;;  %v395_v8 = vld [vmem:[%s4135_s1 + $0xb50] sm:$0xff]  ;;  %v328_v9 = vld [vmem:[%s4135_s1 + $0x938] sm:$0xff]  ;;  %v394_v10 = vld [vmem:[%s4135_s1 + $0xb48] sm:$0xff] }
  0xa0   :  { %1193 = vmatprep.subr.mxu1 %v360_v11  ;;  %1125 = vmatpush1.msra.mxu0 %v293_v12  ;;  %v327_v11 = vld [vmem:[%s4135_s1 + $0x930] sm:$0xff]  ;;  %v393_v12 = vld [vmem:[%s4135_s1 + $0xb40] sm:$0xff] }
  0xa1   :  { %1194 = vmatpush1.msra.mxu1 %v359_v13  ;;  %1126 = vmatprep.subr.mxu0 %v292_v14  ;;  %v326_v13 = vld [vmem:[%s4135_s1 + $0x928] sm:$0xff]  ;;  %v733_v14 = vcombine.high %v29_v7, %v29_v7 }
  0xa2   :  { %1195 = vmatprep.subr.mxu1 %v358_v15  ;;  %1127 = vmatpush1.msra.mxu0 %v291_v16  ;;  %v392_v15 = vld [vmem:[%s4135_s1 + $0xb38] sm:$0xff]  ;;  %v325_v16 = vld [vmem:[%s4135_s1 + $0x920] sm:$0xff] }
  0xa3   :  { %1196 = vmatpush1.msra.mxu1 %v357_v17  ;;  %1128 = vmatprep.subr.mxu0 %v290_v18  ;;  %v740_v17 = vrot.slane %v29_v7, %v2305_v48  ;;  %v391_v18 = vld [vmem:[%s4135_s1 + $0xb30] sm:$0xff] }
  0xa4   :  { %1197 = vmatprep.subr.mxu1 %v356_v19  ;;  %1129 = vmatpush1.msra.mxu0 %v289_v20  ;;  %v324_v19 = vld [vmem:[%s4135_s1 + $0x918] sm:$0xff]  ;;  %v390_v20 = vld [vmem:[%s4135_s1 + $0xb28] sm:$0xff]  ;;  %v495_v7 = vld [vmem:[%s4135_s1 + $0xe70] sm:$0xff] }
  0xa5   :  { %1198 = vmatpush1.msra.mxu1 %v355_v21  ;;  %1130 = vmatprep.subr.mxu0 %v352_v22  ;;  %v323_v21 = vld [vmem:[%s4135_s1 + $0x910] sm:$0xff]  ;;  %v389_v22 = vld [vmem:[%s4135_s1 + $0xb20] sm:$0xff] }
  0xa6   :  { %1199 = vmatprep.subr.mxu1 %v354_v23  ;;  %1131 = vmatpush2.msra.mxu0 %v351_v24  ;;  %v322_v23 = vld [vmem:[%s4135_s1 + $0x908] sm:$0xff]  ;;  %v747_v24 = vrot.slane %v733_v14, %v2305_v48  ;;  %v425_v14 = vld [vmem:[%s4135_s1 + $0xc40] sm:$0xff] }
  0xa7   :  { %1200 = vmatpush1.msra.mxu1 %v353_v25  ;;  %1132 = vmatprep.subr.mxu0 %v350_v26  ;;  %v388_v25 = vld [vmem:[%s4135_s1 + $0xb18] sm:$0xff]  ;;  %v321_v26 = vld [vmem:[%s4135_s1 + $0x900] sm:$0xff] }
  0xa8   :  { %1201 = vmatprep.subr.mxu1 %v416_v27  ;;  %1133 = vmatpush2.msra.mxu0 %v349_v28  ;;  %v748_v27 = vcombine.high %v740_v17, %v740_v17  ;;  %v387_v28 = vld [vmem:[%s4135_s1 + $0xb10] sm:$0xff] }
  0xa9   :  { %1202 = vmatpush2.msra.mxu1 %v415_v29  ;;  %1134 = vmatprep.subr.mxu0 %v348_v30  ;;  %v386_v29 = vld [vmem:[%s4135_s1 + $0xb08] sm:$0xff]  ;;  %v448_v30 = vld [vmem:[%s4135_s1 + $0xcf8] sm:$0xff] }
  0xaa   :  { %1203 = vmatprep.subr.mxu1 %v414_v31  ;;  %1135 = vmatpush2.msra.mxu0 %v347_v32  ;;  %v385_v31 = vld [vmem:[%s4135_s1 + $0xb00] sm:$0xff]  ;;  %v749_v32 = vcombine.high %v747_v24, %v747_v24 }
  0xab   :  { %1204 = vmatpush2.msra.mxu1 %v413_v33  ;;  %1136 = vmatprep.subr.mxu0 %v346_v34  ;;  %v447_v33 = vld [vmem:[%s4135_s1 + $0xcf0] sm:$0xff]  ;;  %v446_v34 = vld [vmem:[%s4135_s1 + $0xce8] sm:$0xff] }
  0xac   :  { %1205 = vmatprep.subr.mxu1 %v412_v35  ;;  %1137 = vmatpush2.msra.mxu0 %v345_v36  ;;  %v512_v35 = vld [vmem:[%s4135_s1 + $0xef8] sm:$0xff]  ;;  %v445_v36 = vld [vmem:[%s4135_s1 + $0xce0] sm:$0xff] }
  0xad   :  { %1206 = vmatpush2.msra.mxu1 %v411_v37  ;;  %1138 = vmatprep.subr.mxu0 %v344_v39  ;;  %v511_v37 = vld [vmem:[%s4135_s1 + $0xef0] sm:$0xff]  ;;  %v444_v39 = vld [vmem:[%s4135_s1 + $0xcd8] sm:$0xff] }
  0xae   :  { %1207 = vmatprep.subr.mxu1 %v410_v40  ;;  %1139 = vmatpush2.msra.mxu0 %v343_v41  ;;  %v510_v40 = vld [vmem:[%s4135_s1 + $0xee8] sm:$0xff]  ;;  %v443_v41 = vld [vmem:[%s4135_s1 + $0xcd0] sm:$0xff] }
  0xaf   :  { %1208 = vmatpush2.msra.mxu1 %v409_v42  ;;  %1140 = vmatprep.subr.mxu0 %v342_v43  ;;  %v509_v42 = vld [vmem:[%s4135_s1 + $0xee0] sm:$0xff]  ;;  %v442_v43 = vld [vmem:[%s4135_s1 + $0xcc8] sm:$0xff] }
  0xb0   :  { %1209 = vmatprep.subr.mxu1 %v408_v44  ;;  %1141 = vmatpush2.msra.mxu0 %v341_v45  ;;  %v508_v44 = vld [vmem:[%s4135_s1 + $0xed8] sm:$0xff]  ;;  %v441_v45 = vld [vmem:[%s4135_s1 + $0xcc0] sm:$0xff] }
  0xb1   :  { %1210 = vmatpush2.msra.mxu1 %v407_v46  ;;  %1142 = vmatprep.subr.mxu0 %v340_v47  ;;  %v507_v46 = vld [vmem:[%s4135_s1 + $0xed0] sm:$0xff]  ;;  %v440_v47 = vld [vmem:[%s4135_s1 + $0xcb8] sm:$0xff] }
  0xb2   :  { %1211 = vmatprep.subr.mxu1 %v406_v49  ;;  %1143 = vmatpush2.msra.mxu0 %v339_v50  ;;  %v506_v49 = vld [vmem:[%s4135_s1 + $0xec8] sm:$0xff]  ;;  %v439_v50 = vld [vmem:[%s4135_s1 + $0xcb0] sm:$0xff] }
  0xb3   :  { %1212 = vmatpush2.msra.mxu1 %v405_v51  ;;  %1144 = vmatprep.subr.mxu0 %v338_v52  ;;  %v505_v51 = vld [vmem:[%s4135_s1 + $0xec0] sm:$0xff]  ;;  %v438_v52 = vld [vmem:[%s4135_s1 + $0xca8] sm:$0xff] }
  0xb4   :  { %1213 = vmatprep.subr.mxu1 %v404_v53  ;;  %1145 = vmatpush2.msra.mxu0 %v337_v54  ;;  %v504_v53 = vld [vmem:[%s4135_s1 + $0xeb8] sm:$0xff]  ;;  %v437_v54 = vld [vmem:[%s4135_s1 + $0xca0] sm:$0xff] }
  0xb5   :  { %1214 = vmatpush2.msra.mxu1 %v403_v55  ;;  %1146 = vmatprep.subr.mxu0 %v336_v56  ;;  %v503_v55 = vld [vmem:[%s4135_s1 + $0xeb0] sm:$0xff]  ;;  %v436_v56 = vld [vmem:[%s4135_s1 + $0xc98] sm:$0xff] }
  0xb6   :  { %1215 = vmatprep.subr.mxu1 %v402_v57  ;;  %1147 = vmatpush2.msra.mxu0 %v335_v58  ;;  %v502_v57 = vld [vmem:[%s4135_s1 + $0xea8] sm:$0xff]  ;;  %v435_v58 = vld [vmem:[%s4135_s1 + $0xc90] sm:$0xff] }
  0xb7   :  { %1216 = vmatpush2.msra.mxu1 %v401_v59  ;;  %1148 = vmatprep.subr.mxu0 %v334_v60  ;;  %v501_v59 = vld [vmem:[%s4135_s1 + $0xea0] sm:$0xff]  ;;  %v434_v60 = vld [vmem:[%s4135_s1 + $0xc88] sm:$0xff] }
  0xb8   :  { %1217 = vmatprep.subr.mxu1 %v400_v61  ;;  %1149 = vmatpush2.msra.mxu0 %v333_v62  ;;  %v500_v61 = vld [vmem:[%s4135_s1 + $0xe98] sm:$0xff]  ;;  %v433_v62 = vld [vmem:[%s4135_s1 + $0xc80] sm:$0xff] }
  0xb9   :  { %1218 = vmatpush2.msra.mxu1 %v399_v63  ;;  %1150 = vmatprep.subr.mxu0 %v332_v0  ;;  %v499_v63 = vld [vmem:[%s4135_s1 + $0xe90] sm:$0xff]  ;;  %v432_v0 = vld [vmem:[%s4135_s1 + $0xc78] sm:$0xff] }
  0xba   :  { %1219 = vmatprep.subr.mxu1 %v398_v1  ;;  %1151 = vmatpush2.msra.mxu0 %v331_v2  ;;  %v498_v1 = vld [vmem:[%s4135_s1 + $0xe88] sm:$0xff]  ;;  %v431_v2 = vld [vmem:[%s4135_s1 + $0xc70] sm:$0xff] }
  0xbb   :  { %1220 = vmatpush2.msra.mxu1 %v397_v3  ;;  %1152 = vmatprep.subr.mxu0 %v330_v4  ;;  %v497_v3 = vld [vmem:[%s4135_s1 + $0xe80] sm:$0xff]  ;;  %v430_v4 = vld [vmem:[%s4135_s1 + $0xc68] sm:$0xff] }
  0xbc   :  { %1221 = vmatprep.subr.mxu1 %v396_v5  ;;  %1153 = vmatpush2.msra.mxu0 %v329_v6  ;;  %v496_v5 = vld [vmem:[%s4135_s1 + $0xe78] sm:$0xff]  ;;  %v429_v6 = vld [vmem:[%s4135_s1 + $0xc60] sm:$0xff] }
  0xbd   :  { %1222 = vmatpush2.msra.mxu1 %v395_v8  ;;  %1154 = vmatprep.subr.mxu0 %v328_v9  ;;  %v428_v8 = vld [vmem:[%s4135_s1 + $0xc58] sm:$0xff]  ;;  %v494_v9 = vld [vmem:[%s4135_s1 + $0xe68] sm:$0xff] }
  0xbe   :  { %1223 = vmatprep.subr.mxu1 %v394_v10  ;;  %1155 = vmatpush2.msra.mxu0 %v327_v11  ;;  %v427_v10 = vld [vmem:[%s4135_s1 + $0xc50] sm:$0xff]  ;;  %v493_v11 = vld [vmem:[%s4135_s1 + $0xe60] sm:$0xff] }
  0xbf   :  { %1224 = vmatpush2.msra.mxu1 %v393_v12  ;;  %1156 = vmatprep.subr.mxu0 %v326_v13  ;;  %v426_v12 = vld [vmem:[%s4135_s1 + $0xc48] sm:$0xff]  ;;  %v492_v13 = vld [vmem:[%s4135_s1 + $0xe58] sm:$0xff] }
  0xc0   :  { %1225 = vmatprep.subr.mxu1 %v392_v15  ;;  %1157 = vmatpush2.msra.mxu0 %v325_v16 }
  0xc1   :  { %1226 = vmatpush2.msra.mxu1 %v391_v18  ;;  %1158 = vmatprep.subr.mxu0 %v324_v19 }
  0xc2   :  { %1227 = vmatprep.subr.mxu1 %v390_v20  ;;  %1159 = vmatpush2.msra.mxu0 %v323_v21 }
  0xc3   :  { %1228 = vmatpush2.msra.mxu1 %v389_v22  ;;  %1160 = vmatprep.subr.mxu0 %v322_v23 }
  0xc4   :  { %1229 = vmatprep.subr.mxu1 %v388_v25  ;;  %1161 = vmatpush2.msra.mxu0 %v321_v26 }
  0xc5   :  { %1162 = vmatprep.mubr.f32.mxu0 %v748_v27  ;;  %1230 = vmatpush2.msra.mxu1 %v387_v28 }
  0xc6   :  { %1163 = vmatmul.mubr.f32.vlgmr.msra.gmra.mxu0 %v740_v17  ;;  %1231 = vmatprep.subr.mxu1 %v386_v29 }
  0xc7   :  { %1240 = vmatprep.subr.mxu0 %v448_v30  ;;  %1232 = vmatpush2.msra.mxu1 %v385_v31 }
  0xc8   :  { %1233 = vmatprep.mubr.f32.mxu1 %v749_v32  ;;  %1241 = vmatpush1.msra.mxu0 %v447_v33 }
  0xc9   :  { %1234 = vmatmul.mubr.f32.vlgmr.msra.gmra.mxu1 %v747_v24  ;;  %1242 = vmatprep.subr.mxu0 %v446_v34 }
  0xca   :  { %1311 = vmatprep.subr.mxu1 %v512_v35  ;;  %1243 = vmatpush1.msra.mxu0 %v445_v36 }
  0xcb   :  { %1312 = vmatpush1.msra.mxu1 %v511_v37  ;;  %1244 = vmatprep.subr.mxu0 %v444_v39 }
  0xcc   :  { %1313 = vmatprep.subr.mxu1 %v510_v40  ;;  %1245 = vmatpush1.msra.mxu0 %v443_v41 }
  0xcd   :  { %1314 = vmatpush1.msra.mxu1 %v509_v42  ;;  %1246 = vmatprep.subr.mxu0 %v442_v43 }
  0xce   :  { %1315 = vmatprep.subr.mxu1 %v508_v44  ;;  %1247 = vmatpush1.msra.mxu0 %v441_v45 }
  0xcf   :  { %1316 = vmatpush1.msra.mxu1 %v507_v46  ;;  %1248 = vmatprep.subr.mxu0 %v440_v47 }
  0xd0   :  { %1317 = vmatprep.subr.mxu1 %v506_v49  ;;  %1249 = vmatpush1.msra.mxu0 %v439_v50 }
  0xd1   :  { %1318 = vmatpush1.msra.mxu1 %v505_v51  ;;  %1250 = vmatprep.subr.mxu0 %v438_v52 }
  0xd2   :  { %1319 = vmatprep.subr.mxu1 %v504_v53  ;;  %1251 = vmatpush1.msra.mxu0 %v437_v54 }
  0xd3   :  { %1320 = vmatpush1.msra.mxu1 %v503_v55  ;;  %1252 = vmatprep.subr.mxu0 %v436_v56 }
  0xd4   :  { %1321 = vmatprep.subr.mxu1 %v502_v57  ;;  %1253 = vmatpush1.msra.mxu0 %v435_v58 }
  0xd5   :  { %1322 = vmatpush1.msra.mxu1 %v501_v59  ;;  %1254 = vmatprep.subr.mxu0 %v434_v60 }
  0xd6   :  { %1323 = vmatprep.subr.mxu1 %v500_v61  ;;  %1255 = vmatpush1.msra.mxu0 %v433_v62 }
  0xd7   :  { %1324 = vmatpush1.msra.mxu1 %v499_v63  ;;  %1256 = vmatprep.subr.mxu0 %v432_v0 }
  0xd8   :  { %1325 = vmatprep.subr.mxu1 %v498_v1  ;;  %1257 = vmatpush1.msra.mxu0 %v431_v2 }
  0xd9   :  { %1326 = vmatpush1.msra.mxu1 %v497_v3  ;;  %1258 = vmatprep.subr.mxu0 %v430_v4 }
  0xda   :  { %1327 = vmatprep.subr.mxu1 %v496_v5  ;;  %1259 = vmatpush1.msra.mxu0 %v429_v6 }
  0xdb   :  { %1328 = vmatpush1.msra.mxu1 %v495_v7  ;;  %1260 = vmatprep.subr.mxu0 %v428_v8 }
  0xdc   :  { %12 = vsyncpa [#allocation3], 0  ;;  %1329 = vmatprep.subr.mxu1 %v494_v9  ;;  %1261 = vmatpush1.msra.mxu0 %v427_v10  ;;  %v491_v15 = vld [vmem:[%s4135_s1 + $0xe50] sm:$0xff]  ;;  %v424_v16 = vld [vmem:[%s4135_s1 + $0xc38] sm:$0xff]  ;;  %vm811_vm0 = vcmask 261120   ;;  %vm1939_vm1 = vmmov 0  }
  0xdd   :  { %1330 = vmatpush1.msra.mxu1 %v493_v11  ;;  %1262 = vmatprep.subr.mxu0 %v426_v12  ;;  %v490_v17 = vld [vmem:[%s4135_s1 + $0xe48] sm:$0xff]  ;;  %v423_v18 = vld [vmem:[%s4135_s1 + $0xc30] sm:$0xff]  ;;  %v489_v19 = vld [vmem:[%s4135_s1 + $0xe40] sm:$0xff]  ;;  %s1940_s20 = smov [#allocation2]  }
  0xde   :  { %1331 = vmatprep.subr.mxu1 %v492_v13  ;;  %1263 = vmatpush1.msra.mxu0 %v425_v14  ;;  %v422_v20 = vld [vmem:[%s4135_s1 + $0xc28] sm:$0xff]  ;;  %v488_v21 = vld [vmem:[%s4135_s1 + $0xe38] sm:$0xff]  ;;  %v421_v22 = vld [vmem:[%s4135_s1 + $0xc20] sm:$0xff] }
  0xdf   :  { %1332 = vmatpush1.msra.mxu1 %v491_v15  ;;  %1264 = vmatprep.subr.mxu0 %v424_v16  ;;  %v487_v23 = vld [vmem:[%s4135_s1 + $0xe30] sm:$0xff]  ;;  %v420_v24 = vld [vmem:[%s4135_s1 + $0xc18] sm:$0xff]  ;;  %v486_v25 = vld [vmem:[%s4135_s1 + $0xe28] sm:$0xff] }
  0xe0   :  { %1333 = vmatprep.subr.mxu1 %v490_v17  ;;  %1265 = vmatpush1.msra.mxu0 %v423_v18  ;;  %v419_v26 = vld [vmem:[%s4135_s1 + $0xc10] sm:$0xff]  ;;  %v485_v27 = vld [vmem:[%s4135_s1 + $0xe20] sm:$0xff]  ;;  %v418_v28 = vld [vmem:[%s4135_s1 + $0xc08] sm:$0xff] }
  0xe1   :  { %1334 = vmatpush1.msra.mxu1 %v489_v19  ;;  %1266 = vmatprep.subr.mxu0 %v422_v20  ;;  %v484_v29 = vld [vmem:[%s4135_s1 + $0xe18] sm:$0xff]  ;;  %v417_v30 = vld [vmem:[%s4135_s1 + $0xc00] sm:$0xff]  ;;  %v483_v31 = vld [vmem:[%s4135_s1 + $0xe10] sm:$0xff] }
  0xe2   :  { %1335 = vmatprep.subr.mxu1 %v488_v21  ;;  %1267 = vmatpush1.msra.mxu0 %v421_v22  ;;  %v480_v32 = vld [vmem:[%s4135_s1 + $0xdf8] sm:$0xff]  ;;  %v482_v33 = vld [vmem:[%s4135_s1 + $0xe08] sm:$0xff]  ;;  %v479_v34 = vld [vmem:[%s4135_s1 + $0xdf0] sm:$0xff] }
  0xe3   :  { %1336 = vmatpush1.msra.mxu1 %v487_v23  ;;  %1268 = vmatprep.subr.mxu0 %v420_v24  ;;  %v481_v35 = vld [vmem:[%s4135_s1 + $0xe00] sm:$0xff]  ;;  %v478_v36 = vld [vmem:[%s4135_s1 + $0xde8] sm:$0xff]  ;;  %v544_v37 = vld [vmem:[%s4135_s1 + $0xff8] sm:$0xff] }
  0xe4   :  { %1337 = vmatprep.subr.mxu1 %v486_v25  ;;  %1269 = vmatpush1.msra.mxu0 %v419_v26  ;;  %v477_v39 = vld [vmem:[%s4135_s1 + $0xde0] sm:$0xff]  ;;  %v543_v40 = vld [vmem:[%s4135_s1 + $0xff0] sm:$0xff]  ;;  %v476_v41 = vld [vmem:[%s4135_s1 + $0xdd8] sm:$0xff] }
  0xe5   :  { %1338 = vmatpush1.msra.mxu1 %v485_v27  ;;  %1270 = vmatprep.subr.mxu0 %v418_v28  ;;  %v542_v42 = vld [vmem:[%s4135_s1 + $0xfe8] sm:$0xff]  ;;  %v475_v43 = vld [vmem:[%s4135_s1 + $0xdd0] sm:$0xff]  ;;  %v541_v44 = vld [vmem:[%s4135_s1 + $0xfe0] sm:$0xff] }
  0xe6   :  { %1339 = vmatprep.subr.mxu1 %v484_v29  ;;  %1271 = vmatpush1.msra.mxu0 %v417_v30  ;;  %v474_v45 = vld [vmem:[%s4135_s1 + $0xdc8] sm:$0xff]  ;;  %v540_v46 = vld [vmem:[%s4135_s1 + $0xfd8] sm:$0xff]  ;;  %v473_v47 = vld [vmem:[%s4135_s1 + $0xdc0] sm:$0xff] }
  0xe7   :  { %1340 = vmatpush1.msra.mxu1 %v483_v31  ;;  %1272 = vmatprep.subr.mxu0 %v480_v32  ;;  %v539_v49 = vld [vmem:[%s4135_s1 + $0xfd0] sm:$0xff]  ;;  %v472_v50 = vld [vmem:[%s4135_s1 + $0xdb8] sm:$0xff]  ;;  %v538_v51 = vld [vmem:[%s4135_s1 + $0xfc8] sm:$0xff] }
  0xe8   :  { %1341 = vmatprep.subr.mxu1 %v482_v33  ;;  %1273 = vmatpush2.msra.mxu0 %v479_v34  ;;  %v471_v52 = vld [vmem:[%s4135_s1 + $0xdb0] sm:$0xff]  ;;  %v537_v53 = vld [vmem:[%s4135_s1 + $0xfc0] sm:$0xff]  ;;  %v470_v54 = vld [vmem:[%s4135_s1 + $0xda8] sm:$0xff] }
  0xe9   :  { %1342 = vmatpush1.msra.mxu1 %v481_v35  ;;  %1274 = vmatprep.subr.mxu0 %v478_v36  ;;  %v536_v55 = vld [vmem:[%s4135_s1 + $0xfb8] sm:$0xff]  ;;  %v469_v56 = vld [vmem:[%s4135_s1 + $0xda0] sm:$0xff]  ;;  %v535_v57 = vld [vmem:[%s4135_s1 + $0xfb0] sm:$0xff] }
  0xea   :  { %1343 = vmatprep.subr.mxu1 %v544_v37  ;;  %1275 = vmatpush2.msra.mxu0 %v477_v39  ;;  %v468_v58 = vld [vmem:[%s4135_s1 + $0xd98] sm:$0xff]  ;;  %v534_v59 = vld [vmem:[%s4135_s1 + $0xfa8] sm:$0xff]  ;;  %v467_v60 = vld [vmem:[%s4135_s1 + $0xd90] sm:$0xff] }
  0xeb   :  { %1344 = vmatpush2.msra.mxu1 %v543_v40  ;;  %1276 = vmatprep.subr.mxu0 %v476_v41  ;;  %v533_v61 = vld [vmem:[%s4135_s1 + $0xfa0] sm:$0xff]  ;;  %v466_v62 = vld [vmem:[%s4135_s1 + $0xd88] sm:$0xff]  ;;  %v532_v63 = vld [vmem:[%s4135_s1 + $0xf98] sm:$0xff] }
  0xec   :  { %1345 = vmatprep.subr.mxu1 %v542_v42  ;;  %1277 = vmatpush2.msra.mxu0 %v475_v43  ;;  %v465_v0 = vld [vmem:[%s4135_s1 + $0xd80] sm:$0xff]  ;;  %v531_v1 = vld [vmem:[%s4135_s1 + $0xf90] sm:$0xff]  ;;  %v464_v2 = vld [vmem:[%s4135_s1 + $0xd78] sm:$0xff] }
  0xed   :  { %1346 = vmatpush2.msra.mxu1 %v541_v44  ;;  %1278 = vmatprep.subr.mxu0 %v474_v45  ;;  %v530_v3 = vld [vmem:[%s4135_s1 + $0xf88] sm:$0xff]  ;;  %v463_v4 = vld [vmem:[%s4135_s1 + $0xd70] sm:$0xff]  ;;  %v529_v5 = vld [vmem:[%s4135_s1 + $0xf80] sm:$0xff] }
  0xee   :  { %1347 = vmatprep.subr.mxu1 %v540_v46  ;;  %1279 = vmatpush2.msra.mxu0 %v473_v47  ;;  %v462_v6 = vld [vmem:[%s4135_s1 + $0xd68] sm:$0xff]  ;;  %v528_v7 = vld [vmem:[%s4135_s1 + $0xf78] sm:$0xff]  ;;  %v461_v8 = vld [vmem:[%s4135_s1 + $0xd60] sm:$0xff] }
  0xef   :  { %1348 = vmatpush2.msra.mxu1 %v539_v49  ;;  %1280 = vmatprep.subr.mxu0 %v472_v50  ;;  %v527_v9 = vld [vmem:[%s4135_s1 + $0xf70] sm:$0xff]  ;;  %v460_v10 = vld [vmem:[%s4135_s1 + $0xd58] sm:$0xff]  ;;  %v526_v11 = vld [vmem:[%s4135_s1 + $0xf68] sm:$0xff] }
  0xf0   :  { %1349 = vmatprep.subr.mxu1 %v538_v51  ;;  %1281 = vmatpush2.msra.mxu0 %v471_v52  ;;  %v459_v12 = vld [vmem:[%s4135_s1 + $0xd50] sm:$0xff]  ;;  %v525_v13 = vld [vmem:[%s4135_s1 + $0xf60] sm:$0xff]  ;;  %v458_v14 = vld [vmem:[%s4135_s1 + $0xd48] sm:$0xff] }
  0xf1   :  { %1350 = vmatpush2.msra.mxu1 %v537_v53  ;;  %1282 = vmatprep.subr.mxu0 %v470_v54  ;;  %v524_v15 = vld [vmem:[%s4135_s1 + $0xf58] sm:$0xff]  ;;  %v457_v16 = vld [vmem:[%s4135_s1 + $0xd40] sm:$0xff]  ;;  %v523_v18 = vld [vmem:[%s4135_s1 + $0xf50] sm:$0xff] }
  0xf2   :  { %1351 = vmatprep.subr.mxu1 %v536_v55  ;;  %1283 = vmatpush2.msra.mxu0 %v469_v56  ;;  %v30_v17 = vld [vmem:[%s4134_s0 + $0x18] sm:$0xff]  ;;  %v522_v20 = vld [vmem:[%s4135_s1 + $0xf48] sm:$0xff]  ;;  %v455_v21 = vld [vmem:[%s4135_s1 + $0xd30] sm:$0xff] }
  0xf3   :  { %1352 = vmatpush2.msra.mxu1 %v535_v57  ;;  %1284 = vmatprep.subr.mxu0 %v468_v58  ;;  %v456_v19 = vld [vmem:[%s4135_s1 + $0xd38] sm:$0xff]  ;;  %v521_v22 = vld [vmem:[%s4135_s1 + $0xf40] sm:$0xff]  ;;  %v454_v23 = vld [vmem:[%s4135_s1 + $0xd28] sm:$0xff]  ;;  %v750_v24 = vcombine.high %v30_v17, %v30_v17  ;;  %v757_v27 = vrot.slane %v30_v17, %v2305_v48 }
  0xf4   :  { %1353 = vmatprep.subr.mxu1 %v534_v59  ;;  %1285 = vmatpush2.msra.mxu0 %v467_v60  ;;  %v520_v25 = vld [vmem:[%s4135_s1 + $0xf38] sm:$0xff]  ;;  %v453_v26 = vld [vmem:[%s4135_s1 + $0xd20] sm:$0xff]  ;;  %v519_v28 = vld [vmem:[%s4135_s1 + $0xf30] sm:$0xff] }
  0xf5   :  { %1354 = vmatpush2.msra.mxu1 %v533_v61  ;;  %1286 = vmatprep.subr.mxu0 %v466_v62  ;;  %v452_v29 = vld [vmem:[%s4135_s1 + $0xd18] sm:$0xff]  ;;  %v518_v30 = vld [vmem:[%s4135_s1 + $0xf28] sm:$0xff]  ;;  %v451_v31 = vld [vmem:[%s4135_s1 + $0xd10] sm:$0xff]  ;;  %v764_v34 = vrot.slane %v750_v24, %v2305_v48  ;;  %v765_v37 = vcombine.high %v757_v27, %v757_v27 }
  0xf6   :  { %1355 = vmatprep.subr.mxu1 %v532_v63  ;;  %1287 = vmatpush2.msra.mxu0 %v465_v0  ;;  %v517_v32 = vld [vmem:[%s4135_s1 + $0xf20] sm:$0xff]  ;;  %v450_v33 = vld [vmem:[%s4135_s1 + $0xd08] sm:$0xff]  ;;  %v516_v35 = vld [vmem:[%s4135_s1 + $0xf18] sm:$0xff] }
  0xf7   :  { %1356 = vmatpush2.msra.mxu1 %v531_v1  ;;  %1288 = vmatprep.subr.mxu0 %v464_v2  ;;  %v449_v36 = vld [vmem:[%s4135_s1 + $0xd00] sm:$0xff]  ;;  %v515_v39 = vld [vmem:[%s4135_s1 + $0xf10] sm:$0xff]  ;;  %v514_v40 = vld [vmem:[%s4135_s1 + $0xf08] sm:$0xff]  ;;  %v766_v43 = vcombine.high %v764_v34, %v764_v34 }
  0xf8   :  { %1357 = vmatprep.subr.mxu1 %v530_v3  ;;  %1289 = vmatpush2.msra.mxu0 %v463_v4  ;;  %v576_v41 = vld [vmem:[%s4135_s1 + $0x10f8] sm:$0xff]  ;;  %v513_v42 = vld [vmem:[%s4135_s1 + $0xf00] sm:$0xff]  ;;  %v575_v44 = vld [vmem:[%s4135_s1 + $0x10f0] sm:$0xff] }
  0xf9   :  { %1358 = vmatpush2.msra.mxu1 %v529_v5  ;;  %1290 = vmatprep.subr.mxu0 %v462_v6  ;;  %v574_v45 = vld [vmem:[%s4135_s1 + $0x10e8] sm:$0xff]  ;;  %v640_v46 = vld [vmem:[%s4135_s1 + $0x12f8] sm:$0xff]  ;;  %v573_v47 = vld [vmem:[%s4135_s1 + $0x10e0] sm:$0xff] }
  0xfa   :  { %1359 = vmatprep.subr.mxu1 %v528_v7  ;;  %1291 = vmatpush2.msra.mxu0 %v461_v8  ;;  %v639_v49 = vld [vmem:[%s4135_s1 + $0x12f0] sm:$0xff]  ;;  %v572_v50 = vld [vmem:[%s4135_s1 + $0x10d8] sm:$0xff]  ;;  %v638_v51 = vld [vmem:[%s4135_s1 + $0x12e8] sm:$0xff] }
  0xfb   :  { %1360 = vmatpush2.msra.mxu1 %v527_v9  ;;  %1292 = vmatprep.subr.mxu0 %v460_v10  ;;  %v571_v52 = vld [vmem:[%s4135_s1 + $0x10d0] sm:$0xff]  ;;  %v637_v53 = vld [vmem:[%s4135_s1 + $0x12e0] sm:$0xff]  ;;  %v570_v54 = vld [vmem:[%s4135_s1 + $0x10c8] sm:$0xff] }
  0xfc   :  { %1361 = vmatprep.subr.mxu1 %v526_v11  ;;  %1293 = vmatpush2.msra.mxu0 %v459_v12  ;;  %v636_v55 = vld [vmem:[%s4135_s1 + $0x12d8] sm:$0xff]  ;;  %v569_v56 = vld [vmem:[%s4135_s1 + $0x10c0] sm:$0xff]  ;;  %v635_v57 = vld [vmem:[%s4135_s1 + $0x12d0] sm:$0xff] }
  0xfd   :  { %1362 = vmatpush2.msra.mxu1 %v525_v13  ;;  %1294 = vmatprep.subr.mxu0 %v458_v14  ;;  %v568_v58 = vld [vmem:[%s4135_s1 + $0x10b8] sm:$0xff]  ;;  %v634_v59 = vld [vmem:[%s4135_s1 + $0x12c8] sm:$0xff]  ;;  %v567_v60 = vld [vmem:[%s4135_s1 + $0x10b0] sm:$0xff] }
  0xfe   :  { %1363 = vmatprep.subr.mxu1 %v524_v15  ;;  %1295 = vmatpush2.msra.mxu0 %v457_v16  ;;  %v633_v61 = vld [vmem:[%s4135_s1 + $0x12c0] sm:$0xff]  ;;  %v566_v62 = vld [vmem:[%s4135_s1 + $0x10a8] sm:$0xff]  ;;  %v632_v63 = vld [vmem:[%s4135_s1 + $0x12b8] sm:$0xff] }
  0xff   :  { %1364 = vmatpush2.msra.mxu1 %v523_v18  ;;  %1296 = vmatprep.subr.mxu0 %v456_v19  ;;  %v565_v0 = vld [vmem:[%s4135_s1 + $0x10a0] sm:$0xff]  ;;  %v631_v1 = vld [vmem:[%s4135_s1 + $0x12b0] sm:$0xff]  ;;  %v564_v2 = vld [vmem:[%s4135_s1 + $0x1098] sm:$0xff] }
 0x100   :  { %1365 = vmatprep.subr.mxu1 %v522_v20  ;;  %1297 = vmatpush2.msra.mxu0 %v455_v21  ;;  %v630_v3 = vld [vmem:[%s4135_s1 + $0x12a8] sm:$0xff]  ;;  %v563_v4 = vld [vmem:[%s4135_s1 + $0x1090] sm:$0xff]  ;;  %v629_v5 = vld [vmem:[%s4135_s1 + $0x12a0] sm:$0xff] }
 0x101   :  { %1366 = vmatpush2.msra.mxu1 %v521_v22  ;;  %1298 = vmatprep.subr.mxu0 %v454_v23  ;;  %v562_v6 = vld [vmem:[%s4135_s1 + $0x1088] sm:$0xff]  ;;  %v628_v7 = vld [vmem:[%s4135_s1 + $0x1298] sm:$0xff]  ;;  %v561_v8 = vld [vmem:[%s4135_s1 + $0x1080] sm:$0xff] }
 0x102   :  { %1367 = vmatprep.subr.mxu1 %v520_v25  ;;  %1299 = vmatpush2.msra.mxu0 %v453_v26  ;;  %v627_v9 = vld [vmem:[%s4135_s1 + $0x1290] sm:$0xff]  ;;  %v560_v10 = vld [vmem:[%s4135_s1 + $0x1078] sm:$0xff]  ;;  %v626_v11 = vld [vmem:[%s4135_s1 + $0x1288] sm:$0xff] }
 0x103   :  { %1368 = vmatpush2.msra.mxu1 %v519_v28  ;;  %1300 = vmatprep.subr.mxu0 %v452_v29  ;;  %v559_v12 = vld [vmem:[%s4135_s1 + $0x1070] sm:$0xff]  ;;  %v625_v13 = vld [vmem:[%s4135_s1 + $0x1280] sm:$0xff]  ;;  %v558_v14 = vld [vmem:[%s4135_s1 + $0x1068] sm:$0xff] }
 0x104   :  { %1369 = vmatprep.subr.mxu1 %v518_v30  ;;  %1301 = vmatpush2.msra.mxu0 %v451_v31  ;;  %v624_v15 = vld [vmem:[%s4135_s1 + $0x1278] sm:$0xff]  ;;  %v557_v16 = vld [vmem:[%s4135_s1 + $0x1060] sm:$0xff]  ;;  %v623_v17 = vld [vmem:[%s4135_s1 + $0x1270] sm:$0xff] }
 0x105   :  { %1370 = vmatpush2.msra.mxu1 %v517_v32  ;;  %1302 = vmatprep.subr.mxu0 %v450_v33  ;;  %v556_v18 = vld [vmem:[%s4135_s1 + $0x1058] sm:$0xff]  ;;  %v622_v19 = vld [vmem:[%s4135_s1 + $0x1268] sm:$0xff]  ;;  %v555_v20 = vld [vmem:[%s4135_s1 + $0x1050] sm:$0xff] }
 0x106   :  { %1371 = vmatprep.subr.mxu1 %v516_v35  ;;  %1303 = vmatpush2.msra.mxu0 %v449_v36  ;;  %v621_v21 = vld [vmem:[%s4135_s1 + $0x1260] sm:$0xff]  ;;  %v554_v22 = vld [vmem:[%s4135_s1 + $0x1048] sm:$0xff]  ;;  %v620_v23 = vld [vmem:[%s4135_s1 + $0x1258] sm:$0xff] }
 0x107   :  { %1304 = vmatprep.mubr.f32.mxu0 %v765_v37  ;;  %1372 = vmatpush2.msra.mxu1 %v515_v39  ;;  %v553_v24 = vld [vmem:[%s4135_s1 + $0x1040] sm:$0xff]  ;;  %v619_v25 = vld [vmem:[%s4135_s1 + $0x1250] sm:$0xff]  ;;  %v552_v26 = vld [vmem:[%s4135_s1 + $0x1038] sm:$0xff] }
 0x108   :  { %1305 = vmatmul.mubr.f32.vlgmr.msra.gmra.mxu0 %v757_v27  ;;  %1373 = vmatprep.subr.mxu1 %v514_v40  ;;  %v618_v27 = vld [vmem:[%s4135_s1 + $0x1248] sm:$0xff]  ;;  %v551_v28 = vld [vmem:[%s4135_s1 + $0x1030] sm:$0xff]  ;;  %v617_v29 = vld [vmem:[%s4135_s1 + $0x1240] sm:$0xff] }
 0x109   :  { %1382 = vmatprep.subr.mxu0 %v576_v41  ;;  %1374 = vmatpush2.msra.mxu1 %v513_v42  ;;  %v550_v30 = vld [vmem:[%s4135_s1 + $0x1028] sm:$0xff]  ;;  %v616_v31 = vld [vmem:[%s4135_s1 + $0x1238] sm:$0xff]  ;;  %v549_v32 = vld [vmem:[%s4135_s1 + $0x1020] sm:$0xff] }
 0x10a   :  { %1375 = vmatprep.mubr.f32.mxu1 %v766_v43  ;;  %1383 = vmatpush1.msra.mxu0 %v575_v44  ;;  %v615_v33 = vld [vmem:[%s4135_s1 + $0x1230] sm:$0xff]  ;;  %v614_v35 = vld [vmem:[%s4135_s1 + $0x1228] sm:$0xff]  ;;  %v613_v37 = vld [vmem:[%s4135_s1 + $0x1220] sm:$0xff] }
 0x10b   :  { %1376 = vmatmul.mubr.f32.vlgmr.msra.gmra.mxu1 %v764_v34  ;;  %1384 = vmatprep.subr.mxu0 %v574_v45  ;;  %v548_v34 = vld [vmem:[%s4135_s1 + $0x1018] sm:$0xff]  ;;  %v547_v36 = vld [vmem:[%s4135_s1 + $0x1010] sm:$0xff]  ;;  %v546_v39 = vld [vmem:[%s4135_s1 + $0x1008] sm:$0xff] }
 0x10c   :  { %1453 = vmatprep.subr.mxu1 %v640_v46  ;;  %1385 = vmatpush1.msra.mxu0 %v573_v47  ;;  %v612_v40 = vld [vmem:[%s4135_s1 + $0x1218] sm:$0xff]  ;;  %v545_v41 = vld [vmem:[%s4135_s1 + $0x1000] sm:$0xff]  ;;  %v611_v42 = vld [vmem:[%s4135_s1 + $0x1210] sm:$0xff] }
 0x10d   :  { %1454 = vmatpush1.msra.mxu1 %v639_v49  ;;  %1386 = vmatprep.subr.mxu0 %v572_v50  ;;  %v608_v43 = vld [vmem:[%s4135_s1 + $0x11f8] sm:$0xff]  ;;  %v610_v44 = vld [vmem:[%s4135_s1 + $0x1208] sm:$0xff]  ;;  %v607_v45 = vld [vmem:[%s4135_s1 + $0x11f0] sm:$0xff] }
 0x10e   :  { %1455 = vmatprep.subr.mxu1 %v638_v51  ;;  %1387 = vmatpush1.msra.mxu0 %v571_v52  ;;  %v609_v46 = vld [vmem:[%s4135_s1 + $0x1200] sm:$0xff]  ;;  %v606_v47 = vld [vmem:[%s4135_s1 + $0x11e8] sm:$0xff]  ;;  %v672_v49 = vld [vmem:[%s4135_s1 + $0x13f8] sm:$0xff] }
 0x10f   :  { %1456 = vmatpush1.msra.mxu1 %v637_v53  ;;  %1388 = vmatprep.subr.mxu0 %v570_v54  ;;  %v605_v50 = vld [vmem:[%s4135_s1 + $0x11e0] sm:$0xff]  ;;  %v671_v51 = vld [vmem:[%s4135_s1 + $0x13f0] sm:$0xff]  ;;  %v604_v52 = vld [vmem:[%s4135_s1 + $0x11d8] sm:$0xff] }
 0x110   :  { %1457 = vmatprep.subr.mxu1 %v636_v55  ;;  %1389 = vmatpush1.msra.mxu0 %v569_v56  ;;  %v670_v53 = vld [vmem:[%s4135_s1 + $0x13e8] sm:$0xff]  ;;  %v603_v54 = vld [vmem:[%s4135_s1 + $0x11d0] sm:$0xff]  ;;  %v669_v55 = vld [vmem:[%s4135_s1 + $0x13e0] sm:$0xff] }
 0x111   :  { %1458 = vmatpush1.msra.mxu1 %v635_v57  ;;  %1390 = vmatprep.subr.mxu0 %v568_v58  ;;  %v602_v56 = vld [vmem:[%s4135_s1 + $0x11c8] sm:$0xff]  ;;  %v668_v57 = vld [vmem:[%s4135_s1 + $0x13d8] sm:$0xff]  ;;  %v601_v58 = vld [vmem:[%s4135_s1 + $0x11c0] sm:$0xff] }
 0x112   :  { %1459 = vmatprep.subr.mxu1 %v634_v59  ;;  %1391 = vmatpush1.msra.mxu0 %v567_v60  ;;  %v667_v59 = vld [vmem:[%s4135_s1 + $0x13d0] sm:$0xff]  ;;  %v600_v60 = vld [vmem:[%s4135_s1 + $0x11b8] sm:$0xff] }
 0x113   :  { %1460 = vmatpush1.msra.mxu1 %v633_v61  ;;  %1392 = vmatprep.subr.mxu0 %v566_v62  ;;  %v666_v61 = vld [vmem:[%s4135_s1 + $0x13c8] sm:$0xff]  ;;  %v599_v62 = vld [vmem:[%s4135_s1 + $0x11b0] sm:$0xff] }
 0x114   :  { %1461 = vmatprep.subr.mxu1 %v632_v63  ;;  %1393 = vmatpush1.msra.mxu0 %v565_v0  ;;  %v665_v63 = vld [vmem:[%s4135_s1 + $0x13c0] sm:$0xff]  ;;  %v598_v0 = vld [vmem:[%s4135_s1 + $0x11a8] sm:$0xff] }
 0x115   :  { %1462 = vmatpush1.msra.mxu1 %v631_v1  ;;  %1394 = vmatprep.subr.mxu0 %v564_v2  ;;  %v664_v1 = vld [vmem:[%s4135_s1 + $0x13b8] sm:$0xff]  ;;  %v597_v2 = vld [vmem:[%s4135_s1 + $0x11a0] sm:$0xff] }
 0x116   :  { %1463 = vmatprep.subr.mxu1 %v630_v3  ;;  %1395 = vmatpush1.msra.mxu0 %v563_v4  ;;  %v663_v3 = vld [vmem:[%s4135_s1 + $0x13b0] sm:$0xff]  ;;  %v596_v4 = vld [vmem:[%s4135_s1 + $0x1198] sm:$0xff] }
 0x117   :  { %1464 = vmatpush1.msra.mxu1 %v629_v5  ;;  %1396 = vmatprep.subr.mxu0 %v562_v6  ;;  %v662_v5 = vld [vmem:[%s4135_s1 + $0x13a8] sm:$0xff]  ;;  %v595_v6 = vld [vmem:[%s4135_s1 + $0x1190] sm:$0xff] }
 0x118   :  { %1465 = vmatprep.subr.mxu1 %v628_v7  ;;  %1397 = vmatpush1.msra.mxu0 %v561_v8  ;;  %v661_v7 = vld [vmem:[%s4135_s1 + $0x13a0] sm:$0xff]  ;;  %v594_v8 = vld [vmem:[%s4135_s1 + $0x1188] sm:$0xff] }
 0x119   :  { %1466 = vmatpush1.msra.mxu1 %v627_v9  ;;  %1398 = vmatprep.subr.mxu0 %v560_v10  ;;  %v660_v9 = vld [vmem:[%s4135_s1 + $0x1398] sm:$0xff]  ;;  %v593_v10 = vld [vmem:[%s4135_s1 + $0x1180] sm:$0xff] }
 0x11a   :  { %1467 = vmatprep.subr.mxu1 %v626_v11  ;;  %1399 = vmatpush1.msra.mxu0 %v559_v12  ;;  %v659_v11 = vld [vmem:[%s4135_s1 + $0x1390] sm:$0xff]  ;;  %v592_v12 = vld [vmem:[%s4135_s1 + $0x1178] sm:$0xff] }
 0x11b   :  { %1468 = vmatpush1.msra.mxu1 %v625_v13  ;;  %1400 = vmatprep.subr.mxu0 %v558_v14  ;;  %v658_v13 = vld [vmem:[%s4135_s1 + $0x1388] sm:$0xff]  ;;  %v591_v14 = vld [vmem:[%s4135_s1 + $0x1170] sm:$0xff] }
 0x11c   :  { %1469 = vmatprep.subr.mxu1 %v624_v15  ;;  %1401 = vmatpush1.msra.mxu0 %v557_v16  ;;  %v657_v15 = vld [vmem:[%s4135_s1 + $0x1380] sm:$0xff]  ;;  %v590_v16 = vld [vmem:[%s4135_s1 + $0x1168] sm:$0xff] }
 0x11d   :  { %1470 = vmatpush1.msra.mxu1 %v623_v17  ;;  %1402 = vmatprep.subr.mxu0 %v556_v18  ;;  %v656_v17 = vld [vmem:[%s4135_s1 + $0x1378] sm:$0xff]  ;;  %v589_v18 = vld [vmem:[%s4135_s1 + $0x1160] sm:$0xff] }
 0x11e   :  { %1471 = vmatprep.subr.mxu1 %v622_v19  ;;  %1403 = vmatpush1.msra.mxu0 %v555_v20  ;;  %v655_v19 = vld [vmem:[%s4135_s1 + $0x1370] sm:$0xff]  ;;  %v588_v20 = vld [vmem:[%s4135_s1 + $0x1158] sm:$0xff] }
 0x11f   :  { %1472 = vmatpush1.msra.mxu1 %v621_v21  ;;  %1404 = vmatprep.subr.mxu0 %v554_v22  ;;  %v654_v21 = vld [vmem:[%s4135_s1 + $0x1368] sm:$0xff]  ;;  %v587_v22 = vld [vmem:[%s4135_s1 + $0x1150] sm:$0xff] }
 0x120   :  { %1473 = vmatprep.subr.mxu1 %v620_v23  ;;  %1405 = vmatpush1.msra.mxu0 %v553_v24  ;;  %v653_v23 = vld [vmem:[%s4135_s1 + $0x1360] sm:$0xff]  ;;  %v586_v24 = vld [vmem:[%s4135_s1 + $0x1148] sm:$0xff] }
 0x121   :  { %1474 = vmatpush1.msra.mxu1 %v619_v25  ;;  %1406 = vmatprep.subr.mxu0 %v552_v26  ;;  %v652_v25 = vld [vmem:[%s4135_s1 + $0x1358] sm:$0xff]  ;;  %v585_v26 = vld [vmem:[%s4135_s1 + $0x1140] sm:$0xff] }
 0x122   :  { %1475 = vmatprep.subr.mxu1 %v618_v27  ;;  %1407 = vmatpush1.msra.mxu0 %v551_v28  ;;  %v31_v27 = vld [vmem:[%s4134_s0 + $0x20] sm:$0xff]  ;;  %v651_v28 = vld [vmem:[%s4135_s1 + $0x1350] sm:$0xff] }
 0x123   :  { %1476 = vmatpush1.msra.mxu1 %v617_v29  ;;  %1408 = vmatprep.subr.mxu0 %v550_v30  ;;  %v584_v29 = vld [vmem:[%s4135_s1 + $0x1138] sm:$0xff]  ;;  %v650_v30 = vld [vmem:[%s4135_s1 + $0x1348] sm:$0xff] }
 0x124   :  { %1477 = vmatprep.subr.mxu1 %v616_v31  ;;  %1409 = vmatpush1.msra.mxu0 %v549_v32  ;;  %v583_v31 = vld [vmem:[%s4135_s1 + $0x1130] sm:$0xff]  ;;  %v649_v32 = vld [vmem:[%s4135_s1 + $0x1340] sm:$0xff] }
 0x125   :  { %1478 = vmatpush1.msra.mxu1 %v615_v33  ;;  %1410 = vmatprep.subr.mxu0 %v548_v34  ;;  %v582_v33 = vld [vmem:[%s4135_s1 + $0x1128] sm:$0xff]  ;;  %v767_v34 = vcombine.high %v31_v27, %v31_v27 }
 0x126   :  { %1479 = vmatprep.subr.mxu1 %v614_v35  ;;  %1411 = vmatpush1.msra.mxu0 %v547_v36  ;;  %v648_v35 = vld [vmem:[%s4135_s1 + $0x1338] sm:$0xff]  ;;  %v581_v36 = vld [vmem:[%s4135_s1 + $0x1120] sm:$0xff] }
 0x127   :  { %1480 = vmatpush1.msra.mxu1 %v613_v37  ;;  %1412 = vmatprep.subr.mxu0 %v546_v39  ;;  %v774_v37 = vrot.slane %v31_v27, %v2305_v48  ;;  %v647_v39 = vld [vmem:[%s4135_s1 + $0x1330] sm:$0xff]  ;;  %v1614_v27 = vld [vmem:[%s4137_s3 + $0x88] sm:$0xff] }
 0x128   :  { %1481 = vmatprep.subr.mxu1 %v612_v40  ;;  %1413 = vmatpush1.msra.mxu0 %v545_v41  ;;  %v580_v40 = vld [vmem:[%s4135_s1 + $0x1118] sm:$0xff]  ;;  %v646_v41 = vld [vmem:[%s4135_s1 + $0x1328] sm:$0xff] }
 0x129   :  { %1482 = vmatpush1.msra.mxu1 %v611_v42  ;;  %1414 = vmatprep.subr.mxu0 %v608_v43  ;;  %v579_v42 = vld [vmem:[%s4135_s1 + $0x1110] sm:$0xff]  ;;  %v645_v43 = vld [vmem:[%s4135_s1 + $0x1320] sm:$0xff] }
 0x12a   :  { %1483 = vmatprep.subr.mxu1 %v610_v44  ;;  %1415 = vmatpush2.msra.mxu0 %v607_v45  ;;  %v578_v44 = vld [vmem:[%s4135_s1 + $0x1108] sm:$0xff]  ;;  %v781_v45 = vrot.slane %v767_v34, %v2305_v48  ;;  %v1719_v34 = vld [vmem:[%s4139_s5 + $0x60] sm:$0xff] }
 0x12b   :  { %1484 = vmatpush1.msra.mxu1 %v609_v46  ;;  %1416 = vmatprep.subr.mxu0 %v606_v47  ;;  %v644_v46 = vld [vmem:[%s4135_s1 + $0x1318] sm:$0xff]  ;;  %v577_v47 = vld [vmem:[%s4135_s1 + $0x1100] sm:$0xff]  ;;  %v642_v48 = vld [vmem:[%s4135_s1 + $0x1308] sm:$0xff] }
 0x12c   :  { %1485 = vmatprep.subr.mxu1 %v672_v49  ;;  %1417 = vmatpush2.msra.mxu0 %v605_v50  ;;  %v782_v49 = vcombine.high %v774_v37, %v774_v37  ;;  %v643_v50 = vld [vmem:[%s4135_s1 + $0x1310] sm:$0xff] }
 0x12d   :  { %1486 = vmatpush2.msra.mxu1 %v671_v51  ;;  %1418 = vmatprep.subr.mxu0 %v604_v52  ;;  %v680_v51 = vld [vmem:[%s4135_s1 + $0x1438] sm:$0xff]  ;;  %v641_v52 = vld [vmem:[%s4135_s1 + $0x1300] sm:$0xff] }
 0x12e   :  { %1487 = vmatprep.subr.mxu1 %v670_v53  ;;  %1419 = vmatpush2.msra.mxu0 %v603_v54  ;;  %v783_v53 = vcombine.high %v781_v45, %v781_v45  ;;  %v679_v54 = vld [vmem:[%s4135_s1 + $0x1430] sm:$0xff] }
 0x12f   :  { %1488 = vmatpush2.msra.mxu1 %v669_v55  ;;  %1420 = vmatprep.subr.mxu0 %v602_v56  ;;  %v678_v55 = vld [vmem:[%s4135_s1 + $0x1428] sm:$0xff]  ;;  %v677_v56 = vld [vmem:[%s4135_s1 + $0x1420] sm:$0xff] }
 0x130   :  { %1489 = vmatprep.subr.mxu1 %v668_v57  ;;  %1421 = vmatpush2.msra.mxu0 %v601_v58  ;;  %v676_v57 = vld [vmem:[%s4135_s1 + $0x1418] sm:$0xff]  ;;  %v675_v58 = vld [vmem:[%s4135_s1 + $0x1410] sm:$0xff] }
 0x131   :  { %1490 = vmatpush2.msra.mxu1 %v667_v59  ;;  %1422 = vmatprep.subr.mxu0 %v600_v60  ;;  %v674_v59 = vld [vmem:[%s4135_s1 + $0x1408] sm:$0xff]  ;;  %v1938_v60 = vmov 0.0  }
 0x132   :  { %1491 = vmatprep.subr.mxu1 %v666_v61  ;;  %1423 = vmatpush2.msra.mxu0 %v599_v62  ;;  %v1628_v61 = vld [vmem:[%s4137_s3 + $0xf8] sm:$0xff] }
 0x133   :  { %1492 = vmatpush2.msra.mxu1 %v665_v63  ;;  %1424 = vmatprep.subr.mxu0 %v598_v0  ;;  %v1612_v62 = vld [vmem:[%s4137_s3 + $0x78] sm:$0xff]  ;;  %v1627_v63 = vld [vmem:[%s4137_s3 + $0xf0] sm:$0xff]  ;;  %v673_v0 = vld [vmem:[%s4135_s1 + $0x1400] sm:$0xff] }
 0x134   :  { %1493 = vmatprep.subr.mxu1 %v664_v1  ;;  %1425 = vmatpush2.msra.mxu0 %v597_v2  ;;  %v1611_v1 = vld [vmem:[%s4137_s3 + $0x70] sm:$0xff]  ;;  %v1815_v2 = vld.sshfl [vmem:[%s4134_s0 + $0x28] sm:$0x3 pattern:$0x76325410] }
 0x135   :  { %1494 = vmatpush2.msra.mxu1 %v663_v3  ;;  %1426 = vmatprep.subr.mxu0 %v596_v4  ;;  %v1626_v3 = vld [vmem:[%s4137_s3 + $0xe8] sm:$0xff] }
 0x136   :  { %1495 = vmatprep.subr.mxu1 %v662_v5  ;;  %1427 = vmatpush2.msra.mxu0 %v595_v6  ;;  %v1610_v4 = vld [vmem:[%s4137_s3 + $0x68] sm:$0xff]  ;;  %v1625_v5 = vld [vmem:[%s4137_s3 + $0xe0] sm:$0xff] }
 0x137   :  { %1496 = vmatpush2.msra.mxu1 %v661_v7  ;;  %1428 = vmatprep.subr.mxu0 %v594_v8  ;;  %v1609_v6 = vld [vmem:[%s4137_s3 + $0x60] sm:$0xff]  ;;  %v1624_v7 = vld [vmem:[%s4137_s3 + $0xd8] sm:$0xff] }
 0x138   :  { %1497 = vmatprep.subr.mxu1 %v660_v9  ;;  %1429 = vmatpush2.msra.mxu0 %v593_v10  ;;  %v1608_v8 = vld [vmem:[%s4137_s3 + $0x58] sm:$0xff]  ;;  %v1623_v9 = vld [vmem:[%s4137_s3 + $0xd0] sm:$0xff] }
 0x139   :  { %1498 = vmatpush2.msra.mxu1 %v659_v11  ;;  %1430 = vmatprep.subr.mxu0 %v592_v12  ;;  %v1607_v10 = vld [vmem:[%s4137_s3 + $0x50] sm:$0xff]  ;;  %v1622_v11 = vld [vmem:[%s4137_s3 + $0xc8] sm:$0xff] }
 0x13a   :  { %1499 = vmatprep.subr.mxu1 %v658_v13  ;;  %1431 = vmatpush2.msra.mxu0 %v591_v14  ;;  %v1606_v12 = vld [vmem:[%s4137_s3 + $0x48] sm:$0xff]  ;;  %v1621_v13 = vld [vmem:[%s4137_s3 + $0xc0] sm:$0xff] }
 0x13b   :  { %1500 = vmatpush2.msra.mxu1 %v657_v15  ;;  %1432 = vmatprep.subr.mxu0 %v590_v16  ;;  %v1605_v14 = vld [vmem:[%s4137_s3 + $0x40] sm:$0xff]  ;;  %v1620_v15 = vld [vmem:[%s4137_s3 + $0xb8] sm:$0xff] }
 0x13c   :  { %1501 = vmatprep.subr.mxu1 %v656_v17  ;;  %1433 = vmatpush2.msra.mxu0 %v589_v18  ;;  %v1604_v16 = vld [vmem:[%s4137_s3 + $0x38] sm:$0xff]  ;;  %v1619_v17 = vld [vmem:[%s4137_s3 + $0xb0] sm:$0xff] }
 0x13d   :  { %1502 = vmatpush2.msra.mxu1 %v655_v19  ;;  %1434 = vmatprep.subr.mxu0 %v588_v20  ;;  %v1603_v18 = vld [vmem:[%s4137_s3 + $0x30] sm:$0xff]  ;;  %v1618_v19 = vld [vmem:[%s4137_s3 + $0xa8] sm:$0xff] }
 0x13e   :  { %1503 = vmatprep.subr.mxu1 %v654_v21  ;;  %1435 = vmatpush2.msra.mxu0 %v587_v22  ;;  %v1602_v20 = vld [vmem:[%s4137_s3 + $0x28] sm:$0xff]  ;;  %v1617_v21 = vld [vmem:[%s4137_s3 + $0xa0] sm:$0xff] }
 0x13f   :  { %1504 = vmatpush2.msra.mxu1 %v653_v23  ;;  %1436 = vmatprep.subr.mxu0 %v586_v24  ;;  %v1601_v22 = vld [vmem:[%s4137_s3 + $0x20] sm:$0xff]  ;;  %v1616_v23 = vld [vmem:[%s4137_s3 + $0x98] sm:$0xff] }
 0x140   :  { %1505 = vmatprep.subr.mxu1 %v652_v25  ;;  %1437 = vmatpush2.msra.mxu0 %v585_v26  ;;  %v1600_v24 = vld [vmem:[%s4137_s3 + $0x18] sm:$0xff]  ;;  %v1615_v25 = vld [vmem:[%s4137_s3 + $0x90] sm:$0xff] }
 0x141   :  { %1506 = vmatpush2.msra.mxu1 %v651_v28  ;;  %1438 = vmatprep.subr.mxu0 %v584_v29  ;;  %v1599_v26 = vld [vmem:[%s4137_s3 + $0x10] sm:$0xff]  ;;  %v1598_v28 = vld [vmem:[%s4137_s3 + $0x8] sm:$0xff]  ;;  %v1613_v29 = vld [vmem:[%s4137_s3 + $0x80] sm:$0xff] }
 0x142   :  { %1507 = vmatprep.subr.mxu1 %v650_v30  ;;  %1439 = vmatpush2.msra.mxu0 %v583_v31  ;;  %v1597_v30 = vld [vmem:[%s4137_s3] sm:$0xff]  ;;  %v1722_v31 = vld [vmem:[%s4139_s5 + $0x78] sm:$0xff] }
 0x143   :  { %1508 = vmatpush2.msra.mxu1 %v649_v32  ;;  %1440 = vmatprep.subr.mxu0 %v582_v33  ;;  %v1721_v32 = vld [vmem:[%s4139_s5 + $0x70] sm:$0xff]  ;;  %v1720_v33 = vld [vmem:[%s4139_s5 + $0x68] sm:$0xff] }
 0x144   :  { %1509 = vmatprep.subr.mxu1 %v648_v35  ;;  %1441 = vmatpush2.msra.mxu0 %v581_v36  ;;  %v1718_v35 = vld [vmem:[%s4139_s5 + $0x58] sm:$0xff]  ;;  %v1717_v36 = vld [vmem:[%s4139_s5 + $0x50] sm:$0xff] }
 0x145   :  { %1510 = vmatpush2.msra.mxu1 %v647_v39  ;;  %1442 = vmatprep.subr.mxu0 %v580_v40  ;;  %v1715_v39 = vld [vmem:[%s4139_s5 + $0x40] sm:$0xff]  ;;  %v1714_v40 = vld [vmem:[%s4139_s5 + $0x38] sm:$0xff] }
 0x146   :  { %1511 = vmatprep.subr.mxu1 %v646_v41  ;;  %1443 = vmatpush2.msra.mxu0 %v579_v42  ;;  %v1713_v41 = vld [vmem:[%s4139_s5 + $0x30] sm:$0xff]  ;;  %v1712_v42 = vld [vmem:[%s4139_s5 + $0x28] sm:$0xff] }
 0x147   :  { %1512 = vmatpush2.msra.mxu1 %v645_v43  ;;  %1444 = vmatprep.subr.mxu0 %v578_v44  ;;  %v685_v43 = vsub.s32 0, %v2278_v38  ;;  %v681_v44 = vld [vmem:[%s4136_s2] sm:$0x3] }
 0x148   :  { %1513 = vmatprep.subr.mxu1 %v644_v46  ;;  %1445 = vmatpush2.msra.mxu0 %v577_v47  ;;  %v880_v46 = vpop.f32.mrf.mxu0 }
 0x149   :  { %1446 = vmatprep.mubr.f32.mxu0 %v782_v49  ;;  %1514 = vmatpush2.msra.mxu1 %v643_v50  ;;  %v686_v47 = vrot.slane %v681_v44, %v685_v43 }
 0x14a   :  { %1447 = vmatmul.mubr.f32.vlgmr.msra.gmra.mxu0 %v774_v37  ;;  %1515 = vmatprep.subr.mxu1 %v642_v48  ;;  %v1716_v37 = vld [vmem:[%s4139_s5 + $0x48] sm:$0xff]  ;;  %v882_v50 = vpop.f32.mrf.mxu0  ;;  %v951_v48 = vpop.f32.mrf.mxu1 }
 0x14b   :  { %1548 = vmatprep.subr.mxu0 %v680_v51  ;;  %1516 = vmatpush2.msra.mxu1 %v641_v52  ;;  %v881_v51 = vadd.f32 %v880_v46, %v686_v47 }
 0x14c   :  { %1517 = vmatprep.mubr.f32.mxu1 %v783_v53  ;;  %1549 = vmatpush1.msra.mxu0 %v679_v54  ;;  %v1022_v52 = vpop.f32.mrf.mxu0  ;;  %v953_v54 = vpop.f32.mrf.mxu1 }
 0x14d   :  { %1518 = vmatmul.mubr.f32.vlgmr.msra.gmra.mxu1 %v781_v45  ;;  %1550 = vmatprep.subr.mxu0 %v678_v55  ;;  %v689_v45 = vsub.s32 1, %v2278_v38  ;;  %v952_v55 = vadd.f32 %v951_v48, %v881_v51 }
 0x14e   :  { %1551 = vmatpush1.msra.mxu0 %v677_v56  ;;  %1588 = vmatprep.mubr.f32.mxu0 %v1938_v60  ;;  %v1024_v56 = vpop.f32.mrf.mxu0 }
 0x14f   :  { %1552 = vmatprep.subr.mxu0 %v676_v57  ;;  %1819 = vmatprep.subr.mxu1 %v1628_v61  ;;  %v690_v49 = vrot.slane %v681_v44, %v689_v45  ;;  %v1093_v57 = vpop.f32.mrf.mxu1 }
 0x150   :  { %1553 = vmatpush1.msra.mxu0 %v675_v58  ;;  %1820 = vmatpush3.msra.mxu1 %v1612_v62 }
 0x151   :  { %1554 = vmatprep.subr.mxu0 %v674_v59  ;;  %1821 = vmatprep.subr.mxu1 %v1627_v63  ;;  %v883_v53 = vadd.f32 %v882_v50, %v690_v49  ;;  %v1023_v59 = vadd.f32 %v1022_v52, %v952_v55  ;;  %v1095_v63 = vpop.f32.mrf.mxu1 }
 0x152   :  { %1555 = vmatpush1.msra.mxu0 %v673_v0  ;;  %1822 = vmatpush3.msra.mxu1 %v1611_v1 }
 0x153   :  { %1816 = vmatmul.mubr.msk.f32.vlgmr.msra.gmra.mxu0 %vm811_vm0, %v1815_v2  ;;  %1823 = vmatprep.subr.mxu1 %v1626_v3  ;;  %v954_v58 = vadd.f32 %v953_v54, %v883_v53  ;;  %v1094_v0 = vadd.f32 %v1093_v57, %v1023_v59 }
 0x154   :  { %1824 = vmatpush3.msra.mxu1 %v1610_v4  ;;  %1871 = vmatprep.subr.mxu0 %v1938_v60 }
 0x155   :  { %1825 = vmatprep.subr.mxu1 %v1625_v5  ;;  %1872 = vmatpush3.msra.mxu0 %v1722_v31  ;;  %v1025_v62 = vadd.f32 %v1024_v56, %v954_v58  ;;  %v1710_v31 = vld [vmem:[%s4139_s5 + $0x18] sm:$0xff] }
 0x156   :  { %1826 = vmatpush3.msra.mxu1 %v1609_v6  ;;  %1873 = vmatprep.subr.mxu0 %v1938_v60 }
 0x157   :  { %1827 = vmatprep.subr.mxu1 %v1624_v7  ;;  %1874 = vmatpush3.msra.mxu0 %v1721_v32  ;;  %v1096_v2 = vadd.f32 %v1095_v63, %v1025_v62  ;;  %v1709_v32 = vld [vmem:[%s4139_s5 + $0x10] sm:$0xff] }
 0x158   :  { %1828 = vmatpush3.msra.mxu1 %v1608_v8  ;;  %1875 = vmatprep.subr.mxu0 %v1938_v60 }
 0x159   :  { %1829 = vmatprep.subr.mxu1 %v1623_v9  ;;  %1876 = vmatpush3.msra.mxu0 %v1720_v33  ;;  %v1708_v33 = vld [vmem:[%s4139_s5 + $0x8] sm:$0xff] }
 0x15a   :  { %1830 = vmatpush3.msra.mxu1 %v1607_v10  ;;  %1877 = vmatprep.subr.mxu0 %v1938_v60 }
 0x15b   :  { %1831 = vmatprep.subr.mxu1 %v1622_v11  ;;  %1878 = vmatpush3.msra.mxu0 %v1719_v34  ;;  %v1707_v34 = vld [vmem:[%s4139_s5] sm:$0xff] }
 0x15c   :  { %1832 = vmatpush3.msra.mxu1 %v1606_v12  ;;  %1879 = vmatprep.subr.mxu0 %v1938_v60 }
 0x15d   :  { %1833 = vmatprep.subr.mxu1 %v1621_v13  ;;  %1880 = vmatpush3.msra.mxu0 %v1718_v35 }
 0x15e   :  { %1834 = vmatpush3.msra.mxu1 %v1605_v14  ;;  %1881 = vmatprep.subr.mxu0 %v1938_v60 }
 0x15f   :  { %1835 = vmatprep.subr.mxu1 %v1620_v15  ;;  %1882 = vmatpush3.msra.mxu0 %v1717_v36  ;;  %v1817_v36 = vld [vmem:[%s4138_s4] ss:$0 sm:$0xff] }
 0x160   :  { %1836 = vmatpush3.msra.mxu1 %v1604_v16  ;;  %1883 = vmatprep.subr.mxu0 %v1938_v60 }
 0x161   :  { %1837 = vmatprep.subr.mxu1 %v1619_v17  ;;  %1884 = vmatpush3.msra.mxu0 %v1716_v37 }
 0x162   :  { %1838 = vmatpush3.msra.mxu1 %v1603_v18  ;;  %1885 = vmatprep.subr.mxu0 %v1938_v60 }
 0x163   :  { %1839 = vmatprep.subr.mxu1 %v1618_v19  ;;  %1886 = vmatpush3.msra.mxu0 %v1715_v39 }
 0x164   :  { %1840 = vmatpush3.msra.mxu1 %v1602_v20  ;;  %1887 = vmatprep.subr.mxu0 %v1938_v60 }
 0x165   :  { %1841 = vmatprep.subr.mxu1 %v1617_v21  ;;  %1888 = vmatpush3.msra.mxu0 %v1714_v40 }
 0x166   :  { %1842 = vmatpush3.msra.mxu1 %v1601_v22  ;;  %1889 = vmatprep.subr.mxu0 %v1938_v60 }
 0x167   :  { %1843 = vmatprep.subr.mxu1 %v1616_v23  ;;  %1890 = vmatpush3.msra.mxu0 %v1713_v41 }
 0x168   :  { %1844 = vmatpush3.msra.mxu1 %v1600_v24  ;;  %1891 = vmatprep.subr.mxu0 %v1938_v60 }
 0x169   :  { %1845 = vmatprep.subr.mxu1 %v1615_v25  ;;  %1892 = vmatpush3.msra.mxu0 %v1712_v42  ;;  %v1818_v42 = vld [vmem:[%s4140_s6] ss:$0 sm:$0xff] }
 0x16a   :  { %1846 = vmatpush3.msra.mxu1 %v1599_v26  ;;  %1893 = vmatprep.subr.mxu0 %v1938_v60 }
 0x16b   :  { %1847 = vmatprep.subr.mxu1 %v1614_v27  ;;  %1903 = vmatprep.mubr.msk.f32.mxu0 %vm1939_vm1, %v1938_v60 }
 0x16c   :  { %1848 = vmatpush3.msra.mxu1 %v1598_v28 }
 0x16d   :  { %1849 = vmatprep.subr.mxu1 %v1613_v29 }
 0x16e   :  { %1850 = vmatpush3.msra.mxu1 %v1597_v30  ;;  %v1711_v30 = vld [vmem:[%s4139_s5 + $0x20] sm:$0xff]  ;;  %s1807_s5 = sshll.u32 %s1940_s20, 4  ;;  %s1808_s5 = int_to_ptr.vmem [resolvable:$true] %s1807_s5 }
 0x16f   :  { %1894 = vmatpush3.msra.mxu0 %v1711_v30  ;;  %s1915_s21 = scalar_lea.vmem %s1808_s5, 32  ;;  %p1920_p1 = scmp.lt.s32.totalorder %s1808_s5, %s1808_s5 }
 0x170   :  { %1895 = vmatprep.subr.mxu0 %v1938_v60  ;;  %p1916_p0 = scmp.ne.s32.totalorder %s1808_s5, %s1915_s21  ;;  %p1921_p2 = scmp.lt.s32.totalorder %s1915_s21, %s1915_s21 }
 0x171   :  { %1896 = vmatpush3.msra.mxu0 %v1710_v31 }
 0x172   :  { %1897 = vmatprep.subr.mxu0 %v1938_v60  ;;  %p1922_p3 = por %p1921_p2, %p1920_p1 }
 0x173   :  { %1898 = vmatpush3.msra.mxu0 %v1709_v32 }
 0x174   :  { %1899 = vmatprep.subr.mxu0 %v1938_v60  ;;  %p1923_p4 = pnand %p1922_p3, %p1916_p0 }
 0x175   :  { %1900 = vmatpush3.msra.mxu0 %v1708_v33 }
 0x176   :  { %1901 = vmatprep.subr.mxu0 %v1938_v60 }
 0x177   :  { %1902 = vmatpush3.msra.mxu0 %v1707_v34 }
 0x186   :  { %v1164_v61 = vpop.f32.mrf.mxu0 }
 0x187   :  { %v1165_v3 = vadd.f32 %v1164_v61, %v1094_v0 }
 0x188   :  { %v1166_v1 = vpop.f32.mrf.mxu0 }
 0x189   :  { %v1235_v38 = vpop.f32.mrf.mxu1  ;;  %v1167_v5 = vadd.f32 %v1166_v1, %v1096_v2 }
 0x18a   :  { %v1236_v7 = vadd.f32 %v1235_v38, %v1165_v3 }
 0x18b   :  { %v1237_v6 = vpop.f32.mrf.mxu1 }
 0x18c   :  { %v1238_v10 = vadd.f32 %v1237_v6, %v1167_v5 }
 0x1c8   :  { %v1306_v4 = vpop.f32.mrf.mxu0 }
 0x1c9   :  { %v1307_v11 = vadd.f32 %v1306_v4, %v1236_v7 }
 0x1ca   :  { %v1308_v8 = vpop.f32.mrf.mxu0 }
 0x1cb   :  { %v1377_v9 = vpop.f32.mrf.mxu1  ;;  %v1309_v12 = vadd.f32 %v1308_v8, %v1238_v10 }
 0x1cc   :  { %v1378_v15 = vadd.f32 %v1377_v9, %v1307_v11 }
 0x1cd   :  { %v1379_v14 = vpop.f32.mrf.mxu1 }
 0x1ce   :  { %v1380_v18 = vadd.f32 %v1379_v14, %v1309_v12 }
 0x20a   :  { %v1448_v13 = vpop.f32.mrf.mxu0 }
 0x20b   :  { %v1449_v19 = vadd.f32 %v1448_v13, %v1378_v15 }
 0x20c   :  { %v1450_v16 = vpop.f32.mrf.mxu0 }
 0x20d   :  { %v1519_v17 = vpop.f32.mrf.mxu1  ;;  %v1451_v20 = vadd.f32 %v1450_v16, %v1380_v18 }
 0x20e   :  { %v1520_v22 = vadd.f32 %v1519_v17, %v1449_v19 }
 0x20f   :  { %v1521_v21 = vpop.f32.mrf.mxu1 }
 0x210   :  { %v1522_v24 = vadd.f32 %v1521_v21, %v1451_v20 }
 0x213   :  { %v1590_v23 = vpop.f32.mrf.mxu0 }
 0x214   :  { %v1591_v25 = vadd.f32 %v1590_v23, %v1520_v22 }
 0x215   :  { %v1592_v26 = vpop.f32.mrf.mxu0 }
 0x216   :  { %v1593_v27 = vadd.f32 %v1592_v26, %v1522_v24  ;;  %v1595_v29 = vmax.f32 %v1591_v25, 0.0 }
 0x218   :  { %v1596_v28 = vmax.f32 %v1593_v27, 0.0 }
 0x21a   :  { %1700 = vmatprep.mubr.f32.mxu1 %v1596_v28 }
 0x21b   :  { %1701 = vmatmul.mubr.f32.vlgmr.msra.gmra.mxu1 %v1595_v29 }
 0x2db   :  { %v1851_v35 = vpop.f32.mrf.mxu1 }
 0x2dd   :  { %v1852_v37 = vpop.f32.mrf.mxu1 }
 0x2de   :  { %v1853_v39 = vadd.f32 %v1852_v37, %v1851_v35 }
 0x2e0   :  { %v1703_v40 = vadd.f32 %v1853_v39, %v1817_v36 }
 0x2e2   :  { %v1706_v41 = vmax.f32 %v1703_v40, 0.0 }
 0x2e4   :  { %1904 = vmatmul.mubr.f32.vlgmr.msra.gmra.mxu0 %v1706_v41 }
 0x3a4   :  { %v1796_v43 = vpop.f32.mrf.mxu0 }
 0x3a5   :  { %v1797_v44 = vadd.f32 %v1818_v42, %v1796_v43 }
 0x3a6   :  { %v1905_v60 = vpop.f32.mrf.mxu0 }
 0x3a7   :  { %1800 = vst [vmem:[#allocation2] sm:$0x3] %v1797_v44 }
 0x3a8   :  { %1926 = shalt.err (!%p1923_p4)
}
 0x3a9   :  { %1810 = dma.vmem_to_hbm [thread:$0]  %s1808_s5, 32, %s4141_s7, [#allocation3]  }
 0x3aa   :  { %1935 = dma.done.wait [#allocation3], 32  }
 0x3ab   :  { %1936 = vsyncadd [#allocation3], 4294967264 }
 0x3ac   :  { %1814 = vsyncpa [#allocation3], 1 }

</bundles_post_ra>
